<compile_context>
chip_gen: v7x
topology: tpu7x:2x2x1
jax: 0.10.0
libtpu: 0.0.40
codegen_flags: <defaults>
</compile_context>

<pallas_src>
import functools

import numpy as np
import jax
import jax.numpy as jnp
from jax.experimental import pallas as pl
from jax.experimental.pallas import tpu as pltpu


def _round_up(x, m):
    return ((x + m - 1) // m) * m


def _pick_row_block(m, cap=1024):
    """Largest multiple of 8 that divides m and is <= cap (head row tile)."""
    best, d = 8, 8
    while d <= min(m, cap):
        if m % d == 0:
            best = d
        d += 8
    return best


def _lstm_gate_update(gates, c_prev, hidden):
    """gates: (B, 4H) f32, gate order i,f,g,o. Returns (h_new, c_new) f32."""
    # Full-tile transcendentals on the EUP, then lane-aligned static slices
    # (H is a multiple of 128 in the intended configuration).
    sig = jax.nn.sigmoid(gates)
    th = jnp.tanh(gates)
    h = hidden
    i_g = sig[:, 0 * h:1 * h]
    f_g = sig[:, 1 * h:2 * h]
    g_g = th[:, 2 * h:3 * h]
    o_g = sig[:, 3 * h:4 * h]
    c_new = f_g * c_prev + i_g * g_g
    h_new = o_g * jnp.tanh(c_new)
    return h_new, c_new


# ----------------------------------------------------------------------------
# Recurrent kernel: one grid step == (batch block, time block). Hidden/cell
# state is carried across time blocks in VMEM scratch. Emits the MASKED top
# layer hidden; the Linear head is applied afterwards (hoisted).
# ----------------------------------------------------------------------------
def _lstm_recurrent_kernel(num_layers, hidden, time_block,
                           lengths_ref, xemb_ref, *rest):
    L, H, Tt = num_layers, hidden, time_block
    w_refs = rest[: 2 * L]            # [w0hh, b0, w_1, b_1, ..., w_{L-1}, b_{L-1}]
    hout_ref = rest[2 * L]            # (Tt, Bt, H) bf16 output block
    h_scr = rest[2 * L + 1]           # (L, Bt, H) f32
    c_scr = rest[2 * L + 2]           # (L, Bt, H) f32

    t_blk = pl.program_id(1)

    @pl.when(t_blk == 0)
    def _init():
        h_scr[...] = jnp.zeros_like(h_scr)
        c_scr[...] = jnp.zeros_like(c_scr)

    lens = lengths_ref[...]                                   # (Bt, 1) int32
    # Hoist weight/bias loads out of the unrolled time loop (they are VMEM
    # resident thanks to the constant index maps).
    w0hh = w_refs[0][...]                                     # (H, 4H) bf16
    b0 = w_refs[1][...]                                       # (1, 4H) f32
    wl = [w_refs[2 * l][...] for l in range(1, L)]            # (2H, 4H) bf16
    bl = [w_refs[2 * l + 1][...] for l in range(1, L)]        # (1, 4H) f32

    # Pull state into vregs for the whole time block.
    h = [h_scr[l] for l in range(L)]                          # (Bt, H) f32
    c = [c_scr[l] for l in range(L)]

    t0 = t_blk * Tt
    for tl in range(Tt):                                      # static unroll
        mask = (t0 + tl) < lens                               # (Bt, 1) bool
        # Layer 0: input projection precomputed (token-id gather of Wih_0^T).
        x0 = xemb_ref[tl].astype(jnp.float32)                 # (Bt, 4H)
        gates = x0 + b0 + jnp.dot(h[0].astype(jnp.bfloat16), w0hh,
                                  preferred_element_type=jnp.float32)
        h_new, c_new = _lstm_gate_update(gates, c[0], H)
        h[0] = jnp.where(mask, h_new, h[0])                   # inactive rows keep state
        c[0] = jnp.where(mask, c_new, c[0])
        inp = h[0]
        for l in range(1, L):
            # Fused [input; hidden] @ [Wih^T; Whh^T]: one MXU pass per layer.
            z = jnp.concatenate(
                [inp.astype(jnp.bfloat16), h[l].astype(jnp.bfloat16)], axis=-1)
            gates = bl[l - 1] + jnp.dot(z, wl[l - 1],
                                        preferred_element_type=jnp.float32)
            h_new, c_new = _lstm_gate_update(gates, c[l], H)
            h[l] = jnp.where(mask, h_new, h[l])
            c[l] = jnp.where(mask, c_new, c[l])
            inp = h[l]
        # pad_sequence zero-pads finished rows before the Linear head.
        hout_ref[tl] = (inp * mask.astype(jnp.float32)).astype(jnp.bfloat16)

    for l in range(L):
        h_scr[l] = h[l]
        c_scr[l] = c[l]


def _pallas_lstm_hidden(x_emb, lengths_arr, params, num_layers, hidden,
                        time_block, batch_block=None):
    T_pad, B_pad, G = x_emb.shape
    H, Tt = hidden, time_block
    Bt = batch_block if batch_block is not None else B_pad
    assert T_pad % Tt == 0 and B_pad % Bt == 0 and Bt % 8 == 0

    kernel = functools.partial(_lstm_recurrent_kernel, num_layers, H, Tt)

    args = [lengths_arr, x_emb, params["w0hh"], params["b0"]]
    in_specs = [
        pl.BlockSpec((Bt, 1), lambda b, t: (b, 0)),            # lengths
        pl.BlockSpec((Tt, Bt, G), lambda b, t: (t, b, 0)),     # x_emb block
        pl.BlockSpec(params["w0hh"].shape, lambda b, t: (0, 0)),
        pl.BlockSpec(params["b0"].shape, lambda b, t: (0, 0)),
    ]
    for (w_l, b_l) in params["layers"]:
        args += [w_l, b_l]
        in_specs += [
            pl.BlockSpec(w_l.shape, lambda b, t: (0, 0)),
            pl.BlockSpec(b_l.shape, lambda b, t: (0, 0)),
        ]

    return pl.pallas_call(
        kernel,
        out_shape=jax.ShapeDtypeStruct((T_pad, B_pad, H), jnp.bfloat16),
        grid_spec=pltpu.PrefetchScalarGridSpec(
            num_scalar_prefetch=0,
            grid=(B_pad // Bt, T_pad // Tt),
            in_specs=in_specs,
            out_specs=pl.BlockSpec((Tt, Bt, H), lambda b, t: (t, b, 0)),
            scratch_shapes=[
                pltpu.VMEM((num_layers, Bt, H), jnp.float32),   # h state
                pltpu.VMEM((num_layers, Bt, H), jnp.float32),   # c state
            ],
        ),
        compiler_params=pltpu.CompilerParams(
            dimension_semantics=("parallel", "arbitrary"),
            vmem_limit_bytes=32 * 1024 * 1024,
        ),
    )(*args)


# ----------------------------------------------------------------------------
# Hoisted Linear head: one lane-dense (T*B, H) @ (H, Ipad) Pallas matmul.
# ----------------------------------------------------------------------------
def _head_kernel(h_ref, w_ref, b_ref, o_ref):
    o_ref[...] = (
        jnp.dot(h_ref[...], w_ref[...], preferred_element_type=jnp.float32)
        + b_ref[...]
    )


def _pallas_head(hid_flat, w_out, b_out):
    M, H = hid_flat.shape
    _, Ip = w_out.shape
    tm = _pick_row_block(M)
    return pl.pallas_call(
        _head_kernel,
        out_shape=jax.ShapeDtypeStruct((M, Ip), jnp.float32),
        grid_spec=pltpu.PrefetchScalarGridSpec(
            num_scalar_prefetch=0,
            grid=(M // tm,),
            in_specs=[
                pl.BlockSpec((tm, H), lambda i: (i, 0)),
                pl.BlockSpec((H, Ip), lambda i: (0, 0)),
                pl.BlockSpec((1, Ip), lambda i: (0, 0)),
            ],
            out_specs=pl.BlockSpec((tm, Ip), lambda i: (i, 0)),
        ),
        compiler_params=pltpu.CompilerParams(
            dimension_semantics=("parallel",),
            vmem_limit_bytes=32 * 1024 * 1024,
        ),
    )(hid_flat, w_out, b_out)


# ----------------------------------------------------------------------------
# Wrapper matching RNN.forward(inputs): list of (seq_len, input_size) one-hot
# arrays -> (logits (batch, input_size, max_seqln), lengths list)
# ----------------------------------------------------------------------------
def rnn_forward(inputs, params, num_layers, hidden_size,
                time_block=8, batch_block=None):
    H = hidden_size
    inputs = sorted(inputs, key=lambda a: -a.shape[0])        # sort desc by length
    lengths = [int(a.shape[0]) for a in inputs]
    B, T = len(inputs), max(lengths)
    I = params["input_size"]

    Tt = time_block
    T_pad = _round_up(T, Tt)
    B_pad = _round_up(B, 8)

    # Token ids (inputs are one-hot per the module contract); the first-layer
    # input projection x @ Wih_0^T is then an exact row gather of Wih_0^T.
    ids = np.zeros((T_pad, B_pad), np.int32)
    for b, seq in enumerate(inputs):
        ids[: seq.shape[0], b] = np.argmax(np.asarray(seq), axis=-1)
    x_emb = jnp.take(params["w0ih"], jnp.asarray(ids), axis=0)  # (T_pad,B_pad,4H) bf16

    lens = np.zeros((B_pad, 1), np.int32)
    lens[:B, 0] = lengths                                     # padded rows: length 0
    lengths_arr = jnp.asarray(lens)

    hid = _pallas_lstm_hidden(x_emb, lengths_arr, params, num_layers, H,
                              time_block=Tt, batch_block=batch_block)
    w_out, b_out = params["head"]                              # (H, Ipad) bf16, (1, Ipad) f32
    logits_flat = _pallas_head(hid.reshape(T_pad * B_pad, H), w_out, b_out)
    logits = logits_flat.reshape(T_pad, B_pad, -1)[:T, :B, :I]
    return jnp.transpose(logits, (1, 2, 0)), lengths           # (B, I, T) == permute(1,2,0)


# ----------------------------------------------------------------------------
# Deterministic parameter init (PyTorch LSTMCell/Linear-style uniform init),
# packed for the kernel (bf16 MXU operands, f32 biases).
# ----------------------------------------------------------------------------
def init_params(key, input_size, hidden_size, num_layers):
    H, I = hidden_size, input_size
    k = 1.0 / np.sqrt(H)

    def u(rk, shape):
        return jax.random.uniform(rk, shape, jnp.float32, -k, k)

    params = {"input_size": I, "hidden_size": H, "num_layers": num_layers}
    layers = []
    for l in range(num_layers):
        in_l = I if l == 0 else H
        key, k1, k2, k3, k4 = jax.random.split(key, 5)
        w_ih = u(k1, (4 * H, in_l))
        w_hh = u(k2, (4 * H, H))
        b = (u(k3, (4 * H,)) + u(k4, (4 * H,))).reshape(1, 4 * H)   # b_ih + b_hh
        if l == 0:
            params["w0ih"] = w_ih.T.astype(jnp.bfloat16)            # (I, 4H)
            params["w0hh"] = w_hh.T.astype(jnp.bfloat16)            # (H, 4H)
            params["b0"] = b
        else:
            w_cat = jnp.concatenate([w_ih.T, w_hh.T], axis=0)       # (2H, 4H)
            layers.append((w_cat.astype(jnp.bfloat16), b))
    params["layers"] = layers

    key, k1, k2 = jax.random.split(key, 3)
    w_out = u(k1, (I, H))                                           # Linear weight (I, H)
    b_out = u(k2, (I,))
    Ip = _round_up(I, 128)                                          # lane-dense head
    w_out_t = jnp.zeros((H, Ip), jnp.float32).at[:, :I].set(w_out.T)
    b_pad = jnp.zeros((1, Ip), jnp.float32).at[0, :I].set(b_out)
    params["head"] = (w_out_t.astype(jnp.bfloat16), b_pad)
    return params, key


# ----------------------------------------------------------------------------
# Pure-numpy reference (mirrors the PyTorch semantics) using the SAME
# bf16-quantized weights as the kernel, computed in f32.
# ----------------------------------------------------------------------------
def reference_forward(inputs, params, num_layers, hidden_size):
    inputs = sorted(inputs, key=lambda a: -a.shape[0])
    lengths = [int(a.shape[0]) for a in inputs]
    T, B = max(lengths), len(inputs)
    I, H = params["input_size"], hidden_size
    x = np.zeros((T, B, I), np.float32)
    for b, seq in enumerate(inputs):
        x[: seq.shape[0], b, :] = np.asarray(seq, np.float32)
    lens = np.asarray(lengths)[:, None]

    f32 = lambda a: np.asarray(a, np.float32)
    w0ih, w0hh, b0 = f32(params["w0ih"]), f32(params["w0hh"]), f32(params["b0"])
    layer_ws = [(f32(w), f32(b)) for (w, b) in params["layers"]]
    w_out, b_out = f32(params["head"][0]), f32(params["head"][1])

    def sigm(z):
        return 1.0 / (1.0 + np.exp(-z))

    def cell(gates, c_prev):
        i_g, f_g = sigm(gates[:, :H]), sigm(gates[:, H:2 * H])
        g_g, o_g = np.tanh(gates[:, 2 * H:3 * H]), sigm(gates[:, 3 * H:])
        c_new = f_g * c_prev + i_g * g_g
        return np.tanh(c_new) * o_g, c_new

    h = [np.zeros((B, H), np.float32) for _ in range(num_layers)]
    c = [np.zeros((B, H), np.float32) for _ in range(num_layers)]
    outs = []
    for t in range(T):
        mask = (t < lens).astype(np.float32)
        gates = x[t] @ w0ih + h[0] @ w0hh + b0
        h_new, c_new = cell(gates, c[0])
        h[0] = mask * h_new + (1 - mask) * h[0]
        c[0] = mask * c_new + (1 - mask) * c[0]
        inp = h[0]
        for l in range(1, num_layers):
            w_cat, b = layer_ws[l - 1]
            gates = np.concatenate([inp, h[l]], axis=-1) @ w_cat + b
            h_new, c_new = cell(gates, c[l])
            h[l] = mask * h_new + (1 - mask) * h[l]
            c[l] = mask * c_new + (1 - mask) * c[l]
            inp = h[l]
        outs.append(inp * mask)
    y = np.stack(outs, axis=0)                                # (T, B, H)
    logits = (y @ w_out + b_out)[:, :, :I]                    # (T, B, I)
    return np.transpose(logits, (1, 2, 0)), lengths           # (B, I, T)


if __name__ == "__main__":
    INPUT_SIZE = 64       # vocab / num_codes
    HIDDEN = 128          # multiple of 128 -> lane-aligned gates & stores
    NUM_LAYERS = 3
    SEQ_LENS = [5, 8, 3, 6]   # variable lengths; forward sorts them descending

    key = jax.random.PRNGKey(0)
    params, key = init_params(key, INPUT_SIZE, HIDDEN, NUM_LAYERS)

    # Build a list of one-hot sequences, like the PyTorch module expects.
    seqs = []
    for L in SEQ_LENS:
        key, sub = jax.random.split(key)
        toks = jax.random.randint(sub, (L,), 0, INPUT_SIZE)
        seqs.append(jax.nn.one_hot(toks, INPUT_SIZE, dtype=jnp.float32))

    logits, lengths = rnn_forward(seqs, params, NUM_LAYERS, HIDDEN)
    logits = jax.block_until_ready(logits)
    assert logits.shape == (len(SEQ_LENS), INPUT_SIZE, max(SEQ_LENS))
    assert lengths == sorted(SEQ_LENS, reverse=True)

    ref_logits, _ = reference_forward(seqs, params, NUM_LAYERS, HIDDEN)
    np.testing.assert_allclose(np.asarray(logits), ref_logits, atol=2e-2, rtol=2e-2)

    print("KERNEL_OK")
</pallas_src>

<mosaic_0001>
module attributes {stable_mosaic.version = 11 : i64} {
  func.func @_lstm_recurrent_kernel(%arg0: i32, %arg1: i32, %arg2: memref<8x1xi32, #tpu.memory_space<vmem>>, %arg3: memref<8x8x512xbf16, #tpu.memory_space<vmem>>, %arg4: memref<128x512xbf16, #tpu.memory_space<vmem>>, %arg5: memref<1x512xf32, #tpu.memory_space<vmem>>, %arg6: memref<256x512xbf16, #tpu.memory_space<vmem>>, %arg7: memref<1x512xf32, #tpu.memory_space<vmem>>, %arg8: memref<256x512xbf16, #tpu.memory_space<vmem>>, %arg9: memref<1x512xf32, #tpu.memory_space<vmem>>, %arg10: memref<8x8x128xbf16, #tpu.memory_space<vmem>>, %arg11: memref<3x8x128xf32, #tpu.memory_space<vmem>>, %arg12: memref<3x8x128xf32, #tpu.memory_space<vmem>>) attributes {dimension_semantics = [#tpu.dimension_semantics<parallel>, #tpu.dimension_semantics<arbitrary>], iteration_bounds = array<i64: 1, 1>, scalar_prefetch = 0 : i64, scratch_operands = 2 : i64, tpu.core_type = #tpu.core_type<tc>, window_params = [{transform_indices = @transform_0, window_bounds = array<i64: 8, 1>}, {transform_indices = @transform_1, window_bounds = array<i64: 8, 8, 512>}, {pipeline_mode = #tpu.pipeline_mode<synchronous>, transform_indices = @transform_2, window_bounds = array<i64: 128, 512>}, {pipeline_mode = #tpu.pipeline_mode<synchronous>, transform_indices = @transform_3, window_bounds = array<i64: 1, 512>}, {pipeline_mode = #tpu.pipeline_mode<synchronous>, transform_indices = @transform_4, window_bounds = array<i64: 256, 512>}, {pipeline_mode = #tpu.pipeline_mode<synchronous>, transform_indices = @transform_5, window_bounds = array<i64: 1, 512>}, {pipeline_mode = #tpu.pipeline_mode<synchronous>, transform_indices = @transform_6, window_bounds = array<i64: 256, 512>}, {pipeline_mode = #tpu.pipeline_mode<synchronous>, transform_indices = @transform_7, window_bounds = array<i64: 1, 512>}, {transform_indices = @transform_8, window_bounds = array<i64: 8, 8, 128>}]} {
    %c0_i32 = arith.constant 0 : i32
    %0 = arith.cmpi eq, %arg1, %c0_i32 : i32
    %1 = arith.extui %0 : i1 to i32
    %c0_i32_0 = arith.constant 0 : i32
    %2 = arith.cmpi ne, %1, %c0_i32_0 : i32
    scf.if %2 {
      %cst_139 = arith.constant 0.000000e+00 : f32
      %793 = vector.broadcast %cst_139 : f32 to vector<3x8x128xf32>
      %c0_140 = arith.constant 0 : index
      %c0_141 = arith.constant 0 : index
      %c0_142 = arith.constant 0 : index
      %794 = vector.load %arg11[%c0_140, %c0_141, %c0_142] : memref<3x8x128xf32, #tpu.memory_space<vmem>>, vector<3x8x128xf32>
      tpu.vector_store %arg11[%c0_140, %c0_141, %c0_142], %793 {strides = array<i32>} : memref<3x8x128xf32, #tpu.memory_space<vmem>>, vector<3x8x128xf32>,
      %cst_143 = arith.constant 0.000000e+00 : f32
      %795 = vector.broadcast %cst_143 : f32 to vector<3x8x128xf32>
      %c0_144 = arith.constant 0 : index
      %c0_145 = arith.constant 0 : index
      %c0_146 = arith.constant 0 : index
      %796 = vector.load %arg12[%c0_144, %c0_145, %c0_146] : memref<3x8x128xf32, #tpu.memory_space<vmem>>, vector<3x8x128xf32>
      tpu.vector_store %arg12[%c0_144, %c0_145, %c0_146], %795 {strides = array<i32>} : memref<3x8x128xf32, #tpu.memory_space<vmem>>, vector<3x8x128xf32>,
    } else {
    }
    %c0 = arith.constant 0 : index
    %c0_1 = arith.constant 0 : index
    %3 = vector.load %arg2[%c0, %c0_1] : memref<8x1xi32, #tpu.memory_space<vmem>>, vector<8x1xi32>
    %c0_2 = arith.constant 0 : index
    %c0_3 = arith.constant 0 : index
    %4 = vector.load %arg4[%c0_2, %c0_3] : memref<128x512xbf16, #tpu.memory_space<vmem>>, vector<128x512xbf16>
    %c0_4 = arith.constant 0 : index
    %c0_5 = arith.constant 0 : index
    %5 = vector.load %arg5[%c0_4, %c0_5] : memref<1x512xf32, #tpu.memory_space<vmem>>, vector<1x512xf32>
    %c0_6 = arith.constant 0 : index
    %c0_7 = arith.constant 0 : index
    %6 = vector.load %arg6[%c0_6, %c0_7] : memref<256x512xbf16, #tpu.memory_space<vmem>>, vector<256x512xbf16>
    %c0_8 = arith.constant 0 : index
    %c0_9 = arith.constant 0 : index
    %7 = vector.load %arg8[%c0_8, %c0_9] : memref<256x512xbf16, #tpu.memory_space<vmem>>, vector<256x512xbf16>
    %c0_10 = arith.constant 0 : index
    %c0_11 = arith.constant 0 : index
    %8 = vector.load %arg7[%c0_10, %c0_11] : memref<1x512xf32, #tpu.memory_space<vmem>>, vector<1x512xf32>
    %c0_12 = arith.constant 0 : index
    %c0_13 = arith.constant 0 : index
    %9 = vector.load %arg9[%c0_12, %c0_13] : memref<1x512xf32, #tpu.memory_space<vmem>>, vector<1x512xf32>
    %c0_14 = arith.constant 0 : index
    %c0_15 = arith.constant 0 : index
    %c0_16 = arith.constant 0 : index
    %10 = vector.load %arg11[%c0_14, %c0_15, %c0_16] : memref<3x8x128xf32, #tpu.memory_space<vmem>>, vector<1x8x128xf32>
    %11 = vector.shape_cast %10 : vector<1x8x128xf32> to vector<8x128xf32>
    %c1 = arith.constant 1 : index
    %c0_17 = arith.constant 0 : index
    %c0_18 = arith.constant 0 : index
    %12 = vector.load %arg11[%c1, %c0_17, %c0_18] : memref<3x8x128xf32, #tpu.memory_space<vmem>>, vector<1x8x128xf32>
    %13 = vector.shape_cast %12 : vector<1x8x128xf32> to vector<8x128xf32>
    %c2 = arith.constant 2 : index
    %c0_19 = arith.constant 0 : index
    %c0_20 = arith.constant 0 : index
    %14 = vector.load %arg11[%c2, %c0_19, %c0_20] : memref<3x8x128xf32, #tpu.memory_space<vmem>>, vector<1x8x128xf32>
    %15 = vector.shape_cast %14 : vector<1x8x128xf32> to vector<8x128xf32>
    %c0_21 = arith.constant 0 : index
    %c0_22 = arith.constant 0 : index
    %c0_23 = arith.constant 0 : index
    %16 = vector.load %arg12[%c0_21, %c0_22, %c0_23] : memref<3x8x128xf32, #tpu.memory_space<vmem>>, vector<1x8x128xf32>
    %17 = vector.shape_cast %16 : vector<1x8x128xf32> to vector<8x128xf32>
    %c1_24 = arith.constant 1 : index
    %c0_25 = arith.constant 0 : index
    %c0_26 = arith.constant 0 : index
    %18 = vector.load %arg12[%c1_24, %c0_25, %c0_26] : memref<3x8x128xf32, #tpu.memory_space<vmem>>, vector<1x8x128xf32>
    %19 = vector.shape_cast %18 : vector<1x8x128xf32> to vector<8x128xf32>
    %c2_27 = arith.constant 2 : index
    %c0_28 = arith.constant 0 : index
    %c0_29 = arith.constant 0 : index
    %20 = vector.load %arg12[%c2_27, %c0_28, %c0_29] : memref<3x8x128xf32, #tpu.memory_space<vmem>>, vector<1x8x128xf32>
    %21 = vector.shape_cast %20 : vector<1x8x128xf32> to vector<8x128xf32>
    %c8_i32 = arith.constant 8 : i32
    %22 = arith.muli %arg1, %c8_i32 : i32
    %c0_i32_30 = arith.constant 0 : i32
    %23 = arith.addi %22, %c0_i32_30 : i32
    %24 = vector.broadcast %23 : i32 to vector<8x1xi32>
    %25 = arith.cmpi slt, %24, %3 : vector<8x1xi32>
    %c0_31 = arith.constant 0 : index
    %c0_32 = arith.constant 0 : index
    %c0_33 = arith.constant 0 : index
    %26 = vector.load %arg3[%c0_31, %c0_32, %c0_33] : memref<8x8x512xbf16, #tpu.memory_space<vmem>>, vector<1x8x512xbf16>
    %27 = vector.shape_cast %26 : vector<1x8x512xbf16> to vector<8x512xbf16>
    %28 = arith.extf %27 : vector<8x512xbf16> to vector<8x512xf32>
    %29 = vector.broadcast %5 : vector<1x512xf32> to vector<8x512xf32>
    %30 = arith.addf %28, %29 : vector<8x512xf32>
    %31 = arith.truncf %11 : vector<8x128xf32> to vector<8x128xbf16>
    %cst = arith.constant dense<0.000000e+00> : vector<8x512xf32>
    %32 = tpu.matmul %31, %4, %cst {dimension_numbers = #tpu.dot_dimension_numbers<[1], [0], [0], [1], [0, 0, 1, 1], [], []>} : vector<8x128xbf16>, vector<128x512xbf16>, vector<8x512xf32> -> vector<8x512xf32>
    %33 = arith.addf %30, %32 : vector<8x512xf32>
    %34 = arith.negf %33 : vector<8x512xf32>
    %35 = math.exp %34 : vector<8x512xf32>
    %cst_34 = arith.constant 1.000000e+00 : f32
    %36 = vector.broadcast %cst_34 : f32 to vector<8x512xf32>
    %37 = arith.addf %36, %35 : vector<8x512xf32>
    %38 = arith.divf %36, %37 : vector<8x512xf32>
    %39 = math.tanh %33 : vector<8x512xf32>
    %40 = vector.extract_strided_slice %38 {offsets = [0, 0], sizes = [8, 128], strides = [1, 1]} : vector<8x512xf32> to vector<8x128xf32>
    %41 = vector.extract_strided_slice %38 {offsets = [0, 128], sizes = [8, 128], strides = [1, 1]} : vector<8x512xf32> to vector<8x128xf32>
    %42 = vector.extract_strided_slice %39 {offsets = [0, 256], sizes = [8, 128], strides = [1, 1]} : vector<8x512xf32> to vector<8x128xf32>
    %43 = vector.extract_strided_slice %38 {offsets = [0, 384], sizes = [8, 128], strides = [1, 1]} : vector<8x512xf32> to vector<8x128xf32>
    %44 = arith.mulf %41, %17 : vector<8x128xf32>
    %45 = arith.mulf %40, %42 : vector<8x128xf32>
    %46 = arith.addf %44, %45 : vector<8x128xf32>
    %47 = math.tanh %46 : vector<8x128xf32>
    %48 = arith.mulf %43, %47 : vector<8x128xf32>
    %49 = vector.shape_cast %25 : vector<8x1xi1> to vector<8x1xi1>
    %50 = vector.broadcast %49 : vector<8x1xi1> to vector<8x128xi1>
    %51 = arith.select %50, %48, %11 : vector<8x128xi1>, vector<8x128xf32>
    %52 = vector.shape_cast %25 : vector<8x1xi1> to vector<8x1xi1>
    %53 = vector.broadcast %52 : vector<8x1xi1> to vector<8x128xi1>
    %54 = arith.select %53, %46, %17 : vector<8x128xi1>, vector<8x128xf32>
    %55 = arith.truncf %51 : vector<8x128xf32> to vector<8x128xbf16>
    %56 = arith.truncf %13 : vector<8x128xf32> to vector<8x128xbf16>
    %57 = tpu.concatenate %55, %56 in 1 : vector<8x128xbf16>, vector<8x128xbf16> -> vector<8x256xbf16>
    %cst_35 = arith.constant dense<0.000000e+00> : vector<8x512xf32>
    %58 = tpu.matmul %57, %6, %cst_35 {dimension_numbers = #tpu.dot_dimension_numbers<[1], [0], [0], [1], [0, 0, 1, 1], [], []>} : vector<8x256xbf16>, vector<256x512xbf16>, vector<8x512xf32> -> vector<8x512xf32>
    %59 = vector.broadcast %8 : vector<1x512xf32> to vector<8x512xf32>
    %60 = arith.addf %59, %58 : vector<8x512xf32>
    %61 = arith.negf %60 : vector<8x512xf32>
    %62 = math.exp %61 : vector<8x512xf32>
    %cst_36 = arith.constant 1.000000e+00 : f32
    %63 = vector.broadcast %cst_36 : f32 to vector<8x512xf32>
    %64 = arith.addf %63, %62 : vector<8x512xf32>
    %65 = arith.divf %63, %64 : vector<8x512xf32>
    %66 = math.tanh %60 : vector<8x512xf32>
    %67 = vector.extract_strided_slice %65 {offsets = [0, 0], sizes = [8, 128], strides = [1, 1]} : vector<8x512xf32> to vector<8x128xf32>
    %68 = vector.extract_strided_slice %65 {offsets = [0, 128], sizes = [8, 128], strides = [1, 1]} : vector<8x512xf32> to vector<8x128xf32>
    %69 = vector.extract_strided_slice %66 {offsets = [0, 256], sizes = [8, 128], strides = [1, 1]} : vector<8x512xf32> to vector<8x128xf32>
    %70 = vector.extract_strided_slice %65 {offsets = [0, 384], sizes = [8, 128], strides = [1, 1]} : vector<8x512xf32> to vector<8x128xf32>
    %71 = arith.mulf %68, %19 : vector<8x128xf32>
    %72 = arith.mulf %67, %69 : vector<8x128xf32>
    %73 = arith.addf %71, %72 : vector<8x128xf32>
    %74 = math.tanh %73 : vector<8x128xf32>
    %75 = arith.mulf %70, %74 : vector<8x128xf32>
    %76 = vector.shape_cast %25 : vector<8x1xi1> to vector<8x1xi1>
    %77 = vector.broadcast %76 : vector<8x1xi1> to vector<8x128xi1>
    %78 = arith.select %77, %75, %13 : vector<8x128xi1>, vector<8x128xf32>
    %79 = vector.shape_cast %25 : vector<8x1xi1> to vector<8x1xi1>
    %80 = vector.broadcast %79 : vector<8x1xi1> to vector<8x128xi1>
    %81 = arith.select %80, %73, %19 : vector<8x128xi1>, vector<8x128xf32>
    %82 = arith.truncf %78 : vector<8x128xf32> to vector<8x128xbf16>
    %83 = arith.truncf %15 : vector<8x128xf32> to vector<8x128xbf16>
    %84 = tpu.concatenate %82, %83 in 1 : vector<8x128xbf16>, vector<8x128xbf16> -> vector<8x256xbf16>
    %cst_37 = arith.constant dense<0.000000e+00> : vector<8x512xf32>
    %85 = tpu.matmul %84, %7, %cst_37 {dimension_numbers = #tpu.dot_dimension_numbers<[1], [0], [0], [1], [0, 0, 1, 1], [], []>} : vector<8x256xbf16>, vector<256x512xbf16>, vector<8x512xf32> -> vector<8x512xf32>
    %86 = vector.broadcast %9 : vector<1x512xf32> to vector<8x512xf32>
    %87 = arith.addf %86, %85 : vector<8x512xf32>
    %88 = arith.negf %87 : vector<8x512xf32>
    %89 = math.exp %88 : vector<8x512xf32>
    %cst_38 = arith.constant 1.000000e+00 : f32
    %90 = vector.broadcast %cst_38 : f32 to vector<8x512xf32>
    %91 = arith.addf %90, %89 : vector<8x512xf32>
    %92 = arith.divf %90, %91 : vector<8x512xf32>
    %93 = math.tanh %87 : vector<8x512xf32>
    %94 = vector.extract_strided_slice %92 {offsets = [0, 0], sizes = [8, 128], strides = [1, 1]} : vector<8x512xf32> to vector<8x128xf32>
    %95 = vector.extract_strided_slice %92 {offsets = [0, 128], sizes = [8, 128], strides = [1, 1]} : vector<8x512xf32> to vector<8x128xf32>
    %96 = vector.extract_strided_slice %93 {offsets = [0, 256], sizes = [8, 128], strides = [1, 1]} : vector<8x512xf32> to vector<8x128xf32>
    %97 = vector.extract_strided_slice %92 {offsets = [0, 384], sizes = [8, 128], strides = [1, 1]} : vector<8x512xf32> to vector<8x128xf32>
    %98 = arith.mulf %95, %21 : vector<8x128xf32>
    %99 = arith.mulf %94, %96 : vector<8x128xf32>
    %100 = arith.addf %98, %99 : vector<8x128xf32>
    %101 = math.tanh %100 : vector<8x128xf32>
    %102 = arith.mulf %97, %101 : vector<8x128xf32>
    %103 = vector.shape_cast %25 : vector<8x1xi1> to vector<8x1xi1>
    %104 = vector.broadcast %103 : vector<8x1xi1> to vector<8x128xi1>
    %105 = arith.select %104, %102, %15 : vector<8x128xi1>, vector<8x128xf32>
    %106 = vector.shape_cast %25 : vector<8x1xi1> to vector<8x1xi1>
    %107 = vector.broadcast %106 : vector<8x1xi1> to vector<8x128xi1>
    %108 = arith.select %107, %100, %21 : vector<8x128xi1>, vector<8x128xf32>
    %109 = arith.extui %25 : vector<8x1xi1> to vector<8x1xi32>
    %110 = arith.sitofp %109 : vector<8x1xi32> to vector<8x1xf32>
    %111 = vector.broadcast %110 : vector<8x1xf32> to vector<8x128xf32>
    %112 = arith.mulf %105, %111 : vector<8x128xf32>
    %113 = arith.truncf %112 : vector<8x128xf32> to vector<8x128xbf16>
    %c0_39 = arith.constant 0 : index
    %c0_40 = arith.constant 0 : index
    %c0_41 = arith.constant 0 : index
    %114 = vector.load %arg10[%c0_39, %c0_40, %c0_41] : memref<8x8x128xbf16, #tpu.memory_space<vmem>>, vector<1x8x128xbf16>
    %115 = vector.shape_cast %114 : vector<1x8x128xbf16> to vector<8x128xbf16>
    %116 = vector.shape_cast %113 : vector<8x128xbf16> to vector<1x8x128xbf16>
    tpu.vector_store %arg10[%c0_39, %c0_40, %c0_41], %116 {strides = array<i32>} : memref<8x8x128xbf16, #tpu.memory_space<vmem>>, vector<1x8x128xbf16>,
    %c1_i32 = arith.constant 1 : i32
    %117 = arith.addi %22, %c1_i32 : i32
    %118 = vector.broadcast %117 : i32 to vector<8x1xi32>
    %119 = arith.cmpi slt, %118, %3 : vector<8x1xi32>
    %c1_42 = arith.constant 1 : index
    %c0_43 = arith.constant 0 : index
    %c0_44 = arith.constant 0 : index
    %120 = vector.load %arg3[%c1_42, %c0_43, %c0_44] : memref<8x8x512xbf16, #tpu.memory_space<vmem>>, vector<1x8x512xbf16>
    %121 = vector.shape_cast %120 : vector<1x8x512xbf16> to vector<8x512xbf16>
    %122 = arith.extf %121 : vector<8x512xbf16> to vector<8x512xf32>
    %123 = vector.broadcast %5 : vector<1x512xf32> to vector<8x512xf32>
    %124 = arith.addf %122, %123 : vector<8x512xf32>
    %125 = arith.truncf %51 : vector<8x128xf32> to vector<8x128xbf16>
    %cst_45 = arith.constant dense<0.000000e+00> : vector<8x512xf32>
    %126 = tpu.matmul %125, %4, %cst_45 {dimension_numbers = #tpu.dot_dimension_numbers<[1], [0], [0], [1], [0, 0, 1, 1], [], []>} : vector<8x128xbf16>, vector<128x512xbf16>, vector<8x512xf32> -> vector<8x512xf32>
    %127 = arith.addf %124, %126 : vector<8x512xf32>
    %128 = arith.negf %127 : vector<8x512xf32>
    %129 = math.exp %128 : vector<8x512xf32>
    %cst_46 = arith.constant 1.000000e+00 : f32
    %130 = vector.broadcast %cst_46 : f32 to vector<8x512xf32>
    %131 = arith.addf %130, %129 : vector<8x512xf32>
    %132 = arith.divf %130, %131 : vector<8x512xf32>
    %133 = math.tanh %127 : vector<8x512xf32>
    %134 = vector.extract_strided_slice %132 {offsets = [0, 0], sizes = [8, 128], strides = [1, 1]} : vector<8x512xf32> to vector<8x128xf32>
    %135 = vector.extract_strided_slice %132 {offsets = [0, 128], sizes = [8, 128], strides = [1, 1]} : vector<8x512xf32> to vector<8x128xf32>
    %136 = vector.extract_strided_slice %133 {offsets = [0, 256], sizes = [8, 128], strides = [1, 1]} : vector<8x512xf32> to vector<8x128xf32>
    %137 = vector.extract_strided_slice %132 {offsets = [0, 384], sizes = [8, 128], strides = [1, 1]} : vector<8x512xf32> to vector<8x128xf32>
    %138 = arith.mulf %135, %54 : vector<8x128xf32>
    %139 = arith.mulf %134, %136 : vector<8x128xf32>
    %140 = arith.addf %138, %139 : vector<8x128xf32>
    %141 = math.tanh %140 : vector<8x128xf32>
    %142 = arith.mulf %137, %141 : vector<8x128xf32>
    %143 = vector.shape_cast %119 : vector<8x1xi1> to vector<8x1xi1>
    %144 = vector.broadcast %143 : vector<8x1xi1> to vector<8x128xi1>
    %145 = arith.select %144, %142, %51 : vector<8x128xi1>, vector<8x128xf32>
    %146 = vector.shape_cast %119 : vector<8x1xi1> to vector<8x1xi1>
    %147 = vector.broadcast %146 : vector<8x1xi1> to vector<8x128xi1>
    %148 = arith.select %147, %140, %54 : vector<8x128xi1>, vector<8x128xf32>
    %149 = arith.truncf %145 : vector<8x128xf32> to vector<8x128xbf16>
    %150 = arith.truncf %78 : vector<8x128xf32> to vector<8x128xbf16>
    %151 = tpu.concatenate %149, %150 in 1 : vector<8x128xbf16>, vector<8x128xbf16> -> vector<8x256xbf16>
    %cst_47 = arith.constant dense<0.000000e+00> : vector<8x512xf32>
    %152 = tpu.matmul %151, %6, %cst_47 {dimension_numbers = #tpu.dot_dimension_numbers<[1], [0], [0], [1], [0, 0, 1, 1], [], []>} : vector<8x256xbf16>, vector<256x512xbf16>, vector<8x512xf32> -> vector<8x512xf32>
    %153 = vector.broadcast %8 : vector<1x512xf32> to vector<8x512xf32>
    %154 = arith.addf %153, %152 : vector<8x512xf32>
    %155 = arith.negf %154 : vector<8x512xf32>
    %156 = math.exp %155 : vector<8x512xf32>
    %cst_48 = arith.constant 1.000000e+00 : f32
    %157 = vector.broadcast %cst_48 : f32 to vector<8x512xf32>
    %158 = arith.addf %157, %156 : vector<8x512xf32>
    %159 = arith.divf %157, %158 : vector<8x512xf32>
    %160 = math.tanh %154 : vector<8x512xf32>
    %161 = vector.extract_strided_slice %159 {offsets = [0, 0], sizes = [8, 128], strides = [1, 1]} : vector<8x512xf32> to vector<8x128xf32>
    %162 = vector.extract_strided_slice %159 {offsets = [0, 128], sizes = [8, 128], strides = [1, 1]} : vector<8x512xf32> to vector<8x128xf32>
    %163 = vector.extract_strided_slice %160 {offsets = [0, 256], sizes = [8, 128], strides = [1, 1]} : vector<8x512xf32> to vector<8x128xf32>
    %164 = vector.extract_strided_slice %159 {offsets = [0, 384], sizes = [8, 128], strides = [1, 1]} : vector<8x512xf32> to vector<8x128xf32>
    %165 = arith.mulf %162, %81 : vector<8x128xf32>
    %166 = arith.mulf %161, %163 : vector<8x128xf32>
    %167 = arith.addf %165, %166 : vector<8x128xf32>
    %168 = math.tanh %167 : vector<8x128xf32>
    %169 = arith.mulf %164, %168 : vector<8x128xf32>
    %170 = vector.shape_cast %119 : vector<8x1xi1> to vector<8x1xi1>
    %171 = vector.broadcast %170 : vector<8x1xi1> to vector<8x128xi1>
    %172 = arith.select %171, %169, %78 : vector<8x128xi1>, vector<8x128xf32>
    %173 = vector.shape_cast %119 : vector<8x1xi1> to vector<8x1xi1>
    %174 = vector.broadcast %173 : vector<8x1xi1> to vector<8x128xi1>
    %175 = arith.select %174, %167, %81 : vector<8x128xi1>, vector<8x128xf32>
    %176 = arith.truncf %172 : vector<8x128xf32> to vector<8x128xbf16>
    %177 = arith.truncf %105 : vector<8x128xf32> to vector<8x128xbf16>
    %178 = tpu.concatenate %176, %177 in 1 : vector<8x128xbf16>, vector<8x128xbf16> -> vector<8x256xbf16>
    %cst_49 = arith.constant dense<0.000000e+00> : vector<8x512xf32>
    %179 = tpu.matmul %178, %7, %cst_49 {dimension_numbers = #tpu.dot_dimension_numbers<[1], [0], [0], [1], [0, 0, 1, 1], [], []>} : vector<8x256xbf16>, vector<256x512xbf16>, vector<8x512xf32> -> vector<8x512xf32>
    %180 = vector.broadcast %9 : vector<1x512xf32> to vector<8x512xf32>
    %181 = arith.addf %180, %179 : vector<8x512xf32>
    %182 = arith.negf %181 : vector<8x512xf32>
    %183 = math.exp %182 : vector<8x512xf32>
    %cst_50 = arith.constant 1.000000e+00 : f32
    %184 = vector.broadcast %cst_50 : f32 to vector<8x512xf32>
    %185 = arith.addf %184, %183 : vector<8x512xf32>
    %186 = arith.divf %184, %185 : vector<8x512xf32>
    %187 = math.tanh %181 : vector<8x512xf32>
    %188 = vector.extract_strided_slice %186 {offsets = [0, 0], sizes = [8, 128], strides = [1, 1]} : vector<8x512xf32> to vector<8x128xf32>
    %189 = vector.extract_strided_slice %186 {offsets = [0, 128], sizes = [8, 128], strides = [1, 1]} : vector<8x512xf32> to vector<8x128xf32>
    %190 = vector.extract_strided_slice %187 {offsets = [0, 256], sizes = [8, 128], strides = [1, 1]} : vector<8x512xf32> to vector<8x128xf32>
    %191 = vector.extract_strided_slice %186 {offsets = [0, 384], sizes = [8, 128], strides = [1, 1]} : vector<8x512xf32> to vector<8x128xf32>
    %192 = arith.mulf %189, %108 : vector<8x128xf32>
    %193 = arith.mulf %188, %190 : vector<8x128xf32>
    %194 = arith.addf %192, %193 : vector<8x128xf32>
    %195 = math.tanh %194 : vector<8x128xf32>
    %196 = arith.mulf %191, %195 : vector<8x128xf32>
    %197 = vector.shape_cast %119 : vector<8x1xi1> to vector<8x1xi1>
    %198 = vector.broadcast %197 : vector<8x1xi1> to vector<8x128xi1>
    %199 = arith.select %198, %196, %105 : vector<8x128xi1>, vector<8x128xf32>
    %200 = vector.shape_cast %119 : vector<8x1xi1> to vector<8x1xi1>
    %201 = vector.broadcast %200 : vector<8x1xi1> to vector<8x128xi1>
    %202 = arith.select %201, %194, %108 : vector<8x128xi1>, vector<8x128xf32>
    %203 = arith.extui %119 : vector<8x1xi1> to vector<8x1xi32>
    %204 = arith.sitofp %203 : vector<8x1xi32> to vector<8x1xf32>
    %205 = vector.broadcast %204 : vector<8x1xf32> to vector<8x128xf32>
    %206 = arith.mulf %199, %205 : vector<8x128xf32>
    %207 = arith.truncf %206 : vector<8x128xf32> to vector<8x128xbf16>
    %c1_51 = arith.constant 1 : index
    %c0_52 = arith.constant 0 : index
    %c0_53 = arith.constant 0 : index
    %208 = vector.load %arg10[%c1_51, %c0_52, %c0_53] : memref<8x8x128xbf16, #tpu.memory_space<vmem>>, vector<1x8x128xbf16>
    %209 = vector.shape_cast %208 : vector<1x8x128xbf16> to vector<8x128xbf16>
    %210 = vector.shape_cast %207 : vector<8x128xbf16> to vector<1x8x128xbf16>
    tpu.vector_store %arg10[%c1_51, %c0_52, %c0_53], %210 {strides = array<i32>} : memref<8x8x128xbf16, #tpu.memory_space<vmem>>, vector<1x8x128xbf16>,
    %c2_i32 = arith.constant 2 : i32
    %211 = arith.addi %22, %c2_i32 : i32
    %212 = vector.broadcast %211 : i32 to vector<8x1xi32>
    %213 = arith.cmpi slt, %212, %3 : vector<8x1xi32>
    %c2_54 = arith.constant 2 : index
    %c0_55 = arith.constant 0 : index
    %c0_56 = arith.constant 0 : index
    %214 = vector.load %arg3[%c2_54, %c0_55, %c0_56] : memref<8x8x512xbf16, #tpu.memory_space<vmem>>, vector<1x8x512xbf16>
    %215 = vector.shape_cast %214 : vector<1x8x512xbf16> to vector<8x512xbf16>
    %216 = arith.extf %215 : vector<8x512xbf16> to vector<8x512xf32>
    %217 = vector.broadcast %5 : vector<1x512xf32> to vector<8x512xf32>
    %218 = arith.addf %216, %217 : vector<8x512xf32>
    %219 = arith.truncf %145 : vector<8x128xf32> to vector<8x128xbf16>
    %cst_57 = arith.constant dense<0.000000e+00> : vector<8x512xf32>
    %220 = tpu.matmul %219, %4, %cst_57 {dimension_numbers = #tpu.dot_dimension_numbers<[1], [0], [0], [1], [0, 0, 1, 1], [], []>} : vector<8x128xbf16>, vector<128x512xbf16>, vector<8x512xf32> -> vector<8x512xf32>
    %221 = arith.addf %218, %220 : vector<8x512xf32>
    %222 = arith.negf %221 : vector<8x512xf32>
    %223 = math.exp %222 : vector<8x512xf32>
    %cst_58 = arith.constant 1.000000e+00 : f32
    %224 = vector.broadcast %cst_58 : f32 to vector<8x512xf32>
    %225 = arith.addf %224, %223 : vector<8x512xf32>
    %226 = arith.divf %224, %225 : vector<8x512xf32>
    %227 = math.tanh %221 : vector<8x512xf32>
    %228 = vector.extract_strided_slice %226 {offsets = [0, 0], sizes = [8, 128], strides = [1, 1]} : vector<8x512xf32> to vector<8x128xf32>
    %229 = vector.extract_strided_slice %226 {offsets = [0, 128], sizes = [8, 128], strides = [1, 1]} : vector<8x512xf32> to vector<8x128xf32>
    %230 = vector.extract_strided_slice %227 {offsets = [0, 256], sizes = [8, 128], strides = [1, 1]} : vector<8x512xf32> to vector<8x128xf32>
    %231 = vector.extract_strided_slice %226 {offsets = [0, 384], sizes = [8, 128], strides = [1, 1]} : vector<8x512xf32> to vector<8x128xf32>
    %232 = arith.mulf %229, %148 : vector<8x128xf32>
    %233 = arith.mulf %228, %230 : vector<8x128xf32>
    %234 = arith.addf %232, %233 : vector<8x128xf32>
    %235 = math.tanh %234 : vector<8x128xf32>
    %236 = arith.mulf %231, %235 : vector<8x128xf32>
    %237 = vector.shape_cast %213 : vector<8x1xi1> to vector<8x1xi1>
    %238 = vector.broadcast %237 : vector<8x1xi1> to vector<8x128xi1>
    %239 = arith.select %238, %236, %145 : vector<8x128xi1>, vector<8x128xf32>
    %240 = vector.shape_cast %213 : vector<8x1xi1> to vector<8x1xi1>
    %241 = vector.broadcast %240 : vector<8x1xi1> to vector<8x128xi1>
    %242 = arith.select %241, %234, %148 : vector<8x128xi1>, vector<8x128xf32>
    %243 = arith.truncf %239 : vector<8x128xf32> to vector<8x128xbf16>
    %244 = arith.truncf %172 : vector<8x128xf32> to vector<8x128xbf16>
    %245 = tpu.concatenate %243, %244 in 1 : vector<8x128xbf16>, vector<8x128xbf16> -> vector<8x256xbf16>
    %cst_59 = arith.constant dense<0.000000e+00> : vector<8x512xf32>
    %246 = tpu.matmul %245, %6, %cst_59 {dimension_numbers = #tpu.dot_dimension_numbers<[1], [0], [0], [1], [0, 0, 1, 1], [], []>} : vector<8x256xbf16>, vector<256x512xbf16>, vector<8x512xf32> -> vector<8x512xf32>
    %247 = vector.broadcast %8 : vector<1x512xf32> to vector<8x512xf32>
    %248 = arith.addf %247, %246 : vector<8x512xf32>
    %249 = arith.negf %248 : vector<8x512xf32>
    %250 = math.exp %249 : vector<8x512xf32>
    %cst_60 = arith.constant 1.000000e+00 : f32
    %251 = vector.broadcast %cst_60 : f32 to vector<8x512xf32>
    %252 = arith.addf %251, %250 : vector<8x512xf32>
    %253 = arith.divf %251, %252 : vector<8x512xf32>
    %254 = math.tanh %248 : vector<8x512xf32>
    %255 = vector.extract_strided_slice %253 {offsets = [0, 0], sizes = [8, 128], strides = [1, 1]} : vector<8x512xf32> to vector<8x128xf32>
    %256 = vector.extract_strided_slice %253 {offsets = [0, 128], sizes = [8, 128], strides = [1, 1]} : vector<8x512xf32> to vector<8x128xf32>
    %257 = vector.extract_strided_slice %254 {offsets = [0, 256], sizes = [8, 128], strides = [1, 1]} : vector<8x512xf32> to vector<8x128xf32>
    %258 = vector.extract_strided_slice %253 {offsets = [0, 384], sizes = [8, 128], strides = [1, 1]} : vector<8x512xf32> to vector<8x128xf32>
    %259 = arith.mulf %256, %175 : vector<8x128xf32>
    %260 = arith.mulf %255, %257 : vector<8x128xf32>
    %261 = arith.addf %259, %260 : vector<8x128xf32>
    %262 = math.tanh %261 : vector<8x128xf32>
    %263 = arith.mulf %258, %262 : vector<8x128xf32>
    %264 = vector.shape_cast %213 : vector<8x1xi1> to vector<8x1xi1>
    %265 = vector.broadcast %264 : vector<8x1xi1> to vector<8x128xi1>
    %266 = arith.select %265, %263, %172 : vector<8x128xi1>, vector<8x128xf32>
    %267 = vector.shape_cast %213 : vector<8x1xi1> to vector<8x1xi1>
    %268 = vector.broadcast %267 : vector<8x1xi1> to vector<8x128xi1>
    %269 = arith.select %268, %261, %175 : vector<8x128xi1>, vector<8x128xf32>
    %270 = arith.truncf %266 : vector<8x128xf32> to vector<8x128xbf16>
    %271 = arith.truncf %199 : vector<8x128xf32> to vector<8x128xbf16>
    %272 = tpu.concatenate %270, %271 in 1 : vector<8x128xbf16>, vector<8x128xbf16> -> vector<8x256xbf16>
    %cst_61 = arith.constant dense<0.000000e+00> : vector<8x512xf32>
    %273 = tpu.matmul %272, %7, %cst_61 {dimension_numbers = #tpu.dot_dimension_numbers<[1], [0], [0], [1], [0, 0, 1, 1], [], []>} : vector<8x256xbf16>, vector<256x512xbf16>, vector<8x512xf32> -> vector<8x512xf32>
    %274 = vector.broadcast %9 : vector<1x512xf32> to vector<8x512xf32>
    %275 = arith.addf %274, %273 : vector<8x512xf32>
    %276 = arith.negf %275 : vector<8x512xf32>
    %277 = math.exp %276 : vector<8x512xf32>
    %cst_62 = arith.constant 1.000000e+00 : f32
    %278 = vector.broadcast %cst_62 : f32 to vector<8x512xf32>
    %279 = arith.addf %278, %277 : vector<8x512xf32>
    %280 = arith.divf %278, %279 : vector<8x512xf32>
    %281 = math.tanh %275 : vector<8x512xf32>
    %282 = vector.extract_strided_slice %280 {offsets = [0, 0], sizes = [8, 128], strides = [1, 1]} : vector<8x512xf32> to vector<8x128xf32>
    %283 = vector.extract_strided_slice %280 {offsets = [0, 128], sizes = [8, 128], strides = [1, 1]} : vector<8x512xf32> to vector<8x128xf32>
    %284 = vector.extract_strided_slice %281 {offsets = [0, 256], sizes = [8, 128], strides = [1, 1]} : vector<8x512xf32> to vector<8x128xf32>
    %285 = vector.extract_strided_slice %280 {offsets = [0, 384], sizes = [8, 128], strides = [1, 1]} : vector<8x512xf32> to vector<8x128xf32>
    %286 = arith.mulf %283, %202 : vector<8x128xf32>
    %287 = arith.mulf %282, %284 : vector<8x128xf32>
    %288 = arith.addf %286, %287 : vector<8x128xf32>
    %289 = math.tanh %288 : vector<8x128xf32>
    %290 = arith.mulf %285, %289 : vector<8x128xf32>
    %291 = vector.shape_cast %213 : vector<8x1xi1> to vector<8x1xi1>
    %292 = vector.broadcast %291 : vector<8x1xi1> to vector<8x128xi1>
    %293 = arith.select %292, %290, %199 : vector<8x128xi1>, vector<8x128xf32>
    %294 = vector.shape_cast %213 : vector<8x1xi1> to vector<8x1xi1>
    %295 = vector.broadcast %294 : vector<8x1xi1> to vector<8x128xi1>
    %296 = arith.select %295, %288, %202 : vector<8x128xi1>, vector<8x128xf32>
    %297 = arith.extui %213 : vector<8x1xi1> to vector<8x1xi32>
    %298 = arith.sitofp %297 : vector<8x1xi32> to vector<8x1xf32>
    %299 = vector.broadcast %298 : vector<8x1xf32> to vector<8x128xf32>
    %300 = arith.mulf %293, %299 : vector<8x128xf32>
    %301 = arith.truncf %300 : vector<8x128xf32> to vector<8x128xbf16>
    %c2_63 = arith.constant 2 : index
    %c0_64 = arith.constant 0 : index
    %c0_65 = arith.constant 0 : index
    %302 = vector.load %arg10[%c2_63, %c0_64, %c0_65] : memref<8x8x128xbf16, #tpu.memory_space<vmem>>, vector<1x8x128xbf16>
    %303 = vector.shape_cast %302 : vector<1x8x128xbf16> to vector<8x128xbf16>
    %304 = vector.shape_cast %301 : vector<8x128xbf16> to vector<1x8x128xbf16>
    tpu.vector_store %arg10[%c2_63, %c0_64, %c0_65], %304 {strides = array<i32>} : memref<8x8x128xbf16, #tpu.memory_space<vmem>>, vector<1x8x128xbf16>,
    %c3_i32 = arith.constant 3 : i32
    %305 = arith.addi %22, %c3_i32 : i32
    %306 = vector.broadcast %305 : i32 to vector<8x1xi32>
    %307 = arith.cmpi slt, %306, %3 : vector<8x1xi32>
    %c3 = arith.constant 3 : index
    %c0_66 = arith.constant 0 : index
    %c0_67 = arith.constant 0 : index
    %308 = vector.load %arg3[%c3, %c0_66, %c0_67] : memref<8x8x512xbf16, #tpu.memory_space<vmem>>, vector<1x8x512xbf16>
    %309 = vector.shape_cast %308 : vector<1x8x512xbf16> to vector<8x512xbf16>
    %310 = arith.extf %309 : vector<8x512xbf16> to vector<8x512xf32>
    %311 = vector.broadcast %5 : vector<1x512xf32> to vector<8x512xf32>
    %312 = arith.addf %310, %311 : vector<8x512xf32>
    %313 = arith.truncf %239 : vector<8x128xf32> to vector<8x128xbf16>
    %cst_68 = arith.constant dense<0.000000e+00> : vector<8x512xf32>
    %314 = tpu.matmul %313, %4, %cst_68 {dimension_numbers = #tpu.dot_dimension_numbers<[1], [0], [0], [1], [0, 0, 1, 1], [], []>} : vector<8x128xbf16>, vector<128x512xbf16>, vector<8x512xf32> -> vector<8x512xf32>
    %315 = arith.addf %312, %314 : vector<8x512xf32>
    %316 = arith.negf %315 : vector<8x512xf32>
    %317 = math.exp %316 : vector<8x512xf32>
    %cst_69 = arith.constant 1.000000e+00 : f32
    %318 = vector.broadcast %cst_69 : f32 to vector<8x512xf32>
    %319 = arith.addf %318, %317 : vector<8x512xf32>
    %320 = arith.divf %318, %319 : vector<8x512xf32>
    %321 = math.tanh %315 : vector<8x512xf32>
    %322 = vector.extract_strided_slice %320 {offsets = [0, 0], sizes = [8, 128], strides = [1, 1]} : vector<8x512xf32> to vector<8x128xf32>
    %323 = vector.extract_strided_slice %320 {offsets = [0, 128], sizes = [8, 128], strides = [1, 1]} : vector<8x512xf32> to vector<8x128xf32>
    %324 = vector.extract_strided_slice %321 {offsets = [0, 256], sizes = [8, 128], strides = [1, 1]} : vector<8x512xf32> to vector<8x128xf32>
    %325 = vector.extract_strided_slice %320 {offsets = [0, 384], sizes = [8, 128], strides = [1, 1]} : vector<8x512xf32> to vector<8x128xf32>
    %326 = arith.mulf %323, %242 : vector<8x128xf32>
    %327 = arith.mulf %322, %324 : vector<8x128xf32>
    %328 = arith.addf %326, %327 : vector<8x128xf32>
    %329 = math.tanh %328 : vector<8x128xf32>
    %330 = arith.mulf %325, %329 : vector<8x128xf32>
    %331 = vector.shape_cast %307 : vector<8x1xi1> to vector<8x1xi1>
    %332 = vector.broadcast %331 : vector<8x1xi1> to vector<8x128xi1>
    %333 = arith.select %332, %330, %239 : vector<8x128xi1>, vector<8x128xf32>
    %334 = vector.shape_cast %307 : vector<8x1xi1> to vector<8x1xi1>
    %335 = vector.broadcast %334 : vector<8x1xi1> to vector<8x128xi1>
    %336 = arith.select %335, %328, %242 : vector<8x128xi1>, vector<8x128xf32>
    %337 = arith.truncf %333 : vector<8x128xf32> to vector<8x128xbf16>
    %338 = arith.truncf %266 : vector<8x128xf32> to vector<8x128xbf16>
    %339 = tpu.concatenate %337, %338 in 1 : vector<8x128xbf16>, vector<8x128xbf16> -> vector<8x256xbf16>
    %cst_70 = arith.constant dense<0.000000e+00> : vector<8x512xf32>
    %340 = tpu.matmul %339, %6, %cst_70 {dimension_numbers = #tpu.dot_dimension_numbers<[1], [0], [0], [1], [0, 0, 1, 1], [], []>} : vector<8x256xbf16>, vector<256x512xbf16>, vector<8x512xf32> -> vector<8x512xf32>
    %341 = vector.broadcast %8 : vector<1x512xf32> to vector<8x512xf32>
    %342 = arith.addf %341, %340 : vector<8x512xf32>
    %343 = arith.negf %342 : vector<8x512xf32>
    %344 = math.exp %343 : vector<8x512xf32>
    %cst_71 = arith.constant 1.000000e+00 : f32
    %345 = vector.broadcast %cst_71 : f32 to vector<8x512xf32>
    %346 = arith.addf %345, %344 : vector<8x512xf32>
    %347 = arith.divf %345, %346 : vector<8x512xf32>
    %348 = math.tanh %342 : vector<8x512xf32>
    %349 = vector.extract_strided_slice %347 {offsets = [0, 0], sizes = [8, 128], strides = [1, 1]} : vector<8x512xf32> to vector<8x128xf32>
    %350 = vector.extract_strided_slice %347 {offsets = [0, 128], sizes = [8, 128], strides = [1, 1]} : vector<8x512xf32> to vector<8x128xf32>
    %351 = vector.extract_strided_slice %348 {offsets = [0, 256], sizes = [8, 128], strides = [1, 1]} : vector<8x512xf32> to vector<8x128xf32>
    %352 = vector.extract_strided_slice %347 {offsets = [0, 384], sizes = [8, 128], strides = [1, 1]} : vector<8x512xf32> to vector<8x128xf32>
    %353 = arith.mulf %350, %269 : vector<8x128xf32>
    %354 = arith.mulf %349, %351 : vector<8x128xf32>
    %355 = arith.addf %353, %354 : vector<8x128xf32>
    %356 = math.tanh %355 : vector<8x128xf32>
    %357 = arith.mulf %352, %356 : vector<8x128xf32>
    %358 = vector.shape_cast %307 : vector<8x1xi1> to vector<8x1xi1>
    %359 = vector.broadcast %358 : vector<8x1xi1> to vector<8x128xi1>
    %360 = arith.select %359, %357, %266 : vector<8x128xi1>, vector<8x128xf32>
    %361 = vector.shape_cast %307 : vector<8x1xi1> to vector<8x1xi1>
    %362 = vector.broadcast %361 : vector<8x1xi1> to vector<8x128xi1>
    %363 = arith.select %362, %355, %269 : vector<8x128xi1>, vector<8x128xf32>
    %364 = arith.truncf %360 : vector<8x128xf32> to vector<8x128xbf16>
    %365 = arith.truncf %293 : vector<8x128xf32> to vector<8x128xbf16>
    %366 = tpu.concatenate %364, %365 in 1 : vector<8x128xbf16>, vector<8x128xbf16> -> vector<8x256xbf16>
    %cst_72 = arith.constant dense<0.000000e+00> : vector<8x512xf32>
    %367 = tpu.matmul %366, %7, %cst_72 {dimension_numbers = #tpu.dot_dimension_numbers<[1], [0], [0], [1], [0, 0, 1, 1], [], []>} : vector<8x256xbf16>, vector<256x512xbf16>, vector<8x512xf32> -> vector<8x512xf32>
    %368 = vector.broadcast %9 : vector<1x512xf32> to vector<8x512xf32>
    %369 = arith.addf %368, %367 : vector<8x512xf32>
    %370 = arith.negf %369 : vector<8x512xf32>
    %371 = math.exp %370 : vector<8x512xf32>
    %cst_73 = arith.constant 1.000000e+00 : f32
    %372 = vector.broadcast %cst_73 : f32 to vector<8x512xf32>
    %373 = arith.addf %372, %371 : vector<8x512xf32>
    %374 = arith.divf %372, %373 : vector<8x512xf32>
    %375 = math.tanh %369 : vector<8x512xf32>
    %376 = vector.extract_strided_slice %374 {offsets = [0, 0], sizes = [8, 128], strides = [1, 1]} : vector<8x512xf32> to vector<8x128xf32>
    %377 = vector.extract_strided_slice %374 {offsets = [0, 128], sizes = [8, 128], strides = [1, 1]} : vector<8x512xf32> to vector<8x128xf32>
    %378 = vector.extract_strided_slice %375 {offsets = [0, 256], sizes = [8, 128], strides = [1, 1]} : vector<8x512xf32> to vector<8x128xf32>
    %379 = vector.extract_strided_slice %374 {offsets = [0, 384], sizes = [8, 128], strides = [1, 1]} : vector<8x512xf32> to vector<8x128xf32>
    %380 = arith.mulf %377, %296 : vector<8x128xf32>
    %381 = arith.mulf %376, %378 : vector<8x128xf32>
    %382 = arith.addf %380, %381 : vector<8x128xf32>
    %383 = math.tanh %382 : vector<8x128xf32>
    %384 = arith.mulf %379, %383 : vector<8x128xf32>
    %385 = vector.shape_cast %307 : vector<8x1xi1> to vector<8x1xi1>
    %386 = vector.broadcast %385 : vector<8x1xi1> to vector<8x128xi1>
    %387 = arith.select %386, %384, %293 : vector<8x128xi1>, vector<8x128xf32>
    %388 = vector.shape_cast %307 : vector<8x1xi1> to vector<8x1xi1>
    %389 = vector.broadcast %388 : vector<8x1xi1> to vector<8x128xi1>
    %390 = arith.select %389, %382, %296 : vector<8x128xi1>, vector<8x128xf32>
    %391 = arith.extui %307 : vector<8x1xi1> to vector<8x1xi32>
    %392 = arith.sitofp %391 : vector<8x1xi32> to vector<8x1xf32>
    %393 = vector.broadcast %392 : vector<8x1xf32> to vector<8x128xf32>
    %394 = arith.mulf %387, %393 : vector<8x128xf32>
    %395 = arith.truncf %394 : vector<8x128xf32> to vector<8x128xbf16>
    %c3_74 = arith.constant 3 : index
    %c0_75 = arith.constant 0 : index
    %c0_76 = arith.constant 0 : index
    %396 = vector.load %arg10[%c3_74, %c0_75, %c0_76] : memref<8x8x128xbf16, #tpu.memory_space<vmem>>, vector<1x8x128xbf16>
    %397 = vector.shape_cast %396 : vector<1x8x128xbf16> to vector<8x128xbf16>
    %398 = vector.shape_cast %395 : vector<8x128xbf16> to vector<1x8x128xbf16>
    tpu.vector_store %arg10[%c3_74, %c0_75, %c0_76], %398 {strides = array<i32>} : memref<8x8x128xbf16, #tpu.memory_space<vmem>>, vector<1x8x128xbf16>,
    %c4_i32 = arith.constant 4 : i32
    %399 = arith.addi %22, %c4_i32 : i32
    %400 = vector.broadcast %399 : i32 to vector<8x1xi32>
    %401 = arith.cmpi slt, %400, %3 : vector<8x1xi32>
    %c4 = arith.constant 4 : index
    %c0_77 = arith.constant 0 : index
    %c0_78 = arith.constant 0 : index
    %402 = vector.load %arg3[%c4, %c0_77, %c0_78] : memref<8x8x512xbf16, #tpu.memory_space<vmem>>, vector<1x8x512xbf16>
    %403 = vector.shape_cast %402 : vector<1x8x512xbf16> to vector<8x512xbf16>
    %404 = arith.extf %403 : vector<8x512xbf16> to vector<8x512xf32>
    %405 = vector.broadcast %5 : vector<1x512xf32> to vector<8x512xf32>
    %406 = arith.addf %404, %405 : vector<8x512xf32>
    %407 = arith.truncf %333 : vector<8x128xf32> to vector<8x128xbf16>
    %cst_79 = arith.constant dense<0.000000e+00> : vector<8x512xf32>
    %408 = tpu.matmul %407, %4, %cst_79 {dimension_numbers = #tpu.dot_dimension_numbers<[1], [0], [0], [1], [0, 0, 1, 1], [], []>} : vector<8x128xbf16>, vector<128x512xbf16>, vector<8x512xf32> -> vector<8x512xf32>
    %409 = arith.addf %406, %408 : vector<8x512xf32>
    %410 = arith.negf %409 : vector<8x512xf32>
    %411 = math.exp %410 : vector<8x512xf32>
    %cst_80 = arith.constant 1.000000e+00 : f32
    %412 = vector.broadcast %cst_80 : f32 to vector<8x512xf32>
    %413 = arith.addf %412, %411 : vector<8x512xf32>
    %414 = arith.divf %412, %413 : vector<8x512xf32>
    %415 = math.tanh %409 : vector<8x512xf32>
    %416 = vector.extract_strided_slice %414 {offsets = [0, 0], sizes = [8, 128], strides = [1, 1]} : vector<8x512xf32> to vector<8x128xf32>
    %417 = vector.extract_strided_slice %414 {offsets = [0, 128], sizes = [8, 128], strides = [1, 1]} : vector<8x512xf32> to vector<8x128xf32>
    %418 = vector.extract_strided_slice %415 {offsets = [0, 256], sizes = [8, 128], strides = [1, 1]} : vector<8x512xf32> to vector<8x128xf32>
    %419 = vector.extract_strided_slice %414 {offsets = [0, 384], sizes = [8, 128], strides = [1, 1]} : vector<8x512xf32> to vector<8x128xf32>
    %420 = arith.mulf %417, %336 : vector<8x128xf32>
    %421 = arith.mulf %416, %418 : vector<8x128xf32>
    %422 = arith.addf %420, %421 : vector<8x128xf32>
    %423 = math.tanh %422 : vector<8x128xf32>
    %424 = arith.mulf %419, %423 : vector<8x128xf32>
    %425 = vector.shape_cast %401 : vector<8x1xi1> to vector<8x1xi1>
    %426 = vector.broadcast %425 : vector<8x1xi1> to vector<8x128xi1>
    %427 = arith.select %426, %424, %333 : vector<8x128xi1>, vector<8x128xf32>
    %428 = vector.shape_cast %401 : vector<8x1xi1> to vector<8x1xi1>
    %429 = vector.broadcast %428 : vector<8x1xi1> to vector<8x128xi1>
    %430 = arith.select %429, %422, %336 : vector<8x128xi1>, vector<8x128xf32>
    %431 = arith.truncf %427 : vector<8x128xf32> to vector<8x128xbf16>
    %432 = arith.truncf %360 : vector<8x128xf32> to vector<8x128xbf16>
    %433 = tpu.concatenate %431, %432 in 1 : vector<8x128xbf16>, vector<8x128xbf16> -> vector<8x256xbf16>
    %cst_81 = arith.constant dense<0.000000e+00> : vector<8x512xf32>
    %434 = tpu.matmul %433, %6, %cst_81 {dimension_numbers = #tpu.dot_dimension_numbers<[1], [0], [0], [1], [0, 0, 1, 1], [], []>} : vector<8x256xbf16>, vector<256x512xbf16>, vector<8x512xf32> -> vector<8x512xf32>
    %435 = vector.broadcast %8 : vector<1x512xf32> to vector<8x512xf32>
    %436 = arith.addf %435, %434 : vector<8x512xf32>
    %437 = arith.negf %436 : vector<8x512xf32>
    %438 = math.exp %437 : vector<8x512xf32>
    %cst_82 = arith.constant 1.000000e+00 : f32
    %439 = vector.broadcast %cst_82 : f32 to vector<8x512xf32>
    %440 = arith.addf %439, %438 : vector<8x512xf32>
    %441 = arith.divf %439, %440 : vector<8x512xf32>
    %442 = math.tanh %436 : vector<8x512xf32>
    %443 = vector.extract_strided_slice %441 {offsets = [0, 0], sizes = [8, 128], strides = [1, 1]} : vector<8x512xf32> to vector<8x128xf32>
    %444 = vector.extract_strided_slice %441 {offsets = [0, 128], sizes = [8, 128], strides = [1, 1]} : vector<8x512xf32> to vector<8x128xf32>
    %445 = vector.extract_strided_slice %442 {offsets = [0, 256], sizes = [8, 128], strides = [1, 1]} : vector<8x512xf32> to vector<8x128xf32>
    %446 = vector.extract_strided_slice %441 {offsets = [0, 384], sizes = [8, 128], strides = [1, 1]} : vector<8x512xf32> to vector<8x128xf32>
    %447 = arith.mulf %444, %363 : vector<8x128xf32>
    %448 = arith.mulf %443, %445 : vector<8x128xf32>
    %449 = arith.addf %447, %448 : vector<8x128xf32>
    %450 = math.tanh %449 : vector<8x128xf32>
    %451 = arith.mulf %446, %450 : vector<8x128xf32>
    %452 = vector.shape_cast %401 : vector<8x1xi1> to vector<8x1xi1>
    %453 = vector.broadcast %452 : vector<8x1xi1> to vector<8x128xi1>
    %454 = arith.select %453, %451, %360 : vector<8x128xi1>, vector<8x128xf32>
    %455 = vector.shape_cast %401 : vector<8x1xi1> to vector<8x1xi1>
    %456 = vector.broadcast %455 : vector<8x1xi1> to vector<8x128xi1>
    %457 = arith.select %456, %449, %363 : vector<8x128xi1>, vector<8x128xf32>
    %458 = arith.truncf %454 : vector<8x128xf32> to vector<8x128xbf16>
    %459 = arith.truncf %387 : vector<8x128xf32> to vector<8x128xbf16>
    %460 = tpu.concatenate %458, %459 in 1 : vector<8x128xbf16>, vector<8x128xbf16> -> vector<8x256xbf16>
    %cst_83 = arith.constant dense<0.000000e+00> : vector<8x512xf32>
    %461 = tpu.matmul %460, %7, %cst_83 {dimension_numbers = #tpu.dot_dimension_numbers<[1], [0], [0], [1], [0, 0, 1, 1], [], []>} : vector<8x256xbf16>, vector<256x512xbf16>, vector<8x512xf32> -> vector<8x512xf32>
    %462 = vector.broadcast %9 : vector<1x512xf32> to vector<8x512xf32>
    %463 = arith.addf %462, %461 : vector<8x512xf32>
    %464 = arith.negf %463 : vector<8x512xf32>
    %465 = math.exp %464 : vector<8x512xf32>
    %cst_84 = arith.constant 1.000000e+00 : f32
    %466 = vector.broadcast %cst_84 : f32 to vector<8x512xf32>
    %467 = arith.addf %466, %465 : vector<8x512xf32>
    %468 = arith.divf %466, %467 : vector<8x512xf32>
    %469 = math.tanh %463 : vector<8x512xf32>
    %470 = vector.extract_strided_slice %468 {offsets = [0, 0], sizes = [8, 128], strides = [1, 1]} : vector<8x512xf32> to vector<8x128xf32>
    %471 = vector.extract_strided_slice %468 {offsets = [0, 128], sizes = [8, 128], strides = [1, 1]} : vector<8x512xf32> to vector<8x128xf32>
    %472 = vector.extract_strided_slice %469 {offsets = [0, 256], sizes = [8, 128], strides = [1, 1]} : vector<8x512xf32> to vector<8x128xf32>
    %473 = vector.extract_strided_slice %468 {offsets = [0, 384], sizes = [8, 128], strides = [1, 1]} : vector<8x512xf32> to vector<8x128xf32>
    %474 = arith.mulf %471, %390 : vector<8x128xf32>
    %475 = arith.mulf %470, %472 : vector<8x128xf32>
    %476 = arith.addf %474, %475 : vector<8x128xf32>
    %477 = math.tanh %476 : vector<8x128xf32>
    %478 = arith.mulf %473, %477 : vector<8x128xf32>
    %479 = vector.shape_cast %401 : vector<8x1xi1> to vector<8x1xi1>
    %480 = vector.broadcast %479 : vector<8x1xi1> to vector<8x128xi1>
    %481 = arith.select %480, %478, %387 : vector<8x128xi1>, vector<8x128xf32>
    %482 = vector.shape_cast %401 : vector<8x1xi1> to vector<8x1xi1>
    %483 = vector.broadcast %482 : vector<8x1xi1> to vector<8x128xi1>
    %484 = arith.select %483, %476, %390 : vector<8x128xi1>, vector<8x128xf32>
    %485 = arith.extui %401 : vector<8x1xi1> to vector<8x1xi32>
    %486 = arith.sitofp %485 : vector<8x1xi32> to vector<8x1xf32>
    %487 = vector.broadcast %486 : vector<8x1xf32> to vector<8x128xf32>
    %488 = arith.mulf %481, %487 : vector<8x128xf32>
    %489 = arith.truncf %488 : vector<8x128xf32> to vector<8x128xbf16>
    %c4_85 = arith.constant 4 : index
    %c0_86 = arith.constant 0 : index
    %c0_87 = arith.constant 0 : index
    %490 = vector.load %arg10[%c4_85, %c0_86, %c0_87] : memref<8x8x128xbf16, #tpu.memory_space<vmem>>, vector<1x8x128xbf16>
    %491 = vector.shape_cast %490 : vector<1x8x128xbf16> to vector<8x128xbf16>
    %492 = vector.shape_cast %489 : vector<8x128xbf16> to vector<1x8x128xbf16>
    tpu.vector_store %arg10[%c4_85, %c0_86, %c0_87], %492 {strides = array<i32>} : memref<8x8x128xbf16, #tpu.memory_space<vmem>>, vector<1x8x128xbf16>,
    %c5_i32 = arith.constant 5 : i32
    %493 = arith.addi %22, %c5_i32 : i32
    %494 = vector.broadcast %493 : i32 to vector<8x1xi32>
    %495 = arith.cmpi slt, %494, %3 : vector<8x1xi32>
    %c5 = arith.constant 5 : index
    %c0_88 = arith.constant 0 : index
    %c0_89 = arith.constant 0 : index
    %496 = vector.load %arg3[%c5, %c0_88, %c0_89] : memref<8x8x512xbf16, #tpu.memory_space<vmem>>, vector<1x8x512xbf16>
    %497 = vector.shape_cast %496 : vector<1x8x512xbf16> to vector<8x512xbf16>
    %498 = arith.extf %497 : vector<8x512xbf16> to vector<8x512xf32>
    %499 = vector.broadcast %5 : vector<1x512xf32> to vector<8x512xf32>
    %500 = arith.addf %498, %499 : vector<8x512xf32>
    %501 = arith.truncf %427 : vector<8x128xf32> to vector<8x128xbf16>
    %cst_90 = arith.constant dense<0.000000e+00> : vector<8x512xf32>
    %502 = tpu.matmul %501, %4, %cst_90 {dimension_numbers = #tpu.dot_dimension_numbers<[1], [0], [0], [1], [0, 0, 1, 1], [], []>} : vector<8x128xbf16>, vector<128x512xbf16>, vector<8x512xf32> -> vector<8x512xf32>
    %503 = arith.addf %500, %502 : vector<8x512xf32>
    %504 = arith.negf %503 : vector<8x512xf32>
    %505 = math.exp %504 : vector<8x512xf32>
    %cst_91 = arith.constant 1.000000e+00 : f32
    %506 = vector.broadcast %cst_91 : f32 to vector<8x512xf32>
    %507 = arith.addf %506, %505 : vector<8x512xf32>
    %508 = arith.divf %506, %507 : vector<8x512xf32>
    %509 = math.tanh %503 : vector<8x512xf32>
    %510 = vector.extract_strided_slice %508 {offsets = [0, 0], sizes = [8, 128], strides = [1, 1]} : vector<8x512xf32> to vector<8x128xf32>
    %511 = vector.extract_strided_slice %508 {offsets = [0, 128], sizes = [8, 128], strides = [1, 1]} : vector<8x512xf32> to vector<8x128xf32>
    %512 = vector.extract_strided_slice %509 {offsets = [0, 256], sizes = [8, 128], strides = [1, 1]} : vector<8x512xf32> to vector<8x128xf32>
    %513 = vector.extract_strided_slice %508 {offsets = [0, 384], sizes = [8, 128], strides = [1, 1]} : vector<8x512xf32> to vector<8x128xf32>
    %514 = arith.mulf %511, %430 : vector<8x128xf32>
    %515 = arith.mulf %510, %512 : vector<8x128xf32>
    %516 = arith.addf %514, %515 : vector<8x128xf32>
    %517 = math.tanh %516 : vector<8x128xf32>
    %518 = arith.mulf %513, %517 : vector<8x128xf32>
    %519 = vector.shape_cast %495 : vector<8x1xi1> to vector<8x1xi1>
    %520 = vector.broadcast %519 : vector<8x1xi1> to vector<8x128xi1>
    %521 = arith.select %520, %518, %427 : vector<8x128xi1>, vector<8x128xf32>
    %522 = vector.shape_cast %495 : vector<8x1xi1> to vector<8x1xi1>
    %523 = vector.broadcast %522 : vector<8x1xi1> to vector<8x128xi1>
    %524 = arith.select %523, %516, %430 : vector<8x128xi1>, vector<8x128xf32>
    %525 = arith.truncf %521 : vector<8x128xf32> to vector<8x128xbf16>
    %526 = arith.truncf %454 : vector<8x128xf32> to vector<8x128xbf16>
    %527 = tpu.concatenate %525, %526 in 1 : vector<8x128xbf16>, vector<8x128xbf16> -> vector<8x256xbf16>
    %cst_92 = arith.constant dense<0.000000e+00> : vector<8x512xf32>
    %528 = tpu.matmul %527, %6, %cst_92 {dimension_numbers = #tpu.dot_dimension_numbers<[1], [0], [0], [1], [0, 0, 1, 1], [], []>} : vector<8x256xbf16>, vector<256x512xbf16>, vector<8x512xf32> -> vector<8x512xf32>
    %529 = vector.broadcast %8 : vector<1x512xf32> to vector<8x512xf32>
    %530 = arith.addf %529, %528 : vector<8x512xf32>
    %531 = arith.negf %530 : vector<8x512xf32>
    %532 = math.exp %531 : vector<8x512xf32>
    %cst_93 = arith.constant 1.000000e+00 : f32
    %533 = vector.broadcast %cst_93 : f32 to vector<8x512xf32>
    %534 = arith.addf %533, %532 : vector<8x512xf32>
    %535 = arith.divf %533, %534 : vector<8x512xf32>
    %536 = math.tanh %530 : vector<8x512xf32>
    %537 = vector.extract_strided_slice %535 {offsets = [0, 0], sizes = [8, 128], strides = [1, 1]} : vector<8x512xf32> to vector<8x128xf32>
    %538 = vector.extract_strided_slice %535 {offsets = [0, 128], sizes = [8, 128], strides = [1, 1]} : vector<8x512xf32> to vector<8x128xf32>
    %539 = vector.extract_strided_slice %536 {offsets = [0, 256], sizes = [8, 128], strides = [1, 1]} : vector<8x512xf32> to vector<8x128xf32>
    %540 = vector.extract_strided_slice %535 {offsets = [0, 384], sizes = [8, 128], strides = [1, 1]} : vector<8x512xf32> to vector<8x128xf32>
    %541 = arith.mulf %538, %457 : vector<8x128xf32>
    %542 = arith.mulf %537, %539 : vector<8x128xf32>
    %543 = arith.addf %541, %542 : vector<8x128xf32>
    %544 = math.tanh %543 : vector<8x128xf32>
    %545 = arith.mulf %540, %544 : vector<8x128xf32>
    %546 = vector.shape_cast %495 : vector<8x1xi1> to vector<8x1xi1>
    %547 = vector.broadcast %546 : vector<8x1xi1> to vector<8x128xi1>
    %548 = arith.select %547, %545, %454 : vector<8x128xi1>, vector<8x128xf32>
    %549 = vector.shape_cast %495 : vector<8x1xi1> to vector<8x1xi1>
    %550 = vector.broadcast %549 : vector<8x1xi1> to vector<8x128xi1>
    %551 = arith.select %550, %543, %457 : vector<8x128xi1>, vector<8x128xf32>
    %552 = arith.truncf %548 : vector<8x128xf32> to vector<8x128xbf16>
    %553 = arith.truncf %481 : vector<8x128xf32> to vector<8x128xbf16>
    %554 = tpu.concatenate %552, %553 in 1 : vector<8x128xbf16>, vector<8x128xbf16> -> vector<8x256xbf16>
    %cst_94 = arith.constant dense<0.000000e+00> : vector<8x512xf32>
    %555 = tpu.matmul %554, %7, %cst_94 {dimension_numbers = #tpu.dot_dimension_numbers<[1], [0], [0], [1], [0, 0, 1, 1], [], []>} : vector<8x256xbf16>, vector<256x512xbf16>, vector<8x512xf32> -> vector<8x512xf32>
    %556 = vector.broadcast %9 : vector<1x512xf32> to vector<8x512xf32>
    %557 = arith.addf %556, %555 : vector<8x512xf32>
    %558 = arith.negf %557 : vector<8x512xf32>
    %559 = math.exp %558 : vector<8x512xf32>
    %cst_95 = arith.constant 1.000000e+00 : f32
    %560 = vector.broadcast %cst_95 : f32 to vector<8x512xf32>
    %561 = arith.addf %560, %559 : vector<8x512xf32>
    %562 = arith.divf %560, %561 : vector<8x512xf32>
    %563 = math.tanh %557 : vector<8x512xf32>
    %564 = vector.extract_strided_slice %562 {offsets = [0, 0], sizes = [8, 128], strides = [1, 1]} : vector<8x512xf32> to vector<8x128xf32>
    %565 = vector.extract_strided_slice %562 {offsets = [0, 128], sizes = [8, 128], strides = [1, 1]} : vector<8x512xf32> to vector<8x128xf32>
    %566 = vector.extract_strided_slice %563 {offsets = [0, 256], sizes = [8, 128], strides = [1, 1]} : vector<8x512xf32> to vector<8x128xf32>
    %567 = vector.extract_strided_slice %562 {offsets = [0, 384], sizes = [8, 128], strides = [1, 1]} : vector<8x512xf32> to vector<8x128xf32>
    %568 = arith.mulf %565, %484 : vector<8x128xf32>
    %569 = arith.mulf %564, %566 : vector<8x128xf32>
    %570 = arith.addf %568, %569 : vector<8x128xf32>
    %571 = math.tanh %570 : vector<8x128xf32>
    %572 = arith.mulf %567, %571 : vector<8x128xf32>
    %573 = vector.shape_cast %495 : vector<8x1xi1> to vector<8x1xi1>
    %574 = vector.broadcast %573 : vector<8x1xi1> to vector<8x128xi1>
    %575 = arith.select %574, %572, %481 : vector<8x128xi1>, vector<8x128xf32>
    %576 = vector.shape_cast %495 : vector<8x1xi1> to vector<8x1xi1>
    %577 = vector.broadcast %576 : vector<8x1xi1> to vector<8x128xi1>
    %578 = arith.select %577, %570, %484 : vector<8x128xi1>, vector<8x128xf32>
    %579 = arith.extui %495 : vector<8x1xi1> to vector<8x1xi32>
    %580 = arith.sitofp %579 : vector<8x1xi32> to vector<8x1xf32>
    %581 = vector.broadcast %580 : vector<8x1xf32> to vector<8x128xf32>
    %582 = arith.mulf %575, %581 : vector<8x128xf32>
    %583 = arith.truncf %582 : vector<8x128xf32> to vector<8x128xbf16>
    %c5_96 = arith.constant 5 : index
    %c0_97 = arith.constant 0 : index
    %c0_98 = arith.constant 0 : index
    %584 = vector.load %arg10[%c5_96, %c0_97, %c0_98] : memref<8x8x128xbf16, #tpu.memory_space<vmem>>, vector<1x8x128xbf16>
    %585 = vector.shape_cast %584 : vector<1x8x128xbf16> to vector<8x128xbf16>
    %586 = vector.shape_cast %583 : vector<8x128xbf16> to vector<1x8x128xbf16>
    tpu.vector_store %arg10[%c5_96, %c0_97, %c0_98], %586 {strides = array<i32>} : memref<8x8x128xbf16, #tpu.memory_space<vmem>>, vector<1x8x128xbf16>,
    %c6_i32 = arith.constant 6 : i32
    %587 = arith.addi %22, %c6_i32 : i32
    %588 = vector.broadcast %587 : i32 to vector<8x1xi32>
    %589 = arith.cmpi slt, %588, %3 : vector<8x1xi32>
    %c6 = arith.constant 6 : index
    %c0_99 = arith.constant 0 : index
    %c0_100 = arith.constant 0 : index
    %590 = vector.load %arg3[%c6, %c0_99, %c0_100] : memref<8x8x512xbf16, #tpu.memory_space<vmem>>, vector<1x8x512xbf16>
    %591 = vector.shape_cast %590 : vector<1x8x512xbf16> to vector<8x512xbf16>
    %592 = arith.extf %591 : vector<8x512xbf16> to vector<8x512xf32>
    %593 = vector.broadcast %5 : vector<1x512xf32> to vector<8x512xf32>
    %594 = arith.addf %592, %593 : vector<8x512xf32>
    %595 = arith.truncf %521 : vector<8x128xf32> to vector<8x128xbf16>
    %cst_101 = arith.constant dense<0.000000e+00> : vector<8x512xf32>
    %596 = tpu.matmul %595, %4, %cst_101 {dimension_numbers = #tpu.dot_dimension_numbers<[1], [0], [0], [1], [0, 0, 1, 1], [], []>} : vector<8x128xbf16>, vector<128x512xbf16>, vector<8x512xf32> -> vector<8x512xf32>
    %597 = arith.addf %594, %596 : vector<8x512xf32>
    %598 = arith.negf %597 : vector<8x512xf32>
    %599 = math.exp %598 : vector<8x512xf32>
    %cst_102 = arith.constant 1.000000e+00 : f32
    %600 = vector.broadcast %cst_102 : f32 to vector<8x512xf32>
    %601 = arith.addf %600, %599 : vector<8x512xf32>
    %602 = arith.divf %600, %601 : vector<8x512xf32>
    %603 = math.tanh %597 : vector<8x512xf32>
    %604 = vector.extract_strided_slice %602 {offsets = [0, 0], sizes = [8, 128], strides = [1, 1]} : vector<8x512xf32> to vector<8x128xf32>
    %605 = vector.extract_strided_slice %602 {offsets = [0, 128], sizes = [8, 128], strides = [1, 1]} : vector<8x512xf32> to vector<8x128xf32>
    %606 = vector.extract_strided_slice %603 {offsets = [0, 256], sizes = [8, 128], strides = [1, 1]} : vector<8x512xf32> to vector<8x128xf32>
    %607 = vector.extract_strided_slice %602 {offsets = [0, 384], sizes = [8, 128], strides = [1, 1]} : vector<8x512xf32> to vector<8x128xf32>
    %608 = arith.mulf %605, %524 : vector<8x128xf32>
    %609 = arith.mulf %604, %606 : vector<8x128xf32>
    %610 = arith.addf %608, %609 : vector<8x128xf32>
    %611 = math.tanh %610 : vector<8x128xf32>
    %612 = arith.mulf %607, %611 : vector<8x128xf32>
    %613 = vector.shape_cast %589 : vector<8x1xi1> to vector<8x1xi1>
    %614 = vector.broadcast %613 : vector<8x1xi1> to vector<8x128xi1>
    %615 = arith.select %614, %612, %521 : vector<8x128xi1>, vector<8x128xf32>
    %616 = vector.shape_cast %589 : vector<8x1xi1> to vector<8x1xi1>
    %617 = vector.broadcast %616 : vector<8x1xi1> to vector<8x128xi1>
    %618 = arith.select %617, %610, %524 : vector<8x128xi1>, vector<8x128xf32>
    %619 = arith.truncf %615 : vector<8x128xf32> to vector<8x128xbf16>
    %620 = arith.truncf %548 : vector<8x128xf32> to vector<8x128xbf16>
    %621 = tpu.concatenate %619, %620 in 1 : vector<8x128xbf16>, vector<8x128xbf16> -> vector<8x256xbf16>
    %cst_103 = arith.constant dense<0.000000e+00> : vector<8x512xf32>
    %622 = tpu.matmul %621, %6, %cst_103 {dimension_numbers = #tpu.dot_dimension_numbers<[1], [0], [0], [1], [0, 0, 1, 1], [], []>} : vector<8x256xbf16>, vector<256x512xbf16>, vector<8x512xf32> -> vector<8x512xf32>
    %623 = vector.broadcast %8 : vector<1x512xf32> to vector<8x512xf32>
    %624 = arith.addf %623, %622 : vector<8x512xf32>
    %625 = arith.negf %624 : vector<8x512xf32>
    %626 = math.exp %625 : vector<8x512xf32>
    %cst_104 = arith.constant 1.000000e+00 : f32
    %627 = vector.broadcast %cst_104 : f32 to vector<8x512xf32>
    %628 = arith.addf %627, %626 : vector<8x512xf32>
    %629 = arith.divf %627, %628 : vector<8x512xf32>
    %630 = math.tanh %624 : vector<8x512xf32>
    %631 = vector.extract_strided_slice %629 {offsets = [0, 0], sizes = [8, 128], strides = [1, 1]} : vector<8x512xf32> to vector<8x128xf32>
    %632 = vector.extract_strided_slice %629 {offsets = [0, 128], sizes = [8, 128], strides = [1, 1]} : vector<8x512xf32> to vector<8x128xf32>
    %633 = vector.extract_strided_slice %630 {offsets = [0, 256], sizes = [8, 128], strides = [1, 1]} : vector<8x512xf32> to vector<8x128xf32>
    %634 = vector.extract_strided_slice %629 {offsets = [0, 384], sizes = [8, 128], strides = [1, 1]} : vector<8x512xf32> to vector<8x128xf32>
    %635 = arith.mulf %632, %551 : vector<8x128xf32>
    %636 = arith.mulf %631, %633 : vector<8x128xf32>
    %637 = arith.addf %635, %636 : vector<8x128xf32>
    %638 = math.tanh %637 : vector<8x128xf32>
    %639 = arith.mulf %634, %638 : vector<8x128xf32>
    %640 = vector.shape_cast %589 : vector<8x1xi1> to vector<8x1xi1>
    %641 = vector.broadcast %640 : vector<8x1xi1> to vector<8x128xi1>
    %642 = arith.select %641, %639, %548 : vector<8x128xi1>, vector<8x128xf32>
    %643 = vector.shape_cast %589 : vector<8x1xi1> to vector<8x1xi1>
    %644 = vector.broadcast %643 : vector<8x1xi1> to vector<8x128xi1>
    %645 = arith.select %644, %637, %551 : vector<8x128xi1>, vector<8x128xf32>
    %646 = arith.truncf %642 : vector<8x128xf32> to vector<8x128xbf16>
    %647 = arith.truncf %575 : vector<8x128xf32> to vector<8x128xbf16>
    %648 = tpu.concatenate %646, %647 in 1 : vector<8x128xbf16>, vector<8x128xbf16> -> vector<8x256xbf16>
    %cst_105 = arith.constant dense<0.000000e+00> : vector<8x512xf32>
    %649 = tpu.matmul %648, %7, %cst_105 {dimension_numbers = #tpu.dot_dimension_numbers<[1], [0], [0], [1], [0, 0, 1, 1], [], []>} : vector<8x256xbf16>, vector<256x512xbf16>, vector<8x512xf32> -> vector<8x512xf32>
    %650 = vector.broadcast %9 : vector<1x512xf32> to vector<8x512xf32>
    %651 = arith.addf %650, %649 : vector<8x512xf32>
    %652 = arith.negf %651 : vector<8x512xf32>
    %653 = math.exp %652 : vector<8x512xf32>
    %cst_106 = arith.constant 1.000000e+00 : f32
    %654 = vector.broadcast %cst_106 : f32 to vector<8x512xf32>
    %655 = arith.addf %654, %653 : vector<8x512xf32>
    %656 = arith.divf %654, %655 : vector<8x512xf32>
    %657 = math.tanh %651 : vector<8x512xf32>
    %658 = vector.extract_strided_slice %656 {offsets = [0, 0], sizes = [8, 128], strides = [1, 1]} : vector<8x512xf32> to vector<8x128xf32>
    %659 = vector.extract_strided_slice %656 {offsets = [0, 128], sizes = [8, 128], strides = [1, 1]} : vector<8x512xf32> to vector<8x128xf32>
    %660 = vector.extract_strided_slice %657 {offsets = [0, 256], sizes = [8, 128], strides = [1, 1]} : vector<8x512xf32> to vector<8x128xf32>
    %661 = vector.extract_strided_slice %656 {offsets = [0, 384], sizes = [8, 128], strides = [1, 1]} : vector<8x512xf32> to vector<8x128xf32>
    %662 = arith.mulf %659, %578 : vector<8x128xf32>
    %663 = arith.mulf %658, %660 : vector<8x128xf32>
    %664 = arith.addf %662, %663 : vector<8x128xf32>
    %665 = math.tanh %664 : vector<8x128xf32>
    %666 = arith.mulf %661, %665 : vector<8x128xf32>
    %667 = vector.shape_cast %589 : vector<8x1xi1> to vector<8x1xi1>
    %668 = vector.broadcast %667 : vector<8x1xi1> to vector<8x128xi1>
    %669 = arith.select %668, %666, %575 : vector<8x128xi1>, vector<8x128xf32>
    %670 = vector.shape_cast %589 : vector<8x1xi1> to vector<8x1xi1>
    %671 = vector.broadcast %670 : vector<8x1xi1> to vector<8x128xi1>
    %672 = arith.select %671, %664, %578 : vector<8x128xi1>, vector<8x128xf32>
    %673 = arith.extui %589 : vector<8x1xi1> to vector<8x1xi32>
    %674 = arith.sitofp %673 : vector<8x1xi32> to vector<8x1xf32>
    %675 = vector.broadcast %674 : vector<8x1xf32> to vector<8x128xf32>
    %676 = arith.mulf %669, %675 : vector<8x128xf32>
    %677 = arith.truncf %676 : vector<8x128xf32> to vector<8x128xbf16>
    %c6_107 = arith.constant 6 : index
    %c0_108 = arith.constant 0 : index
    %c0_109 = arith.constant 0 : index
    %678 = vector.load %arg10[%c6_107, %c0_108, %c0_109] : memref<8x8x128xbf16, #tpu.memory_space<vmem>>, vector<1x8x128xbf16>
    %679 = vector.shape_cast %678 : vector<1x8x128xbf16> to vector<8x128xbf16>
    %680 = vector.shape_cast %677 : vector<8x128xbf16> to vector<1x8x128xbf16>
    tpu.vector_store %arg10[%c6_107, %c0_108, %c0_109], %680 {strides = array<i32>} : memref<8x8x128xbf16, #tpu.memory_space<vmem>>, vector<1x8x128xbf16>,
    %c7_i32 = arith.constant 7 : i32
    %681 = arith.addi %22, %c7_i32 : i32
    %682 = vector.broadcast %681 : i32 to vector<8x1xi32>
    %683 = arith.cmpi slt, %682, %3 : vector<8x1xi32>
    %c7 = arith.constant 7 : index
    %c0_110 = arith.constant 0 : index
    %c0_111 = arith.constant 0 : index
    %684 = vector.load %arg3[%c7, %c0_110, %c0_111] : memref<8x8x512xbf16, #tpu.memory_space<vmem>>, vector<1x8x512xbf16>
    %685 = vector.shape_cast %684 : vector<1x8x512xbf16> to vector<8x512xbf16>
    %686 = arith.extf %685 : vector<8x512xbf16> to vector<8x512xf32>
    %687 = vector.broadcast %5 : vector<1x512xf32> to vector<8x512xf32>
    %688 = arith.addf %686, %687 : vector<8x512xf32>
    %689 = arith.truncf %615 : vector<8x128xf32> to vector<8x128xbf16>
    %cst_112 = arith.constant dense<0.000000e+00> : vector<8x512xf32>
    %690 = tpu.matmul %689, %4, %cst_112 {dimension_numbers = #tpu.dot_dimension_numbers<[1], [0], [0], [1], [0, 0, 1, 1], [], []>} : vector<8x128xbf16>, vector<128x512xbf16>, vector<8x512xf32> -> vector<8x512xf32>
    %691 = arith.addf %688, %690 : vector<8x512xf32>
    %692 = arith.negf %691 : vector<8x512xf32>
    %693 = math.exp %692 : vector<8x512xf32>
    %cst_113 = arith.constant 1.000000e+00 : f32
    %694 = vector.broadcast %cst_113 : f32 to vector<8x512xf32>
    %695 = arith.addf %694, %693 : vector<8x512xf32>
    %696 = arith.divf %694, %695 : vector<8x512xf32>
    %697 = math.tanh %691 : vector<8x512xf32>
    %698 = vector.extract_strided_slice %696 {offsets = [0, 0], sizes = [8, 128], strides = [1, 1]} : vector<8x512xf32> to vector<8x128xf32>
    %699 = vector.extract_strided_slice %696 {offsets = [0, 128], sizes = [8, 128], strides = [1, 1]} : vector<8x512xf32> to vector<8x128xf32>
    %700 = vector.extract_strided_slice %697 {offsets = [0, 256], sizes = [8, 128], strides = [1, 1]} : vector<8x512xf32> to vector<8x128xf32>
    %701 = vector.extract_strided_slice %696 {offsets = [0, 384], sizes = [8, 128], strides = [1, 1]} : vector<8x512xf32> to vector<8x128xf32>
    %702 = arith.mulf %699, %618 : vector<8x128xf32>
    %703 = arith.mulf %698, %700 : vector<8x128xf32>
    %704 = arith.addf %702, %703 : vector<8x128xf32>
    %705 = math.tanh %704 : vector<8x128xf32>
    %706 = arith.mulf %701, %705 : vector<8x128xf32>
    %707 = vector.shape_cast %683 : vector<8x1xi1> to vector<8x1xi1>
    %708 = vector.broadcast %707 : vector<8x1xi1> to vector<8x128xi1>
    %709 = arith.select %708, %706, %615 : vector<8x128xi1>, vector<8x128xf32>
    %710 = vector.shape_cast %683 : vector<8x1xi1> to vector<8x1xi1>
    %711 = vector.broadcast %710 : vector<8x1xi1> to vector<8x128xi1>
    %712 = arith.select %711, %704, %618 : vector<8x128xi1>, vector<8x128xf32>
    %713 = arith.truncf %709 : vector<8x128xf32> to vector<8x128xbf16>
    %714 = arith.truncf %642 : vector<8x128xf32> to vector<8x128xbf16>
    %715 = tpu.concatenate %713, %714 in 1 : vector<8x128xbf16>, vector<8x128xbf16> -> vector<8x256xbf16>
    %cst_114 = arith.constant dense<0.000000e+00> : vector<8x512xf32>
    %716 = tpu.matmul %715, %6, %cst_114 {dimension_numbers = #tpu.dot_dimension_numbers<[1], [0], [0], [1], [0, 0, 1, 1], [], []>} : vector<8x256xbf16>, vector<256x512xbf16>, vector<8x512xf32> -> vector<8x512xf32>
    %717 = vector.broadcast %8 : vector<1x512xf32> to vector<8x512xf32>
    %718 = arith.addf %717, %716 : vector<8x512xf32>
    %719 = arith.negf %718 : vector<8x512xf32>
    %720 = math.exp %719 : vector<8x512xf32>
    %cst_115 = arith.constant 1.000000e+00 : f32
    %721 = vector.broadcast %cst_115 : f32 to vector<8x512xf32>
    %722 = arith.addf %721, %720 : vector<8x512xf32>
    %723 = arith.divf %721, %722 : vector<8x512xf32>
    %724 = math.tanh %718 : vector<8x512xf32>
    %725 = vector.extract_strided_slice %723 {offsets = [0, 0], sizes = [8, 128], strides = [1, 1]} : vector<8x512xf32> to vector<8x128xf32>
    %726 = vector.extract_strided_slice %723 {offsets = [0, 128], sizes = [8, 128], strides = [1, 1]} : vector<8x512xf32> to vector<8x128xf32>
    %727 = vector.extract_strided_slice %724 {offsets = [0, 256], sizes = [8, 128], strides = [1, 1]} : vector<8x512xf32> to vector<8x128xf32>
    %728 = vector.extract_strided_slice %723 {offsets = [0, 384], sizes = [8, 128], strides = [1, 1]} : vector<8x512xf32> to vector<8x128xf32>
    %729 = arith.mulf %726, %645 : vector<8x128xf32>
    %730 = arith.mulf %725, %727 : vector<8x128xf32>
    %731 = arith.addf %729, %730 : vector<8x128xf32>
    %732 = math.tanh %731 : vector<8x128xf32>
    %733 = arith.mulf %728, %732 : vector<8x128xf32>
    %734 = vector.shape_cast %683 : vector<8x1xi1> to vector<8x1xi1>
    %735 = vector.broadcast %734 : vector<8x1xi1> to vector<8x128xi1>
    %736 = arith.select %735, %733, %642 : vector<8x128xi1>, vector<8x128xf32>
    %737 = vector.shape_cast %683 : vector<8x1xi1> to vector<8x1xi1>
    %738 = vector.broadcast %737 : vector<8x1xi1> to vector<8x128xi1>
    %739 = arith.select %738, %731, %645 : vector<8x128xi1>, vector<8x128xf32>
    %740 = arith.truncf %736 : vector<8x128xf32> to vector<8x128xbf16>
    %741 = arith.truncf %669 : vector<8x128xf32> to vector<8x128xbf16>
    %742 = tpu.concatenate %740, %741 in 1 : vector<8x128xbf16>, vector<8x128xbf16> -> vector<8x256xbf16>
    %cst_116 = arith.constant dense<0.000000e+00> : vector<8x512xf32>
    %743 = tpu.matmul %742, %7, %cst_116 {dimension_numbers = #tpu.dot_dimension_numbers<[1], [0], [0], [1], [0, 0, 1, 1], [], []>} : vector<8x256xbf16>, vector<256x512xbf16>, vector<8x512xf32> -> vector<8x512xf32>
    %744 = vector.broadcast %9 : vector<1x512xf32> to vector<8x512xf32>
    %745 = arith.addf %744, %743 : vector<8x512xf32>
    %746 = arith.negf %745 : vector<8x512xf32>
    %747 = math.exp %746 : vector<8x512xf32>
    %cst_117 = arith.constant 1.000000e+00 : f32
    %748 = vector.broadcast %cst_117 : f32 to vector<8x512xf32>
    %749 = arith.addf %748, %747 : vector<8x512xf32>
    %750 = arith.divf %748, %749 : vector<8x512xf32>
    %751 = math.tanh %745 : vector<8x512xf32>
    %752 = vector.extract_strided_slice %750 {offsets = [0, 0], sizes = [8, 128], strides = [1, 1]} : vector<8x512xf32> to vector<8x128xf32>
    %753 = vector.extract_strided_slice %750 {offsets = [0, 128], sizes = [8, 128], strides = [1, 1]} : vector<8x512xf32> to vector<8x128xf32>
    %754 = vector.extract_strided_slice %751 {offsets = [0, 256], sizes = [8, 128], strides = [1, 1]} : vector<8x512xf32> to vector<8x128xf32>
    %755 = vector.extract_strided_slice %750 {offsets = [0, 384], sizes = [8, 128], strides = [1, 1]} : vector<8x512xf32> to vector<8x128xf32>
    %756 = arith.mulf %753, %672 : vector<8x128xf32>
    %757 = arith.mulf %752, %754 : vector<8x128xf32>
    %758 = arith.addf %756, %757 : vector<8x128xf32>
    %759 = math.tanh %758 : vector<8x128xf32>
    %760 = arith.mulf %755, %759 : vector<8x128xf32>
    %761 = vector.shape_cast %683 : vector<8x1xi1> to vector<8x1xi1>
    %762 = vector.broadcast %761 : vector<8x1xi1> to vector<8x128xi1>
    %763 = arith.select %762, %760, %669 : vector<8x128xi1>, vector<8x128xf32>
    %764 = vector.shape_cast %683 : vector<8x1xi1> to vector<8x1xi1>
    %765 = vector.broadcast %764 : vector<8x1xi1> to vector<8x128xi1>
    %766 = arith.select %765, %758, %672 : vector<8x128xi1>, vector<8x128xf32>
    %767 = arith.extui %683 : vector<8x1xi1> to vector<8x1xi32>
    %768 = arith.sitofp %767 : vector<8x1xi32> to vector<8x1xf32>
    %769 = vector.broadcast %768 : vector<8x1xf32> to vector<8x128xf32>
    %770 = arith.mulf %763, %769 : vector<8x128xf32>
    %771 = arith.truncf %770 : vector<8x128xf32> to vector<8x128xbf16>
    %c7_118 = arith.constant 7 : index
    %c0_119 = arith.constant 0 : index
    %c0_120 = arith.constant 0 : index
    %772 = vector.load %arg10[%c7_118, %c0_119, %c0_120] : memref<8x8x128xbf16, #tpu.memory_space<vmem>>, vector<1x8x128xbf16>
    %773 = vector.shape_cast %772 : vector<1x8x128xbf16> to vector<8x128xbf16>
    %774 = vector.shape_cast %771 : vector<8x128xbf16> to vector<1x8x128xbf16>
    tpu.vector_store %arg10[%c7_118, %c0_119, %c0_120], %774 {strides = array<i32>} : memref<8x8x128xbf16, #tpu.memory_space<vmem>>, vector<1x8x128xbf16>,
    %c0_121 = arith.constant 0 : index
    %c0_122 = arith.constant 0 : index
    %c0_123 = arith.constant 0 : index
    %775 = vector.load %arg11[%c0_121, %c0_122, %c0_123] : memref<3x8x128xf32, #tpu.memory_space<vmem>>, vector<1x8x128xf32>
    %776 = vector.shape_cast %775 : vector<1x8x128xf32> to vector<8x128xf32>
    %777 = vector.shape_cast %709 : vector<8x128xf32> to vector<1x8x128xf32>
    tpu.vector_store %arg11[%c0_121, %c0_122, %c0_123], %777 {strides = array<i32>} : memref<3x8x128xf32, #tpu.memory_space<vmem>>, vector<1x8x128xf32>,
    %c0_124 = arith.constant 0 : index
    %c0_125 = arith.constant 0 : index
    %c0_126 = arith.constant 0 : index
    %778 = vector.load %arg12[%c0_124, %c0_125, %c0_126] : memref<3x8x128xf32, #tpu.memory_space<vmem>>, vector<1x8x128xf32>
    %779 = vector.shape_cast %778 : vector<1x8x128xf32> to vector<8x128xf32>
    %780 = vector.shape_cast %712 : vector<8x128xf32> to vector<1x8x128xf32>
    tpu.vector_store %arg12[%c0_124, %c0_125, %c0_126], %780 {strides = array<i32>} : memref<3x8x128xf32, #tpu.memory_space<vmem>>, vector<1x8x128xf32>,
    %c1_127 = arith.constant 1 : index
    %c0_128 = arith.constant 0 : index
    %c0_129 = arith.constant 0 : index
    %781 = vector.load %arg11[%c1_127, %c0_128, %c0_129] : memref<3x8x128xf32, #tpu.memory_space<vmem>>, vector<1x8x128xf32>
    %782 = vector.shape_cast %781 : vector<1x8x128xf32> to vector<8x128xf32>
    %783 = vector.shape_cast %736 : vector<8x128xf32> to vector<1x8x128xf32>
    tpu.vector_store %arg11[%c1_127, %c0_128, %c0_129], %783 {strides = array<i32>} : memref<3x8x128xf32, #tpu.memory_space<vmem>>, vector<1x8x128xf32>,
    %c1_130 = arith.constant 1 : index
    %c0_131 = arith.constant 0 : index
    %c0_132 = arith.constant 0 : index
    %784 = vector.load %arg12[%c1_130, %c0_131, %c0_132] : memref<3x8x128xf32, #tpu.memory_space<vmem>>, vector<1x8x128xf32>
    %785 = vector.shape_cast %784 : vector<1x8x128xf32> to vector<8x128xf32>
    %786 = vector.shape_cast %739 : vector<8x128xf32> to vector<1x8x128xf32>
    tpu.vector_store %arg12[%c1_130, %c0_131, %c0_132], %786 {strides = array<i32>} : memref<3x8x128xf32, #tpu.memory_space<vmem>>, vector<1x8x128xf32>,
    %c2_133 = arith.constant 2 : index
    %c0_134 = arith.constant 0 : index
    %c0_135 = arith.constant 0 : index
    %787 = vector.load %arg11[%c2_133, %c0_134, %c0_135] : memref<3x8x128xf32, #tpu.memory_space<vmem>>, vector<1x8x128xf32>
    %788 = vector.shape_cast %787 : vector<1x8x128xf32> to vector<8x128xf32>
    %789 = vector.shape_cast %763 : vector<8x128xf32> to vector<1x8x128xf32>
    tpu.vector_store %arg11[%c2_133, %c0_134, %c0_135], %789 {strides = array<i32>} : memref<3x8x128xf32, #tpu.memory_space<vmem>>, vector<1x8x128xf32>,
    %c2_136 = arith.constant 2 : index
    %c0_137 = arith.constant 0 : index
    %c0_138 = arith.constant 0 : index
    %790 = vector.load %arg12[%c2_136, %c0_137, %c0_138] : memref<3x8x128xf32, #tpu.memory_space<vmem>>, vector<1x8x128xf32>
    %791 = vector.shape_cast %790 : vector<1x8x128xf32> to vector<8x128xf32>
    %792 = vector.shape_cast %766 : vector<8x128xf32> to vector<1x8x128xf32>
    tpu.vector_store %arg12[%c2_136, %c0_137, %c0_138], %792 {strides = array<i32>} : memref<3x8x128xf32, #tpu.memory_space<vmem>>, vector<1x8x128xf32>,
    return
  }
  func.func @transform_0(%arg0: i32, %arg1: i32) -> (i32, i32) {
    %c0_i32 = arith.constant 0 : i32
    %c0_i32_0 = arith.constant 0 : i32
    return %arg0, %c0_i32 : i32, i32
  }
  func.func @transform_1(%arg0: i32, %arg1: i32) -> (i32, i32, i32) {
    %c0_i32 = arith.constant 0 : i32
    %c0_i32_0 = arith.constant 0 : i32
    return %arg1, %arg0, %c0_i32 : i32, i32, i32
  }
  func.func @transform_2(%arg0: i32, %arg1: i32) -> (i32, i32) {
    %c0_i32 = arith.constant 0 : i32
    %c0_i32_0 = arith.constant 0 : i32
    %c0_i32_1 = arith.constant 0 : i32
    return %c0_i32, %c0_i32_0 : i32, i32
  }
  func.func @transform_3(%arg0: i32, %arg1: i32) -> (i32, i32) {
    %c0_i32 = arith.constant 0 : i32
    %c0_i32_0 = arith.constant 0 : i32
    %c0_i32_1 = arith.constant 0 : i32
    return %c0_i32, %c0_i32_0 : i32, i32
  }
  func.func @transform_4(%arg0: i32, %arg1: i32) -> (i32, i32) {
    %c0_i32 = arith.constant 0 : i32
    %c0_i32_0 = arith.constant 0 : i32
    %c0_i32_1 = arith.constant 0 : i32
    return %c0_i32, %c0_i32_0 : i32, i32
  }
  func.func @transform_5(%arg0: i32, %arg1: i32) -> (i32, i32) {
    %c0_i32 = arith.constant 0 : i32
    %c0_i32_0 = arith.constant 0 : i32
    %c0_i32_1 = arith.constant 0 : i32
    return %c0_i32, %c0_i32_0 : i32, i32
  }
  func.func @transform_6(%arg0: i32, %arg1: i32) -> (i32, i32) {
    %c0_i32 = arith.constant 0 : i32
    %c0_i32_0 = arith.constant 0 : i32
    %c0_i32_1 = arith.constant 0 : i32
    return %c0_i32, %c0_i32_0 : i32, i32
  }
  func.func @transform_7(%arg0: i32, %arg1: i32) -> (i32, i32) {
    %c0_i32 = arith.constant 0 : i32
    %c0_i32_0 = arith.constant 0 : i32
    %c0_i32_1 = arith.constant 0 : i32
    return %c0_i32, %c0_i32_0 : i32, i32
  }
  func.func @transform_8(%arg0: i32, %arg1: i32) -> (i32, i32, i32) {
    %c0_i32 = arith.constant 0 : i32
    %c0_i32_0 = arith.constant 0 : i32
    return %arg1, %arg0, %c0_i32 : i32, i32, i32
  }
}

</mosaic_0001>

<bundles_post_ra>
// kernel: tpu_custom_call.1
= control target key start
LH: loop header
LB: loop body
LE: loop exit
PB: predicated region body
PF: predicated region fallthrough
CT: control target
= control target key end

     0   :  { %13 = vsyncpa [#allocation5], 0  ;;  %s8853_s0 = inlined_call_operand.vmem [shape: s32[8,1], index: 0, kind: input, shape index: {}]   ;;  %s8854_s1 = inlined_call_operand.hbm [shape: bf16[8,8,512], index: 1, kind: input, shape index: {}]   ;;  %s8855_s2 = inlined_call_operand.hbm [shape: bf16[128,512], index: 2, kind: input, shape index: {}]   ;;  %s8856_s3 = inlined_call_operand.vmem [shape: f32[1,512], index: 3, kind: input, shape index: {}]   ;;  %s8857_s4 = inlined_call_operand.hbm [shape: bf16[256,512], index: 4, kind: input, shape index: {}]   ;;  %s8858_s5 = inlined_call_operand.vmem [shape: f32[1,512], index: 5, kind: input, shape index: {}]   ;;  %s8859_s6 = inlined_call_operand.hbm [shape: bf16[256,512], index: 6, kind: input, shape index: {}]   ;;  %s8860_s7 = inlined_call_operand.vmem [shape: f32[1,512], index: 7, kind: input, shape index: {}]   ;;  %s8861_s8 = inlined_call_operand.hbm [shape: bf16[8,8,128], index: 8, kind: output, shape index: {}]  }
   0x1   :  { %14 = vsyncpa [#allocation8], 0 }
   0x2   :  { %15 = vsyncpa [#allocation11], 0 }
   0x3   :  { %16 = vsyncpa [#allocation6], 0  ;;  %s5678_s27 = smov [#allocation7]   ;;  %s5679_s29 = smov [#allocation4]  }
   0x4   :  { %s36_s28 = sshll.u32 %s5678_s27, 4  ;;  %s24_s30 = sshll.u32 %s5679_s29, 4  ;;  %s37_s28 = int_to_ptr.vmem [resolvable:$true] %s36_s28  ;;  %s5735_s30 = int_to_ptr.vmem [resolvable:$true] %s24_s30 }
   0x5   :  { %s5560_s11 = scalar_lea.hbm %s8855_s2, 4096 }
   0x6   :  { %p5561_p0 = scmp.ne.s32.totalorder %s8855_s2, %s5560_s11  ;;  %p5564_p1 = scmp.lt.u32.totalorder %s5560_s11, %s8855_s2 }
   0x8   :  { %p5566_p2 = pnand %p5564_p1, %p5561_p0 }
   0xa   :  { %5569 = shalt.err (!%p5566_p2)
}
   0xb   :  { %s5570_s16 = scalar_lea.vmem %s37_s28, 4096  ;;  %p5575_p4 = scmp.lt.s32.totalorder %s37_s28, %s37_s28 }
   0xc   :  { %p5571_p3 = scmp.ne.s32.totalorder %s37_s28, %s5570_s16  ;;  %p5576_p5 = scmp.lt.s32.totalorder %s5570_s16, %s5570_s16 }
   0xe   :  { %p5577_p6 = por %p5576_p5, %p5575_p4 }
  0x10   :  { %p5578_p7 = pnand %p5577_p6, %p5571_p3 }
  0x12   :  { %5581 = shalt.err (!%p5578_p7)
}
  0x13   :  { %s5680_s17 = smov 256   ;;  %s5681_s18 = smov 16  }
  0x14   :  { %42 = dma.hbm_to_vmem [thread:$0]  %s8855_s2, 4096, %s37_s28, [#allocation8], %s5680_s17, %s5680_s17, %s5681_s18  }
  0x15   :  { %s5582_s23 = scalar_lea.hbm %s8854_s1, 2048 }
  0x16   :  { %p5583_p8 = scmp.ne.s32.totalorder %s8854_s1, %s5582_s23  ;;  %p5586_p9 = scmp.lt.u32.totalorder %s5582_s23, %s8854_s1 }
  0x18   :  { %p5588_p10 = pnand %p5586_p9, %p5583_p8 }
  0x1a   :  { %5591 = shalt.err (!%p5588_p10)
}
  0x1b   :  { %s5592_s29 = scalar_lea.vmem %s5735_s30, 2048  ;;  %p5597_p12 = scmp.lt.s32.totalorder %s5735_s30, %s5735_s30 }
  0x1c   :  { %p5593_p11 = scmp.ne.s32.totalorder %s5735_s30, %s5592_s29  ;;  %p5598_p13 = scmp.lt.s32.totalorder %s5592_s29, %s5592_s29 }
  0x1e   :  { %p5599_p0 = por %p5598_p13, %p5597_p12 }
  0x20   :  { %p5600_p1 = pnand %p5599_p0, %p5593_p11 }
  0x22   :  { %5603 = shalt.err (!%p5600_p1)
}
  0x23   :  { %30 = dma.hbm_to_vmem [thread:$0]  %s8854_s1, 2048, %s5735_s30, [#allocation5], %s5680_s17, %s5680_s17, %s5681_s18  }
  0x24   :  { %s5682_s9 = smov [#allocation9]   ;;  %s5683_s11 = smov [#allocation10]  }
  0x25   :  { %s50_s10 = sshll.u32 %s5682_s9, 4  ;;  %s64_s12 = sshll.u32 %s5683_s11, 4  ;;  %s51_s10 = int_to_ptr.vmem [resolvable:$true] %s50_s10  ;;  %s5772_s12 = int_to_ptr.vmem [resolvable:$true] %s64_s12 }
  0x26   :  { %s5604_s15 = scalar_lea.hbm %s8857_s4, 8192 }
  0x27   :  { %p5605_p2 = scmp.ne.s32.totalorder %s8857_s4, %s5604_s15  ;;  %p5608_p3 = scmp.lt.u32.totalorder %s5604_s15, %s8857_s4 }
  0x29   :  { %p5610_p4 = pnand %p5608_p3, %p5605_p2 }
  0x2b   :  { %5613 = shalt.err (!%p5610_p4)
}
  0x2c   :  { %s5614_s1 = scalar_lea.vmem %s51_s10, 8192  ;;  %p5619_p6 = scmp.lt.s32.totalorder %s51_s10, %s51_s10 }
  0x2d   :  { %p5615_p5 = scmp.ne.s32.totalorder %s51_s10, %s5614_s1  ;;  %p5620_p7 = scmp.lt.s32.totalorder %s5614_s1, %s5614_s1 }
  0x2f   :  { %p5621_p8 = por %p5620_p7, %p5619_p6 }
  0x31   :  { %p5622_p9 = pnand %p5621_p8, %p5615_p5 }
  0x33   :  { %5625 = shalt.err (!%p5622_p9)
}
  0x34   :  { %56 = dma.hbm_to_vmem [thread:$0]  %s8857_s4, 8192, %s51_s10, [#allocation8], %s5680_s17, %s5680_s17, %s5681_s18  }
  0x35   :  { %s5626_s25 = scalar_lea.hbm %s8859_s6, 8192 }
  0x36   :  { %p5627_p10 = scmp.ne.s32.totalorder %s8859_s6, %s5626_s25  ;;  %p5630_p11 = scmp.lt.u32.totalorder %s5626_s25, %s8859_s6 }
  0x38   :  { %p5632_p12 = pnand %p5630_p11, %p5627_p10 }
  0x3a   :  { %5635 = shalt.err (!%p5632_p12)
}
  0x3b   :  { %s5636_s28 = scalar_lea.vmem %s5772_s12, 8192  ;;  %p5641_p0 = scmp.lt.s32.totalorder %s5772_s12, %s5772_s12 }
  0x3c   :  { %p5637_p13 = scmp.ne.s32.totalorder %s5772_s12, %s5636_s28  ;;  %p5642_p1 = scmp.lt.s32.totalorder %s5636_s28, %s5636_s28 }
  0x3e   :  { %p5643_p2 = por %p5642_p1, %p5641_p0 }
  0x40   :  { %p5644_p3 = pnand %p5643_p2, %p5637_p13 }
  0x42   :  { %5647 = shalt.err (!%p5644_p3)
}
  0x43   :  { %70 = dma.hbm_to_vmem [thread:$0]  %s8859_s6, 8192, %s5772_s12, [#allocation11], %s5680_s17, %s5680_s17, %s5681_s18  }
  0x44   :  { %5670 = dma.done.wait [#allocation5], 2048  }
  0x45   :  { %5671 = vsyncadd [#allocation5], 4294965248 }
  0x46   :  { %5672 = dma.done.wait [#allocation8], 12288  }
  0x47   :  { %5673 = vsyncadd [#allocation8], 4294955008 }
  0x48   :  { %5674 = dma.done.wait [#allocation11], 8192  }
  0x49   :  { %5675 = vsyncadd [#allocation11], 4294959104  ;;  %v8864_v0 = vmov 0   ;;  %v4414_v1 = vld [vmem:[#allocation7 + $0x4] ss:$16 sps:$4 sm:$0xff]   ;;  %v5816_v25 = vld [vmem:[%s8853_s0] sm:$0xff] }
  0x4a   :  { %497 = vmatprep.mubr.bf16.mxu0 %v8864_v0  ;;  %538 = vmatprep.mubr.bf16.mxu1 %v8864_v0  ;;  %v4416_v2 = vld [vmem:[#allocation7] ss:$16 sps:$4 sm:$0xff]   ;;  %v4417_v3 = vld [vmem:[#allocation7 + $0x24] ss:$16 sps:$4 sm:$0xff]   ;;  %v4425_v6 = vld [vmem:[#allocation7 + $0xc] ss:$16 sps:$4 sm:$0xff]  }
  0x4b   :  { %4392 = vset.pattern.permute.xlu0 %v8864_v0  ;;  %4393 = vset.pattern.permute.xlu1 %v8864_v0  ;;  %v4419_v4 = vld [vmem:[#allocation7 + $0x20] ss:$16 sps:$4 sm:$0xff]   ;;  %v4420_v5 = vld [vmem:[#allocation7 + $0x44] ss:$16 sps:$4 sm:$0xff]   ;;  %v4428_v7 = vld [vmem:[#allocation7 + $0x8] ss:$16 sps:$4 sm:$0xff]  }
  0x4c   :  { %465 = vmatprep.subr.bf16.mxu0 %v4414_v1  ;;  %v4422_v8 = vld [vmem:[#allocation7 + $0x40] ss:$16 sps:$4 sm:$0xff]   ;;  %506 = vmatprep.subr.bf16.mxu1 %v4425_v6  ;;  %v4423_v9 = vld [vmem:[#allocation7 + $0x64] ss:$16 sps:$4 sm:$0xff]   ;;  %v4431_v10 = vld [vmem:[#allocation7 + $0x2c] ss:$16 sps:$4 sm:$0xff]  }
  0x4d   :  { %466 = vmatpush1.bf16.msra.mxu0 %v4416_v2  ;;  %507 = vmatpush1.bf16.msra.mxu1 %v4428_v7  ;;  %v4434_v11 = vld [vmem:[#allocation7 + $0x28] ss:$16 sps:$4 sm:$0xff]   ;;  %v4427_v12 = vld [vmem:[#allocation7 + $0x60] ss:$16 sps:$4 sm:$0xff]   ;;  %v4429_v13 = vld [vmem:[#allocation7 + $0x84] ss:$16 sps:$4 sm:$0xff]  }
  0x4e   :  { %467 = vmatprep.subr.bf16.mxu0 %v4417_v3  ;;  %508 = vmatprep.subr.bf16.mxu1 %v4431_v10  ;;  %v4437_v14 = vld [vmem:[#allocation7 + $0x4c] ss:$16 sps:$4 sm:$0xff]   ;;  %v4440_v15 = vld [vmem:[#allocation7 + $0x48] ss:$16 sps:$4 sm:$0xff]   ;;  %v4433_v17 = vld [vmem:[#allocation7 + $0x80] ss:$16 sps:$4 sm:$0xff]  }
  0x4f   :  { %v4443_v16 = vld [vmem:[#allocation7 + $0x6c] ss:$16 sps:$4 sm:$0xff]   ;;  %v4435_v18 = vld [vmem:[#allocation7 + $0xa4] ss:$16 sps:$4 sm:$0xff]   ;;  %v4446_v19 = vld [vmem:[#allocation7 + $0x68] ss:$16 sps:$4 sm:$0xff]  }
  0x50   :  { %v4449_v20 = vld [vmem:[#allocation7 + $0x8c] ss:$16 sps:$4 sm:$0xff]   ;;  %v4439_v21 = vld [vmem:[#allocation7 + $0xa0] ss:$16 sps:$4 sm:$0xff]   ;;  %v4441_v22 = vld [vmem:[#allocation7 + $0xc4] ss:$16 sps:$4 sm:$0xff]  }
  0x51   :  { %468 = vmatpush1.bf16.msra.mxu0 %v4419_v4  ;;  %509 = vmatpush1.bf16.msra.mxu1 %v4434_v11  ;;  %v4452_v23 = vld [vmem:[#allocation7 + $0x88] ss:$16 sps:$4 sm:$0xff]   ;;  %v4453_v24 = vld [vmem:[#allocation7 + $0xac] ss:$16 sps:$4 sm:$0xff]   ;;  %9326 = vst [vmem:[#allocation17_spill] sm:$0xff] %v5816_v25  ;;  %vm4102_vm0 = vcmp.gt.s32.totalorder %v5816_v25, 0 }
  0x52   :  { %469 = vmatprep.subr.bf16.mxu0 %v4420_v5  ;;  %510 = vmatprep.subr.bf16.mxu1 %v4437_v14  ;;  %v4445_v26 = vld [vmem:[#allocation7 + $0xc0] ss:$16 sps:$4 sm:$0xff]   ;;  %v4447_v27 = vld [vmem:[#allocation7 + $0xe4] ss:$16 sps:$4 sm:$0xff]   ;;  %v575_v28 = vsel %vm4102_vm0, 1, %v8864_v0  ;;  %vm4273_vm1 = vcmp.gt.s32.totalorder %v5816_v25, 1 }
  0x53   :  { %v4455_v29 = vld [vmem:[#allocation7 + $0xa8] ss:$16 sps:$4 sm:$0xff]   ;;  %v4456_v30 = vld [vmem:[#allocation7 + $0xcc] ss:$16 sps:$4 sm:$0xff]   ;;  %577 = vperm.xlu0 %4392, %v575_v28   ;;  %v1625_v31 = vsel %vm4273_vm1, 1, %v8864_v0  ;;  %vm4306_vm2 = vcmp.gt.s32.totalorder %v5816_v25, 4 }
  0x54   :  { %v4451_v32 = vld [vmem:[#allocation7 + $0xe0] ss:$16 sps:$4 sm:$0xff]   ;;  %v4458_v33 = vld [vmem:[#allocation7 + $0xc8] ss:$16 sps:$4 sm:$0xff]   ;;  %v4462_v34 = vld [vmem:[#allocation9 + $0x4] ss:$16 sps:$4 sm:$0xff]  }
  0x55   :  { %470 = vmatpush1.bf16.msra.mxu0 %v4422_v8  ;;  %511 = vmatpush1.bf16.msra.mxu1 %v4440_v15  ;;  %v4459_v35 = vld [vmem:[#allocation7 + $0xec] ss:$16 sps:$4 sm:$0xff]   ;;  %v4461_v36 = vld [vmem:[#allocation7 + $0xe8] ss:$16 sps:$4 sm:$0xff]   ;;  %v2729_v37 = vsel %vm4306_vm2, 1, %v8864_v0  ;;  %vm4328_vm3 = vcmp.gt.s32.totalorder %v5816_v25, 6 }
  0x56   :  { %471 = vmatprep.subr.bf16.mxu0 %v4423_v9  ;;  %512 = vmatprep.subr.bf16.mxu1 %v4443_v16  ;;  %v4466_v38 = vld [vmem:[#allocation9] ss:$16 sps:$4 sm:$0xff]   ;;  %v4468_v39 = vld [vmem:[#allocation9 + $0x24] ss:$16 sps:$4 sm:$0xff]   ;;  %v8862_v40 = vmov 0.0   ;;  %v8866_v44 = vmov 0.0|0.0  }
  0x57   :  { %1627 = vperm.xlu0 %4392, %v1625_v31   ;;  %v4272_v41 = vsel %vm4102_vm0, 1.0, %v8862_v40  ;;  %v4464_v42 = vld [vmem:[#allocation9 + $0xc] ss:$16 sps:$4 sm:$0xff]   ;;  %v4472_v43 = vld [vmem:[#allocation9 + $0x20] ss:$16 sps:$4 sm:$0xff]   ;;  %v4283_v45 = vsel %vm4273_vm1, 1.0, %v8862_v40 }
  0x58   :  { %v3465_v46 = vsel %vm4328_vm3, 1, %v8864_v0  ;;  %v4467_v47 = vld [vmem:[#allocation9 + $0x8] ss:$16 sps:$4 sm:$0xff]   ;;  %v4474_v48 = vld [vmem:[#allocation9 + $0x44] ss:$16 sps:$4 sm:$0xff]   ;;  %vm4317_vm4 = vcmp.gt.s32.totalorder %v5816_v25, 5  ;;  %v4394_v50 = vpack.i.bf16 %v4283_v45, %v4272_v41 }
  0x59   :  { %472 = vmatpush1.bf16.msra.mxu0 %v4427_v12  ;;  %513 = vmatpush1.bf16.msra.mxu1 %v4446_v19  ;;  %v4470_v49 = vld [vmem:[#allocation9 + $0x2c] ss:$16 sps:$4 sm:$0xff]   ;;  %v4478_v51 = vld [vmem:[#allocation9 + $0x40] ss:$16 sps:$4 sm:$0xff]   ;;  %v4316_v52 = vsel %vm4306_vm2, 1.0, %v8862_v40  ;;  %v4327_v53 = vsel %vm4317_vm4, 1.0, %v8862_v40 }
  0x5a   :  { %473 = vmatprep.subr.bf16.mxu0 %v4429_v13  ;;  %514 = vmatprep.subr.bf16.mxu1 %v4449_v20  ;;  %v5849_v54 = vld [vmem:[#allocation9 + $0x28] ss:$16 sps:$4 sm:$0xff]   ;;  %v5851_v55 = vld [vmem:[#allocation9 + $0x64] ss:$16 sps:$4 sm:$0xff]   ;;  %v5854_v56 = vld [vmem:[#allocation9 + $0x4c] ss:$16 sps:$4 sm:$0xff]   ;;  %v4404_v57 = vpack.i.bf16 %v4327_v53, %v4316_v52  ;;  %v280_v52 = vlaneseq }
  0x5b   :  { %2731 = vperm.xlu0 %4392, %v2729_v37   ;;  %v5856_v58 = vld [vmem:[#allocation9 + $0x60] ss:$16 sps:$4 sm:$0xff]   ;;  %v5858_v59 = vld [vmem:[#allocation9 + $0x48] ss:$16 sps:$4 sm:$0xff]   ;;  %v5861_v60 = vld [vmem:[#allocation9 + $0x6c] ss:$16 sps:$4 sm:$0xff]  }
  0x5c   :  { %v5866_v61 = vld [vmem:[#allocation9 + $0x68] ss:$16 sps:$4 sm:$0xff]   ;;  %v5872_v62 = vld [vmem:[#allocation9 + $0x84] ss:$16 sps:$4 sm:$0xff]   ;;  %v5874_v63 = vld [vmem:[#allocation9 + $0x8c] ss:$16 sps:$4 sm:$0xff]  }
  0x5d   :  { %474 = vmatpush1.bf16.msra.mxu0 %v4433_v17  ;;  %515 = vmatpush1.bf16.msra.mxu1 %v4452_v23  ;;  %v5876_v1 = vld [vmem:[#allocation9 + $0x80] ss:$16 sps:$4 sm:$0xff]   ;;  %v5878_v2 = vld [vmem:[#allocation9 + $0x88] ss:$16 sps:$4 sm:$0xff]   ;;  %v5884_v3 = vld [vmem:[#allocation9 + $0xa4] ss:$16 sps:$4 sm:$0xff]  }
  0x5e   :  { %475 = vmatprep.subr.bf16.mxu0 %v4435_v18  ;;  %516 = vmatprep.subr.bf16.mxu1 %v4453_v24  ;;  %v5886_v4 = vld [vmem:[#allocation9 + $0xac] ss:$16 sps:$4 sm:$0xff]   ;;  %v5888_v5 = vld [vmem:[#allocation9 + $0xa0] ss:$16 sps:$4 sm:$0xff]   ;;  %v5890_v6 = vld [vmem:[#allocation9 + $0xa8] ss:$16 sps:$4 sm:$0xff]  }
  0x5f   :  { %3467 = vperm.xlu0 %4392, %v3465_v46   ;;  %v5896_v7 = vld [vmem:[#allocation9 + $0xc4] ss:$16 sps:$4 sm:$0xff]   ;;  %v5898_v8 = vld [vmem:[#allocation9 + $0xcc] ss:$16 sps:$4 sm:$0xff]   ;;  %v5900_v9 = vld [vmem:[#allocation9 + $0xc0] ss:$16 sps:$4 sm:$0xff]  }
  0x60   :  { %v5902_v10 = vld [vmem:[#allocation9 + $0xc8] ss:$16 sps:$4 sm:$0xff]   ;;  %v5908_v11 = vld [vmem:[#allocation9 + $0xe4] ss:$16 sps:$4 sm:$0xff]   ;;  %v5910_v12 = vld [vmem:[#allocation9 + $0xec] ss:$16 sps:$4 sm:$0xff]  }
  0x61   :  { %476 = vmatpush1.bf16.msra.mxu0 %v4439_v21  ;;  %517 = vmatpush1.bf16.msra.mxu1 %v4455_v29  ;;  %v5912_v13 = vld [vmem:[#allocation9 + $0xe0] ss:$16 sps:$4 sm:$0xff]   ;;  %v5914_v14 = vld [vmem:[#allocation9 + $0xe8] ss:$16 sps:$4 sm:$0xff]   ;;  %v5920_v15 = vld [vmem:[#allocation9 + $0x104] ss:$16 sps:$4 sm:$0xff]  }
  0x62   :  { %477 = vmatprep.subr.bf16.mxu0 %v4441_v22  ;;  %518 = vmatprep.subr.bf16.mxu1 %v4456_v30  ;;  %v5922_v16 = vld [vmem:[#allocation9 + $0x10c] ss:$16 sps:$4 sm:$0xff]   ;;  %v5924_v17 = vld [vmem:[#allocation9 + $0x100] ss:$16 sps:$4 sm:$0xff]   ;;  %v5926_v18 = vld [vmem:[#allocation9 + $0x108] ss:$16 sps:$4 sm:$0xff]  }
  0x63   :  { %4395 = vperm.xlu0 %4392, %v4394_v50   ;;  %v5932_v19 = vld [vmem:[#allocation9 + $0x124] ss:$16 sps:$4 sm:$0xff]   ;;  %v5934_v20 = vld [vmem:[#allocation9 + $0x12c] ss:$16 sps:$4 sm:$0xff]   ;;  %v5936_v21 = vld [vmem:[#allocation9 + $0x120] ss:$16 sps:$4 sm:$0xff]  }
  0x64   :  { %v5938_v22 = vld [vmem:[#allocation9 + $0x128] ss:$16 sps:$4 sm:$0xff]   ;;  %v5944_v23 = vld [vmem:[#allocation9 + $0x144] ss:$16 sps:$4 sm:$0xff]   ;;  %v5946_v24 = vld [vmem:[#allocation9 + $0x14c] ss:$16 sps:$4 sm:$0xff]  }
  0x65   :  { %478 = vmatpush1.bf16.msra.mxu0 %v4445_v26  ;;  %519 = vmatpush1.bf16.msra.mxu1 %v4458_v33  ;;  %v5948_v26 = vld [vmem:[#allocation9 + $0x140] ss:$16 sps:$4 sm:$0xff]   ;;  %v5956_v28 = vld [vmem:[#allocation9 + $0x164] ss:$16 sps:$4 sm:$0xff]   ;;  %v5958_v29 = vld [vmem:[#allocation9 + $0x16c] ss:$16 sps:$4 sm:$0xff]  }
  0x66   :  { %479 = vmatprep.subr.bf16.mxu0 %v4447_v27  ;;  %520 = vmatprep.subr.bf16.mxu1 %v4459_v35  ;;  %v5950_v27 = vld [vmem:[#allocation9 + $0x148] ss:$16 sps:$4 sm:$0xff]   ;;  %v5960_v30 = vld [vmem:[#allocation9 + $0x160] ss:$16 sps:$4 sm:$0xff]   ;;  %v5970_v33 = vld [vmem:[#allocation9 + $0x18c] ss:$16 sps:$4 sm:$0xff]  }
  0x67   :  { %4405 = vperm.xlu0 %4392, %v4404_v57   ;;  %v5962_v31 = vld [vmem:[#allocation9 + $0x168] ss:$16 sps:$4 sm:$0xff]   ;;  %9328 = vst [vmem:[#allocation19_spill] sm:$0xff] %v5970_v33  ;;  %v5982_v37 = vld [vmem:[#allocation9 + $0x1ac] ss:$16 sps:$4 sm:$0xff]   ;;  %v281_v53 = vshrl.u32 %v280_v52, 7 }
  0x68   :  { %v5974_v35 = vld [vmem:[#allocation9 + $0x188] ss:$16 sps:$4 sm:$0xff]   ;;  %9332 = vst [vmem:[#allocation23_spill] sm:$0xff] %v5982_v37  ;;  %v5988_v41 = vld [vmem:[#allocation9 + $0x1c4] ss:$16 sps:$4 sm:$0xff]  }
  0x69   :  { %480 = vmatpush1.bf16.msra.mxu0 %v4451_v32  ;;  %521 = vmatpush1.bf16.msra.mxu1 %v4461_v36  ;;  %v5968_v32 = vld [vmem:[#allocation9 + $0x184] ss:$16 sps:$4 sm:$0xff]   ;;  %9330 = vst [vmem:[#allocation21_spill] sm:$0xff] %v5974_v35  ;;  %9335 = vst [vmem:[#allocation26_spill] sm:$0xff] %v5988_v41  ;;  %v5998_v45 = vld [vmem:[#allocation9 + $0x1c8] ss:$16 sps:$4 sm:$0xff]  }
  0x6a   :  { %904 = vmatprep.subr.bf16.mxu0 %v4462_v34  ;;  %945 = vmatprep.subr.bf16.mxu1 %v4464_v42  ;;  %9327 = vst [vmem:[#allocation18_spill] sm:$0xff] %v5968_v32  ;;  %v5972_v34 = vld [vmem:[#allocation9 + $0x180] ss:$16 sps:$4 sm:$0xff]   ;;  %v5980_v36 = vld [vmem:[#allocation9 + $0x1a4] ss:$16 sps:$4 sm:$0xff]   ;;  %9338 = vst [vmem:[#allocation29_spill] sm:$0xff] %v5998_v45 }
  0x6b   :  { %9329 = vst [vmem:[#allocation20_spill] sm:$0xff] %v5972_v34  ;;  %9331 = vst [vmem:[#allocation22_spill] sm:$0xff] %v5980_v36  ;;  %v5990_v42 = vld [vmem:[#allocation9 + $0x1cc] ss:$16 sps:$4 sm:$0xff]   ;;  %v6002_v46 = vld [vmem:[#allocation9 + $0x1e4] ss:$16 sps:$4 sm:$0xff]  }
  0x6c   :  { %498 = vmatmul.mubr.bf16.vlgmr.msra.gmra.mrb[0].mxu0 %v8866_v44  ;;  %539 = vmatmul.mubr.bf16.vlgmr.msra.gmra.mrb[0].mxu1 %v8866_v44  ;;  %9336 = vst [vmem:[#allocation27_spill] sm:$0xff] %v5990_v42  ;;  %9339 = vst [vmem:[#allocation30_spill] sm:$0xff] %v6002_v46  ;;  %v6016_v50 = vld [vmem:[#allocation10 + $0x4] ss:$16 sps:$4 sm:$0xff]   ;;  %v6022_v57 = vsub.s32 0, %v281_v53  ;;  %v274_v52 = vld [vmem:[#allocation4 + $0x8] sm:$0xff] }
  0x6d   :  { %905 = vmatpush1.bf16.msra.mxu0 %v4466_v38  ;;  %936 = vmatprep.mubr.bf16.mxu0 %v8866_v44  ;;  %v5984_v38 = vld [vmem:[#allocation9 + $0x1a0] ss:$16 sps:$4 sm:$0xff]   ;;  %9343 = vst [vmem:[#allocation34_spill] sm:$0xff] %v6016_v50  ;;  %v129_v40 = vld [vmem:[%s8856_s3] sm:$0xf] }
  0x6e   :  { %906 = vmatprep.subr.bf16.mxu0 %v4468_v39  ;;  %946 = vmatpush1.bf16.msra.mxu1 %v4467_v47  ;;  %9333 = vst [vmem:[#allocation24_spill] sm:$0xff] %v5984_v38  ;;  %v5986_v39 = vld [vmem:[#allocation9 + $0x1a8] ss:$16 sps:$4 sm:$0xff]   ;;  %v6004_v47 = vld [vmem:[#allocation9 + $0x1ec] ss:$16 sps:$4 sm:$0xff]   ;;  %v273_v0 = vld [vmem:[#allocation4] sm:$0xff] }
  0x6f   :  { %947 = vmatprep.subr.bf16.mxu1 %v4470_v49  ;;  %977 = vmatprep.mubr.bf16.mxu1 %v8866_v44  ;;  %9334 = vst [vmem:[#allocation25_spill] sm:$0xff] %v5986_v39  ;;  %9340 = vst [vmem:[#allocation31_spill] sm:$0xff] %v6004_v47  ;;  %v6010_v49 = vld [vmem:[#allocation9 + $0x1e8] ss:$16 sps:$4 sm:$0xff]   ;;  %v6027_v44 = vsub.s32 1, %v281_v53  ;;  %v275_v25 = vunpack.c.l.bf16 %v273_v0 }
  0x70   :  { %9342 = vst [vmem:[#allocation33_spill] sm:$0xff] %v6010_v49 }
  0x71   :  { %907 = vmatpush1.bf16.msra.mxu0 %v4472_v43  ;;  %v5996_v43 = vld [vmem:[#allocation9 + $0x1c0] ss:$16 sps:$4 sm:$0xff]  }
  0x72   :  { %908 = vmatprep.subr.bf16.mxu0 %v4474_v48  ;;  %948 = vmatpush1.bf16.msra.mxu1 %v5849_v54  ;;  %9337 = vst [vmem:[#allocation28_spill] sm:$0xff] %v5996_v43  ;;  %v6008_v48 = vld [vmem:[#allocation9 + $0x1e0] ss:$16 sps:$4 sm:$0xff]  }
  0x73   :  { %949 = vmatprep.subr.bf16.mxu1 %v5854_v56  ;;  %9341 = vst [vmem:[#allocation32_spill] sm:$0xff] %v6008_v48 }
  0x75   :  { %909 = vmatpush1.bf16.msra.mxu0 %v4478_v51  ;;  %v6018_v51 = vld [vmem:[#allocation10 + $0xc] ss:$16 sps:$4 sm:$0xff]  }
  0x76   :  { %910 = vmatprep.subr.bf16.mxu0 %v5851_v55  ;;  %950 = vmatpush1.bf16.msra.mxu1 %v5858_v59  ;;  %9344 = vst [vmem:[#allocation35_spill] sm:$0xff] %v6018_v51 }
  0x77   :  { %951 = vmatprep.subr.bf16.mxu1 %v5861_v60 }
  0x79   :  { %911 = vmatpush1.bf16.msra.mxu0 %v5856_v58 }
  0x7a   :  { %952 = vmatpush1.bf16.msra.mxu1 %v5866_v61  ;;  %912 = vmatprep.subr.bf16.mxu0 %v5872_v62 }
  0x7b   :  { %953 = vmatprep.subr.bf16.mxu1 %v5874_v63 }
  0x7d   :  { %913 = vmatpush1.bf16.msra.mxu0 %v5876_v1 }
  0x7e   :  { %954 = vmatpush1.bf16.msra.mxu1 %v5878_v2  ;;  %914 = vmatprep.subr.bf16.mxu0 %v5884_v3 }
  0x7f   :  { %955 = vmatprep.subr.bf16.mxu1 %v5886_v4 }
  0x81   :  { %915 = vmatpush1.bf16.msra.mxu0 %v5888_v5 }
  0x82   :  { %956 = vmatpush1.bf16.msra.mxu1 %v5890_v6  ;;  %916 = vmatprep.subr.bf16.mxu0 %v5896_v7 }
  0x83   :  { %957 = vmatprep.subr.bf16.mxu1 %v5898_v8 }
  0x85   :  { %917 = vmatpush1.bf16.msra.mxu0 %v5900_v9 }
  0x86   :  { %958 = vmatpush1.bf16.msra.mxu1 %v5902_v10  ;;  %918 = vmatprep.subr.bf16.mxu0 %v5908_v11 }
  0x87   :  { %959 = vmatprep.subr.bf16.mxu1 %v5910_v12 }
  0x89   :  { %919 = vmatpush1.bf16.msra.mxu0 %v5912_v13 }
  0x8a   :  { %960 = vmatpush1.bf16.msra.mxu1 %v5914_v14  ;;  %920 = vmatprep.subr.bf16.mxu0 %v5920_v15 }
  0x8b   :  { %961 = vmatprep.subr.bf16.mxu1 %v5922_v16 }
  0x8d   :  { %921 = vmatpush1.bf16.msra.mxu0 %v5924_v17 }
  0x8e   :  { %962 = vmatpush1.bf16.msra.mxu1 %v5926_v18  ;;  %922 = vmatprep.subr.bf16.mxu0 %v5932_v19 }
  0x8f   :  { %963 = vmatprep.subr.bf16.mxu1 %v5934_v20 }
  0x91   :  { %923 = vmatpush1.bf16.msra.mxu0 %v5936_v21 }
  0x92   :  { %964 = vmatpush1.bf16.msra.mxu1 %v5938_v22  ;;  %924 = vmatprep.subr.bf16.mxu0 %v5944_v23 }
  0x93   :  { %965 = vmatprep.subr.bf16.mxu1 %v5946_v24 }
  0x95   :  { %925 = vmatpush1.bf16.msra.mxu0 %v5948_v26 }
  0x96   :  { %966 = vmatpush1.bf16.msra.mxu1 %v5950_v27  ;;  %926 = vmatprep.subr.bf16.mxu0 %v5956_v28 }
  0x97   :  { %967 = vmatprep.subr.bf16.mxu1 %v5958_v29 }
  0x99   :  { %927 = vmatpush1.bf16.msra.mxu0 %v5960_v30 }
  0x9a   :  { %968 = vmatpush1.bf16.msra.mxu1 %v5962_v31  ;;  %928 = vmatprep.subr.bf16.mxu0 %v5968_v32  ;;  %v277_v32 = vunpack.c.l.bf16 %v274_v52 }
  0x9b   :  { %969 = vmatprep.subr.bf16.mxu1 %v5970_v33 }
  0x9d   :  { %929 = vmatpush1.bf16.msra.mxu0 %v5972_v34 }
  0x9e   :  { %970 = vmatpush1.bf16.msra.mxu1 %v5974_v35  ;;  %930 = vmatprep.subr.bf16.mxu0 %v5980_v36 }
  0x9f   :  { %971 = vmatprep.subr.bf16.mxu1 %v5982_v37 }
  0xa1   :  { %931 = vmatpush1.bf16.msra.mxu0 %v5984_v38 }
  0xa2   :  { %972 = vmatpush1.bf16.msra.mxu1 %v5986_v39  ;;  %932 = vmatprep.subr.bf16.mxu0 %v5988_v41  ;;  %v6042_v41 = vsub.s32 2, %v281_v53 }
  0xa3   :  { %973 = vmatprep.subr.bf16.mxu1 %v5990_v42 }
  0xa5   :  { %933 = vmatpush1.bf16.msra.mxu0 %v5996_v43 }
  0xa6   :  { %974 = vmatpush1.bf16.msra.mxu1 %v5998_v45  ;;  %934 = vmatprep.subr.bf16.mxu0 %v6002_v46  ;;  %v278_v45 = vunpack.c.h.bf16 %v274_v52 }
  0xa7   :  { %975 = vmatprep.subr.bf16.mxu1 %v6004_v47 }
  0xa9   :  { %935 = vmatpush1.bf16.msra.mxu0 %v6008_v48  ;;  %v276_v48 = vunpack.c.h.bf16 %v273_v0 }
  0xaa   :  { %976 = vmatpush1.bf16.msra.mxu1 %v6010_v49  ;;  %1359 = vmatprep.subr.bf16.mxu0 %v6016_v50  ;;  %v6030_v49 = vrot.slane %v129_v40, %v6022_v57  ;;  %v6033_v50 = vrot.slane %v129_v40, %v6027_v44 }
  0xab   :  { %1400 = vmatprep.subr.bf16.mxu1 %v6018_v51  ;;  %v6035_v51 = vsub.s32 3, %v281_v53 }
  0xac   :  { %9345 = vst [vmem:[#allocation36_spill] sm:$0xff] %v6030_v49  ;;  %9346 = vst [vmem:[#allocation37_spill] sm:$0xff] %v6033_v50  ;;  %v300_v47 = vadd.f32 %v6030_v49, %v275_v25  ;;  %v301_v46 = vadd.f32 %v6033_v50, %v276_v48  ;;  %v6046_v25 = vrot.slane %v129_v40, %v6042_v41 }
  0xad   :  { %v6040_v43 = vrot.slane %v129_v40, %v6035_v51 }
  0xae   :  { %9347 = vst [vmem:[#allocation38_spill] sm:$0xff] %v6046_v25 }
  0xaf   :  { %v303_v34 = vadd.f32 %v6040_v43, %v278_v45 }
 0x13f   :  { %v499_v42 = vpop.f32.mrb[0].mxu0  ;;  %v540_v48 = vpop.f32.mrb[0].mxu1 }
 0x140   :  { %v547_v39 = vadd.f32 %v499_v42, %v300_v47  ;;  %v501_v38 = vpop.f32.mrb[1].mxu0  ;;  %v542_v50 = vpop.f32.mrb[1].mxu1  ;;  %v302_v42 = vadd.f32 %v6046_v25, %v277_v32 }
 0x141   :  { %v548_v0 = vadd.f32 %v501_v38, %v301_v46  ;;  %v503_v37 = vpop.f32.mrb[2].mxu0  ;;  %v550_v49 = vadd.f32 %v542_v50, %v303_v34  ;;  %v544_v53 = vpop.f32.mrb[2].mxu1 }
 0x142   :  { %v4135_v36 = vmul.f32 -1.442695, %v547_v39  ;;  %v504_v35 = vpop.f32.mrb[3].mxu0  ;;  %v545_v47 = vpop.f32.mrb[3].mxu1  ;;  %v549_v37 = vadd.f32 %v540_v48, %v302_v42 }
 0x143   :  { %v4136_v33 = vmul.f32 -1.442695, %v548_v0  ;;  %v4137_v38 = vmul.f32 -1.442695, %v550_v49  ;;  %v6052_v48 = vpop.permute.xlu0 %577 }
 0x144   :  { %4654 = vpow2.f32 %v4135_v36  ;;  %9349 = vst [vmem:[#allocation40_spill] sm:$0xff] %v6052_v48  ;;  %vm579_vm5 = vcmp.eq.s32.totalorder %v6052_v48, 1 }
 0x145   :  { %4656 = vpow2.f32 %v4136_v33  ;;  %vm6060_vm6 = vmpackc.low %vm579_vm5, %vm579_vm5 }
 0x146   :  { %4658 = vpow2.f32 %v4137_v38  ;;  %v6064_v38 = vld [vmem:[#allocation10] ss:$16 sps:$4 sm:$0xff]  }
 0x147   :  { %4660 = vtanh.f32 %v549_v37  ;;  %9353 = vst [vmem:[#allocation42_spill] sm:$0xff] %v6064_v38  ;;  %v6066_v37 = vld [vmem:[#allocation10 + $0x8] ss:$16 sps:$4 sm:$0xff]  }
 0x148   :  { %9354 = vst [vmem:[#allocation43_spill] sm:$0xff] %v6066_v37 }
 0x14e   :  { %v4655_v39 = vpop.eup %4654 }
 0x14f   :  { %v4657_v35 = vpop.eup %4656  ;;  %v560_v45 = vadd.f32 1.0, %v4655_v39 }
 0x150   :  { %v561_v46 = vadd.f32 1.0, %v4657_v35  ;;  %v4659_v40 = vpop.eup %4658  ;;  %v6072_v35 = vld [vmem:[#allocation10 + $0x24] ss:$16 sps:$4 sm:$0xff]  }
 0x151   :  { %4662 = vrcp.f32 %v560_v45  ;;  %v4661_v36 = vpop.eup %4660  ;;  %v562_v33 = vadd.f32 1.0, %v4659_v40  ;;  %9355 = vst [vmem:[#allocation44_spill] sm:$0xff] %v6072_v35  ;;  %v6074_v45 = vld [vmem:[#allocation10 + $0x2c] ss:$16 sps:$4 sm:$0xff]   ;;  %v6086_v40 = vld [vmem:[#allocation10 + $0x28] ss:$16 sps:$4 sm:$0xff]  }
 0x152   :  { %4664 = vrcp.f32 %v561_v46  ;;  %9356 = vst [vmem:[#allocation45_spill] sm:$0xff] %v6074_v45  ;;  %v6084_v46 = vld [vmem:[#allocation10 + $0x20] ss:$16 sps:$4 sm:$0xff]   ;;  %9358 = vst [vmem:[#allocation47_spill] sm:$0xff] %v6086_v40 }
 0x153   :  { %4666 = vrcp.f32 %v562_v33  ;;  %9357 = vst [vmem:[#allocation46_spill] sm:$0xff] %v6084_v46  ;;  %v9361_v33 = vmov 0.0|0.0  }
 0x15b   :  { %v4663_v52 = vpop.eup %4662 }
 0x15c   :  { %v4665_v0 = vpop.eup %4664  ;;  %v571_v34 = vmul.f32 %v4663_v52, %v4661_v36  ;;  %v6090_v36 = vld [vmem:[#allocation10 + $0x44] ss:$16 sps:$4 sm:$0xff]   ;;  %v6092_v52 = vld [vmem:[#allocation10 + $0x4c] ss:$16 sps:$4 sm:$0xff]  }
 0x15d   :  { %v570_v50 = vmul.f32 0.0, %v4665_v0  ;;  %v4667_v32 = vpop.eup %4666  ;;  %9359 = vst [vmem:[#allocation48_spill] sm:$0xff] %v6090_v36  ;;  %9360 = vst [vmem:[#allocation49_spill] sm:$0xff] %v6092_v52  ;;  %v6098_v0 = vld [vmem:[#allocation10 + $0x40] ss:$16 sps:$4 sm:$0xff]  }
 0x15e   :  { %9362 = vst [vmem:[#allocation50_spill] sm:$0xff] %v6098_v0 }
 0x15f   :  { %v6049_v53 = vadd.f32 %v571_v34, %v570_v50  ;;  %v6100_v34 = vld [vmem:[#allocation10 + $0x48] ss:$16 sps:$4 sm:$0xff]   ;;  %v6104_v50 = vld [vmem:[#allocation10 + $0x64] ss:$16 sps:$4 sm:$0xff]  }
 0x160   :  { %9363 = vst [vmem:[#allocation51_spill] sm:$0xff] %v6100_v34  ;;  %9364 = vst [vmem:[#allocation52_spill] sm:$0xff] %v6104_v50 }
 0x161   :  { %9348 = vst [vmem:[#allocation39_spill] sm:$0xff] %v6049_v53  ;;  %4668 = vtanh.f32 %v6049_v53 }
 0x167   :  { %v9485_v47 = vld [vmem:[#allocation51_spill] sm:$0xff] }
 0x16b   :  { %v4669_v49 = vpop.eup %4668 }
 0x16c   :  { %v6055_v42 = vmul.f32 %v4669_v49, %v4667_v32  ;;  %v6106_v32 = vld [vmem:[#allocation10 + $0x6c] ss:$16 sps:$4 sm:$0xff]   ;;  %v6110_v49 = vld [vmem:[#allocation10 + $0x60] ss:$16 sps:$4 sm:$0xff]  }
 0x16d   :  { %9365 = vst [vmem:[#allocation53_spill] sm:$0xff] %v6106_v32  ;;  %9366 = vst [vmem:[#allocation54_spill] sm:$0xff] %v6110_v49 }
 0x16e   :  { %9350 = vst [vmem:[#allocation41_spill] sm:$0xff] %v6055_v42  ;;  %v6070_v39 = vpack.c.bf16 %v6055_v42, %v6055_v42 }
 0x170   :  { %4352 = vmatmul.mubr.msk.bf16.vlgmr.msra.gmra.mrb[4].mxu0 %vm6060_vm6, %v6070_v39  ;;  %4355 = vmatmul.mubr.msk.bf16.vlgmr.msra.gmra.mrb[4].mxu1 %vm6060_vm6, %v6070_v39 }
 0x171   :  { %1360 = vmatpush1.bf16.msra.mxu0 %v6064_v38  ;;  %1401 = vmatpush1.bf16.msra.mxu1 %v6066_v37 }
 0x172   :  { %1361 = vmatprep.subr.bf16.mxu0 %v6072_v35  ;;  %1402 = vmatprep.subr.bf16.mxu1 %v6074_v45 }
 0x173   :  { %1391 = vmatprep.mubr.bf16.mxu0 %v9361_v33  ;;  %1432 = vmatprep.mubr.bf16.mxu1 %v9361_v33  ;;  %v6112_v33 = vld [vmem:[#allocation10 + $0x68] ss:$16 sps:$4 sm:$0xff]  }
 0x174   :  { %9367 = vst [vmem:[#allocation55_spill] sm:$0xff] %v6112_v33 }
 0x175   :  { %1362 = vmatpush1.bf16.msra.mxu0 %v6084_v46  ;;  %1403 = vmatpush1.bf16.msra.mxu1 %v6086_v40  ;;  %v6234_v40 = vld [vmem:[#allocation10 + $0x1c4] ss:$16 sps:$4 sm:$0xff]   ;;  %v6236_v46 = vld [vmem:[#allocation10 + $0x1cc] ss:$16 sps:$4 sm:$0xff]  }
 0x176   :  { %1363 = vmatprep.subr.bf16.mxu0 %v6090_v36  ;;  %1404 = vmatprep.subr.bf16.mxu1 %v6092_v52  ;;  %v6118_v52 = vld [vmem:[#allocation10 + $0x84] ss:$16 sps:$4 sm:$0xff]   ;;  %v6120_v36 = vld [vmem:[#allocation10 + $0x8c] ss:$16 sps:$4 sm:$0xff]   ;;  %9408 = vst [vmem:[#allocation96_spill] sm:$0xff] %v6234_v40  ;;  %9409 = vst [vmem:[#allocation97_spill] sm:$0xff] %v6236_v46 }
 0x177   :  { %9368 = vst [vmem:[#allocation56_spill] sm:$0xff] %v6118_v52  ;;  %9369 = vst [vmem:[#allocation57_spill] sm:$0xff] %v6120_v36 }
 0x179   :  { %1364 = vmatpush1.bf16.msra.mxu0 %v6098_v0  ;;  %1405 = vmatpush1.bf16.msra.mxu1 %v6100_v34  ;;  %v6124_v34 = vld [vmem:[#allocation10 + $0x80] ss:$16 sps:$4 sm:$0xff]   ;;  %v6126_v0 = vld [vmem:[#allocation10 + $0x88] ss:$16 sps:$4 sm:$0xff]  }
 0x17a   :  { %1365 = vmatprep.subr.bf16.mxu0 %v6104_v50  ;;  %1406 = vmatprep.subr.bf16.mxu1 %v6106_v32  ;;  %9370 = vst [vmem:[#allocation58_spill] sm:$0xff] %v6124_v34  ;;  %9371 = vst [vmem:[#allocation59_spill] sm:$0xff] %v6126_v0  ;;  %v6130_v32 = vld [vmem:[#allocation10 + $0xa4] ss:$16 sps:$4 sm:$0xff]   ;;  %v6136_v50 = vld [vmem:[#allocation10 + $0xa8] ss:$16 sps:$4 sm:$0xff]  }
 0x17b   :  { %9372 = vst [vmem:[#allocation60_spill] sm:$0xff] %v6130_v32  ;;  %9375 = vst [vmem:[#allocation63_spill] sm:$0xff] %v6136_v50 }
 0x17d   :  { %1366 = vmatpush1.bf16.msra.mxu0 %v6110_v49  ;;  %1407 = vmatpush1.bf16.msra.mxu1 %v6112_v33  ;;  %v6132_v49 = vld [vmem:[#allocation10 + $0xac] ss:$16 sps:$4 sm:$0xff]   ;;  %v6134_v33 = vld [vmem:[#allocation10 + $0xa0] ss:$16 sps:$4 sm:$0xff]  }
 0x17e   :  { %1367 = vmatprep.subr.bf16.mxu0 %v6118_v52  ;;  %1408 = vmatprep.subr.bf16.mxu1 %v6120_v36  ;;  %9373 = vst [vmem:[#allocation61_spill] sm:$0xff] %v6132_v49  ;;  %9374 = vst [vmem:[#allocation62_spill] sm:$0xff] %v6134_v33  ;;  %v6142_v36 = vld [vmem:[#allocation10 + $0xc4] ss:$16 sps:$4 sm:$0xff]   ;;  %v6148_v52 = vld [vmem:[#allocation10 + $0xc8] ss:$16 sps:$4 sm:$0xff]  }
 0x17f   :  { %9376 = vst [vmem:[#allocation64_spill] sm:$0xff] %v6142_v36  ;;  %9379 = vst [vmem:[#allocation67_spill] sm:$0xff] %v6148_v52 }
 0x181   :  { %1368 = vmatpush1.bf16.msra.mxu0 %v6124_v34  ;;  %1409 = vmatpush1.bf16.msra.mxu1 %v6126_v0  ;;  %v6144_v34 = vld [vmem:[#allocation10 + $0xcc] ss:$16 sps:$4 sm:$0xff]   ;;  %v6146_v0 = vld [vmem:[#allocation10 + $0xc0] ss:$16 sps:$4 sm:$0xff]  }
 0x182   :  { %1369 = vmatprep.subr.bf16.mxu0 %v6130_v32  ;;  %1410 = vmatprep.subr.bf16.mxu1 %v6132_v49  ;;  %9377 = vst [vmem:[#allocation65_spill] sm:$0xff] %v6144_v34  ;;  %9378 = vst [vmem:[#allocation66_spill] sm:$0xff] %v6146_v0  ;;  %v6154_v49 = vld [vmem:[#allocation10 + $0xe4] ss:$16 sps:$4 sm:$0xff]   ;;  %v6160_v32 = vld [vmem:[#allocation10 + $0xe8] ss:$16 sps:$4 sm:$0xff]  }
 0x183   :  { %9380 = vst [vmem:[#allocation68_spill] sm:$0xff] %v6154_v49  ;;  %9383 = vst [vmem:[#allocation71_spill] sm:$0xff] %v6160_v32 }
 0x185   :  { %1370 = vmatpush1.bf16.msra.mxu0 %v6134_v33  ;;  %1411 = vmatpush1.bf16.msra.mxu1 %v6136_v50  ;;  %v6156_v33 = vld [vmem:[#allocation10 + $0xec] ss:$16 sps:$4 sm:$0xff]   ;;  %v6158_v50 = vld [vmem:[#allocation10 + $0xe0] ss:$16 sps:$4 sm:$0xff]  }
 0x186   :  { %1371 = vmatprep.subr.bf16.mxu0 %v6142_v36  ;;  %1412 = vmatprep.subr.bf16.mxu1 %v6144_v34  ;;  %9381 = vst [vmem:[#allocation69_spill] sm:$0xff] %v6156_v33  ;;  %9382 = vst [vmem:[#allocation70_spill] sm:$0xff] %v6158_v50  ;;  %v6166_v34 = vld [vmem:[#allocation10 + $0x104] ss:$16 sps:$4 sm:$0xff]   ;;  %v6172_v36 = vld [vmem:[#allocation10 + $0x108] ss:$16 sps:$4 sm:$0xff]  }
 0x187   :  { %9384 = vst [vmem:[#allocation72_spill] sm:$0xff] %v6166_v34  ;;  %9387 = vst [vmem:[#allocation75_spill] sm:$0xff] %v6172_v36 }
 0x189   :  { %1372 = vmatpush1.bf16.msra.mxu0 %v6146_v0  ;;  %1413 = vmatpush1.bf16.msra.mxu1 %v6148_v52  ;;  %v6168_v0 = vld [vmem:[#allocation10 + $0x10c] ss:$16 sps:$4 sm:$0xff]   ;;  %v6170_v52 = vld [vmem:[#allocation10 + $0x100] ss:$16 sps:$4 sm:$0xff]  }
 0x18a   :  { %1373 = vmatprep.subr.bf16.mxu0 %v6154_v49  ;;  %1414 = vmatprep.subr.bf16.mxu1 %v6156_v33  ;;  %9385 = vst [vmem:[#allocation73_spill] sm:$0xff] %v6168_v0  ;;  %9386 = vst [vmem:[#allocation74_spill] sm:$0xff] %v6170_v52  ;;  %v6178_v33 = vld [vmem:[#allocation10 + $0x124] ss:$16 sps:$4 sm:$0xff]   ;;  %v6184_v49 = vld [vmem:[#allocation10 + $0x128] ss:$16 sps:$4 sm:$0xff]  }
 0x18b   :  { %9388 = vst [vmem:[#allocation76_spill] sm:$0xff] %v6178_v33  ;;  %9391 = vst [vmem:[#allocation79_spill] sm:$0xff] %v6184_v49 }
 0x18d   :  { %1374 = vmatpush1.bf16.msra.mxu0 %v6158_v50  ;;  %1415 = vmatpush1.bf16.msra.mxu1 %v6160_v32  ;;  %v6180_v50 = vld [vmem:[#allocation10 + $0x12c] ss:$16 sps:$4 sm:$0xff]   ;;  %v6182_v32 = vld [vmem:[#allocation10 + $0x120] ss:$16 sps:$4 sm:$0xff]  }
 0x18e   :  { %1375 = vmatprep.subr.bf16.mxu0 %v6166_v34  ;;  %1416 = vmatprep.subr.bf16.mxu1 %v6168_v0  ;;  %9389 = vst [vmem:[#allocation77_spill] sm:$0xff] %v6180_v50  ;;  %9390 = vst [vmem:[#allocation78_spill] sm:$0xff] %v6182_v32  ;;  %v6190_v0 = vld [vmem:[#allocation10 + $0x144] ss:$16 sps:$4 sm:$0xff]   ;;  %v6196_v34 = vld [vmem:[#allocation10 + $0x148] ss:$16 sps:$4 sm:$0xff]  }
 0x18f   :  { %9392 = vst [vmem:[#allocation80_spill] sm:$0xff] %v6190_v0  ;;  %9395 = vst [vmem:[#allocation83_spill] sm:$0xff] %v6196_v34 }
 0x191   :  { %1376 = vmatpush1.bf16.msra.mxu0 %v6170_v52  ;;  %1417 = vmatpush1.bf16.msra.mxu1 %v6172_v36  ;;  %v6192_v52 = vld [vmem:[#allocation10 + $0x14c] ss:$16 sps:$4 sm:$0xff]   ;;  %v6194_v36 = vld [vmem:[#allocation10 + $0x140] ss:$16 sps:$4 sm:$0xff]  }
 0x192   :  { %1377 = vmatprep.subr.bf16.mxu0 %v6178_v33  ;;  %1418 = vmatprep.subr.bf16.mxu1 %v6180_v50  ;;  %9393 = vst [vmem:[#allocation81_spill] sm:$0xff] %v6192_v52  ;;  %9394 = vst [vmem:[#allocation82_spill] sm:$0xff] %v6194_v36  ;;  %v6202_v50 = vld [vmem:[#allocation10 + $0x164] ss:$16 sps:$4 sm:$0xff]   ;;  %v6208_v33 = vld [vmem:[#allocation10 + $0x168] ss:$16 sps:$4 sm:$0xff]  }
 0x193   :  { %9396 = vst [vmem:[#allocation84_spill] sm:$0xff] %v6202_v50  ;;  %9399 = vst [vmem:[#allocation87_spill] sm:$0xff] %v6208_v33 }
 0x195   :  { %1378 = vmatpush1.bf16.msra.mxu0 %v6182_v32  ;;  %1419 = vmatpush1.bf16.msra.mxu1 %v6184_v49  ;;  %v6204_v32 = vld [vmem:[#allocation10 + $0x16c] ss:$16 sps:$4 sm:$0xff]   ;;  %v6206_v49 = vld [vmem:[#allocation10 + $0x160] ss:$16 sps:$4 sm:$0xff]  }
 0x196   :  { %1379 = vmatprep.subr.bf16.mxu0 %v6190_v0  ;;  %1420 = vmatprep.subr.bf16.mxu1 %v6192_v52  ;;  %9397 = vst [vmem:[#allocation85_spill] sm:$0xff] %v6204_v32  ;;  %9398 = vst [vmem:[#allocation86_spill] sm:$0xff] %v6206_v49  ;;  %v6214_v52 = vld [vmem:[#allocation10 + $0x184] ss:$16 sps:$4 sm:$0xff]   ;;  %v6220_v0 = vld [vmem:[#allocation10 + $0x188] ss:$16 sps:$4 sm:$0xff]  }
 0x197   :  { %9400 = vst [vmem:[#allocation88_spill] sm:$0xff] %v6214_v52  ;;  %9403 = vst [vmem:[#allocation91_spill] sm:$0xff] %v6220_v0 }
 0x199   :  { %1380 = vmatpush1.bf16.msra.mxu0 %v6194_v36  ;;  %1421 = vmatpush1.bf16.msra.mxu1 %v6196_v34  ;;  %v6216_v36 = vld [vmem:[#allocation10 + $0x18c] ss:$16 sps:$4 sm:$0xff]   ;;  %v6218_v34 = vld [vmem:[#allocation10 + $0x180] ss:$16 sps:$4 sm:$0xff]  }
 0x19a   :  { %1381 = vmatprep.subr.bf16.mxu0 %v6202_v50  ;;  %1422 = vmatprep.subr.bf16.mxu1 %v6204_v32  ;;  %9401 = vst [vmem:[#allocation89_spill] sm:$0xff] %v6216_v36  ;;  %9402 = vst [vmem:[#allocation90_spill] sm:$0xff] %v6218_v34  ;;  %v6226_v32 = vld [vmem:[#allocation10 + $0x1a4] ss:$16 sps:$4 sm:$0xff]   ;;  %v6232_v50 = vld [vmem:[#allocation10 + $0x1a8] ss:$16 sps:$4 sm:$0xff]  }
 0x19b   :  { %9404 = vst [vmem:[#allocation92_spill] sm:$0xff] %v6226_v32  ;;  %9407 = vst [vmem:[#allocation95_spill] sm:$0xff] %v6232_v50 }
 0x19d   :  { %1382 = vmatpush1.bf16.msra.mxu0 %v6206_v49  ;;  %1423 = vmatpush1.bf16.msra.mxu1 %v6208_v33  ;;  %v6228_v49 = vld [vmem:[#allocation10 + $0x1ac] ss:$16 sps:$4 sm:$0xff]   ;;  %v6230_v33 = vld [vmem:[#allocation10 + $0x1a0] ss:$16 sps:$4 sm:$0xff]  }
 0x19e   :  { %1383 = vmatprep.subr.bf16.mxu0 %v6214_v52  ;;  %1424 = vmatprep.subr.bf16.mxu1 %v6216_v36  ;;  %9405 = vst [vmem:[#allocation93_spill] sm:$0xff] %v6228_v49  ;;  %9406 = vst [vmem:[#allocation94_spill] sm:$0xff] %v6230_v33  ;;  %v6248_v36 = vld [vmem:[#allocation10 + $0x1e4] ss:$16 sps:$4 sm:$0xff]   ;;  %v6250_v52 = vld [vmem:[#allocation10 + $0x1ec] ss:$16 sps:$4 sm:$0xff]  }
 0x19f   :  { %9412 = vst [vmem:[#allocation100_spill] sm:$0xff] %v6248_v36  ;;  %9413 = vst [vmem:[#allocation101_spill] sm:$0xff] %v6250_v52 }
 0x1a1   :  { %1384 = vmatpush1.bf16.msra.mxu0 %v6218_v34  ;;  %1425 = vmatpush1.bf16.msra.mxu1 %v6220_v0  ;;  %v6242_v0 = vld [vmem:[#allocation10 + $0x1c0] ss:$16 sps:$4 sm:$0xff]   ;;  %v6244_v34 = vld [vmem:[#allocation10 + $0x1c8] ss:$16 sps:$4 sm:$0xff]  }
 0x1a2   :  { %1385 = vmatprep.subr.bf16.mxu0 %v6226_v32  ;;  %1426 = vmatprep.subr.bf16.mxu1 %v6228_v49  ;;  %9410 = vst [vmem:[#allocation98_spill] sm:$0xff] %v6242_v0  ;;  %9411 = vst [vmem:[#allocation99_spill] sm:$0xff] %v6244_v34  ;;  %v6254_v49 = vld [vmem:[#allocation10 + $0x1e0] ss:$16 sps:$4 sm:$0xff]  }
 0x1a3   :  { %9414 = vst [vmem:[#allocation102_spill] sm:$0xff] %v6254_v49 }
 0x1a5   :  { %1386 = vmatpush1.bf16.msra.mxu0 %v6230_v33  ;;  %1427 = vmatpush1.bf16.msra.mxu1 %v6232_v50  ;;  %v6256_v33 = vld [vmem:[#allocation10 + $0x1e8] ss:$16 sps:$4 sm:$0xff]  }
 0x1a6   :  { %1387 = vmatprep.subr.bf16.mxu0 %v6234_v40  ;;  %1428 = vmatprep.subr.bf16.mxu1 %v6236_v46  ;;  %9415 = vst [vmem:[#allocation103_spill] sm:$0xff] %v6256_v33  ;;  %v6262_v46 = vld [vmem:[#allocation7 + $0x4] ss:$16 sps:$4 sm:$0xff]   ;;  %v6265_v40 = vld [vmem:[#allocation7 + $0xc] ss:$16 sps:$4 sm:$0xff]  }
 0x1a7   :  { %9416 = vst [vmem:[#allocation104_spill] sm:$0xff] %v6262_v46  ;;  %9417 = vst [vmem:[#allocation105_spill] sm:$0xff] %v6265_v40 }
 0x1a9   :  { %1388 = vmatpush1.bf16.msra.mxu0 %v6242_v0  ;;  %1429 = vmatpush1.bf16.msra.mxu1 %v6244_v34  ;;  %v258_v34 = vld [vmem:[%s8858_s5] sm:$0xf] }
 0x1aa   :  { %1389 = vmatprep.subr.bf16.mxu0 %v6248_v36  ;;  %1430 = vmatprep.subr.bf16.mxu1 %v6250_v52  ;;  %v6272_v36 = vrot.slane %v258_v34, %v6022_v57  ;;  %v6275_v52 = vrot.slane %v258_v34, %v6027_v44  ;;  %v6280_v53 = vrot.slane %v258_v34, %v6035_v51 }
 0x1ab   :  { %v6284_v25 = vrot.slane %v258_v34, %v6042_v41 }
 0x1ac   :  { %9418 = vst [vmem:[#allocation106_spill] sm:$0xff] %v6272_v36  ;;  %9419 = vst [vmem:[#allocation107_spill] sm:$0xff] %v6280_v53 }
 0x1ad   :  { %1390 = vmatpush1.bf16.msra.mxu0 %v6254_v49  ;;  %1431 = vmatpush1.bf16.msra.mxu1 %v6256_v33 }
 0x1ae   :  { %1515 = vmatprep.subr.bf16.mxu0 %v6262_v46  ;;  %1556 = vmatprep.subr.bf16.mxu1 %v6265_v40 }
 0x243   :  { %v938_v49 = vpop.f32.mrb[4].mxu0  ;;  %v979_v33 = vpop.f32.mrb[4].mxu1 }
 0x244   :  { %v1007_v0 = vadd.f32 %v6272_v36, %v938_v49  ;;  %v940_v50 = vpop.f32.mrb[5].mxu0  ;;  %v981_v46 = vpop.f32.mrb[5].mxu1  ;;  %v1009_v36 = vadd.f32 %v6284_v25, %v979_v33 }
 0x245   :  { %v1008_v32 = vadd.f32 %v6275_v52, %v940_v50  ;;  %v942_v45 = vpop.f32.mrb[6].mxu0  ;;  %v983_v40 = vpop.f32.mrb[6].mxu1  ;;  %v1010_v48 = vadd.f32 %v6280_v53, %v981_v46 }
 0x246   :  { %v4202_v35 = vmul.f32 -1.442695, %v1007_v0  ;;  %v943_v37 = vpop.f32.mrb[7].mxu0  ;;  %v984_v38 = vpop.f32.mrb[7].mxu1 }
 0x247   :  { %v4203_v42 = vmul.f32 -1.442695, %v1008_v32  ;;  %v4204_v49 = vmul.f32 -1.442695, %v1010_v48 }
 0x248   :  { %4670 = vpow2.f32 %v4202_v35 }
 0x249   :  { %4672 = vpow2.f32 %v4203_v42 }
 0x24a   :  { %4674 = vpow2.f32 %v4204_v49  ;;  %v6305_v49 = vld [vmem:[#allocation7 + $0x8] ss:$16 sps:$4 sm:$0xff]  }
 0x24b   :  { %4676 = vtanh.f32 %v1009_v36 }
 0x252   :  { %v4671_v50 = vpop.eup %4670 }
 0x253   :  { %v4673_v45 = vpop.eup %4672  ;;  %v1020_v40 = vadd.f32 1.0, %v4671_v50 }
 0x254   :  { %v1021_v38 = vadd.f32 1.0, %v4673_v45  ;;  %v4675_v37 = vpop.eup %4674  ;;  %v6308_v45 = vld [vmem:[#allocation7 + $0x24] ss:$16 sps:$4 sm:$0xff]  }
 0x255   :  { %4678 = vrcp.f32 %v1020_v40  ;;  %v4677_v0 = vpop.eup %4676  ;;  %v1022_v46 = vadd.f32 1.0, %v4675_v37  ;;  %v6311_v40 = vld [vmem:[#allocation7 + $0x2c] ss:$16 sps:$4 sm:$0xff]   ;;  %v6316_v37 = vld [vmem:[#allocation7 + $0x20] ss:$16 sps:$4 sm:$0xff]  }
 0x256   :  { %4680 = vrcp.f32 %v1021_v38  ;;  %v9420_v38 = vmov 0  }
 0x257   :  { %4682 = vrcp.f32 %v1022_v46  ;;  %v6331_v46 = vld [vmem:[#allocation7 + $0x48] ss:$16 sps:$4 sm:$0xff]  }
 0x258   :  { %9424 = vst [vmem:[#allocation111_spill] sm:$0xff] %v6331_v46 }
 0x25f   :  { %v4679_v35 = vpop.eup %4678 }
 0x260   :  { %v4681_v42 = vpop.eup %4680  ;;  %v1031_v32 = vmul.f32 %v4679_v35, %v4677_v0  ;;  %v6319_v0 = vld [vmem:[#allocation7 + $0x28] ss:$16 sps:$4 sm:$0xff]   ;;  %v6322_v35 = vld [vmem:[#allocation7 + $0x44] ss:$16 sps:$4 sm:$0xff]  }
 0x261   :  { %v1030_v53 = vmul.f32 0.0, %v4681_v42  ;;  %v4683_v48 = vpop.eup %4682  ;;  %9421 = vst [vmem:[#allocation108_spill] sm:$0xff] %v6322_v35  ;;  %v6325_v42 = vld [vmem:[#allocation7 + $0x4c] ss:$16 sps:$4 sm:$0xff]  }
 0x262   :  { %9422 = vst [vmem:[#allocation109_spill] sm:$0xff] %v6325_v42 }
 0x263   :  { %v6287_v34 = vadd.f32 %v1031_v32, %v1030_v53  ;;  %v6302_v53 = vld [vmem:[#allocation7] ss:$16 sps:$4 sm:$0xff]  }
 0x264   :  { %v6328_v32 = vld [vmem:[#allocation7 + $0x40] ss:$16 sps:$4 sm:$0xff]  }
 0x265   :  { %4684 = vtanh.f32 %v6287_v34  ;;  %9423 = vst [vmem:[#allocation110_spill] sm:$0xff] %v6328_v32 }
 0x26f   :  { %v4685_v33 = vpop.eup %4684 }
 0x270   :  { %v6290_v50 = vmul.f32 %v4685_v33, %v4683_v48  ;;  %v6334_v48 = vld [vmem:[#allocation7 + $0x64] ss:$16 sps:$4 sm:$0xff]   ;;  %v6337_v33 = vld [vmem:[#allocation7 + $0x6c] ss:$16 sps:$4 sm:$0xff]  }
 0x271   :  { %9425 = vst [vmem:[#allocation112_spill] sm:$0xff] %v6334_v48  ;;  %9426 = vst [vmem:[#allocation113_spill] sm:$0xff] %v6337_v33 }
 0x272   :  { %v6294_v36 = vpack.c.bf16 %v6290_v50, %v6290_v50 }
 0x274   :  { %4358 = vmatmul.mubr.msk.bf16.vlgmr.msra.gmra.mrb[8].mxu0 %vm6060_vm6, %v6294_v36  ;;  %4361 = vmatmul.mubr.msk.bf16.vlgmr.msra.gmra.mrb[8].mxu1 %vm6060_vm6, %v6294_v36 }
 0x275   :  { %1516 = vmatpush1.bf16.msra.mxu0 %v6302_v53  ;;  %1557 = vmatpush1.bf16.msra.mxu1 %v6305_v49 }
 0x276   :  { %1517 = vmatprep.subr.bf16.mxu0 %v6308_v45  ;;  %1558 = vmatprep.subr.bf16.mxu1 %v6311_v40 }
 0x277   :  { %1547 = vmatprep.mubr.bf16.mxu0 %v9420_v38  ;;  %1588 = vmatprep.mubr.bf16.mxu1 %v9420_v38 }
 0x279   :  { %1518 = vmatpush1.bf16.msra.mxu0 %v6316_v37  ;;  %1559 = vmatpush1.bf16.msra.mxu1 %v6319_v0 }
 0x27a   :  { %1519 = vmatprep.subr.bf16.mxu0 %v6322_v35  ;;  %1560 = vmatprep.subr.bf16.mxu1 %v6325_v42  ;;  %v6340_v35 = vld [vmem:[#allocation7 + $0x60] ss:$16 sps:$4 sm:$0xff]   ;;  %v6343_v42 = vld [vmem:[#allocation7 + $0x68] ss:$16 sps:$4 sm:$0xff]  }
 0x27b   :  { %9427 = vst [vmem:[#allocation114_spill] sm:$0xff] %v6340_v35  ;;  %9428 = vst [vmem:[#allocation115_spill] sm:$0xff] %v6343_v42 }
 0x27d   :  { %1520 = vmatpush1.bf16.msra.mxu0 %v6328_v32  ;;  %1561 = vmatpush1.bf16.msra.mxu1 %v6331_v46  ;;  %v6346_v32 = vld [vmem:[#allocation7 + $0x84] ss:$16 sps:$4 sm:$0xff]   ;;  %v6349_v46 = vld [vmem:[#allocation7 + $0x8c] ss:$16 sps:$4 sm:$0xff]  }
 0x27e   :  { %1521 = vmatprep.subr.bf16.mxu0 %v6334_v48  ;;  %1562 = vmatprep.subr.bf16.mxu1 %v6337_v33  ;;  %9429 = vst [vmem:[#allocation116_spill] sm:$0xff] %v6346_v32  ;;  %9430 = vst [vmem:[#allocation117_spill] sm:$0xff] %v6349_v46  ;;  %v6352_v48 = vld [vmem:[#allocation7 + $0x80] ss:$16 sps:$4 sm:$0xff]   ;;  %v6355_v33 = vld [vmem:[#allocation7 + $0x88] ss:$16 sps:$4 sm:$0xff]  }
 0x27f   :  { %9431 = vst [vmem:[#allocation118_spill] sm:$0xff] %v6352_v48  ;;  %9432 = vst [vmem:[#allocation119_spill] sm:$0xff] %v6355_v33 }
 0x281   :  { %1522 = vmatpush1.bf16.msra.mxu0 %v6340_v35  ;;  %1563 = vmatpush1.bf16.msra.mxu1 %v6343_v42  ;;  %v6358_v35 = vld [vmem:[#allocation7 + $0xa4] ss:$16 sps:$4 sm:$0xff]   ;;  %v6361_v42 = vld [vmem:[#allocation7 + $0xac] ss:$16 sps:$4 sm:$0xff]  }
 0x282   :  { %1523 = vmatprep.subr.bf16.mxu0 %v6346_v32  ;;  %1564 = vmatprep.subr.bf16.mxu1 %v6349_v46  ;;  %9433 = vst [vmem:[#allocation120_spill] sm:$0xff] %v6358_v35  ;;  %9434 = vst [vmem:[#allocation121_spill] sm:$0xff] %v6361_v42  ;;  %v6364_v32 = vld [vmem:[#allocation7 + $0xa0] ss:$16 sps:$4 sm:$0xff]   ;;  %v6367_v46 = vld [vmem:[#allocation7 + $0xa8] ss:$16 sps:$4 sm:$0xff]  }
 0x283   :  { %9435 = vst [vmem:[#allocation122_spill] sm:$0xff] %v6364_v32  ;;  %9436 = vst [vmem:[#allocation123_spill] sm:$0xff] %v6367_v46 }
 0x285   :  { %1524 = vmatpush1.bf16.msra.mxu0 %v6352_v48  ;;  %1565 = vmatpush1.bf16.msra.mxu1 %v6355_v33  ;;  %v6370_v48 = vld [vmem:[#allocation7 + $0xc4] ss:$16 sps:$4 sm:$0xff]   ;;  %v6373_v33 = vld [vmem:[#allocation7 + $0xcc] ss:$16 sps:$4 sm:$0xff]  }
 0x286   :  { %1525 = vmatprep.subr.bf16.mxu0 %v6358_v35  ;;  %1566 = vmatprep.subr.bf16.mxu1 %v6361_v42  ;;  %9437 = vst [vmem:[#allocation124_spill] sm:$0xff] %v6370_v48  ;;  %9438 = vst [vmem:[#allocation125_spill] sm:$0xff] %v6373_v33  ;;  %v6376_v35 = vld [vmem:[#allocation7 + $0xc0] ss:$16 sps:$4 sm:$0xff]   ;;  %v6379_v42 = vld [vmem:[#allocation7 + $0xc8] ss:$16 sps:$4 sm:$0xff]  }
 0x287   :  { %9439 = vst [vmem:[#allocation126_spill] sm:$0xff] %v6376_v35  ;;  %9440 = vst [vmem:[#allocation127_spill] sm:$0xff] %v6379_v42 }
 0x289   :  { %1526 = vmatpush1.bf16.msra.mxu0 %v6364_v32  ;;  %1567 = vmatpush1.bf16.msra.mxu1 %v6367_v46  ;;  %v6382_v32 = vld [vmem:[#allocation7 + $0xe4] ss:$16 sps:$4 sm:$0xff]   ;;  %v6385_v46 = vld [vmem:[#allocation7 + $0xec] ss:$16 sps:$4 sm:$0xff]  }
 0x28a   :  { %1527 = vmatprep.subr.bf16.mxu0 %v6370_v48  ;;  %1568 = vmatprep.subr.bf16.mxu1 %v6373_v33  ;;  %v6388_v48 = vld [vmem:[#allocation7 + $0xe0] ss:$16 sps:$4 sm:$0xff]   ;;  %v6391_v33 = vld [vmem:[#allocation7 + $0xe8] ss:$16 sps:$4 sm:$0xff]  }
 0x28b   :  { %9441 = vst [vmem:[#allocation128_spill] sm:$0xff] %v6388_v48  ;;  %9442 = vst [vmem:[#allocation129_spill] sm:$0xff] %v6391_v33 }
 0x28d   :  { %1528 = vmatpush1.bf16.msra.mxu0 %v6376_v35  ;;  %1569 = vmatpush1.bf16.msra.mxu1 %v6379_v42  ;;  %v6394_v35 = vld [vmem:[#allocation9 + $0x4] ss:$16 sps:$4 sm:$0xff]   ;;  %v6397_v42 = vld [vmem:[#allocation9 + $0xc] ss:$16 sps:$4 sm:$0xff]  }
 0x28e   :  { %1529 = vmatprep.subr.bf16.mxu0 %v6382_v32  ;;  %1570 = vmatprep.subr.bf16.mxu1 %v6385_v46  ;;  %9443 = vst [vmem:[#allocation130_spill] sm:$0xff] %v6394_v35  ;;  %9444 = vst [vmem:[#allocation131_spill] sm:$0xff] %v6397_v42 }
 0x291   :  { %1530 = vmatpush1.bf16.msra.mxu0 %v6388_v48  ;;  %1571 = vmatpush1.bf16.msra.mxu1 %v6391_v33  ;;  %v6418_v33 = vld [vmem:[#allocation9 + $0x24] ss:$16 sps:$4 sm:$0xff]   ;;  %v6424_v48 = vld [vmem:[#allocation9 + $0x20] ss:$16 sps:$4 sm:$0xff]  }
 0x292   :  { %1633 = vmatprep.subr.bf16.mxu0 %v6394_v35  ;;  %1674 = vmatprep.subr.bf16.mxu1 %v6397_v42  ;;  %v6412_v35 = vld [vmem:[#allocation9] ss:$16 sps:$4 sm:$0xff]   ;;  %v6415_v42 = vld [vmem:[#allocation9 + $0x8] ss:$16 sps:$4 sm:$0xff]  }
 0x293   :  { %9445 = vst [vmem:[#allocation132_spill] sm:$0xff] %v6415_v42 }
 0x294   :  { %4364 = vmatmul.mubr.msk.bf16.vlgmr.msra.gmra.mrb[12].mxu0 %vm6060_vm6, %v6070_v39  ;;  %4367 = vmatmul.mubr.msk.bf16.vlgmr.msra.gmra.mrb[12].mxu1 %vm6060_vm6, %v6070_v39  ;;  %v6421_v39 = vld [vmem:[#allocation9 + $0x2c] ss:$16 sps:$4 sm:$0xff]  }
 0x295   :  { %4370 = vmatprep.mubr.msk.bf16.mxu0 %vm6060_vm6, %v6294_v36  ;;  %4373 = vmatprep.mubr.msk.bf16.mxu1 %vm6060_vm6, %v6294_v36  ;;  %v6428_v36 = vld [vmem:[#allocation9 + $0x44] ss:$16 sps:$4 sm:$0xff]  }
 0x296   :  { %1634 = vmatpush1.bf16.msra.mxu0 %v6412_v35  ;;  %1675 = vmatpush1.bf16.msra.mxu1 %v6415_v42  ;;  %v6432_v42 = vld [vmem:[#allocation9 + $0x40] ss:$16 sps:$4 sm:$0xff]  }
 0x297   :  { %1635 = vmatprep.subr.bf16.mxu0 %v6418_v33  ;;  %1676 = vmatprep.subr.bf16.mxu1 %v6421_v39 }
 0x29a   :  { %1636 = vmatpush1.bf16.msra.mxu0 %v6424_v48  ;;  %1677 = vmatpush1.bf16.msra.mxu1 %v5849_v54  ;;  %v9446_v54 = vld [vmem:[#allocation18_spill] sm:$0xff] }
 0x29b   :  { %1637 = vmatprep.subr.bf16.mxu0 %v6428_v36  ;;  %1678 = vmatprep.subr.bf16.mxu1 %v5854_v56  ;;  %v9448_v56 = vld [vmem:[#allocation20_spill] sm:$0xff] }
 0x29e   :  { %1638 = vmatpush1.bf16.msra.mxu0 %v6432_v42  ;;  %1679 = vmatpush1.bf16.msra.mxu1 %v5858_v59  ;;  %v9450_v59 = vld [vmem:[#allocation22_spill] sm:$0xff] }
 0x29f   :  { %1639 = vmatprep.subr.bf16.mxu0 %v5851_v55  ;;  %1680 = vmatprep.subr.bf16.mxu1 %v5861_v60  ;;  %v9447_v55 = vld [vmem:[#allocation19_spill] sm:$0xff] }
 0x2a0   :  { %v9451_v60 = vld [vmem:[#allocation23_spill] sm:$0xff] }
 0x2a2   :  { %1640 = vmatpush1.bf16.msra.mxu0 %v5856_v58  ;;  %1681 = vmatpush1.bf16.msra.mxu1 %v5866_v61  ;;  %v9449_v58 = vld [vmem:[#allocation21_spill] sm:$0xff]  ;;  %v9452_v61 = vld [vmem:[#allocation24_spill] sm:$0xff] }
 0x2a3   :  { %1641 = vmatprep.subr.bf16.mxu0 %v5872_v62  ;;  %1682 = vmatprep.subr.bf16.mxu1 %v5874_v63  ;;  %v9453_v62 = vld [vmem:[#allocation25_spill] sm:$0xff]  ;;  %v9454_v63 = vld [vmem:[#allocation26_spill] sm:$0xff] }
 0x2a6   :  { %1642 = vmatpush1.bf16.msra.mxu0 %v5876_v1  ;;  %1683 = vmatpush1.bf16.msra.mxu1 %v5878_v2  ;;  %v9455_v1 = vld [vmem:[#allocation27_spill] sm:$0xff]  ;;  %v9456_v2 = vld [vmem:[#allocation28_spill] sm:$0xff] }
 0x2a7   :  { %1643 = vmatprep.subr.bf16.mxu0 %v5884_v3  ;;  %1684 = vmatprep.subr.bf16.mxu1 %v5886_v4  ;;  %v9457_v3 = vld [vmem:[#allocation29_spill] sm:$0xff]  ;;  %v9458_v4 = vld [vmem:[#allocation30_spill] sm:$0xff] }
 0x2aa   :  { %1644 = vmatpush1.bf16.msra.mxu0 %v5888_v5  ;;  %1685 = vmatpush1.bf16.msra.mxu1 %v5890_v6  ;;  %v9459_v5 = vld [vmem:[#allocation31_spill] sm:$0xff]  ;;  %v9460_v6 = vld [vmem:[#allocation32_spill] sm:$0xff] }
 0x2ab   :  { %1645 = vmatprep.subr.bf16.mxu0 %v5896_v7  ;;  %1686 = vmatprep.subr.bf16.mxu1 %v5898_v8  ;;  %v9461_v7 = vld [vmem:[#allocation33_spill] sm:$0xff]  ;;  %v9462_v8 = vld [vmem:[#allocation34_spill] sm:$0xff] }
 0x2ae   :  { %1646 = vmatpush1.bf16.msra.mxu0 %v5900_v9  ;;  %1687 = vmatpush1.bf16.msra.mxu1 %v5902_v10  ;;  %v9463_v9 = vld [vmem:[#allocation35_spill] sm:$0xff]  ;;  %v259_v10 = vld [vmem:[%s8860_s7] sm:$0xf] }
 0x2af   :  { %1647 = vmatprep.subr.bf16.mxu0 %v5908_v11  ;;  %1688 = vmatprep.subr.bf16.mxu1 %v5910_v12  ;;  %v6494_v11 = vrot.slane %v259_v10, %v6022_v57  ;;  %v6497_v12 = vrot.slane %v259_v10, %v6027_v44 }
 0x2b1   :  { %9464 = vst [vmem:[#allocation18_spill] sm:$0xff] %v6494_v11  ;;  %9465 = vst [vmem:[#allocation19_spill] sm:$0xff] %v6497_v12 }
 0x2b2   :  { %1648 = vmatpush1.bf16.msra.mxu0 %v5912_v13  ;;  %1689 = vmatpush1.bf16.msra.mxu1 %v5914_v14 }
 0x2b3   :  { %1649 = vmatprep.subr.bf16.mxu0 %v5920_v15  ;;  %1690 = vmatprep.subr.bf16.mxu1 %v5922_v16 }
 0x2b6   :  { %1650 = vmatpush1.bf16.msra.mxu0 %v5924_v17  ;;  %1691 = vmatpush1.bf16.msra.mxu1 %v5926_v18 }
 0x2b7   :  { %1651 = vmatprep.subr.bf16.mxu0 %v5932_v19  ;;  %1692 = vmatprep.subr.bf16.mxu1 %v5934_v20 }
 0x2ba   :  { %1652 = vmatpush1.bf16.msra.mxu0 %v5936_v21  ;;  %1693 = vmatpush1.bf16.msra.mxu1 %v5938_v22 }
 0x2bb   :  { %1653 = vmatprep.subr.bf16.mxu0 %v5944_v23  ;;  %1694 = vmatprep.subr.bf16.mxu1 %v5946_v24 }
 0x2be   :  { %1654 = vmatpush1.bf16.msra.mxu0 %v5948_v26  ;;  %1695 = vmatpush1.bf16.msra.mxu1 %v5950_v27  ;;  %v6502_v26 = vrot.slane %v259_v10, %v6035_v51  ;;  %v6506_v27 = vrot.slane %v259_v10, %v6042_v41  ;;  %v1505_v51 = vld [vmem:[#allocation4 + $0x10] sm:$0xff] }
 0x2bf   :  { %1655 = vmatprep.subr.bf16.mxu0 %v5956_v28  ;;  %1696 = vmatprep.subr.bf16.mxu1 %v5958_v29 }
 0x2c0   :  { %9466 = vst [vmem:[#allocation20_spill] sm:$0xff] %v6502_v26  ;;  %9467 = vst [vmem:[#allocation21_spill] sm:$0xff] %v6506_v27 }
 0x2c2   :  { %1656 = vmatpush1.bf16.msra.mxu0 %v5960_v30  ;;  %1697 = vmatpush1.bf16.msra.mxu1 %v5962_v31 }
 0x2c3   :  { %1657 = vmatprep.subr.bf16.mxu0 %v9446_v54  ;;  %1698 = vmatprep.subr.bf16.mxu1 %v9447_v55  ;;  %v6509_v55 = vpop.permute.xlu0 %1627 }
 0x2c4   :  { %vm1629_vm7 = vcmp.eq.s32.totalorder %v6509_v55, 1 }
 0x2c6   :  { %1658 = vmatpush1.bf16.msra.mxu0 %v9448_v56  ;;  %1699 = vmatpush1.bf16.msra.mxu1 %v9449_v58  ;;  %v1507_v56 = vunpack.c.l.bf16 %v1505_v51 }
 0x2c7   :  { %1659 = vmatprep.subr.bf16.mxu0 %v9450_v59  ;;  %1700 = vmatprep.subr.bf16.mxu1 %v9451_v60  ;;  %v1508_v59 = vunpack.c.h.bf16 %v1505_v51 }
 0x2ca   :  { %1660 = vmatpush1.bf16.msra.mxu0 %v9452_v61  ;;  %1701 = vmatpush1.bf16.msra.mxu1 %v9453_v62 }
 0x2cb   :  { %1661 = vmatprep.subr.bf16.mxu0 %v9454_v63  ;;  %1702 = vmatprep.subr.bf16.mxu1 %v9455_v1  ;;  %v9468_v1 = vld [vmem:[#allocation36_spill] sm:$0xff] }
 0x2ce   :  { %1662 = vmatpush1.bf16.msra.mxu0 %v9456_v2  ;;  %1703 = vmatpush1.bf16.msra.mxu1 %v9457_v3  ;;  %v1511_v2 = vadd.f32 %v1507_v56, %v9468_v1  ;;  %v1506_v3 = vld [vmem:[#allocation4 + $0x18] sm:$0xff] }
 0x2cf   :  { %1663 = vmatprep.subr.bf16.mxu0 %v9458_v4  ;;  %1704 = vmatprep.subr.bf16.mxu1 %v9459_v5  ;;  %v9469_v5 = vld [vmem:[#allocation37_spill] sm:$0xff] }
 0x2d2   :  { %1664 = vmatpush1.bf16.msra.mxu0 %v9460_v6  ;;  %1705 = vmatpush1.bf16.msra.mxu1 %v9461_v7  ;;  %v1512_v6 = vadd.f32 %v1508_v59, %v9469_v5  ;;  %v6513_v7 = vpop.permute.xlu0 %2731 }
 0x2d3   :  { %1747 = vmatprep.subr.bf16.mxu0 %v9462_v8  ;;  %1788 = vmatprep.subr.bf16.mxu1 %v9463_v9  ;;  %9470 = vst [vmem:[#allocation22_spill] sm:$0xff] %v6513_v7  ;;  %v6820_v7 = vld [vmem:[#allocation9 + $0x180] ss:$16 sps:$4 sm:$0xff]  }
 0x347   :  { %v1393_v13 = vpop.f32.mrb[8].mxu0  ;;  %v1434_v14 = vpop.f32.mrb[8].mxu1 }
 0x348   :  { %v1462_v15 = vadd.f32 %v6494_v11, %v1393_v13  ;;  %v1395_v16 = vpop.f32.mrb[9].mxu0  ;;  %v1436_v17 = vpop.f32.mrb[9].mxu1  ;;  %v1464_v29 = vadd.f32 %v6506_v27, %v1434_v14  ;;  %v1510_v13 = vunpack.c.h.bf16 %v1506_v3 }
 0x349   :  { %v1463_v18 = vadd.f32 %v6497_v12, %v1395_v16  ;;  %v1397_v19 = vpop.f32.mrb[10].mxu0  ;;  %v1438_v20 = vpop.f32.mrb[10].mxu1  ;;  %v1465_v44 = vadd.f32 %v6502_v26, %v1436_v17 }
 0x34a   :  { %v4269_v21 = vmul.f32 -1.442695, %v1462_v15  ;;  %v1398_v22 = vpop.f32.mrb[11].mxu0  ;;  %v1439_v23 = vpop.f32.mrb[11].mxu1 }
 0x34b   :  { %v4270_v24 = vmul.f32 -1.442695, %v1463_v18  ;;  %v4271_v28 = vmul.f32 -1.442695, %v1465_v44  ;;  %v1509_v44 = vunpack.c.l.bf16 %v1506_v3 }
 0x34c   :  { %4686 = vpow2.f32 %v4269_v21 }
 0x34d   :  { %4688 = vpow2.f32 %v4270_v24  ;;  %v1514_v24 = vadd.f32 %v1510_v13, %v6040_v43 }
 0x34e   :  { %4690 = vpow2.f32 %v4271_v28  ;;  %v6519_v28 = vpop.permute.xlu0 %3467 }
 0x34f   :  { %4692 = vtanh.f32 %v1464_v29  ;;  %9471 = vst [vmem:[#allocation23_spill] sm:$0xff] %v6519_v28  ;;  %v6817_v28 = vld [vmem:[#allocation9 + $0x18c] ss:$16 sps:$4 sm:$0xff]  }
 0x352   :  { %v6522_v56 = vpop.permute.xlu0 %4395 }
 0x356   :  { %v4687_v30 = vpop.eup %4686 }
 0x357   :  { %v4689_v31 = vpop.eup %4688  ;;  %v1475_v57 = vadd.f32 1.0, %v4687_v30  ;;  %v9472_v30 = vld [vmem:[#allocation38_spill] sm:$0xff] }
 0x358   :  { %v1476_v54 = vadd.f32 1.0, %v4689_v31  ;;  %v4691_v58 = vpop.eup %4690  ;;  %v1513_v31 = vadd.f32 %v1509_v44, %v9472_v30  ;;  %v9475_v44 = vld [vmem:[#allocation41_spill] sm:$0xff] }
 0x359   :  { %4694 = vrcp.f32 %v1475_v57  ;;  %v4693_v60 = vpop.eup %4692  ;;  %v1477_v63 = vadd.f32 1.0, %v4691_v58  ;;  %9585 = vst [vmem:[#allocation41_spill] sm:$0xff] %v6820_v7 }
 0x35a   :  { %4696 = vrcp.f32 %v1476_v54 }
 0x35b   :  { %4698 = vrcp.f32 %v1477_v63 }
 0x363   :  { %v4695_v41 = vpop.eup %4694 }
 0x364   :  { %v4697_v61 = vpop.eup %4696  ;;  %v1486_v62 = vmul.f32 %v4695_v41, %v4693_v60  ;;  %v4397_v60 = vunpack.i.l.bf16 %v6522_v56 }
 0x365   :  { %v1485_v4 = vmul.f32 0.0, %v4697_v61  ;;  %v4699_v57 = vpop.eup %4698 }
 0x367   :  { %v6515_v8 = vadd.f32 %v1486_v62, %v1485_v4  ;;  %v1549_v9 = vpop.f32.mrb[12].mxu0  ;;  %v1590_v10 = vpop.f32.mrb[12].mxu1 }
 0x368   :  { %v1597_v14 = vadd.f32 %v1549_v9, %v1511_v2  ;;  %v1551_v15 = vpop.f32.mrb[13].mxu0  ;;  %v1592_v16 = vpop.f32.mrb[13].mxu1  ;;  %v1599_v58 = vadd.f32 %v1590_v10, %v1513_v31 }
 0x369   :  { %4700 = vtanh.f32 %v6515_v8  ;;  %v1598_v17 = vadd.f32 %v1551_v15, %v1512_v6  ;;  %v1553_v18 = vpop.f32.mrb[14].mxu0  ;;  %v1594_v19 = vpop.f32.mrb[14].mxu1  ;;  %v1600_v29 = vadd.f32 %v1592_v16, %v1514_v24  ;;  %v9474_v15 = vld [vmem:[#allocation39_spill] sm:$0xff] }
 0x36a   :  { %v4274_v20 = vmul.f32 -1.442695, %v1597_v14  ;;  %v1554_v21 = vpop.f32.mrb[15].mxu0  ;;  %v1595_v22 = vpop.f32.mrb[15].mxu1  ;;  %v581_v16 = vsel %vm579_vm5, %v9474_v15, 0.0  ;;  %v9491_v15 = vld [vmem:[#allocation57_spill] sm:$0xff] }
 0x36b   :  { %v4275_v23 = vmul.f32 -1.442695, %v1598_v17  ;;  %v4276_v51 = vmul.f32 -1.442695, %v1600_v29  ;;  %v580_v29 = vsel %vm579_vm5, %v9475_v44, 0.0  ;;  %v9500_v44 = vld [vmem:[#allocation66_spill] sm:$0xff] }
 0x36c   :  { %4702 = vpow2.f32 %v4274_v20  ;;  %9584 = vst [vmem:[#allocation39_spill] sm:$0xff] %v6817_v28 }
 0x36d   :  { %4704 = vpow2.f32 %v4275_v23 }
 0x36e   :  { %4706 = vpow2.f32 %v4276_v51  ;;  %v9476_v51 = vld [vmem:[#allocation42_spill] sm:$0xff] }
 0x36f   :  { %4708 = vtanh.f32 %v1599_v58  ;;  %v9477_v58 = vld [vmem:[#allocation43_spill] sm:$0xff] }
 0x373   :  { %v4701_v54 = vpop.eup %4700 }
 0x374   :  { %v1489_v59 = vmul.f32 %v4701_v54, %v4699_v57 }
 0x376   :  { %v4703_v41 = vpop.eup %4702  ;;  %v6527_v62 = vsel %vm579_vm5, %v1489_v59, 0.0  ;;  %v4375_v54 = vpack.c.bf16 %v1489_v59, %v1489_v59  ;;  %v9481_v59 = vld [vmem:[#allocation47_spill] sm:$0xff] }
 0x377   :  { %v4705_v63 = vpop.eup %4704  ;;  %v1610_v2 = vadd.f32 1.0, %v4703_v41  ;;  %v1498_v3 = vmul.f32 %v4397_v60, %v6527_v62  ;;  %v9478_v60 = vld [vmem:[#allocation44_spill] sm:$0xff]  ;;  %v9479_v41 = vld [vmem:[#allocation45_spill] sm:$0xff] }
 0x378   :  { %v1611_v4 = vadd.f32 1.0, %v4705_v63  ;;  %v4707_v9 = vpop.eup %4706  ;;  %v9480_v63 = vld [vmem:[#allocation46_spill] sm:$0xff] }
 0x379   :  { %4710 = vrcp.f32 %v1610_v2  ;;  %v1499_v6 = vpack.c.bf16 %v1498_v3, %v1498_v3  ;;  %v4709_v10 = vpop.eup %4708  ;;  %v1612_v18 = vadd.f32 1.0, %v4707_v9  ;;  %v9482_v2 = vld [vmem:[#allocation48_spill] sm:$0xff]  ;;  %v9483_v3 = vld [vmem:[#allocation49_spill] sm:$0xff] }
 0x37a   :  { %4712 = vrcp.f32 %v1611_v4  ;;  %v9484_v4 = vld [vmem:[#allocation50_spill] sm:$0xff]  ;;  %v9487_v9 = vld [vmem:[#allocation53_spill] sm:$0xff] }
 0x37b   :  { %1500 = vst [vmem:[#allocation12] sm:$0xf] %v1499_v6  ;;  %4714 = vrcp.f32 %v1612_v18  ;;  %v9486_v6 = vld [vmem:[#allocation52_spill] sm:$0xff] }
 0x37c   :  { %v9494_v18 = vld [vmem:[#allocation60_spill] sm:$0xff] }
 0x383   :  { %v4711_v13 = vpop.eup %4710 }
 0x384   :  { %v4713_v14 = vpop.eup %4712  ;;  %v1621_v17 = vmul.f32 %v4711_v13, %v4709_v10  ;;  %v9488_v10 = vld [vmem:[#allocation54_spill] sm:$0xff]  ;;  %v9489_v13 = vld [vmem:[#allocation55_spill] sm:$0xff] }
 0x385   :  { %v1620_v19 = vmul.f32 %v4713_v14, %v581_v16  ;;  %v4715_v22 = vpop.eup %4714  ;;  %v9490_v14 = vld [vmem:[#allocation56_spill] sm:$0xff] }
 0x387   :  { %v1622_v20 = vadd.f32 %v1621_v17, %v1620_v19  ;;  %v9493_v17 = vld [vmem:[#allocation59_spill] sm:$0xff]  ;;  %v9495_v19 = vld [vmem:[#allocation61_spill] sm:$0xff] }
 0x389   :  { %4716 = vtanh.f32 %v1622_v20  ;;  %v6536_v21 = vsel %vm1629_vm7, %v1622_v20, %v581_v16  ;;  %v9492_v16 = vld [vmem:[#allocation58_spill] sm:$0xff] }
 0x38a   :  { %v9496_v20 = vld [vmem:[#allocation62_spill] sm:$0xff] }
 0x393   :  { %v4717_v23 = vpop.eup %4716 }
 0x394   :  { %v1624_v24 = vmul.f32 %v4717_v23, %v4715_v22  ;;  %v9497_v22 = vld [vmem:[#allocation63_spill] sm:$0xff]  ;;  %v9498_v23 = vld [vmem:[#allocation64_spill] sm:$0xff] }
 0x396   :  { %v6543_v31 = vsel %vm1629_vm7, %v1624_v24, %v580_v29  ;;  %v9499_v24 = vld [vmem:[#allocation65_spill] sm:$0xff]  ;;  %v9501_v29 = vld [vmem:[#allocation67_spill] sm:$0xff] }
 0x397   :  { %v6547_v57 = vpack.c.bf16 %v6543_v31, %v6543_v31 }
 0x399   :  { %1666 = vmatmul.mubr.bf16.vlgmr.msra.gmra.mrb[16].mxu0 %v6547_v57  ;;  %1707 = vmatmul.mubr.bf16.vlgmr.msra.gmra.mrb[16].mxu1 %v6547_v57 }
 0x39a   :  { %4376 = vmatprep.mubr.msk.bf16.mxu0 %vm6060_vm6, %v4375_v54  ;;  %4379 = vmatprep.mubr.msk.bf16.mxu1 %vm6060_vm6, %v4375_v54  ;;  %v9502_v54 = vld [vmem:[#allocation68_spill] sm:$0xff] }
 0x39b   :  { %1748 = vmatpush1.bf16.msra.mxu0 %v9476_v51  ;;  %1789 = vmatpush1.bf16.msra.mxu1 %v9477_v58  ;;  %v9503_v51 = vld [vmem:[#allocation69_spill] sm:$0xff]  ;;  %v9504_v58 = vld [vmem:[#allocation70_spill] sm:$0xff] }
 0x39c   :  { %1749 = vmatprep.subr.bf16.mxu0 %v9478_v60  ;;  %1790 = vmatprep.subr.bf16.mxu1 %v9479_v41  ;;  %v9505_v60 = vld [vmem:[#allocation71_spill] sm:$0xff]  ;;  %v9506_v41 = vld [vmem:[#allocation72_spill] sm:$0xff] }
 0x39f   :  { %1750 = vmatpush1.bf16.msra.mxu0 %v9480_v63  ;;  %1791 = vmatpush1.bf16.msra.mxu1 %v9481_v59  ;;  %v9507_v63 = vld [vmem:[#allocation73_spill] sm:$0xff]  ;;  %v9508_v59 = vld [vmem:[#allocation74_spill] sm:$0xff] }
 0x3a0   :  { %1751 = vmatprep.subr.bf16.mxu0 %v9482_v2  ;;  %1792 = vmatprep.subr.bf16.mxu1 %v9483_v3  ;;  %v9509_v2 = vld [vmem:[#allocation75_spill] sm:$0xff]  ;;  %v9510_v3 = vld [vmem:[#allocation76_spill] sm:$0xff] }
 0x3a3   :  { %1752 = vmatpush1.bf16.msra.mxu0 %v9484_v4  ;;  %1793 = vmatpush1.bf16.msra.mxu1 %v9485_v47  ;;  %v9511_v4 = vld [vmem:[#allocation77_spill] sm:$0xff]  ;;  %v9512_v47 = vld [vmem:[#allocation78_spill] sm:$0xff] }
 0x3a4   :  { %1753 = vmatprep.subr.bf16.mxu0 %v9486_v6  ;;  %1794 = vmatprep.subr.bf16.mxu1 %v9487_v9  ;;  %v9513_v6 = vld [vmem:[#allocation79_spill] sm:$0xff]  ;;  %v9514_v9 = vld [vmem:[#allocation80_spill] sm:$0xff] }
 0x3a7   :  { %1754 = vmatpush1.bf16.msra.mxu0 %v9488_v10  ;;  %1795 = vmatpush1.bf16.msra.mxu1 %v9489_v13  ;;  %v9515_v10 = vld [vmem:[#allocation81_spill] sm:$0xff]  ;;  %v9516_v13 = vld [vmem:[#allocation82_spill] sm:$0xff] }
 0x3a8   :  { %1755 = vmatprep.subr.bf16.mxu0 %v9490_v14  ;;  %1796 = vmatprep.subr.bf16.mxu1 %v9491_v15  ;;  %v9517_v14 = vld [vmem:[#allocation83_spill] sm:$0xff]  ;;  %v9518_v15 = vld [vmem:[#allocation84_spill] sm:$0xff] }
 0x3ab   :  { %1756 = vmatpush1.bf16.msra.mxu0 %v9492_v16  ;;  %1797 = vmatpush1.bf16.msra.mxu1 %v9493_v17  ;;  %v9519_v16 = vld [vmem:[#allocation85_spill] sm:$0xff]  ;;  %v9520_v17 = vld [vmem:[#allocation86_spill] sm:$0xff] }
 0x3ac   :  { %1757 = vmatprep.subr.bf16.mxu0 %v9494_v18  ;;  %1798 = vmatprep.subr.bf16.mxu1 %v9495_v19  ;;  %v9521_v18 = vld [vmem:[#allocation87_spill] sm:$0xff]  ;;  %v9522_v19 = vld [vmem:[#allocation88_spill] sm:$0xff] }
 0x3af   :  { %1758 = vmatpush1.bf16.msra.mxu0 %v9496_v20  ;;  %1799 = vmatpush1.bf16.msra.mxu1 %v9497_v22  ;;  %v9523_v20 = vld [vmem:[#allocation89_spill] sm:$0xff]  ;;  %v9524_v22 = vld [vmem:[#allocation90_spill] sm:$0xff] }
 0x3b0   :  { %1759 = vmatprep.subr.bf16.mxu0 %v9498_v23  ;;  %1800 = vmatprep.subr.bf16.mxu1 %v9499_v24  ;;  %v9525_v23 = vld [vmem:[#allocation91_spill] sm:$0xff]  ;;  %v9526_v24 = vld [vmem:[#allocation92_spill] sm:$0xff] }
 0x3b3   :  { %1760 = vmatpush1.bf16.msra.mxu0 %v9500_v44  ;;  %1801 = vmatpush1.bf16.msra.mxu1 %v9501_v29  ;;  %v9527_v44 = vld [vmem:[#allocation93_spill] sm:$0xff]  ;;  %v9528_v29 = vld [vmem:[#allocation94_spill] sm:$0xff] }
 0x3b4   :  { %1761 = vmatprep.subr.bf16.mxu0 %v9502_v54  ;;  %1802 = vmatprep.subr.bf16.mxu1 %v9503_v51  ;;  %v9529_v54 = vld [vmem:[#allocation95_spill] sm:$0xff]  ;;  %v9530_v51 = vld [vmem:[#allocation96_spill] sm:$0xff] }
 0x3b7   :  { %1762 = vmatpush1.bf16.msra.mxu0 %v9504_v58  ;;  %1803 = vmatpush1.bf16.msra.mxu1 %v9505_v60  ;;  %v9531_v58 = vld [vmem:[#allocation97_spill] sm:$0xff]  ;;  %v9532_v60 = vld [vmem:[#allocation98_spill] sm:$0xff] }
 0x3b8   :  { %1763 = vmatprep.subr.bf16.mxu0 %v9506_v41  ;;  %1804 = vmatprep.subr.bf16.mxu1 %v9507_v63  ;;  %v9533_v41 = vld [vmem:[#allocation99_spill] sm:$0xff]  ;;  %v9534_v63 = vld [vmem:[#allocation100_spill] sm:$0xff] }
 0x3bb   :  { %1764 = vmatpush1.bf16.msra.mxu0 %v9508_v59  ;;  %1805 = vmatpush1.bf16.msra.mxu1 %v9509_v2  ;;  %v9535_v59 = vld [vmem:[#allocation101_spill] sm:$0xff]  ;;  %v9536_v2 = vld [vmem:[#allocation102_spill] sm:$0xff] }
 0x3bc   :  { %1765 = vmatprep.subr.bf16.mxu0 %v9510_v3  ;;  %1806 = vmatprep.subr.bf16.mxu1 %v9511_v4  ;;  %v9537_v3 = vld [vmem:[#allocation103_spill] sm:$0xff]  ;;  %v9538_v4 = vld [vmem:[#allocation104_spill] sm:$0xff] }
 0x3bf   :  { %1766 = vmatpush1.bf16.msra.mxu0 %v9512_v47  ;;  %1807 = vmatpush1.bf16.msra.mxu1 %v9513_v6  ;;  %v9539_v47 = vld [vmem:[#allocation105_spill] sm:$0xff]  ;;  %v5079_v6 = vld [vmem:[%s8853_s0] sm:$0xff]  ;;  %s5687_s0 = smov [#allocation12]  }
 0x3c0   :  { %1767 = vmatprep.subr.bf16.mxu0 %v9514_v9  ;;  %1808 = vmatprep.subr.bf16.mxu1 %v9515_v10  ;;  %vm4284_vm8 = vcmp.gt.s32.totalorder %v5079_v6, 2  ;;  %vm4295_vm9 = vcmp.gt.s32.totalorder %v5079_v6, 3  ;;  %vm4339_vm10 = vcmp.gt.s32.totalorder %v5079_v6, 7  ;;  %s4088_s14 = sshll.u32 %s5687_s0, 4  ;;  %s4089_s14 = int_to_ptr.vmem [resolvable:$true] %s4088_s14 }
 0x3c1   :  { %v1993_v9 = vsel %vm4284_vm8, 1, %v9420_v38  ;;  %v2361_v10 = vsel %vm4295_vm9, 1, %v9420_v38  ;;  %s5648_s15 = scalar_lea.vmem %s4089_s14, 512  ;;  %p5653_p5 = scmp.lt.s32.totalorder %s4089_s14, %s4089_s14 }
 0x3c2   :  { %1995 = vperm.xlu1 %4393, %v1993_v9   ;;  %p5649_p4 = scmp.ne.s32.totalorder %s4089_s14, %s5648_s15  ;;  %p5654_p6 = scmp.lt.s32.totalorder %s5648_s15, %s5648_s15 }
 0x3c3   :  { %1768 = vmatpush1.bf16.msra.mxu0 %v9516_v13  ;;  %1809 = vmatpush1.bf16.msra.mxu1 %v9517_v14  ;;  %v3097_v14 = vsel %vm4317_vm4, 1, %v9420_v38 }
 0x3c4   :  { %1769 = vmatprep.subr.bf16.mxu0 %v9518_v15  ;;  %1810 = vmatprep.subr.bf16.mxu1 %v9519_v16  ;;  %v9541_v15 = vmov 0.0   ;;  %p5655_p7 = por %p5654_p6, %p5653_p5 }
 0x3c5   :  { %v4294_v16 = vsel %vm4284_vm8, 1.0, %v9541_v15 }
 0x3c6   :  { %2363 = vperm.xlu1 %4393, %v2361_v10   ;;  %p5656_p8 = pnand %p5655_p7, %p5649_p4 }
 0x3c7   :  { %1770 = vmatpush1.bf16.msra.mxu0 %v9520_v17  ;;  %1811 = vmatpush1.bf16.msra.mxu1 %v9521_v18  ;;  %v4305_v17 = vsel %vm4295_vm9, 1.0, %v9541_v15  ;;  %v3833_v18 = vsel %vm4339_vm10, 1, %v9420_v38 }
 0x3c8   :  { %1771 = vmatprep.subr.bf16.mxu0 %v9522_v19  ;;  %1812 = vmatprep.subr.bf16.mxu1 %v9523_v20  ;;  %v4399_v19 = vpack.i.bf16 %v4305_v17, %v4294_v16  ;;  %v4338_v20 = vsel %vm4328_vm3, 1.0, %v9541_v15 }
 0x3ca   :  { %3099 = vperm.xlu1 %4393, %v3097_v14  }
 0x3cb   :  { %1772 = vmatpush1.bf16.msra.mxu0 %v9524_v22  ;;  %1813 = vmatpush1.bf16.msra.mxu1 %v9525_v23  ;;  %v4349_v22 = vsel %vm4339_vm10, 1.0, %v9541_v15 }
 0x3cc   :  { %1773 = vmatprep.subr.bf16.mxu0 %v9526_v24  ;;  %1814 = vmatprep.subr.bf16.mxu1 %v9527_v44  ;;  %v4409_v23 = vpack.i.bf16 %v4349_v22, %v4338_v20  ;;  %v1036_v22 = vsel %vm579_vm5, %v6287_v34, 0.0 }
 0x3ce   :  { %3835 = vperm.xlu1 %4393, %v3833_v18  }
 0x3cf   :  { %1774 = vmatpush1.bf16.msra.mxu0 %v9528_v29  ;;  %1815 = vmatpush1.bf16.msra.mxu1 %v9529_v54  ;;  %v9542_v29 = vld [vmem:[#allocation106_spill] sm:$0xff] }
 0x3d0   :  { %1775 = vmatprep.subr.bf16.mxu0 %v9530_v51  ;;  %1816 = vmatprep.subr.bf16.mxu1 %v9531_v58 }
 0x3d2   :  { %4400 = vperm.xlu1 %4393, %v4399_v19  }
 0x3d3   :  { %1776 = vmatpush1.bf16.msra.mxu0 %v9532_v60  ;;  %1817 = vmatpush1.bf16.msra.mxu1 %v9533_v41 }
 0x3d4   :  { %1777 = vmatprep.subr.bf16.mxu0 %v9534_v63  ;;  %1818 = vmatprep.subr.bf16.mxu1 %v9535_v59 }
 0x3d6   :  { %4410 = vperm.xlu1 %4393, %v4409_v23  }
 0x3d7   :  { %1778 = vmatpush1.bf16.msra.mxu0 %v9536_v2  ;;  %1819 = vmatpush1.bf16.msra.mxu1 %v9537_v3 }
 0x3d8   :  { %1883 = vmatprep.subr.bf16.mxu0 %v9538_v4  ;;  %1924 = vmatprep.subr.bf16.mxu1 %v9539_v47  ;;  %v9543_v47 = vld [vmem:[#allocation107_spill] sm:$0xff] }
 0x441   :  { %v6890_v55 = vpop.permute.xlu1 %1995 }
 0x442   :  { %vm1997_vm11 = vcmp.eq.s32.totalorder %v6890_v55, 1 }
 0x46c   :  { %v1667_v24 = vpop.f32.mrb[16].mxu0  ;;  %v1708_v44 = vpop.f32.mrb[16].mxu1 }
 0x46d   :  { %v1715_v54 = vadd.f32 %v1667_v24, %v9542_v29  ;;  %v1669_v51 = vpop.f32.mrb[17].mxu0  ;;  %v1710_v58 = vpop.f32.mrb[17].mxu1  ;;  %v1717_v10 = vadd.f32 %v1708_v44, %v6284_v25 }
 0x46e   :  { %v1716_v60 = vadd.f32 %v1669_v51, %v6275_v52  ;;  %v1671_v41 = vpop.f32.mrb[18].mxu0  ;;  %v1712_v63 = vpop.f32.mrb[18].mxu1  ;;  %v1718_v6 = vadd.f32 %v1710_v58, %v9543_v47 }
 0x46f   :  { %v4277_v59 = vmul.f32 -1.442695, %v1715_v54  ;;  %v1672_v2 = vpop.f32.mrb[19].mxu0  ;;  %v1713_v3 = vpop.f32.mrb[19].mxu1  ;;  %v1035_v63 = vsel %vm579_vm5, %v6290_v50, 0.0  ;;  %v9544_v50 = vld [vmem:[#allocation108_spill] sm:$0xff] }
 0x470   :  { %v4278_v4 = vmul.f32 -1.442695, %v1716_v60  ;;  %v4279_v9 = vmul.f32 -1.442695, %v1718_v6  ;;  %v9545_v2 = vld [vmem:[#allocation109_spill] sm:$0xff]  ;;  %v9546_v3 = vld [vmem:[#allocation110_spill] sm:$0xff] }
 0x471   :  { %4718 = vpow2.f32 %v4277_v59  ;;  %v9552_v6 = vld [vmem:[#allocation116_spill] sm:$0xff] }
 0x472   :  { %4720 = vpow2.f32 %v4278_v4  ;;  %v9551_v4 = vld [vmem:[#allocation115_spill] sm:$0xff] }
 0x473   :  { %4722 = vpow2.f32 %v4279_v9  ;;  %v9555_v9 = vld [vmem:[#allocation119_spill] sm:$0xff] }
 0x474   :  { %4724 = vtanh.f32 %v1717_v10  ;;  %v9556_v10 = vld [vmem:[#allocation120_spill] sm:$0xff] }
 0x47b   :  { %v4719_v13 = vpop.eup %4718 }
 0x47c   :  { %v4721_v14 = vpop.eup %4720  ;;  %v1728_v15 = vadd.f32 1.0, %v4719_v13  ;;  %v9557_v13 = vld [vmem:[#allocation121_spill] sm:$0xff] }
 0x47d   :  { %v1729_v16 = vadd.f32 1.0, %v4721_v14  ;;  %v4723_v17 = vpop.eup %4722  ;;  %v9558_v14 = vld [vmem:[#allocation122_spill] sm:$0xff] }
 0x47e   :  { %4726 = vrcp.f32 %v1728_v15  ;;  %v4725_v18 = vpop.eup %4724  ;;  %v1730_v24 = vadd.f32 1.0, %v4723_v17  ;;  %v9559_v15 = vld [vmem:[#allocation123_spill] sm:$0xff]  ;;  %v9561_v17 = vld [vmem:[#allocation125_spill] sm:$0xff] }
 0x47f   :  { %4728 = vrcp.f32 %v1729_v16  ;;  %v9560_v16 = vld [vmem:[#allocation124_spill] sm:$0xff] }
 0x480   :  { %4730 = vrcp.f32 %v1730_v24  ;;  %v9567_v24 = vld [vmem:[#allocation131_spill] sm:$0xff] }
 0x488   :  { %v4727_v19 = vpop.eup %4726 }
 0x489   :  { %v4729_v20 = vpop.eup %4728  ;;  %v1739_v23 = vmul.f32 %v4727_v19, %v4725_v18  ;;  %v9562_v18 = vld [vmem:[#allocation126_spill] sm:$0xff]  ;;  %v9563_v19 = vld [vmem:[#allocation127_spill] sm:$0xff] }
 0x48a   :  { %v1738_v54 = vmul.f32 %v4729_v20, %v1036_v22  ;;  %v4731_v58 = vpop.eup %4730  ;;  %v9564_v20 = vld [vmem:[#allocation128_spill] sm:$0xff] }
 0x48c   :  { %v1740_v44 = vadd.f32 %v1739_v23, %v1738_v54  ;;  %v9566_v23 = vld [vmem:[#allocation130_spill] sm:$0xff]  ;;  %v9568_v54 = vld [vmem:[#allocation132_spill] sm:$0xff] }
 0x48e   :  { %4732 = vtanh.f32 %v1740_v44  ;;  %v6643_v51 = vsel %vm1629_vm7, %v1740_v44, %v1036_v22  ;;  %v9565_v22 = vld [vmem:[#allocation129_spill] sm:$0xff] }
 0x48f   :  { %v6724_v44 = vld [vmem:[#allocation9 + $0x80] ss:$16 sps:$4 sm:$0xff]  }
 0x498   :  { %v4733_v60 = vpop.eup %4732 }
 0x499   :  { %v1742_v41 = vmul.f32 %v4733_v60, %v4731_v58  ;;  %v6727_v58 = vld [vmem:[#allocation9 + $0x88] ss:$16 sps:$4 sm:$0xff]   ;;  %v6730_v60 = vld [vmem:[#allocation9 + $0xa4] ss:$16 sps:$4 sm:$0xff]  }
 0x49b   :  { %v6650_v34 = vsel %vm1629_vm7, %v1742_v41, %v1035_v63  ;;  %v6733_v41 = vld [vmem:[#allocation9 + $0xac] ss:$16 sps:$4 sm:$0xff]   ;;  %v6736_v63 = vld [vmem:[#allocation9 + $0xa0] ss:$16 sps:$4 sm:$0xff]  }
 0x49c   :  { %v1745_v59 = vpack.c.bf16 %v6650_v34, %v6650_v34 }
 0x49e   :  { %1780 = vmatmul.mubr.bf16.vlgmr.msra.gmra.mrb[20].mxu0 %v1745_v59  ;;  %1821 = vmatmul.mubr.bf16.vlgmr.msra.gmra.mrb[20].mxu1 %v1745_v59 }
 0x49f   :  { %1884 = vmatpush1.bf16.msra.mxu0 %v6302_v53  ;;  %1925 = vmatpush1.bf16.msra.mxu1 %v6305_v49  ;;  %v9547_v53 = vld [vmem:[#allocation111_spill] sm:$0xff]  ;;  %v9548_v49 = vld [vmem:[#allocation112_spill] sm:$0xff] }
 0x4a0   :  { %1885 = vmatprep.subr.bf16.mxu0 %v6308_v45  ;;  %1926 = vmatprep.subr.bf16.mxu1 %v6311_v40  ;;  %v9549_v45 = vld [vmem:[#allocation113_spill] sm:$0xff]  ;;  %v9550_v40 = vld [vmem:[#allocation114_spill] sm:$0xff] }
 0x4a1   :  { %1915 = vmatprep.mubr.bf16.mxu0 %v9420_v38  ;;  %1956 = vmatprep.mubr.bf16.mxu1 %v9420_v38 }
 0x4a3   :  { %1886 = vmatpush1.bf16.msra.mxu0 %v6316_v37  ;;  %1927 = vmatpush1.bf16.msra.mxu1 %v6319_v0  ;;  %v9553_v37 = vld [vmem:[#allocation117_spill] sm:$0xff]  ;;  %v9554_v0 = vld [vmem:[#allocation118_spill] sm:$0xff] }
 0x4a4   :  { %1887 = vmatprep.subr.bf16.mxu0 %v9544_v50  ;;  %1928 = vmatprep.subr.bf16.mxu1 %v9545_v2  ;;  %v6742_v50 = vld [vmem:[#allocation9 + $0xc4] ss:$16 sps:$4 sm:$0xff]   ;;  %v6745_v2 = vld [vmem:[#allocation9 + $0xcc] ss:$16 sps:$4 sm:$0xff]  }
 0x4a7   :  { %1888 = vmatpush1.bf16.msra.mxu0 %v9546_v3  ;;  %1929 = vmatpush1.bf16.msra.mxu1 %v9547_v53  ;;  %v6748_v3 = vld [vmem:[#allocation9 + $0xc0] ss:$16 sps:$4 sm:$0xff]   ;;  %v6751_v53 = vld [vmem:[#allocation9 + $0xc8] ss:$16 sps:$4 sm:$0xff]  }
 0x4a8   :  { %1889 = vmatprep.subr.bf16.mxu0 %v9548_v49  ;;  %1930 = vmatprep.subr.bf16.mxu1 %v9549_v45  ;;  %v6754_v49 = vld [vmem:[#allocation9 + $0xe4] ss:$16 sps:$4 sm:$0xff]   ;;  %v6757_v45 = vld [vmem:[#allocation9 + $0xec] ss:$16 sps:$4 sm:$0xff]  }
 0x4ab   :  { %1890 = vmatpush1.bf16.msra.mxu0 %v9550_v40  ;;  %1931 = vmatpush1.bf16.msra.mxu1 %v9551_v4  ;;  %v6760_v40 = vld [vmem:[#allocation9 + $0xe0] ss:$16 sps:$4 sm:$0xff]   ;;  %v6763_v4 = vld [vmem:[#allocation9 + $0xe8] ss:$16 sps:$4 sm:$0xff]  }
 0x4ac   :  { %1891 = vmatprep.subr.bf16.mxu0 %v9552_v6  ;;  %1932 = vmatprep.subr.bf16.mxu1 %v9553_v37  ;;  %v6766_v6 = vld [vmem:[#allocation9 + $0x104] ss:$16 sps:$4 sm:$0xff]   ;;  %v6769_v37 = vld [vmem:[#allocation9 + $0x10c] ss:$16 sps:$4 sm:$0xff]  }
 0x4af   :  { %1892 = vmatpush1.bf16.msra.mxu0 %v9554_v0  ;;  %1933 = vmatpush1.bf16.msra.mxu1 %v9555_v9  ;;  %v6772_v0 = vld [vmem:[#allocation9 + $0x100] ss:$16 sps:$4 sm:$0xff]   ;;  %v6775_v9 = vld [vmem:[#allocation9 + $0x108] ss:$16 sps:$4 sm:$0xff]  }
 0x4b0   :  { %1893 = vmatprep.subr.bf16.mxu0 %v9556_v10  ;;  %1934 = vmatprep.subr.bf16.mxu1 %v9557_v13  ;;  %9569 = vst [vmem:[#allocation24_spill] sm:$0xff] %v6772_v0  ;;  %9570 = vst [vmem:[#allocation25_spill] sm:$0xff] %v6775_v9  ;;  %v6778_v10 = vld [vmem:[#allocation9 + $0x124] ss:$16 sps:$4 sm:$0xff]   ;;  %v6781_v13 = vld [vmem:[#allocation9 + $0x12c] ss:$16 sps:$4 sm:$0xff]  }
 0x4b1   :  { %9571 = vst [vmem:[#allocation26_spill] sm:$0xff] %v6778_v10  ;;  %9572 = vst [vmem:[#allocation27_spill] sm:$0xff] %v6781_v13 }
 0x4b3   :  { %1894 = vmatpush1.bf16.msra.mxu0 %v9558_v14  ;;  %1935 = vmatpush1.bf16.msra.mxu1 %v9559_v15  ;;  %v6784_v14 = vld [vmem:[#allocation9 + $0x120] ss:$16 sps:$4 sm:$0xff]   ;;  %v6787_v15 = vld [vmem:[#allocation9 + $0x128] ss:$16 sps:$4 sm:$0xff]  }
 0x4b4   :  { %1895 = vmatprep.subr.bf16.mxu0 %v9560_v16  ;;  %1936 = vmatprep.subr.bf16.mxu1 %v9561_v17  ;;  %9573 = vst [vmem:[#allocation28_spill] sm:$0xff] %v6784_v14  ;;  %9574 = vst [vmem:[#allocation29_spill] sm:$0xff] %v6787_v15  ;;  %v6790_v16 = vld [vmem:[#allocation9 + $0x144] ss:$16 sps:$4 sm:$0xff]   ;;  %v6793_v17 = vld [vmem:[#allocation9 + $0x14c] ss:$16 sps:$4 sm:$0xff]  }
 0x4b5   :  { %9575 = vst [vmem:[#allocation30_spill] sm:$0xff] %v6790_v16  ;;  %9576 = vst [vmem:[#allocation31_spill] sm:$0xff] %v6793_v17 }
 0x4b7   :  { %1896 = vmatpush1.bf16.msra.mxu0 %v9562_v18  ;;  %1937 = vmatpush1.bf16.msra.mxu1 %v9563_v19  ;;  %v6796_v18 = vld [vmem:[#allocation9 + $0x140] ss:$16 sps:$4 sm:$0xff]   ;;  %v6799_v19 = vld [vmem:[#allocation9 + $0x148] ss:$16 sps:$4 sm:$0xff]  }
 0x4b8   :  { %1897 = vmatprep.subr.bf16.mxu0 %v6382_v32  ;;  %1938 = vmatprep.subr.bf16.mxu1 %v6385_v46  ;;  %v6695_v32 = vld [vmem:[#allocation9 + $0x28] ss:$16 sps:$4 sm:$0xff]   ;;  %v6699_v46 = vld [vmem:[#allocation9 + $0x4c] ss:$16 sps:$4 sm:$0xff]   ;;  %9577 = vst [vmem:[#allocation32_spill] sm:$0xff] %v6796_v18  ;;  %9578 = vst [vmem:[#allocation33_spill] sm:$0xff] %v6799_v19 }
 0x4bb   :  { %1898 = vmatpush1.bf16.msra.mxu0 %v9564_v20  ;;  %1939 = vmatpush1.bf16.msra.mxu1 %v9565_v22  ;;  %v6802_v20 = vld [vmem:[#allocation9 + $0x164] ss:$16 sps:$4 sm:$0xff]   ;;  %v6805_v22 = vld [vmem:[#allocation9 + $0x16c] ss:$16 sps:$4 sm:$0xff]  }
 0x4bc   :  { %2001 = vmatprep.subr.bf16.mxu0 %v9566_v23  ;;  %2042 = vmatprep.subr.bf16.mxu1 %v9567_v24  ;;  %9579 = vst [vmem:[#allocation34_spill] sm:$0xff] %v6802_v20  ;;  %9580 = vst [vmem:[#allocation35_spill] sm:$0xff] %v6805_v22  ;;  %v6808_v23 = vld [vmem:[#allocation9 + $0x160] ss:$16 sps:$4 sm:$0xff]   ;;  %v6811_v24 = vld [vmem:[#allocation9 + $0x168] ss:$16 sps:$4 sm:$0xff]  }
 0x4bd   :  { %9581 = vst [vmem:[#allocation36_spill] sm:$0xff] %v6808_v23  ;;  %9582 = vst [vmem:[#allocation38_spill] sm:$0xff] %v6811_v24 }
 0x4be   :  { %1916 = vmatmul.mubr.bf16.vlgmr.msra.gmra.mrb[24].mxu0 %v6547_v57  ;;  %1957 = vmatmul.mubr.bf16.vlgmr.msra.gmra.mrb[24].mxu1 %v6547_v57  ;;  %v6721_v57 = vld [vmem:[#allocation9 + $0x8c] ss:$16 sps:$4 sm:$0xff]  }
 0x4bf   :  { %2033 = vmatprep.mubr.bf16.mxu0 %v1745_v59  ;;  %2074 = vmatprep.mubr.bf16.mxu1 %v1745_v59  ;;  %v6739_v59 = vld [vmem:[#allocation9 + $0xa8] ss:$16 sps:$4 sm:$0xff]  }
 0x4c0   :  { %2002 = vmatpush1.bf16.msra.mxu0 %v6412_v35  ;;  %2043 = vmatpush1.bf16.msra.mxu1 %v9568_v54  ;;  %v6703_v35 = vld [vmem:[#allocation9 + $0x48] ss:$16 sps:$4 sm:$0xff]   ;;  %v6814_v54 = vld [vmem:[#allocation9 + $0x184] ss:$16 sps:$4 sm:$0xff]  }
 0x4c1   :  { %2003 = vmatprep.subr.bf16.mxu0 %v6418_v33  ;;  %2044 = vmatprep.subr.bf16.mxu1 %v6421_v39  ;;  %v6706_v33 = vld [vmem:[#allocation9 + $0x64] ss:$16 sps:$4 sm:$0xff]   ;;  %v6712_v39 = vld [vmem:[#allocation9 + $0x60] ss:$16 sps:$4 sm:$0xff]   ;;  %9583 = vst [vmem:[#allocation40_spill] sm:$0xff] %v6814_v54 }
 0x4c4   :  { %2004 = vmatpush1.bf16.msra.mxu0 %v6424_v48  ;;  %2045 = vmatpush1.bf16.msra.mxu1 %v6695_v32  ;;  %v6709_v48 = vld [vmem:[#allocation9 + $0x6c] ss:$16 sps:$4 sm:$0xff]  }
 0x4c5   :  { %2005 = vmatprep.subr.bf16.mxu0 %v6428_v36  ;;  %2046 = vmatprep.subr.bf16.mxu1 %v6699_v46  ;;  %v6715_v36 = vld [vmem:[#allocation9 + $0x68] ss:$16 sps:$4 sm:$0xff]  }
 0x4c8   :  { %2006 = vmatpush1.bf16.msra.mxu0 %v6432_v42  ;;  %2047 = vmatpush1.bf16.msra.mxu1 %v6703_v35  ;;  %v6718_v42 = vld [vmem:[#allocation9 + $0x84] ss:$16 sps:$4 sm:$0xff]  }
 0x4c9   :  { %2007 = vmatprep.subr.bf16.mxu0 %v6706_v33  ;;  %2048 = vmatprep.subr.bf16.mxu1 %v6709_v48 }
 0x4cc   :  { %2008 = vmatpush1.bf16.msra.mxu0 %v6712_v39  ;;  %2049 = vmatpush1.bf16.msra.mxu1 %v6715_v36 }
 0x4cd   :  { %2009 = vmatprep.subr.bf16.mxu0 %v6718_v42  ;;  %2050 = vmatprep.subr.bf16.mxu1 %v6721_v57 }
 0x4d0   :  { %2010 = vmatpush1.bf16.msra.mxu0 %v6724_v44  ;;  %2051 = vmatpush1.bf16.msra.mxu1 %v6727_v58 }
 0x4d1   :  { %2011 = vmatprep.subr.bf16.mxu0 %v6730_v60  ;;  %2052 = vmatprep.subr.bf16.mxu1 %v6733_v41 }
 0x4d4   :  { %2012 = vmatpush1.bf16.msra.mxu0 %v6736_v63  ;;  %2053 = vmatpush1.bf16.msra.mxu1 %v6739_v59 }
 0x4d5   :  { %2013 = vmatprep.subr.bf16.mxu0 %v6742_v50  ;;  %2054 = vmatprep.subr.bf16.mxu1 %v6745_v2 }
 0x4d8   :  { %2014 = vmatpush1.bf16.msra.mxu0 %v6748_v3  ;;  %2055 = vmatpush1.bf16.msra.mxu1 %v6751_v53 }
 0x4d9   :  { %2015 = vmatprep.subr.bf16.mxu0 %v6754_v49  ;;  %2056 = vmatprep.subr.bf16.mxu1 %v6757_v45 }
 0x4dc   :  { %2016 = vmatpush1.bf16.msra.mxu0 %v6760_v40  ;;  %2057 = vmatpush1.bf16.msra.mxu1 %v6763_v4 }
 0x4dd   :  { %2017 = vmatprep.subr.bf16.mxu0 %v6766_v6  ;;  %2058 = vmatprep.subr.bf16.mxu1 %v6769_v37 }
 0x4e0   :  { %2018 = vmatpush1.bf16.msra.mxu0 %v6772_v0  ;;  %2059 = vmatpush1.bf16.msra.mxu1 %v6775_v9 }
 0x4e1   :  { %2019 = vmatprep.subr.bf16.mxu0 %v6778_v10  ;;  %2060 = vmatprep.subr.bf16.mxu1 %v6781_v13 }
 0x4e4   :  { %2020 = vmatpush1.bf16.msra.mxu0 %v6784_v14  ;;  %2061 = vmatpush1.bf16.msra.mxu1 %v6787_v15 }
 0x4e5   :  { %2021 = vmatprep.subr.bf16.mxu0 %v6790_v16  ;;  %2062 = vmatprep.subr.bf16.mxu1 %v6793_v17 }
 0x4e8   :  { %2022 = vmatpush1.bf16.msra.mxu0 %v6796_v18  ;;  %2063 = vmatpush1.bf16.msra.mxu1 %v6799_v19 }
 0x4e9   :  { %2023 = vmatprep.subr.bf16.mxu0 %v6802_v20  ;;  %2064 = vmatprep.subr.bf16.mxu1 %v6805_v22  ;;  %v6823_v22 = vld [vmem:[#allocation9 + $0x188] ss:$16 sps:$4 sm:$0xff]  }
 0x4ea   :  { %9586 = vst [vmem:[#allocation42_spill] sm:$0xff] %v6823_v22 }
 0x4ec   :  { %2024 = vmatpush1.bf16.msra.mxu0 %v6808_v23  ;;  %2065 = vmatpush1.bf16.msra.mxu1 %v6811_v24  ;;  %v6826_v23 = vld [vmem:[#allocation9 + $0x1a4] ss:$16 sps:$4 sm:$0xff]   ;;  %v6829_v24 = vld [vmem:[#allocation9 + $0x1ac] ss:$16 sps:$4 sm:$0xff]  }
 0x4ed   :  { %2025 = vmatprep.subr.bf16.mxu0 %v6814_v54  ;;  %2066 = vmatprep.subr.bf16.mxu1 %v6817_v28  ;;  %9587 = vst [vmem:[#allocation43_spill] sm:$0xff] %v6826_v23  ;;  %9588 = vst [vmem:[#allocation44_spill] sm:$0xff] %v6829_v24  ;;  %v6832_v54 = vld [vmem:[#allocation9 + $0x1a0] ss:$16 sps:$4 sm:$0xff]   ;;  %v6835_v28 = vld [vmem:[#allocation9 + $0x1a8] ss:$16 sps:$4 sm:$0xff]  }
 0x4ee   :  { %9589 = vst [vmem:[#allocation45_spill] sm:$0xff] %v6832_v54  ;;  %9590 = vst [vmem:[#allocation46_spill] sm:$0xff] %v6835_v28 }
 0x4f0   :  { %2026 = vmatpush1.bf16.msra.mxu0 %v6820_v7  ;;  %2067 = vmatpush1.bf16.msra.mxu1 %v6823_v22  ;;  %v6838_v7 = vld [vmem:[#allocation9 + $0x1c4] ss:$16 sps:$4 sm:$0xff]   ;;  %v6841_v22 = vld [vmem:[#allocation9 + $0x1cc] ss:$16 sps:$4 sm:$0xff]  }
 0x4f1   :  { %2027 = vmatprep.subr.bf16.mxu0 %v6826_v23  ;;  %2068 = vmatprep.subr.bf16.mxu1 %v6829_v24  ;;  %9591 = vst [vmem:[#allocation47_spill] sm:$0xff] %v6838_v7  ;;  %9592 = vst [vmem:[#allocation48_spill] sm:$0xff] %v6841_v22  ;;  %v6844_v23 = vld [vmem:[#allocation9 + $0x1c0] ss:$16 sps:$4 sm:$0xff]   ;;  %v6847_v24 = vld [vmem:[#allocation9 + $0x1c8] ss:$16 sps:$4 sm:$0xff]  }
 0x4f2   :  { %9593 = vst [vmem:[#allocation49_spill] sm:$0xff] %v6844_v23  ;;  %9594 = vst [vmem:[#allocation50_spill] sm:$0xff] %v6847_v24 }
 0x4f4   :  { %2028 = vmatpush1.bf16.msra.mxu0 %v6832_v54  ;;  %2069 = vmatpush1.bf16.msra.mxu1 %v6835_v28  ;;  %v6850_v54 = vld [vmem:[#allocation9 + $0x1e4] ss:$16 sps:$4 sm:$0xff]   ;;  %v6853_v28 = vld [vmem:[#allocation9 + $0x1ec] ss:$16 sps:$4 sm:$0xff]  }
 0x4f5   :  { %2029 = vmatprep.subr.bf16.mxu0 %v6838_v7  ;;  %2070 = vmatprep.subr.bf16.mxu1 %v6841_v22  ;;  %9595 = vst [vmem:[#allocation51_spill] sm:$0xff] %v6850_v54  ;;  %9596 = vst [vmem:[#allocation52_spill] sm:$0xff] %v6853_v28  ;;  %v6856_v7 = vld [vmem:[#allocation9 + $0x1e0] ss:$16 sps:$4 sm:$0xff]   ;;  %v6859_v22 = vld [vmem:[#allocation9 + $0x1e8] ss:$16 sps:$4 sm:$0xff]  }
 0x4f6   :  { %9597 = vst [vmem:[#allocation53_spill] sm:$0xff] %v6856_v7  ;;  %9598 = vst [vmem:[#allocation54_spill] sm:$0xff] %v6859_v22 }
 0x4f8   :  { %2030 = vmatpush1.bf16.msra.mxu0 %v6844_v23  ;;  %2071 = vmatpush1.bf16.msra.mxu1 %v6847_v24  ;;  %v6862_v23 = vld [vmem:[#allocation10 + $0x4] ss:$16 sps:$4 sm:$0xff]   ;;  %v6865_v24 = vld [vmem:[#allocation10 + $0xc] ss:$16 sps:$4 sm:$0xff]  }
 0x4f9   :  { %2031 = vmatprep.subr.bf16.mxu0 %v6850_v54  ;;  %2072 = vmatprep.subr.bf16.mxu1 %v6853_v28  ;;  %9599 = vst [vmem:[#allocation55_spill] sm:$0xff] %v6862_v23  ;;  %9600 = vst [vmem:[#allocation56_spill] sm:$0xff] %v6865_v24 }
 0x4fc   :  { %2032 = vmatpush1.bf16.msra.mxu0 %v6856_v7  ;;  %2073 = vmatpush1.bf16.msra.mxu1 %v6859_v22 }
 0x4fd   :  { %2115 = vmatprep.subr.bf16.mxu0 %v6862_v23  ;;  %2156 = vmatprep.subr.bf16.mxu1 %v6865_v24 }
 0x571   :  { %v1781_v54 = vpop.f32.mrb[20].mxu0  ;;  %v1822_v20 = vpop.f32.mrb[20].mxu1 }
 0x572   :  { %v1829_v28 = vadd.f32 %v1781_v54, %v6494_v11  ;;  %v1783_v19 = vpop.f32.mrb[21].mxu0  ;;  %v1824_v18 = vpop.f32.mrb[21].mxu1  ;;  %v1831_v24 = vadd.f32 %v1822_v20, %v6506_v27 }
 0x573   :  { %v1830_v7 = vadd.f32 %v1783_v19, %v6497_v12  ;;  %v1785_v17 = vpop.f32.mrb[22].mxu0  ;;  %v1826_v16 = vpop.f32.mrb[22].mxu1  ;;  %v1832_v23 = vadd.f32 %v1824_v18, %v6502_v26  ;;  %v1491_v18 = vsel %vm579_vm5, %v6515_v8, 0.0 }
 0x574   :  { %v4280_v15 = vmul.f32 -1.442695, %v1829_v28  ;;  %v1786_v22 = vpop.f32.mrb[23].mxu0  ;;  %v1827_v14 = vpop.f32.mrb[23].mxu1  ;;  %v1873_v16 = vld [vmem:[#allocation4 + $0x20] sm:$0xff] }
 0x575   :  { %v4281_v13 = vmul.f32 -1.442695, %v1830_v7  ;;  %v4282_v10 = vmul.f32 -1.442695, %v1832_v23  ;;  %v1875_v28 = vunpack.c.l.bf16 %v1873_v16  ;;  %v1876_v14 = vunpack.c.h.bf16 %v1873_v16 }
 0x576   :  { %4734 = vpow2.f32 %v4280_v15 }
 0x577   :  { %4736 = vpow2.f32 %v4281_v13 }
 0x578   :  { %4738 = vpow2.f32 %v4282_v10  ;;  %v1874_v10 = vld [vmem:[#allocation4 + $0x28] sm:$0xff] }
 0x579   :  { %4740 = vtanh.f32 %v1831_v24 }
 0x580   :  { %v4735_v9 = vpop.eup %4734 }
 0x581   :  { %v4737_v0 = vpop.eup %4736  ;;  %v1842_v54 = vadd.f32 1.0, %v4735_v9  ;;  %v1879_v9 = vadd.f32 %v1875_v28, %v9468_v1 }
 0x582   :  { %v1843_v11 = vadd.f32 1.0, %v4737_v0  ;;  %v4739_v17 = vpop.eup %4738  ;;  %v1880_v0 = vadd.f32 %v1876_v14, %v9469_v5 }
 0x583   :  { %4742 = vrcp.f32 %v1842_v54  ;;  %v4741_v7 = vpop.eup %4740  ;;  %v1844_v20 = vadd.f32 1.0, %v4739_v17  ;;  %v1878_v54 = vunpack.c.h.bf16 %v1874_v10 }
 0x584   :  { %4744 = vrcp.f32 %v1843_v11 }
 0x585   :  { %4746 = vrcp.f32 %v1844_v20 }
 0x58d   :  { %v4743_v15 = vpop.eup %4742 }
 0x58e   :  { %v4745_v13 = vpop.eup %4744  ;;  %v1853_v19 = vmul.f32 %v4743_v15, %v4741_v7 }
 0x58f   :  { %v1852_v22 = vmul.f32 %v4745_v13, %v1491_v18  ;;  %v1882_v13 = vadd.f32 %v1878_v54, %v6040_v43 }
 0x591   :  { %v1854_v11 = vadd.f32 %v1853_v19, %v1852_v22  ;;  %v1917_v23 = vpop.f32.mrb[24].mxu0  ;;  %v1958_v24 = vpop.f32.mrb[24].mxu1  ;;  %v1877_v19 = vunpack.c.l.bf16 %v1874_v10 }
 0x592   :  { %v1965_v16 = vadd.f32 %v1917_v23, %v1879_v9  ;;  %v1919_v27 = vpop.f32.mrb[25].mxu0  ;;  %v1960_v26 = vpop.f32.mrb[25].mxu1 }
 0x593   :  { %4748 = vtanh.f32 %v1854_v11  ;;  %v1966_v12 = vadd.f32 %v1919_v27, %v1880_v0  ;;  %v1921_v61 = vpop.f32.mrb[26].mxu0  ;;  %v1962_v8 = vpop.f32.mrb[26].mxu1  ;;  %v6879_v17 = vsel %vm1629_vm7, %v1854_v11, %v1491_v18  ;;  %v1968_v20 = vadd.f32 %v1960_v26, %v1882_v13 }
 0x594   :  { %v4285_v28 = vmul.f32 -1.442695, %v1965_v16  ;;  %v1922_v7 = vpop.f32.mrb[27].mxu0  ;;  %v1963_v15 = vpop.f32.mrb[27].mxu1  ;;  %v1881_v9 = vadd.f32 %v1877_v19, %v9472_v30  ;;  %v4398_v18 = vunpack.i.h.bf16 %v6522_v56 }
 0x595   :  { %v4286_v14 = vmul.f32 -1.442695, %v1966_v12  ;;  %v4747_v22 = vpop.eup %4746  ;;  %v4287_v0 = vmul.f32 -1.442695, %v1968_v20 }
 0x596   :  { %4750 = vpow2.f32 %v4285_v28  ;;  %v1967_v23 = vadd.f32 %v1958_v24, %v1881_v9 }
 0x597   :  { %4752 = vpow2.f32 %v4286_v14 }
 0x598   :  { %4754 = vpow2.f32 %v4287_v0 }
 0x599   :  { %4756 = vtanh.f32 %v1967_v23 }
 0x59d   :  { %v4749_v27 = vpop.eup %4748 }
 0x59e   :  { %v1856_v61 = vmul.f32 %v4749_v27, %v4747_v22 }
 0x5a0   :  { %v4751_v11 = vpop.eup %4750  ;;  %v6887_v12 = vsel %vm1629_vm7, %v1856_v61, %v6527_v62  ;;  %v6915_v61 = vld [vmem:[#allocation10 + $0x8] ss:$16 sps:$4 sm:$0xff]  }
 0x5a1   :  { %v4753_v54 = vpop.eup %4752  ;;  %v1978_v16 = vadd.f32 1.0, %v4751_v11  ;;  %v1865_v26 = vmul.f32 %v4398_v18, %v6887_v12  ;;  %v2114_v23 = vpack.c.bf16 %v6887_v12, %v6887_v12  ;;  %v6921_v18 = vld [vmem:[#allocation10 + $0x2c] ss:$16 sps:$4 sm:$0xff]   ;;  %v6924_v11 = vld [vmem:[#allocation10 + $0x20] ss:$16 sps:$4 sm:$0xff]  }
 0x5a2   :  { %v1979_v10 = vadd.f32 1.0, %v4753_v54  ;;  %v4755_v24 = vpop.eup %4754  ;;  %v6927_v54 = vld [vmem:[#allocation10 + $0x28] ss:$16 sps:$4 sm:$0xff]  }
 0x5a3   :  { %4758 = vrcp.f32 %v1978_v16  ;;  %v1866_v8 = vpack.c.bf16 %v1865_v26, %v1865_v26  ;;  %v4757_v28 = vpop.eup %4756  ;;  %v1980_v14 = vadd.f32 1.0, %v4755_v24  ;;  %9601 = vst [vmem:[#allocation57_spill] sm:$0xff] %v6927_v54  ;;  %v6930_v16 = vld [vmem:[#allocation10 + $0x44] ss:$16 sps:$4 sm:$0xff]   ;;  %v6933_v26 = vld [vmem:[#allocation10 + $0x4c] ss:$16 sps:$4 sm:$0xff]  }
 0x5a4   :  { %4760 = vrcp.f32 %v1979_v10  ;;  %9602 = vst [vmem:[#allocation58_spill] sm:$0xff] %v6930_v16  ;;  %9603 = vst [vmem:[#allocation59_spill] sm:$0xff] %v6933_v26  ;;  %v6936_v10 = vld [vmem:[#allocation10 + $0x40] ss:$16 sps:$4 sm:$0xff]   ;;  %v6942_v24 = vld [vmem:[#allocation10 + $0x64] ss:$16 sps:$4 sm:$0xff]  }
 0x5a5   :  { %1868 = vst [vmem:[#allocation12 + $0x4] sm:$0xf] %v1866_v8  ;;  %4762 = vrcp.f32 %v1980_v14  ;;  %9604 = vst [vmem:[#allocation60_spill] sm:$0xff] %v6936_v10  ;;  %v6939_v8 = vld [vmem:[#allocation10 + $0x48] ss:$16 sps:$4 sm:$0xff]  }
 0x5a6   :  { %9605 = vst [vmem:[#allocation61_spill] sm:$0xff] %v6939_v8  ;;  %9606 = vst [vmem:[#allocation62_spill] sm:$0xff] %v6942_v24  ;;  %v6957_v14 = vld [vmem:[#allocation10 + $0x8c] ss:$16 sps:$4 sm:$0xff]  }
 0x5a7   :  { %9611 = vst [vmem:[#allocation67_spill] sm:$0xff] %v6957_v14 }
 0x5ad   :  { %v4759_v56 = vpop.eup %4758 }
 0x5ae   :  { %v4761_v7 = vpop.eup %4760  ;;  %v1989_v15 = vmul.f32 %v4759_v56, %v4757_v28  ;;  %v6945_v28 = vld [vmem:[#allocation10 + $0x6c] ss:$16 sps:$4 sm:$0xff]   ;;  %v6948_v56 = vld [vmem:[#allocation10 + $0x60] ss:$16 sps:$4 sm:$0xff]  }
 0x5af   :  { %v1988_v62 = vmul.f32 %v4761_v7, %v6536_v21  ;;  %v4763_v20 = vpop.eup %4762  ;;  %9607 = vst [vmem:[#allocation63_spill] sm:$0xff] %v6945_v28  ;;  %9608 = vst [vmem:[#allocation64_spill] sm:$0xff] %v6948_v56  ;;  %v6951_v7 = vld [vmem:[#allocation10 + $0x68] ss:$16 sps:$4 sm:$0xff]  }
 0x5b0   :  { %9609 = vst [vmem:[#allocation65_spill] sm:$0xff] %v6951_v7 }
 0x5b1   :  { %v1990_v13 = vadd.f32 %v1989_v15, %v1988_v62  ;;  %v6954_v15 = vld [vmem:[#allocation10 + $0x84] ss:$16 sps:$4 sm:$0xff]   ;;  %v6960_v62 = vld [vmem:[#allocation10 + $0x80] ss:$16 sps:$4 sm:$0xff]  }
 0x5b2   :  { %9610 = vst [vmem:[#allocation66_spill] sm:$0xff] %v6954_v15  ;;  %9612 = vst [vmem:[#allocation68_spill] sm:$0xff] %v6960_v62 }
 0x5b3   :  { %4764 = vtanh.f32 %v1990_v13  ;;  %v6897_v19 = vsel %vm1997_vm11, %v1990_v13, %v6536_v21  ;;  %v6912_v21 = vld [vmem:[#allocation10] ss:$16 sps:$4 sm:$0xff]   ;;  %v6963_v13 = vld [vmem:[#allocation10 + $0x88] ss:$16 sps:$4 sm:$0xff]  }
 0x5b4   :  { %9613 = vst [vmem:[#allocation69_spill] sm:$0xff] %v6963_v13 }
 0x5bd   :  { %v4765_v9 = vpop.eup %4764 }
 0x5be   :  { %v1992_v22 = vmul.f32 %v4765_v9, %v4763_v20  ;;  %v6966_v20 = vld [vmem:[#allocation10 + $0xa4] ss:$16 sps:$4 sm:$0xff]   ;;  %v6969_v9 = vld [vmem:[#allocation10 + $0xac] ss:$16 sps:$4 sm:$0xff]  }
 0x5bf   :  { %9614 = vst [vmem:[#allocation70_spill] sm:$0xff] %v6966_v20  ;;  %9615 = vst [vmem:[#allocation71_spill] sm:$0xff] %v6969_v9 }
 0x5c0   :  { %v6902_v27 = vsel %vm1997_vm11, %v1992_v22, %v6543_v31  ;;  %v6918_v31 = vld [vmem:[#allocation10 + $0x24] ss:$16 sps:$4 sm:$0xff]   ;;  %v6972_v22 = vld [vmem:[#allocation10 + $0xa0] ss:$16 sps:$4 sm:$0xff]  }
 0x5c1   :  { %v6906_v0 = vpack.c.bf16 %v6902_v27, %v6902_v27  ;;  %9616 = vst [vmem:[#allocation72_spill] sm:$0xff] %v6972_v22 }
 0x5c3   :  { %2034 = vmatmul.mubr.bf16.vlgmr.msra.gmra.mrb[28].mxu0 %v6906_v0  ;;  %2075 = vmatmul.mubr.bf16.vlgmr.msra.gmra.mrb[28].mxu1 %v6906_v0 }
 0x5c4   :  { %2147 = vmatprep.mubr.bf16.mxu0 %v2114_v23  ;;  %2188 = vmatprep.mubr.bf16.mxu1 %v2114_v23  ;;  %v6975_v23 = vld [vmem:[#allocation10 + $0xa8] ss:$16 sps:$4 sm:$0xff]  }
 0x5c5   :  { %2116 = vmatpush1.bf16.msra.mxu0 %v6912_v21  ;;  %2157 = vmatpush1.bf16.msra.mxu1 %v6915_v61  ;;  %9617 = vst [vmem:[#allocation73_spill] sm:$0xff] %v6975_v23 }
 0x5c6   :  { %2117 = vmatprep.subr.bf16.mxu0 %v6918_v31  ;;  %2158 = vmatprep.subr.bf16.mxu1 %v6921_v18 }
 0x5c9   :  { %2118 = vmatpush1.bf16.msra.mxu0 %v6924_v11  ;;  %2159 = vmatpush1.bf16.msra.mxu1 %v6927_v54 }
 0x5ca   :  { %2119 = vmatprep.subr.bf16.mxu0 %v6930_v16  ;;  %2160 = vmatprep.subr.bf16.mxu1 %v6933_v26 }
 0x5cd   :  { %2120 = vmatpush1.bf16.msra.mxu0 %v6936_v10  ;;  %2161 = vmatpush1.bf16.msra.mxu1 %v6939_v8 }
 0x5ce   :  { %2121 = vmatprep.subr.bf16.mxu0 %v6942_v24  ;;  %2162 = vmatprep.subr.bf16.mxu1 %v6945_v28 }
 0x5d1   :  { %2122 = vmatpush1.bf16.msra.mxu0 %v6948_v56  ;;  %2163 = vmatpush1.bf16.msra.mxu1 %v6951_v7 }
 0x5d2   :  { %2123 = vmatprep.subr.bf16.mxu0 %v6954_v15  ;;  %2164 = vmatprep.subr.bf16.mxu1 %v6957_v14 }
 0x5d5   :  { %2124 = vmatpush1.bf16.msra.mxu0 %v6960_v62  ;;  %2165 = vmatpush1.bf16.msra.mxu1 %v6963_v13  ;;  %v6978_v62 = vld [vmem:[#allocation10 + $0xc4] ss:$16 sps:$4 sm:$0xff]   ;;  %v6981_v13 = vld [vmem:[#allocation10 + $0xcc] ss:$16 sps:$4 sm:$0xff]  }
 0x5d6   :  { %2125 = vmatprep.subr.bf16.mxu0 %v6966_v20  ;;  %2166 = vmatprep.subr.bf16.mxu1 %v6969_v9  ;;  %9618 = vst [vmem:[#allocation74_spill] sm:$0xff] %v6978_v62  ;;  %9619 = vst [vmem:[#allocation75_spill] sm:$0xff] %v6981_v13  ;;  %v6984_v20 = vld [vmem:[#allocation10 + $0xc0] ss:$16 sps:$4 sm:$0xff]   ;;  %v6987_v9 = vld [vmem:[#allocation10 + $0xc8] ss:$16 sps:$4 sm:$0xff]  }
 0x5d7   :  { %9620 = vst [vmem:[#allocation76_spill] sm:$0xff] %v6984_v20  ;;  %9621 = vst [vmem:[#allocation77_spill] sm:$0xff] %v6987_v9 }
 0x5d9   :  { %2126 = vmatpush1.bf16.msra.mxu0 %v6972_v22  ;;  %2167 = vmatpush1.bf16.msra.mxu1 %v6975_v23  ;;  %v6990_v22 = vld [vmem:[#allocation10 + $0xe4] ss:$16 sps:$4 sm:$0xff]   ;;  %v6993_v23 = vld [vmem:[#allocation10 + $0xec] ss:$16 sps:$4 sm:$0xff]  }
 0x5da   :  { %2127 = vmatprep.subr.bf16.mxu0 %v6978_v62  ;;  %2168 = vmatprep.subr.bf16.mxu1 %v6981_v13  ;;  %9622 = vst [vmem:[#allocation78_spill] sm:$0xff] %v6990_v22  ;;  %9623 = vst [vmem:[#allocation79_spill] sm:$0xff] %v6993_v23  ;;  %v6996_v62 = vld [vmem:[#allocation10 + $0xe0] ss:$16 sps:$4 sm:$0xff]   ;;  %v6999_v13 = vld [vmem:[#allocation10 + $0xe8] ss:$16 sps:$4 sm:$0xff]  }
 0x5db   :  { %9624 = vst [vmem:[#allocation80_spill] sm:$0xff] %v6996_v62  ;;  %9625 = vst [vmem:[#allocation81_spill] sm:$0xff] %v6999_v13 }
 0x5dd   :  { %2128 = vmatpush1.bf16.msra.mxu0 %v6984_v20  ;;  %2169 = vmatpush1.bf16.msra.mxu1 %v6987_v9  ;;  %v7002_v20 = vld [vmem:[#allocation10 + $0x104] ss:$16 sps:$4 sm:$0xff]   ;;  %v7005_v9 = vld [vmem:[#allocation10 + $0x10c] ss:$16 sps:$4 sm:$0xff]  }
 0x5de   :  { %2129 = vmatprep.subr.bf16.mxu0 %v6990_v22  ;;  %2170 = vmatprep.subr.bf16.mxu1 %v6993_v23  ;;  %9626 = vst [vmem:[#allocation82_spill] sm:$0xff] %v7002_v20  ;;  %9627 = vst [vmem:[#allocation83_spill] sm:$0xff] %v7005_v9  ;;  %v7008_v22 = vld [vmem:[#allocation10 + $0x100] ss:$16 sps:$4 sm:$0xff]   ;;  %v7011_v23 = vld [vmem:[#allocation10 + $0x108] ss:$16 sps:$4 sm:$0xff]  }
 0x5df   :  { %9628 = vst [vmem:[#allocation84_spill] sm:$0xff] %v7008_v22  ;;  %9629 = vst [vmem:[#allocation85_spill] sm:$0xff] %v7011_v23 }
 0x5e1   :  { %2130 = vmatpush1.bf16.msra.mxu0 %v6996_v62  ;;  %2171 = vmatpush1.bf16.msra.mxu1 %v6999_v13  ;;  %v7014_v62 = vld [vmem:[#allocation10 + $0x124] ss:$16 sps:$4 sm:$0xff]   ;;  %v7017_v13 = vld [vmem:[#allocation10 + $0x12c] ss:$16 sps:$4 sm:$0xff]  }
 0x5e2   :  { %2131 = vmatprep.subr.bf16.mxu0 %v7002_v20  ;;  %2172 = vmatprep.subr.bf16.mxu1 %v7005_v9  ;;  %9630 = vst [vmem:[#allocation86_spill] sm:$0xff] %v7014_v62  ;;  %9631 = vst [vmem:[#allocation87_spill] sm:$0xff] %v7017_v13  ;;  %v7020_v20 = vld [vmem:[#allocation10 + $0x120] ss:$16 sps:$4 sm:$0xff]   ;;  %v7023_v9 = vld [vmem:[#allocation10 + $0x128] ss:$16 sps:$4 sm:$0xff]  }
 0x5e3   :  { %9632 = vst [vmem:[#allocation88_spill] sm:$0xff] %v7020_v20  ;;  %9633 = vst [vmem:[#allocation89_spill] sm:$0xff] %v7023_v9 }
 0x5e5   :  { %2132 = vmatpush1.bf16.msra.mxu0 %v7008_v22  ;;  %2173 = vmatpush1.bf16.msra.mxu1 %v7011_v23  ;;  %v7026_v22 = vld [vmem:[#allocation10 + $0x144] ss:$16 sps:$4 sm:$0xff]   ;;  %v7029_v23 = vld [vmem:[#allocation10 + $0x14c] ss:$16 sps:$4 sm:$0xff]  }
 0x5e6   :  { %2133 = vmatprep.subr.bf16.mxu0 %v7014_v62  ;;  %2174 = vmatprep.subr.bf16.mxu1 %v7017_v13  ;;  %9634 = vst [vmem:[#allocation90_spill] sm:$0xff] %v7026_v22  ;;  %9635 = vst [vmem:[#allocation91_spill] sm:$0xff] %v7029_v23  ;;  %v7032_v62 = vld [vmem:[#allocation10 + $0x140] ss:$16 sps:$4 sm:$0xff]   ;;  %v7035_v13 = vld [vmem:[#allocation10 + $0x148] ss:$16 sps:$4 sm:$0xff]  }
 0x5e7   :  { %9636 = vst [vmem:[#allocation92_spill] sm:$0xff] %v7032_v62  ;;  %9637 = vst [vmem:[#allocation93_spill] sm:$0xff] %v7035_v13 }
 0x5e9   :  { %2134 = vmatpush1.bf16.msra.mxu0 %v7020_v20  ;;  %2175 = vmatpush1.bf16.msra.mxu1 %v7023_v9  ;;  %v7038_v20 = vld [vmem:[#allocation10 + $0x164] ss:$16 sps:$4 sm:$0xff]   ;;  %v7041_v9 = vld [vmem:[#allocation10 + $0x16c] ss:$16 sps:$4 sm:$0xff]  }
 0x5ea   :  { %2135 = vmatprep.subr.bf16.mxu0 %v7026_v22  ;;  %2176 = vmatprep.subr.bf16.mxu1 %v7029_v23  ;;  %9638 = vst [vmem:[#allocation94_spill] sm:$0xff] %v7038_v20  ;;  %9639 = vst [vmem:[#allocation95_spill] sm:$0xff] %v7041_v9  ;;  %v7044_v22 = vld [vmem:[#allocation10 + $0x160] ss:$16 sps:$4 sm:$0xff]   ;;  %v7047_v23 = vld [vmem:[#allocation10 + $0x168] ss:$16 sps:$4 sm:$0xff]  }
 0x5eb   :  { %9640 = vst [vmem:[#allocation96_spill] sm:$0xff] %v7044_v22  ;;  %9641 = vst [vmem:[#allocation97_spill] sm:$0xff] %v7047_v23 }
 0x5ed   :  { %2136 = vmatpush1.bf16.msra.mxu0 %v7032_v62  ;;  %2177 = vmatpush1.bf16.msra.mxu1 %v7035_v13  ;;  %v7050_v62 = vld [vmem:[#allocation10 + $0x184] ss:$16 sps:$4 sm:$0xff]   ;;  %v7053_v13 = vld [vmem:[#allocation10 + $0x18c] ss:$16 sps:$4 sm:$0xff]  }
 0x5ee   :  { %2137 = vmatprep.subr.bf16.mxu0 %v7038_v20  ;;  %2178 = vmatprep.subr.bf16.mxu1 %v7041_v9  ;;  %9642 = vst [vmem:[#allocation98_spill] sm:$0xff] %v7050_v62  ;;  %9643 = vst [vmem:[#allocation99_spill] sm:$0xff] %v7053_v13  ;;  %v7056_v20 = vld [vmem:[#allocation10 + $0x180] ss:$16 sps:$4 sm:$0xff]   ;;  %v7059_v9 = vld [vmem:[#allocation10 + $0x188] ss:$16 sps:$4 sm:$0xff]  }
 0x5ef   :  { %9644 = vst [vmem:[#allocation100_spill] sm:$0xff] %v7056_v20  ;;  %9645 = vst [vmem:[#allocation101_spill] sm:$0xff] %v7059_v9 }
 0x5f1   :  { %2138 = vmatpush1.bf16.msra.mxu0 %v7044_v22  ;;  %2179 = vmatpush1.bf16.msra.mxu1 %v7047_v23  ;;  %v7062_v22 = vld [vmem:[#allocation10 + $0x1a4] ss:$16 sps:$4 sm:$0xff]   ;;  %v7065_v23 = vld [vmem:[#allocation10 + $0x1ac] ss:$16 sps:$4 sm:$0xff]  }
 0x5f2   :  { %2139 = vmatprep.subr.bf16.mxu0 %v7050_v62  ;;  %2180 = vmatprep.subr.bf16.mxu1 %v7053_v13  ;;  %9646 = vst [vmem:[#allocation102_spill] sm:$0xff] %v7062_v22  ;;  %9647 = vst [vmem:[#allocation103_spill] sm:$0xff] %v7065_v23  ;;  %v7068_v62 = vld [vmem:[#allocation10 + $0x1a0] ss:$16 sps:$4 sm:$0xff]   ;;  %v7071_v13 = vld [vmem:[#allocation10 + $0x1a8] ss:$16 sps:$4 sm:$0xff]  }
 0x5f3   :  { %9648 = vst [vmem:[#allocation104_spill] sm:$0xff] %v7068_v62  ;;  %9649 = vst [vmem:[#allocation105_spill] sm:$0xff] %v7071_v13 }
 0x5f5   :  { %2140 = vmatpush1.bf16.msra.mxu0 %v7056_v20  ;;  %2181 = vmatpush1.bf16.msra.mxu1 %v7059_v9  ;;  %v7074_v20 = vld [vmem:[#allocation10 + $0x1c4] ss:$16 sps:$4 sm:$0xff]   ;;  %v7077_v9 = vld [vmem:[#allocation10 + $0x1cc] ss:$16 sps:$4 sm:$0xff]  }
 0x5f6   :  { %2141 = vmatprep.subr.bf16.mxu0 %v7062_v22  ;;  %2182 = vmatprep.subr.bf16.mxu1 %v7065_v23  ;;  %9650 = vst [vmem:[#allocation17_spill] sm:$0xff] %v7074_v20  ;;  %9651 = vst [vmem:[#allocation107_spill] sm:$0xff] %v7077_v9  ;;  %v7080_v22 = vld [vmem:[#allocation10 + $0x1c0] ss:$16 sps:$4 sm:$0xff]   ;;  %v7083_v23 = vld [vmem:[#allocation10 + $0x1c8] ss:$16 sps:$4 sm:$0xff]  }
 0x5f7   :  { %9652 = vst [vmem:[#allocation108_spill] sm:$0xff] %v7080_v22  ;;  %9653 = vst [vmem:[#allocation109_spill] sm:$0xff] %v7083_v23 }
 0x5f9   :  { %2142 = vmatpush1.bf16.msra.mxu0 %v7068_v62  ;;  %2183 = vmatpush1.bf16.msra.mxu1 %v7071_v13  ;;  %v7086_v62 = vld [vmem:[#allocation10 + $0x1e4] ss:$16 sps:$4 sm:$0xff]   ;;  %v7089_v13 = vld [vmem:[#allocation10 + $0x1ec] ss:$16 sps:$4 sm:$0xff]  }
 0x5fa   :  { %2143 = vmatprep.subr.bf16.mxu0 %v7074_v20  ;;  %2184 = vmatprep.subr.bf16.mxu1 %v7077_v9  ;;  %9654 = vst [vmem:[#allocation110_spill] sm:$0xff] %v7086_v62  ;;  %9655 = vst [vmem:[#allocation111_spill] sm:$0xff] %v7089_v13  ;;  %v7092_v20 = vld [vmem:[#allocation10 + $0x1e0] ss:$16 sps:$4 sm:$0xff]   ;;  %v7095_v9 = vld [vmem:[#allocation10 + $0x1e8] ss:$16 sps:$4 sm:$0xff]  }
 0x5fb   :  { %9656 = vst [vmem:[#allocation112_spill] sm:$0xff] %v7092_v20  ;;  %9657 = vst [vmem:[#allocation113_spill] sm:$0xff] %v7095_v9 }
 0x5fd   :  { %2144 = vmatpush1.bf16.msra.mxu0 %v7080_v22  ;;  %2185 = vmatpush1.bf16.msra.mxu1 %v7083_v23  ;;  %v7098_v22 = vld [vmem:[#allocation7 + $0x4] ss:$16 sps:$4 sm:$0xff]   ;;  %v7101_v23 = vld [vmem:[#allocation7 + $0xc] ss:$16 sps:$4 sm:$0xff]  }
 0x5fe   :  { %2145 = vmatprep.subr.bf16.mxu0 %v7086_v62  ;;  %2186 = vmatprep.subr.bf16.mxu1 %v7089_v13  ;;  %9658 = vst [vmem:[#allocation114_spill] sm:$0xff] %v7098_v22  ;;  %9659 = vst [vmem:[#allocation115_spill] sm:$0xff] %v7101_v23 }
 0x601   :  { %2146 = vmatpush1.bf16.msra.mxu0 %v7092_v20  ;;  %2187 = vmatpush1.bf16.msra.mxu1 %v7095_v9 }
 0x602   :  { %2251 = vmatprep.subr.bf16.mxu0 %v7098_v22  ;;  %2292 = vmatprep.subr.bf16.mxu1 %v7101_v23 }
 0x696   :  { %v2035_v62 = vpop.f32.mrb[28].mxu0  ;;  %v2076_v14 = vpop.f32.mrb[28].mxu1 }
 0x697   :  { %v2083_v13 = vadd.f32 %v2035_v62, %v9542_v29  ;;  %v2037_v15 = vpop.f32.mrb[29].mxu0  ;;  %v2078_v7 = vpop.f32.mrb[29].mxu1  ;;  %v2085_v23 = vadd.f32 %v2076_v14, %v6284_v25 }
 0x698   :  { %v2084_v20 = vadd.f32 %v2037_v15, %v6275_v52  ;;  %v2039_v56 = vpop.f32.mrb[30].mxu0  ;;  %v2080_v28 = vpop.f32.mrb[30].mxu1  ;;  %v2086_v22 = vadd.f32 %v2078_v7, %v9543_v47 }
 0x699   :  { %v4288_v24 = vmul.f32 -1.442695, %v2083_v13  ;;  %v2040_v9 = vpop.f32.mrb[31].mxu0  ;;  %v2081_v8 = vpop.f32.mrb[31].mxu1 }
 0x69a   :  { %v4289_v10 = vmul.f32 -1.442695, %v2084_v20  ;;  %v4290_v26 = vmul.f32 -1.442695, %v2086_v22  ;;  %v7125_v9 = vld [vmem:[#allocation7] ss:$16 sps:$4 sm:$0xff]  }
 0x69b   :  { %4766 = vpow2.f32 %v4288_v24  ;;  %v7131_v22 = vld [vmem:[#allocation7 + $0x24] ss:$16 sps:$4 sm:$0xff]  }
 0x69c   :  { %4768 = vpow2.f32 %v4289_v10 }
 0x69d   :  { %4770 = vpow2.f32 %v4290_v26 }
 0x69e   :  { %4772 = vtanh.f32 %v2085_v23  ;;  %v7139_v23 = vld [vmem:[#allocation7 + $0x20] ss:$16 sps:$4 sm:$0xff]  }
 0x6a5   :  { %v4767_v16 = vpop.eup %4766 }
 0x6a6   :  { %v4769_v54 = vpop.eup %4768  ;;  %v2096_v62 = vadd.f32 1.0, %v4767_v16 }
 0x6a7   :  { %v2097_v29 = vadd.f32 1.0, %v4769_v54  ;;  %v4771_v28 = vpop.eup %4770 }
 0x6a8   :  { %4774 = vrcp.f32 %v2096_v62  ;;  %v4773_v56 = vpop.eup %4772  ;;  %v2098_v24 = vadd.f32 1.0, %v4771_v28  ;;  %v7142_v62 = vld [vmem:[#allocation7 + $0x28] ss:$16 sps:$4 sm:$0xff]   ;;  %v7145_v28 = vld [vmem:[#allocation7 + $0x44] ss:$16 sps:$4 sm:$0xff]  }
 0x6a9   :  { %4776 = vrcp.f32 %v2097_v29 }
 0x6aa   :  { %4778 = vrcp.f32 %v2098_v24  ;;  %v7160_v24 = vld [vmem:[#allocation7 + $0x6c] ss:$16 sps:$4 sm:$0xff]  }
 0x6ab   :  { %9660 = vst [vmem:[#allocation116_spill] sm:$0xff] %v7160_v24 }
 0x6b2   :  { %v4775_v15 = vpop.eup %4774 }
 0x6b3   :  { %v4777_v8 = vpop.eup %4776  ;;  %v2107_v13 = vmul.f32 %v4775_v15, %v4773_v56  ;;  %v7148_v56 = vld [vmem:[#allocation7 + $0x4c] ss:$16 sps:$4 sm:$0xff]   ;;  %v7151_v15 = vld [vmem:[#allocation7 + $0x40] ss:$16 sps:$4 sm:$0xff]  }
 0x6b4   :  { %v2106_v10 = vmul.f32 %v4777_v8, %v6643_v51  ;;  %v4779_v26 = vpop.eup %4778  ;;  %v7154_v8 = vld [vmem:[#allocation7 + $0x48] ss:$16 sps:$4 sm:$0xff]  }
 0x6b6   :  { %v2108_v7 = vadd.f32 %v2107_v13, %v2106_v10  ;;  %v7157_v13 = vld [vmem:[#allocation7 + $0x64] ss:$16 sps:$4 sm:$0xff]   ;;  %v7163_v10 = vld [vmem:[#allocation7 + $0x60] ss:$16 sps:$4 sm:$0xff]  }
 0x6b7   :  { %9661 = vst [vmem:[#allocation117_spill] sm:$0xff] %v7163_v10 }
 0x6b8   :  { %4780 = vtanh.f32 %v2108_v7  ;;  %v7112_v16 = vsel %vm1997_vm11, %v2108_v7, %v6643_v51  ;;  %v7128_v51 = vld [vmem:[#allocation7 + $0x8] ss:$16 sps:$4 sm:$0xff]  }
 0x6b9   :  { %v7166_v7 = vld [vmem:[#allocation7 + $0x68] ss:$16 sps:$4 sm:$0xff]  }
 0x6ba   :  { %9662 = vst [vmem:[#allocation118_spill] sm:$0xff] %v7166_v7 }
 0x6c2   :  { %v4781_v54 = vpop.eup %4780 }
 0x6c3   :  { %v2110_v14 = vmul.f32 %v4781_v54, %v4779_v26  ;;  %v7169_v26 = vld [vmem:[#allocation7 + $0x84] ss:$16 sps:$4 sm:$0xff]   ;;  %v7172_v54 = vld [vmem:[#allocation7 + $0x8c] ss:$16 sps:$4 sm:$0xff]  }
 0x6c4   :  { %9663 = vst [vmem:[#allocation119_spill] sm:$0xff] %v7169_v26  ;;  %9664 = vst [vmem:[#allocation120_spill] sm:$0xff] %v7172_v54 }
 0x6c5   :  { %v7117_v29 = vsel %vm1997_vm11, %v2110_v14, %v6650_v34  ;;  %v7134_v34 = vld [vmem:[#allocation7 + $0x2c] ss:$16 sps:$4 sm:$0xff]   ;;  %v7175_v14 = vld [vmem:[#allocation7 + $0x80] ss:$16 sps:$4 sm:$0xff]  }
 0x6c6   :  { %v7121_v20 = vpack.c.bf16 %v7117_v29, %v7117_v29  ;;  %9665 = vst [vmem:[#allocation121_spill] sm:$0xff] %v7175_v14 }
 0x6c8   :  { %2148 = vmatmul.mubr.bf16.vlgmr.msra.gmra.mrb[32].mxu0 %v7121_v20  ;;  %2189 = vmatmul.mubr.bf16.vlgmr.msra.gmra.mrb[32].mxu1 %v7121_v20 }
 0x6c9   :  { %2252 = vmatpush1.bf16.msra.mxu0 %v7125_v9  ;;  %2293 = vmatpush1.bf16.msra.mxu1 %v7128_v51 }
 0x6ca   :  { %2253 = vmatprep.subr.bf16.mxu0 %v7131_v22  ;;  %2294 = vmatprep.subr.bf16.mxu1 %v7134_v34 }
 0x6cb   :  { %2283 = vmatprep.mubr.bf16.mxu0 %v9420_v38  ;;  %2324 = vmatprep.mubr.bf16.mxu1 %v9420_v38 }
 0x6cd   :  { %2254 = vmatpush1.bf16.msra.mxu0 %v7139_v23  ;;  %2295 = vmatpush1.bf16.msra.mxu1 %v7142_v62 }
 0x6ce   :  { %2255 = vmatprep.subr.bf16.mxu0 %v7145_v28  ;;  %2296 = vmatprep.subr.bf16.mxu1 %v7148_v56 }
 0x6d1   :  { %2256 = vmatpush1.bf16.msra.mxu0 %v7151_v15  ;;  %2297 = vmatpush1.bf16.msra.mxu1 %v7154_v8 }
 0x6d2   :  { %2257 = vmatprep.subr.bf16.mxu0 %v7157_v13  ;;  %2298 = vmatprep.subr.bf16.mxu1 %v7160_v24  ;;  %v7178_v24 = vld [vmem:[#allocation7 + $0x88] ss:$16 sps:$4 sm:$0xff]  }
 0x6d3   :  { %9666 = vst [vmem:[#allocation122_spill] sm:$0xff] %v7178_v24 }
 0x6d5   :  { %2258 = vmatpush1.bf16.msra.mxu0 %v7163_v10  ;;  %2299 = vmatpush1.bf16.msra.mxu1 %v7166_v7  ;;  %v7181_v10 = vld [vmem:[#allocation7 + $0xa4] ss:$16 sps:$4 sm:$0xff]   ;;  %v7184_v7 = vld [vmem:[#allocation7 + $0xac] ss:$16 sps:$4 sm:$0xff]  }
 0x6d6   :  { %2259 = vmatprep.subr.bf16.mxu0 %v7169_v26  ;;  %2300 = vmatprep.subr.bf16.mxu1 %v7172_v54  ;;  %9667 = vst [vmem:[#allocation123_spill] sm:$0xff] %v7181_v10  ;;  %9668 = vst [vmem:[#allocation124_spill] sm:$0xff] %v7184_v7  ;;  %v7187_v26 = vld [vmem:[#allocation7 + $0xa0] ss:$16 sps:$4 sm:$0xff]   ;;  %v7190_v54 = vld [vmem:[#allocation7 + $0xa8] ss:$16 sps:$4 sm:$0xff]  }
 0x6d7   :  { %9669 = vst [vmem:[#allocation125_spill] sm:$0xff] %v7187_v26  ;;  %9670 = vst [vmem:[#allocation126_spill] sm:$0xff] %v7190_v54 }
 0x6d9   :  { %2260 = vmatpush1.bf16.msra.mxu0 %v7175_v14  ;;  %2301 = vmatpush1.bf16.msra.mxu1 %v7178_v24  ;;  %v7193_v14 = vld [vmem:[#allocation7 + $0xc4] ss:$16 sps:$4 sm:$0xff]   ;;  %v7196_v24 = vld [vmem:[#allocation7 + $0xcc] ss:$16 sps:$4 sm:$0xff]  }
 0x6da   :  { %2261 = vmatprep.subr.bf16.mxu0 %v7181_v10  ;;  %2302 = vmatprep.subr.bf16.mxu1 %v7184_v7  ;;  %9671 = vst [vmem:[#allocation127_spill] sm:$0xff] %v7193_v14  ;;  %9672 = vst [vmem:[#allocation128_spill] sm:$0xff] %v7196_v24  ;;  %v7199_v10 = vld [vmem:[#allocation7 + $0xc0] ss:$16 sps:$4 sm:$0xff]   ;;  %v7202_v7 = vld [vmem:[#allocation7 + $0xc8] ss:$16 sps:$4 sm:$0xff]  }
 0x6db   :  { %9673 = vst [vmem:[#allocation129_spill] sm:$0xff] %v7199_v10  ;;  %9674 = vst [vmem:[#allocation130_spill] sm:$0xff] %v7202_v7 }
 0x6dd   :  { %2262 = vmatpush1.bf16.msra.mxu0 %v7187_v26  ;;  %2303 = vmatpush1.bf16.msra.mxu1 %v7190_v54  ;;  %v7205_v26 = vld [vmem:[#allocation7 + $0xe4] ss:$16 sps:$4 sm:$0xff]   ;;  %v7208_v54 = vld [vmem:[#allocation7 + $0xec] ss:$16 sps:$4 sm:$0xff]  }
 0x6de   :  { %2263 = vmatprep.subr.bf16.mxu0 %v7193_v14  ;;  %2304 = vmatprep.subr.bf16.mxu1 %v7196_v24  ;;  %v7211_v14 = vld [vmem:[#allocation7 + $0xe0] ss:$16 sps:$4 sm:$0xff]   ;;  %v7214_v24 = vld [vmem:[#allocation7 + $0xe8] ss:$16 sps:$4 sm:$0xff]  }
 0x6df   :  { %9675 = vst [vmem:[#allocation131_spill] sm:$0xff] %v7211_v14  ;;  %9676 = vst [vmem:[#allocation132_spill] sm:$0xff] %v7214_v24 }
 0x6e1   :  { %2264 = vmatpush1.bf16.msra.mxu0 %v7199_v10  ;;  %2305 = vmatpush1.bf16.msra.mxu1 %v7202_v7  ;;  %v7217_v10 = vld [vmem:[#allocation9 + $0x4] ss:$16 sps:$4 sm:$0xff]   ;;  %v7220_v7 = vld [vmem:[#allocation9 + $0xc] ss:$16 sps:$4 sm:$0xff]  }
 0x6e2   :  { %2265 = vmatprep.subr.bf16.mxu0 %v7205_v26  ;;  %2306 = vmatprep.subr.bf16.mxu1 %v7208_v54  ;;  %9677 = vst [vmem:[#allocation133_spill] sm:$0xff] %v7217_v10  ;;  %9678 = vst [vmem:[#allocation134_spill] sm:$0xff] %v7220_v7 }
 0x6e5   :  { %2266 = vmatpush1.bf16.msra.mxu0 %v7211_v14  ;;  %2307 = vmatpush1.bf16.msra.mxu1 %v7214_v24  ;;  %v7227_v14 = vld [vmem:[#allocation9] ss:$16 sps:$4 sm:$0xff]   ;;  %v7230_v24 = vld [vmem:[#allocation9 + $0x8] ss:$16 sps:$4 sm:$0xff]  }
 0x6e6   :  { %2369 = vmatprep.subr.bf16.mxu0 %v7217_v10  ;;  %2410 = vmatprep.subr.bf16.mxu1 %v7220_v7  ;;  %9679 = vst [vmem:[#allocation135_spill] sm:$0xff] %v7230_v24  ;;  %v7233_v10 = vld [vmem:[#allocation9 + $0x24] ss:$16 sps:$4 sm:$0xff]   ;;  %v7236_v7 = vld [vmem:[#allocation9 + $0x2c] ss:$16 sps:$4 sm:$0xff]  }
 0x6e8   :  { %2284 = vmatmul.mubr.bf16.vlgmr.msra.gmra.mrb[36].mxu0 %v6906_v0  ;;  %2325 = vmatmul.mubr.bf16.vlgmr.msra.gmra.mrb[36].mxu1 %v6906_v0  ;;  %v7239_v0 = vld [vmem:[#allocation9 + $0x20] ss:$16 sps:$4 sm:$0xff]  }
 0x6e9   :  { %2401 = vmatprep.mubr.bf16.mxu0 %v7121_v20  ;;  %2442 = vmatprep.mubr.bf16.mxu1 %v7121_v20  ;;  %v7243_v20 = vld [vmem:[#allocation9 + $0x44] ss:$16 sps:$4 sm:$0xff]  }
 0x6ea   :  { %2370 = vmatpush1.bf16.msra.mxu0 %v7227_v14  ;;  %2411 = vmatpush1.bf16.msra.mxu1 %v7230_v24  ;;  %v7247_v24 = vld [vmem:[#allocation9 + $0x40] ss:$16 sps:$4 sm:$0xff]  }
 0x6eb   :  { %2371 = vmatprep.subr.bf16.mxu0 %v7233_v10  ;;  %2412 = vmatprep.subr.bf16.mxu1 %v7236_v7 }
 0x6ee   :  { %2372 = vmatpush1.bf16.msra.mxu0 %v7239_v0  ;;  %2413 = vmatpush1.bf16.msra.mxu1 %v6695_v32  ;;  %v9680_v32 = vld [vmem:[#allocation24_spill] sm:$0xff] }
 0x6ef   :  { %2373 = vmatprep.subr.bf16.mxu0 %v7243_v20  ;;  %2414 = vmatprep.subr.bf16.mxu1 %v6699_v46  ;;  %v9681_v46 = vld [vmem:[#allocation25_spill] sm:$0xff] }
 0x6f2   :  { %2374 = vmatpush1.bf16.msra.mxu0 %v7247_v24  ;;  %2415 = vmatpush1.bf16.msra.mxu1 %v6703_v35  ;;  %v9682_v35 = vld [vmem:[#allocation26_spill] sm:$0xff] }
 0x6f3   :  { %2375 = vmatprep.subr.bf16.mxu0 %v6706_v33  ;;  %2416 = vmatprep.subr.bf16.mxu1 %v6709_v48  ;;  %v9683_v33 = vld [vmem:[#allocation27_spill] sm:$0xff]  ;;  %v9684_v48 = vld [vmem:[#allocation28_spill] sm:$0xff] }
 0x6f6   :  { %2376 = vmatpush1.bf16.msra.mxu0 %v6712_v39  ;;  %2417 = vmatpush1.bf16.msra.mxu1 %v6715_v36  ;;  %v9685_v39 = vld [vmem:[#allocation29_spill] sm:$0xff]  ;;  %v9686_v36 = vld [vmem:[#allocation30_spill] sm:$0xff] }
 0x6f7   :  { %2377 = vmatprep.subr.bf16.mxu0 %v6718_v42  ;;  %2418 = vmatprep.subr.bf16.mxu1 %v6721_v57  ;;  %v9687_v42 = vld [vmem:[#allocation31_spill] sm:$0xff]  ;;  %v9688_v57 = vld [vmem:[#allocation32_spill] sm:$0xff] }
 0x6fa   :  { %2378 = vmatpush1.bf16.msra.mxu0 %v6724_v44  ;;  %2419 = vmatpush1.bf16.msra.mxu1 %v6727_v58  ;;  %v9689_v44 = vld [vmem:[#allocation33_spill] sm:$0xff]  ;;  %v9690_v58 = vld [vmem:[#allocation34_spill] sm:$0xff] }
 0x6fb   :  { %2379 = vmatprep.subr.bf16.mxu0 %v6730_v60  ;;  %2420 = vmatprep.subr.bf16.mxu1 %v6733_v41  ;;  %v9691_v60 = vld [vmem:[#allocation35_spill] sm:$0xff]  ;;  %v9692_v41 = vld [vmem:[#allocation36_spill] sm:$0xff] }
 0x6fe   :  { %2380 = vmatpush1.bf16.msra.mxu0 %v6736_v63  ;;  %2421 = vmatpush1.bf16.msra.mxu1 %v6739_v59  ;;  %v9693_v63 = vld [vmem:[#allocation38_spill] sm:$0xff]  ;;  %v9694_v59 = vld [vmem:[#allocation40_spill] sm:$0xff] }
 0x6ff   :  { %2381 = vmatprep.subr.bf16.mxu0 %v6742_v50  ;;  %2422 = vmatprep.subr.bf16.mxu1 %v6745_v2  ;;  %v9695_v50 = vld [vmem:[#allocation39_spill] sm:$0xff]  ;;  %v9696_v2 = vld [vmem:[#allocation41_spill] sm:$0xff] }
 0x702   :  { %2382 = vmatpush1.bf16.msra.mxu0 %v6748_v3  ;;  %2423 = vmatpush1.bf16.msra.mxu1 %v6751_v53  ;;  %v9697_v3 = vld [vmem:[#allocation42_spill] sm:$0xff]  ;;  %v9698_v53 = vld [vmem:[#allocation43_spill] sm:$0xff] }
 0x703   :  { %2383 = vmatprep.subr.bf16.mxu0 %v6754_v49  ;;  %2424 = vmatprep.subr.bf16.mxu1 %v6757_v45  ;;  %v9699_v49 = vld [vmem:[#allocation44_spill] sm:$0xff]  ;;  %v9700_v45 = vld [vmem:[#allocation45_spill] sm:$0xff] }
 0x706   :  { %2384 = vmatpush1.bf16.msra.mxu0 %v6760_v40  ;;  %2425 = vmatpush1.bf16.msra.mxu1 %v6763_v4  ;;  %v9701_v40 = vld [vmem:[#allocation46_spill] sm:$0xff]  ;;  %v9702_v4 = vld [vmem:[#allocation47_spill] sm:$0xff] }
 0x707   :  { %2385 = vmatprep.subr.bf16.mxu0 %v6766_v6  ;;  %2426 = vmatprep.subr.bf16.mxu1 %v6769_v37  ;;  %v9703_v6 = vld [vmem:[#allocation48_spill] sm:$0xff]  ;;  %v9704_v37 = vld [vmem:[#allocation49_spill] sm:$0xff] }
 0x70a   :  { %2386 = vmatpush1.bf16.msra.mxu0 %v9680_v32  ;;  %2427 = vmatpush1.bf16.msra.mxu1 %v9681_v46  ;;  %v9705_v32 = vld [vmem:[#allocation50_spill] sm:$0xff]  ;;  %v9706_v46 = vld [vmem:[#allocation51_spill] sm:$0xff] }
 0x70b   :  { %2387 = vmatprep.subr.bf16.mxu0 %v9682_v35  ;;  %2428 = vmatprep.subr.bf16.mxu1 %v9683_v33  ;;  %v9707_v35 = vld [vmem:[#allocation52_spill] sm:$0xff]  ;;  %v9708_v33 = vld [vmem:[#allocation53_spill] sm:$0xff] }
 0x70e   :  { %2388 = vmatpush1.bf16.msra.mxu0 %v9684_v48  ;;  %2429 = vmatpush1.bf16.msra.mxu1 %v9685_v39  ;;  %v9709_v48 = vld [vmem:[#allocation54_spill] sm:$0xff]  ;;  %v9710_v39 = vld [vmem:[#allocation55_spill] sm:$0xff] }
 0x70f   :  { %2389 = vmatprep.subr.bf16.mxu0 %v9686_v36  ;;  %2430 = vmatprep.subr.bf16.mxu1 %v9687_v42  ;;  %v9711_v36 = vld [vmem:[#allocation56_spill] sm:$0xff] }
 0x712   :  { %2390 = vmatpush1.bf16.msra.mxu0 %v9688_v57  ;;  %2431 = vmatpush1.bf16.msra.mxu1 %v9689_v44  ;;  %v9712_v44 = vld [vmem:[#allocation18_spill] sm:$0xff] }
 0x713   :  { %2391 = vmatprep.subr.bf16.mxu0 %v9690_v58  ;;  %2432 = vmatprep.subr.bf16.mxu1 %v9691_v60 }
 0x716   :  { %2392 = vmatpush1.bf16.msra.mxu0 %v9692_v41  ;;  %2433 = vmatpush1.bf16.msra.mxu1 %v9693_v63  ;;  %v9713_v63 = vld [vmem:[#allocation19_spill] sm:$0xff] }
 0x717   :  { %2393 = vmatprep.subr.bf16.mxu0 %v9694_v59  ;;  %2434 = vmatprep.subr.bf16.mxu1 %v9695_v50 }
 0x71a   :  { %2394 = vmatpush1.bf16.msra.mxu0 %v9696_v2  ;;  %2435 = vmatpush1.bf16.msra.mxu1 %v9697_v3 }
 0x71b   :  { %2395 = vmatprep.subr.bf16.mxu0 %v9698_v53  ;;  %2436 = vmatprep.subr.bf16.mxu1 %v9699_v49 }
 0x71e   :  { %2396 = vmatpush1.bf16.msra.mxu0 %v9700_v45  ;;  %2437 = vmatpush1.bf16.msra.mxu1 %v9701_v40  ;;  %v9714_v40 = vld [vmem:[#allocation20_spill] sm:$0xff] }
 0x71f   :  { %2397 = vmatprep.subr.bf16.mxu0 %v9702_v4  ;;  %2438 = vmatprep.subr.bf16.mxu1 %v9703_v6 }
 0x722   :  { %2398 = vmatpush1.bf16.msra.mxu0 %v9704_v37  ;;  %2439 = vmatpush1.bf16.msra.mxu1 %v9705_v32  ;;  %v9715_v37 = vld [vmem:[#allocation21_spill] sm:$0xff] }
 0x723   :  { %2399 = vmatprep.subr.bf16.mxu0 %v9706_v46  ;;  %2440 = vmatprep.subr.bf16.mxu1 %v9707_v35 }
 0x726   :  { %2400 = vmatpush1.bf16.msra.mxu0 %v9708_v33  ;;  %2441 = vmatpush1.bf16.msra.mxu1 %v9709_v48 }
 0x727   :  { %2483 = vmatprep.subr.bf16.mxu0 %v9710_v39  ;;  %2524 = vmatprep.subr.bf16.mxu1 %v9711_v36  ;;  %v2241_v39 = vld [vmem:[#allocation4 + $0x30] sm:$0xff]  ;;  %v7309_v36 = vpop.permute.xlu1 %2363 }
 0x728   :  { %vm2365_vm12 = vcmp.eq.s32.totalorder %v7309_v36, 1 }
 0x79b   :  { %v2149_v42 = vpop.f32.mrb[32].mxu0  ;;  %v2190_v57 = vpop.f32.mrb[32].mxu1 }
 0x79c   :  { %v2197_v58 = vadd.f32 %v2149_v42, %v9712_v44  ;;  %v2151_v60 = vpop.f32.mrb[33].mxu0  ;;  %v2192_v41 = vpop.f32.mrb[33].mxu1  ;;  %v2199_v32 = vadd.f32 %v2190_v57, %v9715_v37  ;;  %v2243_v42 = vunpack.c.l.bf16 %v2241_v39 }
 0x79d   :  { %v2198_v59 = vadd.f32 %v2151_v60, %v9713_v63  ;;  %v2153_v50 = vpop.f32.mrb[34].mxu0  ;;  %v2194_v2 = vpop.f32.mrb[34].mxu1  ;;  %v2200_v4 = vadd.f32 %v2192_v41, %v9714_v40  ;;  %v2244_v60 = vunpack.c.h.bf16 %v2241_v39 }
 0x79e   :  { %v4291_v3 = vmul.f32 -1.442695, %v2197_v58  ;;  %v2154_v53 = vpop.f32.mrb[35].mxu0  ;;  %v2195_v49 = vpop.f32.mrb[35].mxu1  ;;  %v2247_v57 = vadd.f32 %v2243_v42, %v9468_v1 }
 0x79f   :  { %v4292_v45 = vmul.f32 -1.442695, %v2198_v59  ;;  %v4293_v6 = vmul.f32 -1.442695, %v2200_v4  ;;  %v2242_v53 = vld [vmem:[#allocation4 + $0x38] sm:$0xff]  ;;  %v7314_v4 = vpop.permute.xlu1 %3099 }
 0x7a0   :  { %4782 = vpow2.f32 %v4291_v3  ;;  %9716 = vst [vmem:[#allocation24_spill] sm:$0xff] %v7314_v4 }
 0x7a1   :  { %4784 = vpow2.f32 %v4292_v45  ;;  %v2248_v45 = vadd.f32 %v2244_v60, %v9469_v5 }
 0x7a2   :  { %4786 = vpow2.f32 %v4293_v6 }
 0x7a3   :  { %4788 = vtanh.f32 %v2199_v32 }
 0x7aa   :  { %v4783_v46 = vpop.eup %4782 }
 0x7ab   :  { %v4785_v35 = vpop.eup %4784  ;;  %v2210_v33 = vadd.f32 1.0, %v4783_v46 }
 0x7ac   :  { %v2211_v48 = vadd.f32 1.0, %v4785_v35  ;;  %v4787_v58 = vpop.eup %4786  ;;  %v2246_v35 = vunpack.c.h.bf16 %v2242_v53 }
 0x7ad   :  { %4790 = vrcp.f32 %v2210_v33  ;;  %v4789_v59 = vpop.eup %4788  ;;  %v2212_v3 = vadd.f32 1.0, %v4787_v58 }
 0x7ae   :  { %4792 = vrcp.f32 %v2211_v48 }
 0x7af   :  { %4794 = vrcp.f32 %v2212_v3  ;;  %v2245_v3 = vunpack.c.l.bf16 %v2242_v53 }
 0x7b7   :  { %v4791_v50 = vpop.eup %4790 }
 0x7b8   :  { %v4793_v41 = vpop.eup %4792  ;;  %v2221_v2 = vmul.f32 %v4791_v50, %v4789_v59 }
 0x7b9   :  { %v2220_v49 = vmul.f32 %v4793_v41, %v6879_v17 }
 0x7bb   :  { %v2222_v6 = vadd.f32 %v2221_v2, %v2220_v49  ;;  %v2285_v32 = vpop.f32.mrb[36].mxu0  ;;  %v2326_v46 = vpop.f32.mrb[36].mxu1  ;;  %v2250_v49 = vadd.f32 %v2246_v35, %v6040_v43 }
 0x7bc   :  { %v2333_v33 = vadd.f32 %v2285_v32, %v2247_v57  ;;  %v2287_v48 = vpop.f32.mrb[37].mxu0  ;;  %v2328_v39 = vpop.f32.mrb[37].mxu1 }
 0x7bd   :  { %4796 = vtanh.f32 %v2222_v6  ;;  %v2334_v59 = vadd.f32 %v2287_v48, %v2248_v45  ;;  %v2289_v58 = vpop.f32.mrb[38].mxu0  ;;  %v2330_v50 = vpop.f32.mrb[38].mxu1  ;;  %v7319_v42 = vsel %vm1997_vm11, %v2222_v6, %v6879_v17  ;;  %v2336_v32 = vadd.f32 %v2328_v39, %v2250_v49 }
 0x7be   :  { %v4296_v60 = vmul.f32 -1.442695, %v2333_v33  ;;  %v2290_v41 = vpop.f32.mrb[39].mxu0  ;;  %v2331_v4 = vpop.f32.mrb[39].mxu1  ;;  %v2249_v45 = vadd.f32 %v2245_v3, %v9472_v30 }
 0x7bf   :  { %v4297_v2 = vmul.f32 -1.442695, %v2334_v59  ;;  %v7322_v57 = vpop.permute.xlu1 %3835  ;;  %v4795_v48 = vpop.eup %4794  ;;  %v4298_v50 = vmul.f32 -1.442695, %v2336_v32 }
 0x7c0   :  { %4798 = vpow2.f32 %v4296_v60  ;;  %9717 = vst [vmem:[#allocation25_spill] sm:$0xff] %v7322_v57  ;;  %v2335_v17 = vadd.f32 %v2326_v46, %v2249_v45  ;;  %v7607_v57 = vld [vmem:[#allocation9 + $0x1a4] ss:$16 sps:$4 sm:$0xff]  }
 0x7c1   :  { %4800 = vpow2.f32 %v4297_v2  ;;  %9815 = vst [vmem:[#allocation44_spill] sm:$0xff] %v7607_v57 }
 0x7c2   :  { %4802 = vpow2.f32 %v4298_v50 }
 0x7c3   :  { %v7325_v5 = vpop.permute.xlu1 %4400  ;;  %4804 = vtanh.f32 %v2335_v17 }
 0x7c4   :  { %v4402_v4 = vunpack.i.l.bf16 %v7325_v5 }
 0x7c7   :  { %v4797_v58 = vpop.eup %4796 }
 0x7c8   :  { %v2224_v6 = vmul.f32 %v4797_v58, %v4795_v48 }
 0x7ca   :  { %v4799_v33 = vpop.eup %4798  ;;  %v7331_v53 = vsel %vm1997_vm11, %v2224_v6, %v6887_v12 }
 0x7cb   :  { %v4801_v35 = vpop.eup %4800  ;;  %v2346_v59 = vadd.f32 1.0, %v4799_v33  ;;  %v2233_v39 = vmul.f32 %v4402_v4, %v7331_v53  ;;  %v2482_v33 = vpack.c.bf16 %v7331_v53, %v7331_v53 }
 0x7cc   :  { %v2347_v60 = vadd.f32 1.0, %v4801_v35  ;;  %v4803_v46 = vpop.eup %4802  ;;  %v9720_v35 = vld [vmem:[#allocation59_spill] sm:$0xff] }
 0x7cd   :  { %4806 = vrcp.f32 %v2346_v59  ;;  %v2234_v41 = vpack.c.bf16 %v2233_v39, %v2233_v39  ;;  %v4805_v2 = vpop.eup %4804  ;;  %v2348_v45 = vadd.f32 1.0, %v4803_v46  ;;  %v9721_v59 = vld [vmem:[#allocation60_spill] sm:$0xff]  ;;  %v9722_v39 = vld [vmem:[#allocation61_spill] sm:$0xff] }
 0x7ce   :  { %4808 = vrcp.f32 %v2347_v60  ;;  %v9723_v60 = vld [vmem:[#allocation62_spill] sm:$0xff]  ;;  %v9730_v46 = vld [vmem:[#allocation69_spill] sm:$0xff] }
 0x7cf   :  { %2236 = vst [vmem:[#allocation12 + $0x8] sm:$0xf] %v2234_v41  ;;  %4810 = vrcp.f32 %v2348_v45  ;;  %v9729_v41 = vld [vmem:[#allocation68_spill] sm:$0xff]  ;;  %v9735_v45 = vld [vmem:[#allocation74_spill] sm:$0xff] }
 0x7d7   :  { %v4807_v49 = vpop.eup %4806 }
 0x7d8   :  { %v4809_v3 = vpop.eup %4808  ;;  %v2357_v32 = vmul.f32 %v4807_v49, %v4805_v2  ;;  %v9731_v2 = vld [vmem:[#allocation70_spill] sm:$0xff]  ;;  %v9732_v49 = vld [vmem:[#allocation71_spill] sm:$0xff] }
 0x7d9   :  { %v2356_v12 = vmul.f32 %v4809_v3, %v6897_v19  ;;  %v4811_v58 = vpop.eup %4810  ;;  %v9733_v3 = vld [vmem:[#allocation72_spill] sm:$0xff] }
 0x7db   :  { %v2358_v55 = vadd.f32 %v2357_v32, %v2356_v12  ;;  %v9734_v32 = vld [vmem:[#allocation73_spill] sm:$0xff]  ;;  %v9736_v12 = vld [vmem:[#allocation75_spill] sm:$0xff] }
 0x7dd   :  { %4812 = vtanh.f32 %v2358_v55  ;;  %v7339_v48 = vsel %vm2365_vm12, %v2358_v55, %v6897_v19  ;;  %v9718_v19 = vld [vmem:[#allocation57_spill] sm:$0xff]  ;;  %v9737_v55 = vld [vmem:[#allocation76_spill] sm:$0xff] }
 0x7e7   :  { %v4813_v50 = vpop.eup %4812 }
 0x7e8   :  { %v2360_v17 = vmul.f32 %v4813_v50, %v4811_v58  ;;  %v9738_v58 = vld [vmem:[#allocation77_spill] sm:$0xff]  ;;  %v9739_v50 = vld [vmem:[#allocation78_spill] sm:$0xff] }
 0x7ea   :  { %v7344_v6 = vsel %vm2365_vm12, %v2360_v17, %v6902_v27  ;;  %v9719_v27 = vld [vmem:[#allocation58_spill] sm:$0xff]  ;;  %v9740_v17 = vld [vmem:[#allocation79_spill] sm:$0xff] }
 0x7eb   :  { %v7348_v4 = vpack.c.bf16 %v7344_v6, %v7344_v6 }
 0x7ed   :  { %2402 = vmatmul.mubr.bf16.vlgmr.msra.gmra.mrb[40].mxu0 %v7348_v4  ;;  %2443 = vmatmul.mubr.bf16.vlgmr.msra.gmra.mrb[40].mxu1 %v7348_v4 }
 0x7ee   :  { %2515 = vmatprep.mubr.bf16.mxu0 %v2482_v33  ;;  %2556 = vmatprep.mubr.bf16.mxu1 %v2482_v33  ;;  %v9741_v33 = vld [vmem:[#allocation80_spill] sm:$0xff] }
 0x7ef   :  { %2484 = vmatpush1.bf16.msra.mxu0 %v6912_v21  ;;  %2525 = vmatpush1.bf16.msra.mxu1 %v6915_v61  ;;  %v9724_v21 = vld [vmem:[#allocation63_spill] sm:$0xff]  ;;  %v9725_v61 = vld [vmem:[#allocation64_spill] sm:$0xff] }
 0x7f0   :  { %2485 = vmatprep.subr.bf16.mxu0 %v6918_v31  ;;  %2526 = vmatprep.subr.bf16.mxu1 %v6921_v18  ;;  %v9726_v31 = vld [vmem:[#allocation65_spill] sm:$0xff]  ;;  %v9727_v18 = vld [vmem:[#allocation66_spill] sm:$0xff] }
 0x7f3   :  { %2486 = vmatpush1.bf16.msra.mxu0 %v6924_v11  ;;  %2527 = vmatpush1.bf16.msra.mxu1 %v9718_v19  ;;  %v9728_v11 = vld [vmem:[#allocation67_spill] sm:$0xff]  ;;  %v9742_v19 = vld [vmem:[#allocation81_spill] sm:$0xff] }
 0x7f4   :  { %2487 = vmatprep.subr.bf16.mxu0 %v9719_v27  ;;  %2528 = vmatprep.subr.bf16.mxu1 %v9720_v35  ;;  %v9743_v27 = vld [vmem:[#allocation82_spill] sm:$0xff]  ;;  %v9744_v35 = vld [vmem:[#allocation83_spill] sm:$0xff] }
 0x7f7   :  { %2488 = vmatpush1.bf16.msra.mxu0 %v9721_v59  ;;  %2529 = vmatpush1.bf16.msra.mxu1 %v9722_v39  ;;  %v9745_v59 = vld [vmem:[#allocation84_spill] sm:$0xff]  ;;  %v9746_v39 = vld [vmem:[#allocation85_spill] sm:$0xff] }
 0x7f8   :  { %2489 = vmatprep.subr.bf16.mxu0 %v9723_v60  ;;  %2530 = vmatprep.subr.bf16.mxu1 %v9724_v21  ;;  %v9747_v60 = vld [vmem:[#allocation86_spill] sm:$0xff]  ;;  %v9748_v21 = vld [vmem:[#allocation87_spill] sm:$0xff] }
 0x7fb   :  { %2490 = vmatpush1.bf16.msra.mxu0 %v9725_v61  ;;  %2531 = vmatpush1.bf16.msra.mxu1 %v9726_v31  ;;  %v9749_v61 = vld [vmem:[#allocation88_spill] sm:$0xff]  ;;  %v9750_v31 = vld [vmem:[#allocation89_spill] sm:$0xff] }
 0x7fc   :  { %2491 = vmatprep.subr.bf16.mxu0 %v9727_v18  ;;  %2532 = vmatprep.subr.bf16.mxu1 %v9728_v11  ;;  %v9751_v18 = vld [vmem:[#allocation90_spill] sm:$0xff]  ;;  %v9752_v11 = vld [vmem:[#allocation91_spill] sm:$0xff] }
 0x7ff   :  { %2492 = vmatpush1.bf16.msra.mxu0 %v9729_v41  ;;  %2533 = vmatpush1.bf16.msra.mxu1 %v9730_v46  ;;  %v9753_v41 = vld [vmem:[#allocation92_spill] sm:$0xff]  ;;  %v9754_v46 = vld [vmem:[#allocation93_spill] sm:$0xff] }
 0x800   :  { %2493 = vmatprep.subr.bf16.mxu0 %v9731_v2  ;;  %2534 = vmatprep.subr.bf16.mxu1 %v9732_v49  ;;  %v9755_v2 = vld [vmem:[#allocation94_spill] sm:$0xff]  ;;  %v9756_v49 = vld [vmem:[#allocation95_spill] sm:$0xff] }
 0x803   :  { %2494 = vmatpush1.bf16.msra.mxu0 %v9733_v3  ;;  %2535 = vmatpush1.bf16.msra.mxu1 %v9734_v32  ;;  %v9757_v3 = vld [vmem:[#allocation96_spill] sm:$0xff]  ;;  %v9758_v32 = vld [vmem:[#allocation97_spill] sm:$0xff] }
 0x804   :  { %2495 = vmatprep.subr.bf16.mxu0 %v9735_v45  ;;  %2536 = vmatprep.subr.bf16.mxu1 %v9736_v12  ;;  %v9759_v45 = vld [vmem:[#allocation98_spill] sm:$0xff]  ;;  %v9760_v12 = vld [vmem:[#allocation99_spill] sm:$0xff] }
 0x807   :  { %2496 = vmatpush1.bf16.msra.mxu0 %v9737_v55  ;;  %2537 = vmatpush1.bf16.msra.mxu1 %v9738_v58  ;;  %v9761_v55 = vld [vmem:[#allocation100_spill] sm:$0xff]  ;;  %v9762_v58 = vld [vmem:[#allocation101_spill] sm:$0xff] }
 0x808   :  { %2497 = vmatprep.subr.bf16.mxu0 %v9739_v50  ;;  %2538 = vmatprep.subr.bf16.mxu1 %v9740_v17  ;;  %v9763_v50 = vld [vmem:[#allocation102_spill] sm:$0xff]  ;;  %v9764_v17 = vld [vmem:[#allocation103_spill] sm:$0xff] }
 0x80b   :  { %2498 = vmatpush1.bf16.msra.mxu0 %v9741_v33  ;;  %2539 = vmatpush1.bf16.msra.mxu1 %v9742_v19  ;;  %v9765_v33 = vld [vmem:[#allocation104_spill] sm:$0xff]  ;;  %v9766_v19 = vld [vmem:[#allocation105_spill] sm:$0xff] }
 0x80c   :  { %2499 = vmatprep.subr.bf16.mxu0 %v9743_v27  ;;  %2540 = vmatprep.subr.bf16.mxu1 %v9744_v35  ;;  %v9767_v27 = vld [vmem:[#allocation17_spill] sm:$0xff]  ;;  %v9768_v35 = vld [vmem:[#allocation107_spill] sm:$0xff] }
 0x80f   :  { %2500 = vmatpush1.bf16.msra.mxu0 %v9745_v59  ;;  %2541 = vmatpush1.bf16.msra.mxu1 %v9746_v39  ;;  %v9769_v59 = vld [vmem:[#allocation108_spill] sm:$0xff]  ;;  %v9770_v39 = vld [vmem:[#allocation109_spill] sm:$0xff] }
 0x810   :  { %2501 = vmatprep.subr.bf16.mxu0 %v9747_v60  ;;  %2542 = vmatprep.subr.bf16.mxu1 %v9748_v21  ;;  %v9771_v60 = vld [vmem:[#allocation110_spill] sm:$0xff]  ;;  %v9772_v21 = vld [vmem:[#allocation111_spill] sm:$0xff] }
 0x813   :  { %2502 = vmatpush1.bf16.msra.mxu0 %v9749_v61  ;;  %2543 = vmatpush1.bf16.msra.mxu1 %v9750_v31  ;;  %v9773_v61 = vld [vmem:[#allocation112_spill] sm:$0xff]  ;;  %v9774_v31 = vld [vmem:[#allocation113_spill] sm:$0xff] }
 0x814   :  { %2503 = vmatprep.subr.bf16.mxu0 %v9751_v18  ;;  %2544 = vmatprep.subr.bf16.mxu1 %v9752_v11  ;;  %v9775_v18 = vld [vmem:[#allocation114_spill] sm:$0xff]  ;;  %v9776_v11 = vld [vmem:[#allocation115_spill] sm:$0xff] }
 0x817   :  { %2504 = vmatpush1.bf16.msra.mxu0 %v9753_v41  ;;  %2545 = vmatpush1.bf16.msra.mxu1 %v9754_v46 }
 0x818   :  { %2505 = vmatprep.subr.bf16.mxu0 %v9755_v2  ;;  %2546 = vmatprep.subr.bf16.mxu1 %v9756_v49  ;;  %v9777_v2 = vld [vmem:[#allocation106_spill] sm:$0xff] }
 0x81b   :  { %2506 = vmatpush1.bf16.msra.mxu0 %v9757_v3  ;;  %2547 = vmatpush1.bf16.msra.mxu1 %v9758_v32 }
 0x81c   :  { %2507 = vmatprep.subr.bf16.mxu0 %v9759_v45  ;;  %2548 = vmatprep.subr.bf16.mxu1 %v9760_v12 }
 0x81f   :  { %2508 = vmatpush1.bf16.msra.mxu0 %v9761_v55  ;;  %2549 = vmatpush1.bf16.msra.mxu1 %v9762_v58 }
 0x820   :  { %2509 = vmatprep.subr.bf16.mxu0 %v9763_v50  ;;  %2550 = vmatprep.subr.bf16.mxu1 %v9764_v17 }
 0x823   :  { %2510 = vmatpush1.bf16.msra.mxu0 %v9765_v33  ;;  %2551 = vmatpush1.bf16.msra.mxu1 %v9766_v19 }
 0x824   :  { %2511 = vmatprep.subr.bf16.mxu0 %v9767_v27  ;;  %2552 = vmatprep.subr.bf16.mxu1 %v9768_v35 }
 0x827   :  { %2512 = vmatpush1.bf16.msra.mxu0 %v9769_v59  ;;  %2553 = vmatpush1.bf16.msra.mxu1 %v9770_v39 }
 0x828   :  { %2513 = vmatprep.subr.bf16.mxu0 %v9771_v60  ;;  %2554 = vmatprep.subr.bf16.mxu1 %v9772_v21 }
 0x82b   :  { %2514 = vmatpush1.bf16.msra.mxu0 %v9773_v61  ;;  %2555 = vmatpush1.bf16.msra.mxu1 %v9774_v31 }
 0x82c   :  { %2619 = vmatprep.subr.bf16.mxu0 %v9775_v18  ;;  %2660 = vmatprep.subr.bf16.mxu1 %v9776_v11 }
 0x8c0   :  { %v2403_v41 = vpop.f32.mrb[40].mxu0  ;;  %v2444_v46 = vpop.f32.mrb[40].mxu1 }
 0x8c1   :  { %v2451_v49 = vadd.f32 %v2403_v41, %v9777_v2  ;;  %v2405_v3 = vpop.f32.mrb[41].mxu0  ;;  %v2446_v32 = vpop.f32.mrb[41].mxu1  ;;  %v2453_v35 = vadd.f32 %v2444_v46, %v6284_v25 }
 0x8c2   :  { %v2452_v45 = vadd.f32 %v2405_v3, %v6275_v52  ;;  %v2407_v12 = vpop.f32.mrb[42].mxu0  ;;  %v2448_v55 = vpop.f32.mrb[42].mxu1  ;;  %v2454_v19 = vadd.f32 %v2446_v32, %v9543_v47 }
 0x8c3   :  { %v4299_v58 = vmul.f32 -1.442695, %v2451_v49  ;;  %v2408_v50 = vpop.f32.mrb[43].mxu0  ;;  %v2449_v17 = vpop.f32.mrb[43].mxu1 }
 0x8c4   :  { %v4300_v33 = vmul.f32 -1.442695, %v2452_v45  ;;  %v4301_v27 = vmul.f32 -1.442695, %v2454_v19  ;;  %v9791_v17 = vld [vmem:[#allocation129_spill] sm:$0xff]  ;;  %v9793_v19 = vld [vmem:[#allocation131_spill] sm:$0xff] }
 0x8c5   :  { %4814 = vpow2.f32 %v4299_v58 }
 0x8c6   :  { %4816 = vpow2.f32 %v4300_v33  ;;  %v9792_v33 = vld [vmem:[#allocation130_spill] sm:$0xff] }
 0x8c7   :  { %4818 = vpow2.f32 %v4301_v27  ;;  %v9794_v27 = vld [vmem:[#allocation132_spill] sm:$0xff] }
 0x8c8   :  { %4820 = vtanh.f32 %v2453_v35  ;;  %v9795_v35 = vld [vmem:[#allocation133_spill] sm:$0xff] }
 0x8cf   :  { %v4815_v59 = vpop.eup %4814 }
 0x8d0   :  { %v4817_v39 = vpop.eup %4816  ;;  %v2464_v60 = vadd.f32 1.0, %v4815_v59  ;;  %v9796_v59 = vld [vmem:[#allocation134_spill] sm:$0xff] }
 0x8d1   :  { %v2465_v21 = vadd.f32 1.0, %v4817_v39  ;;  %v4819_v61 = vpop.eup %4818  ;;  %v9797_v39 = vld [vmem:[#allocation135_spill] sm:$0xff] }
 0x8d2   :  { %4822 = vrcp.f32 %v2464_v60  ;;  %v4821_v31 = vpop.eup %4820  ;;  %v2466_v49 = vadd.f32 1.0, %v4819_v61  ;;  %v7505_v60 = vld [vmem:[#allocation9 + $0x80] ss:$16 sps:$4 sm:$0xff]   ;;  %v7511_v61 = vld [vmem:[#allocation9 + $0xa4] ss:$16 sps:$4 sm:$0xff]  }
 0x8d3   :  { %4824 = vrcp.f32 %v2465_v21  ;;  %v7508_v21 = vld [vmem:[#allocation9 + $0x88] ss:$16 sps:$4 sm:$0xff]  }
 0x8d4   :  { %4826 = vrcp.f32 %v2466_v49  ;;  %v7526_v49 = vld [vmem:[#allocation9 + $0xcc] ss:$16 sps:$4 sm:$0xff]  }
 0x8dc   :  { %v4823_v18 = vpop.eup %4822 }
 0x8dd   :  { %v4825_v11 = vpop.eup %4824  ;;  %v2475_v41 = vmul.f32 %v4823_v18, %v4821_v31  ;;  %v7514_v31 = vld [vmem:[#allocation9 + $0xac] ss:$16 sps:$4 sm:$0xff]   ;;  %v7517_v18 = vld [vmem:[#allocation9 + $0xa0] ss:$16 sps:$4 sm:$0xff]  }
 0x8de   :  { %v2474_v3 = vmul.f32 %v4825_v11, %v7112_v16  ;;  %v4827_v45 = vpop.eup %4826  ;;  %v7520_v11 = vld [vmem:[#allocation9 + $0xa8] ss:$16 sps:$4 sm:$0xff]  }
 0x8e0   :  { %v2476_v32 = vadd.f32 %v2475_v41, %v2474_v3  ;;  %v7523_v41 = vld [vmem:[#allocation9 + $0xc4] ss:$16 sps:$4 sm:$0xff]   ;;  %v7529_v3 = vld [vmem:[#allocation9 + $0xc0] ss:$16 sps:$4 sm:$0xff]  }
 0x8e2   :  { %4828 = vtanh.f32 %v2476_v32  ;;  %v7426_v46 = vsel %vm2365_vm12, %v2476_v32, %v7112_v16  ;;  %v9778_v16 = vld [vmem:[#allocation116_spill] sm:$0xff] }
 0x8e3   :  { %v7532_v32 = vld [vmem:[#allocation9 + $0xc8] ss:$16 sps:$4 sm:$0xff]  }
 0x8ec   :  { %v4829_v12 = vpop.eup %4828 }
 0x8ed   :  { %v2478_v55 = vmul.f32 %v4829_v12, %v4827_v45  ;;  %v7535_v45 = vld [vmem:[#allocation9 + $0xe4] ss:$16 sps:$4 sm:$0xff]   ;;  %v7538_v12 = vld [vmem:[#allocation9 + $0xec] ss:$16 sps:$4 sm:$0xff]  }
 0x8ef   :  { %v7431_v58 = vsel %vm2365_vm12, %v2478_v55, %v7117_v29  ;;  %v9779_v29 = vld [vmem:[#allocation117_spill] sm:$0xff] }
 0x8f0   :  { %v2481_v50 = vpack.c.bf16 %v7431_v58, %v7431_v58  ;;  %v7541_v55 = vld [vmem:[#allocation9 + $0xe0] ss:$16 sps:$4 sm:$0xff]  }
 0x8f2   :  { %2516 = vmatmul.mubr.bf16.vlgmr.msra.gmra.mrb[44].mxu0 %v2481_v50  ;;  %2557 = vmatmul.mubr.bf16.vlgmr.msra.gmra.mrb[44].mxu1 %v2481_v50 }
 0x8f3   :  { %2620 = vmatpush1.bf16.msra.mxu0 %v7125_v9  ;;  %2661 = vmatpush1.bf16.msra.mxu1 %v7128_v51  ;;  %v9780_v9 = vld [vmem:[#allocation118_spill] sm:$0xff]  ;;  %v9781_v51 = vld [vmem:[#allocation119_spill] sm:$0xff] }
 0x8f4   :  { %2621 = vmatprep.subr.bf16.mxu0 %v7131_v22  ;;  %2662 = vmatprep.subr.bf16.mxu1 %v7134_v34  ;;  %v9782_v22 = vld [vmem:[#allocation120_spill] sm:$0xff]  ;;  %v9783_v34 = vld [vmem:[#allocation121_spill] sm:$0xff] }
 0x8f5   :  { %2651 = vmatprep.mubr.bf16.mxu0 %v9420_v38  ;;  %2692 = vmatprep.mubr.bf16.mxu1 %v9420_v38 }
 0x8f7   :  { %2622 = vmatpush1.bf16.msra.mxu0 %v7139_v23  ;;  %2663 = vmatpush1.bf16.msra.mxu1 %v7142_v62  ;;  %v9784_v23 = vld [vmem:[#allocation122_spill] sm:$0xff]  ;;  %v9785_v62 = vld [vmem:[#allocation123_spill] sm:$0xff] }
 0x8f8   :  { %2623 = vmatprep.subr.bf16.mxu0 %v7145_v28  ;;  %2664 = vmatprep.subr.bf16.mxu1 %v7148_v56  ;;  %v9786_v28 = vld [vmem:[#allocation124_spill] sm:$0xff]  ;;  %v9787_v56 = vld [vmem:[#allocation125_spill] sm:$0xff] }
 0x8fb   :  { %2624 = vmatpush1.bf16.msra.mxu0 %v7151_v15  ;;  %2665 = vmatpush1.bf16.msra.mxu1 %v7154_v8  ;;  %v9788_v15 = vld [vmem:[#allocation126_spill] sm:$0xff]  ;;  %v9789_v8 = vld [vmem:[#allocation127_spill] sm:$0xff] }
 0x8fc   :  { %2625 = vmatprep.subr.bf16.mxu0 %v7157_v13  ;;  %2666 = vmatprep.subr.bf16.mxu1 %v9778_v16  ;;  %v9790_v13 = vld [vmem:[#allocation128_spill] sm:$0xff]  ;;  %v7547_v16 = vld [vmem:[#allocation9 + $0x104] ss:$16 sps:$4 sm:$0xff]  }
 0x8ff   :  { %2626 = vmatpush1.bf16.msra.mxu0 %v9779_v29  ;;  %2667 = vmatpush1.bf16.msra.mxu1 %v9780_v9  ;;  %v7550_v29 = vld [vmem:[#allocation9 + $0x10c] ss:$16 sps:$4 sm:$0xff]   ;;  %v7553_v9 = vld [vmem:[#allocation9 + $0x100] ss:$16 sps:$4 sm:$0xff]  }
 0x900   :  { %2627 = vmatprep.subr.bf16.mxu0 %v9781_v51  ;;  %2668 = vmatprep.subr.bf16.mxu1 %v9782_v22  ;;  %v7556_v51 = vld [vmem:[#allocation9 + $0x108] ss:$16 sps:$4 sm:$0xff]   ;;  %v7559_v22 = vld [vmem:[#allocation9 + $0x124] ss:$16 sps:$4 sm:$0xff]  }
 0x901   :  { %9798 = vst [vmem:[#allocation26_spill] sm:$0xff] %v7556_v51  ;;  %9799 = vst [vmem:[#allocation27_spill] sm:$0xff] %v7559_v22 }
 0x903   :  { %2628 = vmatpush1.bf16.msra.mxu0 %v9783_v34  ;;  %2669 = vmatpush1.bf16.msra.mxu1 %v9784_v23  ;;  %v7562_v34 = vld [vmem:[#allocation9 + $0x12c] ss:$16 sps:$4 sm:$0xff]   ;;  %v7565_v23 = vld [vmem:[#allocation9 + $0x120] ss:$16 sps:$4 sm:$0xff]  }
 0x904   :  { %2629 = vmatprep.subr.bf16.mxu0 %v9785_v62  ;;  %2670 = vmatprep.subr.bf16.mxu1 %v9786_v28  ;;  %9800 = vst [vmem:[#allocation28_spill] sm:$0xff] %v7562_v34  ;;  %9801 = vst [vmem:[#allocation29_spill] sm:$0xff] %v7565_v23  ;;  %v7568_v62 = vld [vmem:[#allocation9 + $0x128] ss:$16 sps:$4 sm:$0xff]   ;;  %v7571_v28 = vld [vmem:[#allocation9 + $0x144] ss:$16 sps:$4 sm:$0xff]  }
 0x905   :  { %9802 = vst [vmem:[#allocation30_spill] sm:$0xff] %v7568_v62  ;;  %9803 = vst [vmem:[#allocation31_spill] sm:$0xff] %v7571_v28 }
 0x907   :  { %2630 = vmatpush1.bf16.msra.mxu0 %v9787_v56  ;;  %2671 = vmatpush1.bf16.msra.mxu1 %v9788_v15  ;;  %v7574_v56 = vld [vmem:[#allocation9 + $0x14c] ss:$16 sps:$4 sm:$0xff]   ;;  %v7577_v15 = vld [vmem:[#allocation9 + $0x140] ss:$16 sps:$4 sm:$0xff]  }
 0x908   :  { %2631 = vmatprep.subr.bf16.mxu0 %v9789_v8  ;;  %2672 = vmatprep.subr.bf16.mxu1 %v9790_v13  ;;  %9804 = vst [vmem:[#allocation32_spill] sm:$0xff] %v7574_v56  ;;  %9805 = vst [vmem:[#allocation33_spill] sm:$0xff] %v7577_v15  ;;  %v7580_v8 = vld [vmem:[#allocation9 + $0x148] ss:$16 sps:$4 sm:$0xff]   ;;  %v7583_v13 = vld [vmem:[#allocation9 + $0x164] ss:$16 sps:$4 sm:$0xff]  }
 0x909   :  { %9806 = vst [vmem:[#allocation34_spill] sm:$0xff] %v7580_v8  ;;  %9807 = vst [vmem:[#allocation35_spill] sm:$0xff] %v7583_v13 }
 0x90b   :  { %2632 = vmatpush1.bf16.msra.mxu0 %v9791_v17  ;;  %2673 = vmatpush1.bf16.msra.mxu1 %v9792_v33  ;;  %v7586_v17 = vld [vmem:[#allocation9 + $0x16c] ss:$16 sps:$4 sm:$0xff]   ;;  %v7589_v33 = vld [vmem:[#allocation9 + $0x160] ss:$16 sps:$4 sm:$0xff]  }
 0x90c   :  { %2633 = vmatprep.subr.bf16.mxu0 %v7205_v26  ;;  %2674 = vmatprep.subr.bf16.mxu1 %v7208_v54  ;;  %v7476_v26 = vld [vmem:[#allocation9 + $0x28] ss:$16 sps:$4 sm:$0xff]   ;;  %v7480_v54 = vld [vmem:[#allocation9 + $0x4c] ss:$16 sps:$4 sm:$0xff]   ;;  %9808 = vst [vmem:[#allocation36_spill] sm:$0xff] %v7586_v17  ;;  %9809 = vst [vmem:[#allocation38_spill] sm:$0xff] %v7589_v33 }
 0x90f   :  { %2634 = vmatpush1.bf16.msra.mxu0 %v9793_v19  ;;  %2675 = vmatpush1.bf16.msra.mxu1 %v9794_v27  ;;  %v7592_v19 = vld [vmem:[#allocation9 + $0x168] ss:$16 sps:$4 sm:$0xff]   ;;  %v7595_v27 = vld [vmem:[#allocation9 + $0x184] ss:$16 sps:$4 sm:$0xff]  }
 0x910   :  { %2737 = vmatprep.subr.bf16.mxu0 %v9795_v35  ;;  %2778 = vmatprep.subr.bf16.mxu1 %v9796_v59  ;;  %9810 = vst [vmem:[#allocation40_spill] sm:$0xff] %v7592_v19  ;;  %9811 = vst [vmem:[#allocation39_spill] sm:$0xff] %v7595_v27  ;;  %v7598_v35 = vld [vmem:[#allocation9 + $0x18c] ss:$16 sps:$4 sm:$0xff]   ;;  %v7601_v59 = vld [vmem:[#allocation9 + $0x180] ss:$16 sps:$4 sm:$0xff]  }
 0x911   :  { %9812 = vst [vmem:[#allocation41_spill] sm:$0xff] %v7598_v35  ;;  %9813 = vst [vmem:[#allocation42_spill] sm:$0xff] %v7601_v59 }
 0x912   :  { %2652 = vmatmul.mubr.bf16.vlgmr.msra.gmra.mrb[48].mxu0 %v7348_v4  ;;  %2693 = vmatmul.mubr.bf16.vlgmr.msra.gmra.mrb[48].mxu1 %v7348_v4  ;;  %v7502_v4 = vld [vmem:[#allocation9 + $0x8c] ss:$16 sps:$4 sm:$0xff]  }
 0x913   :  { %2769 = vmatprep.mubr.bf16.mxu0 %v2481_v50  ;;  %2810 = vmatprep.mubr.bf16.mxu1 %v2481_v50  ;;  %v7544_v50 = vld [vmem:[#allocation9 + $0xe8] ss:$16 sps:$4 sm:$0xff]  }
 0x914   :  { %2738 = vmatpush1.bf16.msra.mxu0 %v7227_v14  ;;  %2779 = vmatpush1.bf16.msra.mxu1 %v9797_v39  ;;  %v7484_v14 = vld [vmem:[#allocation9 + $0x48] ss:$16 sps:$4 sm:$0xff]  }
 0x915   :  { %2739 = vmatprep.subr.bf16.mxu0 %v7233_v10  ;;  %2780 = vmatprep.subr.bf16.mxu1 %v7236_v7  ;;  %v7487_v10 = vld [vmem:[#allocation9 + $0x64] ss:$16 sps:$4 sm:$0xff]   ;;  %v7490_v7 = vld [vmem:[#allocation9 + $0x6c] ss:$16 sps:$4 sm:$0xff]   ;;  %v7604_v39 = vld [vmem:[#allocation9 + $0x188] ss:$16 sps:$4 sm:$0xff]  }
 0x916   :  { %9814 = vst [vmem:[#allocation43_spill] sm:$0xff] %v7604_v39 }
 0x918   :  { %2740 = vmatpush1.bf16.msra.mxu0 %v7239_v0  ;;  %2781 = vmatpush1.bf16.msra.mxu1 %v7476_v26  ;;  %v7493_v0 = vld [vmem:[#allocation9 + $0x60] ss:$16 sps:$4 sm:$0xff]  }
 0x919   :  { %2741 = vmatprep.subr.bf16.mxu0 %v7243_v20  ;;  %2782 = vmatprep.subr.bf16.mxu1 %v7480_v54  ;;  %v7496_v20 = vld [vmem:[#allocation9 + $0x68] ss:$16 sps:$4 sm:$0xff]  }
 0x91c   :  { %2742 = vmatpush1.bf16.msra.mxu0 %v7247_v24  ;;  %2783 = vmatpush1.bf16.msra.mxu1 %v7484_v14  ;;  %v7499_v24 = vld [vmem:[#allocation9 + $0x84] ss:$16 sps:$4 sm:$0xff]  }
 0x91d   :  { %2743 = vmatprep.subr.bf16.mxu0 %v7487_v10  ;;  %2784 = vmatprep.subr.bf16.mxu1 %v7490_v7 }
 0x920   :  { %2744 = vmatpush1.bf16.msra.mxu0 %v7493_v0  ;;  %2785 = vmatpush1.bf16.msra.mxu1 %v7496_v20 }
 0x921   :  { %2745 = vmatprep.subr.bf16.mxu0 %v7499_v24  ;;  %2786 = vmatprep.subr.bf16.mxu1 %v7502_v4 }
 0x924   :  { %2746 = vmatpush1.bf16.msra.mxu0 %v7505_v60  ;;  %2787 = vmatpush1.bf16.msra.mxu1 %v7508_v21 }
 0x925   :  { %2747 = vmatprep.subr.bf16.mxu0 %v7511_v61  ;;  %2788 = vmatprep.subr.bf16.mxu1 %v7514_v31 }
 0x928   :  { %2748 = vmatpush1.bf16.msra.mxu0 %v7517_v18  ;;  %2789 = vmatpush1.bf16.msra.mxu1 %v7520_v11 }
 0x929   :  { %2749 = vmatprep.subr.bf16.mxu0 %v7523_v41  ;;  %2790 = vmatprep.subr.bf16.mxu1 %v7526_v49 }
 0x92c   :  { %2750 = vmatpush1.bf16.msra.mxu0 %v7529_v3  ;;  %2791 = vmatpush1.bf16.msra.mxu1 %v7532_v32 }
 0x92d   :  { %2751 = vmatprep.subr.bf16.mxu0 %v7535_v45  ;;  %2792 = vmatprep.subr.bf16.mxu1 %v7538_v12 }
 0x930   :  { %2752 = vmatpush1.bf16.msra.mxu0 %v7541_v55  ;;  %2793 = vmatpush1.bf16.msra.mxu1 %v7544_v50 }
 0x931   :  { %2753 = vmatprep.subr.bf16.mxu0 %v7547_v16  ;;  %2794 = vmatprep.subr.bf16.mxu1 %v7550_v29 }
 0x934   :  { %2754 = vmatpush1.bf16.msra.mxu0 %v7553_v9  ;;  %2795 = vmatpush1.bf16.msra.mxu1 %v7556_v51 }
 0x935   :  { %2755 = vmatprep.subr.bf16.mxu0 %v7559_v22  ;;  %2796 = vmatprep.subr.bf16.mxu1 %v7562_v34 }
 0x938   :  { %2756 = vmatpush1.bf16.msra.mxu0 %v7565_v23  ;;  %2797 = vmatpush1.bf16.msra.mxu1 %v7568_v62 }
 0x939   :  { %2757 = vmatprep.subr.bf16.mxu0 %v7571_v28  ;;  %2798 = vmatprep.subr.bf16.mxu1 %v7574_v56 }
 0x93c   :  { %2758 = vmatpush1.bf16.msra.mxu0 %v7577_v15  ;;  %2799 = vmatpush1.bf16.msra.mxu1 %v7580_v8 }
 0x93d   :  { %2759 = vmatprep.subr.bf16.mxu0 %v7583_v13  ;;  %2800 = vmatprep.subr.bf16.mxu1 %v7586_v17 }
 0x940   :  { %2760 = vmatpush1.bf16.msra.mxu0 %v7589_v33  ;;  %2801 = vmatpush1.bf16.msra.mxu1 %v7592_v19  ;;  %v7610_v19 = vld [vmem:[#allocation9 + $0x1ac] ss:$16 sps:$4 sm:$0xff]  }
 0x941   :  { %2761 = vmatprep.subr.bf16.mxu0 %v7595_v27  ;;  %2802 = vmatprep.subr.bf16.mxu1 %v7598_v35  ;;  %9816 = vst [vmem:[#allocation45_spill] sm:$0xff] %v7610_v19  ;;  %v7613_v27 = vld [vmem:[#allocation9 + $0x1a0] ss:$16 sps:$4 sm:$0xff]   ;;  %v7616_v35 = vld [vmem:[#allocation9 + $0x1a8] ss:$16 sps:$4 sm:$0xff]  }
 0x942   :  { %9817 = vst [vmem:[#allocation46_spill] sm:$0xff] %v7613_v27  ;;  %9818 = vst [vmem:[#allocation47_spill] sm:$0xff] %v7616_v35 }
 0x944   :  { %2762 = vmatpush1.bf16.msra.mxu0 %v7601_v59  ;;  %2803 = vmatpush1.bf16.msra.mxu1 %v7604_v39  ;;  %v7619_v59 = vld [vmem:[#allocation9 + $0x1c4] ss:$16 sps:$4 sm:$0xff]   ;;  %v7622_v39 = vld [vmem:[#allocation9 + $0x1cc] ss:$16 sps:$4 sm:$0xff]  }
 0x945   :  { %2763 = vmatprep.subr.bf16.mxu0 %v7607_v57  ;;  %2804 = vmatprep.subr.bf16.mxu1 %v7610_v19  ;;  %9819 = vst [vmem:[#allocation48_spill] sm:$0xff] %v7619_v59  ;;  %9820 = vst [vmem:[#allocation49_spill] sm:$0xff] %v7622_v39  ;;  %v7625_v57 = vld [vmem:[#allocation9 + $0x1c0] ss:$16 sps:$4 sm:$0xff]   ;;  %v7628_v19 = vld [vmem:[#allocation9 + $0x1c8] ss:$16 sps:$4 sm:$0xff]  }
 0x946   :  { %9821 = vst [vmem:[#allocation50_spill] sm:$0xff] %v7625_v57  ;;  %9822 = vst [vmem:[#allocation51_spill] sm:$0xff] %v7628_v19 }
 0x948   :  { %2764 = vmatpush1.bf16.msra.mxu0 %v7613_v27  ;;  %2805 = vmatpush1.bf16.msra.mxu1 %v7616_v35  ;;  %v7631_v27 = vld [vmem:[#allocation9 + $0x1e4] ss:$16 sps:$4 sm:$0xff]   ;;  %v7634_v35 = vld [vmem:[#allocation9 + $0x1ec] ss:$16 sps:$4 sm:$0xff]  }
 0x949   :  { %2765 = vmatprep.subr.bf16.mxu0 %v7619_v59  ;;  %2806 = vmatprep.subr.bf16.mxu1 %v7622_v39  ;;  %9823 = vst [vmem:[#allocation52_spill] sm:$0xff] %v7631_v27  ;;  %9824 = vst [vmem:[#allocation53_spill] sm:$0xff] %v7634_v35  ;;  %v7637_v59 = vld [vmem:[#allocation9 + $0x1e0] ss:$16 sps:$4 sm:$0xff]   ;;  %v7640_v39 = vld [vmem:[#allocation9 + $0x1e8] ss:$16 sps:$4 sm:$0xff]  }
 0x94a   :  { %9825 = vst [vmem:[#allocation54_spill] sm:$0xff] %v7637_v59  ;;  %9826 = vst [vmem:[#allocation55_spill] sm:$0xff] %v7640_v39 }
 0x94c   :  { %2766 = vmatpush1.bf16.msra.mxu0 %v7625_v57  ;;  %2807 = vmatpush1.bf16.msra.mxu1 %v7628_v19  ;;  %v7643_v57 = vld [vmem:[#allocation10 + $0x4] ss:$16 sps:$4 sm:$0xff]   ;;  %v7646_v19 = vld [vmem:[#allocation10 + $0xc] ss:$16 sps:$4 sm:$0xff]  }
 0x94d   :  { %2767 = vmatprep.subr.bf16.mxu0 %v7631_v27  ;;  %2808 = vmatprep.subr.bf16.mxu1 %v7634_v35  ;;  %9827 = vst [vmem:[#allocation56_spill] sm:$0xff] %v7643_v57  ;;  %9828 = vst [vmem:[#allocation57_spill] sm:$0xff] %v7646_v19 }
 0x950   :  { %2768 = vmatpush1.bf16.msra.mxu0 %v7637_v59  ;;  %2809 = vmatpush1.bf16.msra.mxu1 %v7640_v39 }
 0x951   :  { %2851 = vmatprep.subr.bf16.mxu0 %v7643_v57  ;;  %2892 = vmatprep.subr.bf16.mxu1 %v7646_v19 }
 0x9c5   :  { %v2517_v27 = vpop.f32.mrb[44].mxu0  ;;  %v2558_v33 = vpop.f32.mrb[44].mxu1 }
 0x9c6   :  { %v2565_v35 = vadd.f32 %v2517_v27, %v9712_v44  ;;  %v2519_v17 = vpop.f32.mrb[45].mxu0  ;;  %v2560_v13 = vpop.f32.mrb[45].mxu1  ;;  %v2567_v19 = vadd.f32 %v2558_v33, %v9715_v37  ;;  %v2610_v33 = vld [vmem:[#allocation4 + $0x48] sm:$0xff] }
 0x9c7   :  { %v2566_v59 = vadd.f32 %v2519_v17, %v9713_v63  ;;  %v2521_v8 = vpop.f32.mrb[46].mxu0  ;;  %v2562_v15 = vpop.f32.mrb[46].mxu1  ;;  %v2568_v57 = vadd.f32 %v2560_v13, %v9714_v40 }
 0x9c8   :  { %v4302_v56 = vmul.f32 -1.442695, %v2565_v35  ;;  %v2522_v39 = vpop.f32.mrb[47].mxu0  ;;  %v2563_v28 = vpop.f32.mrb[47].mxu1  ;;  %v2609_v15 = vld [vmem:[#allocation4 + $0x40] sm:$0xff] }
 0x9c9   :  { %v4303_v62 = vmul.f32 -1.442695, %v2566_v59  ;;  %v4304_v23 = vmul.f32 -1.442695, %v2568_v57  ;;  %v2611_v8 = vunpack.c.l.bf16 %v2609_v15  ;;  %v2612_v28 = vunpack.c.h.bf16 %v2609_v15 }
 0x9ca   :  { %4830 = vpow2.f32 %v4302_v56 }
 0x9cb   :  { %4832 = vpow2.f32 %v4303_v62  ;;  %v2615_v57 = vadd.f32 %v2611_v8, %v9468_v1 }
 0x9cc   :  { %4834 = vpow2.f32 %v4304_v23 }
 0x9cd   :  { %4836 = vtanh.f32 %v2567_v19 }
 0x9d4   :  { %v4831_v34 = vpop.eup %4830 }
 0x9d5   :  { %v4833_v22 = vpop.eup %4832  ;;  %v2578_v27 = vadd.f32 1.0, %v4831_v34  ;;  %v9829_v34 = vld [vmem:[#allocation37_spill] sm:$0xff] }
 0x9d6   :  { %v2579_v44 = vadd.f32 1.0, %v4833_v22  ;;  %v4835_v17 = vpop.eup %4834  ;;  %v2616_v23 = vadd.f32 %v2612_v28, %v9829_v34 }
 0x9d7   :  { %4838 = vrcp.f32 %v2578_v27  ;;  %v4837_v35 = vpop.eup %4836  ;;  %v2580_v13 = vadd.f32 1.0, %v4835_v17 }
 0x9d8   :  { %4840 = vrcp.f32 %v2579_v44  ;;  %v2614_v44 = vunpack.c.h.bf16 %v2610_v33 }
 0x9d9   :  { %4842 = vrcp.f32 %v2580_v13  ;;  %v2613_v13 = vunpack.c.l.bf16 %v2610_v33 }
 0x9e1   :  { %v4839_v56 = vpop.eup %4838 }
 0x9e2   :  { %v4841_v62 = vpop.eup %4840  ;;  %v2589_v59 = vmul.f32 %v4839_v56, %v4837_v35 }
 0x9e3   :  { %v2588_v39 = vmul.f32 %v4841_v62, %v7319_v42 }
 0x9e5   :  { %v2590_v19 = vadd.f32 %v2589_v59, %v2588_v39  ;;  %v2653_v22 = vpop.f32.mrb[48].mxu0  ;;  %v2694_v27 = vpop.f32.mrb[48].mxu1  ;;  %v2618_v59 = vadd.f32 %v2614_v44, %v6040_v43  ;;  %v2617_v39 = vadd.f32 %v2613_v13, %v9472_v30  ;;  %v9830_v13 = vld [vmem:[#allocation22_spill] sm:$0xff] }
 0x9e6   :  { %v2701_v37 = vadd.f32 %v2653_v22, %v2615_v57  ;;  %v2655_v40 = vpop.f32.mrb[49].mxu0  ;;  %v2696_v15 = vpop.f32.mrb[49].mxu1  ;;  %vm2733_vm13 = vcmp.eq.s32.totalorder %v9830_v13, 1 }
 0x9e7   :  { %4844 = vtanh.f32 %v2590_v19  ;;  %v2702_v63 = vadd.f32 %v2655_v40, %v2616_v23  ;;  %v2657_v51 = vpop.f32.mrb[50].mxu0  ;;  %v2698_v35 = vpop.f32.mrb[50].mxu1  ;;  %v7659_v8 = vsel %vm2365_vm12, %v2590_v19, %v7319_v42  ;;  %v2704_v57 = vadd.f32 %v2696_v15, %v2618_v59 }
 0x9e8   :  { %v4307_v17 = vmul.f32 -1.442695, %v2701_v37  ;;  %v2658_v56 = vpop.f32.mrb[51].mxu0  ;;  %v2699_v28 = vpop.f32.mrb[51].mxu1  ;;  %v2703_v22 = vadd.f32 %v2694_v27, %v2617_v39  ;;  %v4403_v42 = vunpack.i.h.bf16 %v7325_v5 }
 0x9e9   :  { %v4308_v62 = vmul.f32 -1.442695, %v2702_v63  ;;  %v4843_v40 = vpop.eup %4842  ;;  %v4309_v23 = vmul.f32 -1.442695, %v2704_v57 }
 0x9ea   :  { %4846 = vpow2.f32 %v4307_v17 }
 0x9eb   :  { %4848 = vpow2.f32 %v4308_v62 }
 0x9ec   :  { %4850 = vpow2.f32 %v4309_v23 }
 0x9ed   :  { %4852 = vtanh.f32 %v2703_v22 }
 0x9f1   :  { %v4845_v51 = vpop.eup %4844 }
 0x9f2   :  { %v2592_v35 = vmul.f32 %v4845_v51, %v4843_v40 }
 0x9f4   :  { %v4847_v19 = vpop.eup %4846  ;;  %v7667_v63 = vsel %vm2365_vm12, %v2592_v35, %v7331_v53 }
 0x9f5   :  { %v4849_v37 = vpop.eup %4848  ;;  %v2714_v44 = vadd.f32 1.0, %v4847_v19  ;;  %v2601_v33 = vmul.f32 %v4403_v42, %v7667_v63  ;;  %v2850_v35 = vpack.c.bf16 %v7667_v63, %v7667_v63  ;;  %v7693_v42 = vld [vmem:[#allocation10 + $0x8] ss:$16 sps:$4 sm:$0xff]   ;;  %v7699_v19 = vld [vmem:[#allocation10 + $0x2c] ss:$16 sps:$4 sm:$0xff]  }
 0x9f6   :  { %v2715_v15 = vadd.f32 1.0, %v4849_v37  ;;  %v4851_v27 = vpop.eup %4850  ;;  %v7702_v37 = vld [vmem:[#allocation10 + $0x20] ss:$16 sps:$4 sm:$0xff]  }
 0x9f7   :  { %4854 = vrcp.f32 %v2714_v44  ;;  %v2602_v17 = vpack.c.bf16 %v2601_v33, %v2601_v33  ;;  %v4853_v56 = vpop.eup %4852  ;;  %v2716_v59 = vadd.f32 1.0, %v4851_v27  ;;  %9831 = vst [vmem:[#allocation58_spill] sm:$0xff] %v7702_v37  ;;  %v7705_v44 = vld [vmem:[#allocation10 + $0x28] ss:$16 sps:$4 sm:$0xff]   ;;  %v7708_v33 = vld [vmem:[#allocation10 + $0x44] ss:$16 sps:$4 sm:$0xff]  }
 0x9f8   :  { %4856 = vrcp.f32 %v2715_v15  ;;  %9832 = vst [vmem:[#allocation59_spill] sm:$0xff] %v7705_v44  ;;  %9833 = vst [vmem:[#allocation60_spill] sm:$0xff] %v7708_v33  ;;  %v7711_v15 = vld [vmem:[#allocation10 + $0x4c] ss:$16 sps:$4 sm:$0xff]   ;;  %v7717_v27 = vld [vmem:[#allocation10 + $0x48] ss:$16 sps:$4 sm:$0xff]  }
 0x9f9   :  { %2604 = vst [vmem:[#allocation12 + $0xc] sm:$0xf] %v2602_v17  ;;  %4858 = vrcp.f32 %v2716_v59  ;;  %9834 = vst [vmem:[#allocation61_spill] sm:$0xff] %v7711_v15  ;;  %v7714_v17 = vld [vmem:[#allocation10 + $0x40] ss:$16 sps:$4 sm:$0xff]  }
 0x9fa   :  { %9835 = vst [vmem:[#allocation62_spill] sm:$0xff] %v7714_v17  ;;  %9836 = vst [vmem:[#allocation63_spill] sm:$0xff] %v7717_v27  ;;  %v7732_v59 = vld [vmem:[#allocation10 + $0x84] ss:$16 sps:$4 sm:$0xff]  }
 0x9fb   :  { %9841 = vst [vmem:[#allocation68_spill] sm:$0xff] %v7732_v59 }
 0xa01   :  { %v4855_v5 = vpop.eup %4854 }
 0xa02   :  { %v4857_v28 = vpop.eup %4856  ;;  %v2725_v62 = vmul.f32 %v4855_v5, %v4853_v56  ;;  %v7720_v56 = vld [vmem:[#allocation10 + $0x64] ss:$16 sps:$4 sm:$0xff]   ;;  %v7723_v5 = vld [vmem:[#allocation10 + $0x6c] ss:$16 sps:$4 sm:$0xff]  }
 0xa03   :  { %v2724_v36 = vmul.f32 %v4857_v28, %v7339_v48  ;;  %v4859_v39 = vpop.eup %4858  ;;  %9837 = vst [vmem:[#allocation64_spill] sm:$0xff] %v7720_v56  ;;  %9838 = vst [vmem:[#allocation65_spill] sm:$0xff] %v7723_v5  ;;  %v7726_v28 = vld [vmem:[#allocation10 + $0x60] ss:$16 sps:$4 sm:$0xff]  }
 0xa04   :  { %9839 = vst [vmem:[#allocation66_spill] sm:$0xff] %v7726_v28 }
 0xa05   :  { %v2726_v53 = vadd.f32 %v2725_v62, %v2724_v36  ;;  %v7729_v62 = vld [vmem:[#allocation10 + $0x68] ss:$16 sps:$4 sm:$0xff]   ;;  %v7735_v36 = vld [vmem:[#allocation10 + $0x8c] ss:$16 sps:$4 sm:$0xff]  }
 0xa06   :  { %9840 = vst [vmem:[#allocation67_spill] sm:$0xff] %v7729_v62  ;;  %9842 = vst [vmem:[#allocation69_spill] sm:$0xff] %v7735_v36 }
 0xa07   :  { %4860 = vtanh.f32 %v2726_v53  ;;  %v7675_v57 = vsel %vm2733_vm13, %v2726_v53, %v7339_v48  ;;  %v7690_v48 = vld [vmem:[#allocation10] ss:$16 sps:$4 sm:$0xff]  }
 0xa08   :  { %v7738_v53 = vld [vmem:[#allocation10 + $0x80] ss:$16 sps:$4 sm:$0xff]  }
 0xa09   :  { %9843 = vst [vmem:[#allocation70_spill] sm:$0xff] %v7738_v53 }
 0xa11   :  { %v4861_v40 = vpop.eup %4860 }
 0xa12   :  { %v2728_v51 = vmul.f32 %v4861_v40, %v4859_v39  ;;  %v7741_v39 = vld [vmem:[#allocation10 + $0x88] ss:$16 sps:$4 sm:$0xff]   ;;  %v7744_v40 = vld [vmem:[#allocation10 + $0xa4] ss:$16 sps:$4 sm:$0xff]  }
 0xa13   :  { %9844 = vst [vmem:[#allocation71_spill] sm:$0xff] %v7741_v39  ;;  %9845 = vst [vmem:[#allocation72_spill] sm:$0xff] %v7744_v40 }
 0xa14   :  { %v7680_v23 = vsel %vm2733_vm13, %v2728_v51, %v7344_v6  ;;  %v7696_v6 = vld [vmem:[#allocation10 + $0x24] ss:$16 sps:$4 sm:$0xff]   ;;  %v7747_v51 = vld [vmem:[#allocation10 + $0xac] ss:$16 sps:$4 sm:$0xff]  }
 0xa15   :  { %v7684_v22 = vpack.c.bf16 %v7680_v23, %v7680_v23  ;;  %9846 = vst [vmem:[#allocation73_spill] sm:$0xff] %v7747_v51 }
 0xa17   :  { %2770 = vmatmul.mubr.bf16.vlgmr.msra.gmra.mrb[52].mxu0 %v7684_v22  ;;  %2811 = vmatmul.mubr.bf16.vlgmr.msra.gmra.mrb[52].mxu1 %v7684_v22 }
 0xa18   :  { %2883 = vmatprep.mubr.bf16.mxu0 %v2850_v35  ;;  %2924 = vmatprep.mubr.bf16.mxu1 %v2850_v35  ;;  %v7750_v35 = vld [vmem:[#allocation10 + $0xa0] ss:$16 sps:$4 sm:$0xff]  }
 0xa19   :  { %2852 = vmatpush1.bf16.msra.mxu0 %v7690_v48  ;;  %2893 = vmatpush1.bf16.msra.mxu1 %v7693_v42  ;;  %9847 = vst [vmem:[#allocation74_spill] sm:$0xff] %v7750_v35 }
 0xa1a   :  { %2853 = vmatprep.subr.bf16.mxu0 %v7696_v6  ;;  %2894 = vmatprep.subr.bf16.mxu1 %v7699_v19 }
 0xa1d   :  { %2854 = vmatpush1.bf16.msra.mxu0 %v7702_v37  ;;  %2895 = vmatpush1.bf16.msra.mxu1 %v7705_v44 }
 0xa1e   :  { %2855 = vmatprep.subr.bf16.mxu0 %v7708_v33  ;;  %2896 = vmatprep.subr.bf16.mxu1 %v7711_v15 }
 0xa21   :  { %2856 = vmatpush1.bf16.msra.mxu0 %v7714_v17  ;;  %2897 = vmatpush1.bf16.msra.mxu1 %v7717_v27 }
 0xa22   :  { %2857 = vmatprep.subr.bf16.mxu0 %v7720_v56  ;;  %2898 = vmatprep.subr.bf16.mxu1 %v7723_v5 }
 0xa25   :  { %2858 = vmatpush1.bf16.msra.mxu0 %v7726_v28  ;;  %2899 = vmatpush1.bf16.msra.mxu1 %v7729_v62 }
 0xa26   :  { %2859 = vmatprep.subr.bf16.mxu0 %v7732_v59  ;;  %2900 = vmatprep.subr.bf16.mxu1 %v7735_v36  ;;  %v7753_v36 = vld [vmem:[#allocation10 + $0xa8] ss:$16 sps:$4 sm:$0xff]  }
 0xa27   :  { %9848 = vst [vmem:[#allocation75_spill] sm:$0xff] %v7753_v36 }
 0xa29   :  { %2860 = vmatpush1.bf16.msra.mxu0 %v7738_v53  ;;  %2901 = vmatpush1.bf16.msra.mxu1 %v7741_v39  ;;  %v7756_v53 = vld [vmem:[#allocation10 + $0xc4] ss:$16 sps:$4 sm:$0xff]   ;;  %v7759_v39 = vld [vmem:[#allocation10 + $0xcc] ss:$16 sps:$4 sm:$0xff]  }
 0xa2a   :  { %2861 = vmatprep.subr.bf16.mxu0 %v7744_v40  ;;  %2902 = vmatprep.subr.bf16.mxu1 %v7747_v51  ;;  %9849 = vst [vmem:[#allocation76_spill] sm:$0xff] %v7756_v53  ;;  %9850 = vst [vmem:[#allocation77_spill] sm:$0xff] %v7759_v39  ;;  %v7762_v40 = vld [vmem:[#allocation10 + $0xc0] ss:$16 sps:$4 sm:$0xff]   ;;  %v7765_v51 = vld [vmem:[#allocation10 + $0xc8] ss:$16 sps:$4 sm:$0xff]  }
 0xa2b   :  { %9851 = vst [vmem:[#allocation78_spill] sm:$0xff] %v7762_v40  ;;  %9852 = vst [vmem:[#allocation79_spill] sm:$0xff] %v7765_v51 }
 0xa2d   :  { %2862 = vmatpush1.bf16.msra.mxu0 %v7750_v35  ;;  %2903 = vmatpush1.bf16.msra.mxu1 %v7753_v36  ;;  %v7768_v35 = vld [vmem:[#allocation10 + $0xe4] ss:$16 sps:$4 sm:$0xff]   ;;  %v7771_v36 = vld [vmem:[#allocation10 + $0xec] ss:$16 sps:$4 sm:$0xff]  }
 0xa2e   :  { %2863 = vmatprep.subr.bf16.mxu0 %v7756_v53  ;;  %2904 = vmatprep.subr.bf16.mxu1 %v7759_v39  ;;  %9853 = vst [vmem:[#allocation80_spill] sm:$0xff] %v7768_v35  ;;  %9854 = vst [vmem:[#allocation81_spill] sm:$0xff] %v7771_v36  ;;  %v7774_v53 = vld [vmem:[#allocation10 + $0xe0] ss:$16 sps:$4 sm:$0xff]   ;;  %v7777_v39 = vld [vmem:[#allocation10 + $0xe8] ss:$16 sps:$4 sm:$0xff]  }
 0xa2f   :  { %9855 = vst [vmem:[#allocation82_spill] sm:$0xff] %v7774_v53  ;;  %9856 = vst [vmem:[#allocation83_spill] sm:$0xff] %v7777_v39 }
 0xa31   :  { %2864 = vmatpush1.bf16.msra.mxu0 %v7762_v40  ;;  %2905 = vmatpush1.bf16.msra.mxu1 %v7765_v51  ;;  %v7780_v40 = vld [vmem:[#allocation10 + $0x104] ss:$16 sps:$4 sm:$0xff]   ;;  %v7783_v51 = vld [vmem:[#allocation10 + $0x10c] ss:$16 sps:$4 sm:$0xff]  }
 0xa32   :  { %2865 = vmatprep.subr.bf16.mxu0 %v7768_v35  ;;  %2906 = vmatprep.subr.bf16.mxu1 %v7771_v36  ;;  %9857 = vst [vmem:[#allocation84_spill] sm:$0xff] %v7780_v40  ;;  %9858 = vst [vmem:[#allocation85_spill] sm:$0xff] %v7783_v51  ;;  %v7786_v35 = vld [vmem:[#allocation10 + $0x100] ss:$16 sps:$4 sm:$0xff]   ;;  %v7789_v36 = vld [vmem:[#allocation10 + $0x108] ss:$16 sps:$4 sm:$0xff]  }
 0xa33   :  { %9859 = vst [vmem:[#allocation86_spill] sm:$0xff] %v7786_v35  ;;  %9860 = vst [vmem:[#allocation87_spill] sm:$0xff] %v7789_v36 }
 0xa35   :  { %2866 = vmatpush1.bf16.msra.mxu0 %v7774_v53  ;;  %2907 = vmatpush1.bf16.msra.mxu1 %v7777_v39  ;;  %v7792_v53 = vld [vmem:[#allocation10 + $0x124] ss:$16 sps:$4 sm:$0xff]   ;;  %v7795_v39 = vld [vmem:[#allocation10 + $0x12c] ss:$16 sps:$4 sm:$0xff]  }
 0xa36   :  { %2867 = vmatprep.subr.bf16.mxu0 %v7780_v40  ;;  %2908 = vmatprep.subr.bf16.mxu1 %v7783_v51  ;;  %9861 = vst [vmem:[#allocation88_spill] sm:$0xff] %v7792_v53  ;;  %9862 = vst [vmem:[#allocation89_spill] sm:$0xff] %v7795_v39  ;;  %v7798_v40 = vld [vmem:[#allocation10 + $0x120] ss:$16 sps:$4 sm:$0xff]   ;;  %v7801_v51 = vld [vmem:[#allocation10 + $0x128] ss:$16 sps:$4 sm:$0xff]  }
 0xa37   :  { %9863 = vst [vmem:[#allocation90_spill] sm:$0xff] %v7798_v40  ;;  %9864 = vst [vmem:[#allocation91_spill] sm:$0xff] %v7801_v51 }
 0xa39   :  { %2868 = vmatpush1.bf16.msra.mxu0 %v7786_v35  ;;  %2909 = vmatpush1.bf16.msra.mxu1 %v7789_v36  ;;  %v7804_v35 = vld [vmem:[#allocation10 + $0x144] ss:$16 sps:$4 sm:$0xff]   ;;  %v7807_v36 = vld [vmem:[#allocation10 + $0x14c] ss:$16 sps:$4 sm:$0xff]  }
 0xa3a   :  { %2869 = vmatprep.subr.bf16.mxu0 %v7792_v53  ;;  %2910 = vmatprep.subr.bf16.mxu1 %v7795_v39  ;;  %9865 = vst [vmem:[#allocation92_spill] sm:$0xff] %v7804_v35  ;;  %9866 = vst [vmem:[#allocation93_spill] sm:$0xff] %v7807_v36  ;;  %v7810_v53 = vld [vmem:[#allocation10 + $0x140] ss:$16 sps:$4 sm:$0xff]   ;;  %v7813_v39 = vld [vmem:[#allocation10 + $0x148] ss:$16 sps:$4 sm:$0xff]  }
 0xa3b   :  { %9867 = vst [vmem:[#allocation94_spill] sm:$0xff] %v7810_v53  ;;  %9868 = vst [vmem:[#allocation95_spill] sm:$0xff] %v7813_v39 }
 0xa3d   :  { %2870 = vmatpush1.bf16.msra.mxu0 %v7798_v40  ;;  %2911 = vmatpush1.bf16.msra.mxu1 %v7801_v51  ;;  %v7816_v40 = vld [vmem:[#allocation10 + $0x164] ss:$16 sps:$4 sm:$0xff]   ;;  %v7819_v51 = vld [vmem:[#allocation10 + $0x16c] ss:$16 sps:$4 sm:$0xff]  }
 0xa3e   :  { %2871 = vmatprep.subr.bf16.mxu0 %v7804_v35  ;;  %2912 = vmatprep.subr.bf16.mxu1 %v7807_v36  ;;  %9869 = vst [vmem:[#allocation96_spill] sm:$0xff] %v7816_v40  ;;  %9870 = vst [vmem:[#allocation97_spill] sm:$0xff] %v7819_v51  ;;  %v7822_v35 = vld [vmem:[#allocation10 + $0x160] ss:$16 sps:$4 sm:$0xff]   ;;  %v7825_v36 = vld [vmem:[#allocation10 + $0x168] ss:$16 sps:$4 sm:$0xff]  }
 0xa3f   :  { %9871 = vst [vmem:[#allocation98_spill] sm:$0xff] %v7822_v35  ;;  %9872 = vst [vmem:[#allocation99_spill] sm:$0xff] %v7825_v36 }
 0xa41   :  { %2872 = vmatpush1.bf16.msra.mxu0 %v7810_v53  ;;  %2913 = vmatpush1.bf16.msra.mxu1 %v7813_v39  ;;  %v7828_v53 = vld [vmem:[#allocation10 + $0x184] ss:$16 sps:$4 sm:$0xff]   ;;  %v7831_v39 = vld [vmem:[#allocation10 + $0x18c] ss:$16 sps:$4 sm:$0xff]  }
 0xa42   :  { %2873 = vmatprep.subr.bf16.mxu0 %v7816_v40  ;;  %2914 = vmatprep.subr.bf16.mxu1 %v7819_v51  ;;  %9873 = vst [vmem:[#allocation100_spill] sm:$0xff] %v7828_v53  ;;  %9874 = vst [vmem:[#allocation101_spill] sm:$0xff] %v7831_v39  ;;  %v7834_v40 = vld [vmem:[#allocation10 + $0x180] ss:$16 sps:$4 sm:$0xff]   ;;  %v7837_v51 = vld [vmem:[#allocation10 + $0x188] ss:$16 sps:$4 sm:$0xff]  }
 0xa43   :  { %9875 = vst [vmem:[#allocation102_spill] sm:$0xff] %v7834_v40  ;;  %9876 = vst [vmem:[#allocation103_spill] sm:$0xff] %v7837_v51 }
 0xa45   :  { %2874 = vmatpush1.bf16.msra.mxu0 %v7822_v35  ;;  %2915 = vmatpush1.bf16.msra.mxu1 %v7825_v36  ;;  %v7840_v35 = vld [vmem:[#allocation10 + $0x1a4] ss:$16 sps:$4 sm:$0xff]   ;;  %v7843_v36 = vld [vmem:[#allocation10 + $0x1ac] ss:$16 sps:$4 sm:$0xff]  }
 0xa46   :  { %2875 = vmatprep.subr.bf16.mxu0 %v7828_v53  ;;  %2916 = vmatprep.subr.bf16.mxu1 %v7831_v39  ;;  %9877 = vst [vmem:[#allocation104_spill] sm:$0xff] %v7840_v35  ;;  %9878 = vst [vmem:[#allocation105_spill] sm:$0xff] %v7843_v36  ;;  %v7846_v53 = vld [vmem:[#allocation10 + $0x1a0] ss:$16 sps:$4 sm:$0xff]   ;;  %v7849_v39 = vld [vmem:[#allocation10 + $0x1a8] ss:$16 sps:$4 sm:$0xff]  }
 0xa47   :  { %9879 = vst [vmem:[#allocation17_spill] sm:$0xff] %v7846_v53  ;;  %9880 = vst [vmem:[#allocation107_spill] sm:$0xff] %v7849_v39 }
 0xa49   :  { %2876 = vmatpush1.bf16.msra.mxu0 %v7834_v40  ;;  %2917 = vmatpush1.bf16.msra.mxu1 %v7837_v51  ;;  %v7852_v40 = vld [vmem:[#allocation10 + $0x1c4] ss:$16 sps:$4 sm:$0xff]   ;;  %v7855_v51 = vld [vmem:[#allocation10 + $0x1cc] ss:$16 sps:$4 sm:$0xff]  }
 0xa4a   :  { %2877 = vmatprep.subr.bf16.mxu0 %v7840_v35  ;;  %2918 = vmatprep.subr.bf16.mxu1 %v7843_v36  ;;  %9881 = vst [vmem:[#allocation108_spill] sm:$0xff] %v7852_v40  ;;  %9882 = vst [vmem:[#allocation109_spill] sm:$0xff] %v7855_v51  ;;  %v7858_v35 = vld [vmem:[#allocation10 + $0x1c0] ss:$16 sps:$4 sm:$0xff]   ;;  %v7861_v36 = vld [vmem:[#allocation10 + $0x1c8] ss:$16 sps:$4 sm:$0xff]  }
 0xa4b   :  { %9883 = vst [vmem:[#allocation110_spill] sm:$0xff] %v7858_v35  ;;  %9884 = vst [vmem:[#allocation111_spill] sm:$0xff] %v7861_v36 }
 0xa4d   :  { %2878 = vmatpush1.bf16.msra.mxu0 %v7846_v53  ;;  %2919 = vmatpush1.bf16.msra.mxu1 %v7849_v39  ;;  %v7864_v53 = vld [vmem:[#allocation10 + $0x1e4] ss:$16 sps:$4 sm:$0xff]   ;;  %v7867_v39 = vld [vmem:[#allocation10 + $0x1ec] ss:$16 sps:$4 sm:$0xff]  }
 0xa4e   :  { %2879 = vmatprep.subr.bf16.mxu0 %v7852_v40  ;;  %2920 = vmatprep.subr.bf16.mxu1 %v7855_v51  ;;  %9885 = vst [vmem:[#allocation112_spill] sm:$0xff] %v7864_v53  ;;  %9886 = vst [vmem:[#allocation113_spill] sm:$0xff] %v7867_v39  ;;  %v7870_v40 = vld [vmem:[#allocation10 + $0x1e0] ss:$16 sps:$4 sm:$0xff]   ;;  %v7873_v51 = vld [vmem:[#allocation10 + $0x1e8] ss:$16 sps:$4 sm:$0xff]  }
 0xa4f   :  { %9887 = vst [vmem:[#allocation114_spill] sm:$0xff] %v7870_v40  ;;  %9888 = vst [vmem:[#allocation115_spill] sm:$0xff] %v7873_v51 }
 0xa51   :  { %2880 = vmatpush1.bf16.msra.mxu0 %v7858_v35  ;;  %2921 = vmatpush1.bf16.msra.mxu1 %v7861_v36  ;;  %v7876_v35 = vld [vmem:[#allocation7 + $0x4] ss:$16 sps:$4 sm:$0xff]   ;;  %v7879_v36 = vld [vmem:[#allocation7 + $0xc] ss:$16 sps:$4 sm:$0xff]  }
 0xa52   :  { %2881 = vmatprep.subr.bf16.mxu0 %v7864_v53  ;;  %2922 = vmatprep.subr.bf16.mxu1 %v7867_v39  ;;  %9889 = vst [vmem:[#allocation116_spill] sm:$0xff] %v7876_v35  ;;  %9890 = vst [vmem:[#allocation117_spill] sm:$0xff] %v7879_v36 }
 0xa55   :  { %2882 = vmatpush1.bf16.msra.mxu0 %v7870_v40  ;;  %2923 = vmatpush1.bf16.msra.mxu1 %v7873_v51 }
 0xa56   :  { %2987 = vmatprep.subr.bf16.mxu0 %v7876_v35  ;;  %3028 = vmatprep.subr.bf16.mxu1 %v7879_v36 }
 0xaea   :  { %v2771_v53 = vpop.f32.mrb[52].mxu0  ;;  %v2812_v59 = vpop.f32.mrb[52].mxu1 }
 0xaeb   :  { %v2819_v39 = vadd.f32 %v2771_v53, %v9777_v2  ;;  %v2773_v62 = vpop.f32.mrb[53].mxu0  ;;  %v2814_v28 = vpop.f32.mrb[53].mxu1  ;;  %v2821_v36 = vadd.f32 %v2812_v59, %v6284_v25 }
 0xaec   :  { %v2820_v40 = vadd.f32 %v2773_v62, %v6275_v52  ;;  %v2775_v5 = vpop.f32.mrb[54].mxu0  ;;  %v2816_v56 = vpop.f32.mrb[54].mxu1  ;;  %v2822_v35 = vadd.f32 %v2814_v28, %v9543_v47 }
 0xaed   :  { %v4310_v27 = vmul.f32 -1.442695, %v2819_v39  ;;  %v2776_v51 = vpop.f32.mrb[55].mxu0  ;;  %v2817_v17 = vpop.f32.mrb[55].mxu1 }
 0xaee   :  { %v4311_v15 = vmul.f32 -1.442695, %v2820_v40  ;;  %v4312_v33 = vmul.f32 -1.442695, %v2822_v35  ;;  %v7903_v40 = vld [vmem:[#allocation7] ss:$16 sps:$4 sm:$0xff]  }
 0xaef   :  { %4862 = vpow2.f32 %v4310_v27  ;;  %v7909_v51 = vld [vmem:[#allocation7 + $0x24] ss:$16 sps:$4 sm:$0xff]   ;;  %v7917_v35 = vld [vmem:[#allocation7 + $0x20] ss:$16 sps:$4 sm:$0xff]  }
 0xaf0   :  { %4864 = vpow2.f32 %v4311_v15 }
 0xaf1   :  { %4866 = vpow2.f32 %v4312_v33 }
 0xaf2   :  { %4868 = vtanh.f32 %v2821_v36 }
 0xaf9   :  { %v4863_v44 = vpop.eup %4862 }
 0xafa   :  { %v4865_v37 = vpop.eup %4864  ;;  %v2832_v53 = vadd.f32 1.0, %v4863_v44 }
 0xafb   :  { %v2833_v2 = vadd.f32 1.0, %v4865_v37  ;;  %v4867_v56 = vpop.eup %4866 }
 0xafc   :  { %4870 = vrcp.f32 %v2832_v53  ;;  %v4869_v5 = vpop.eup %4868  ;;  %v2834_v27 = vadd.f32 1.0, %v4867_v56  ;;  %v7920_v53 = vld [vmem:[#allocation7 + $0x28] ss:$16 sps:$4 sm:$0xff]   ;;  %v7923_v56 = vld [vmem:[#allocation7 + $0x44] ss:$16 sps:$4 sm:$0xff]  }
 0xafd   :  { %4872 = vrcp.f32 %v2833_v2 }
 0xafe   :  { %4874 = vrcp.f32 %v2834_v27  ;;  %v7938_v27 = vld [vmem:[#allocation7 + $0x6c] ss:$16 sps:$4 sm:$0xff]  }
 0xaff   :  { %9891 = vst [vmem:[#allocation118_spill] sm:$0xff] %v7938_v27 }
 0xb06   :  { %v4871_v62 = vpop.eup %4870 }
 0xb07   :  { %v4873_v17 = vpop.eup %4872  ;;  %v2843_v39 = vmul.f32 %v4871_v62, %v4869_v5  ;;  %v7926_v5 = vld [vmem:[#allocation7 + $0x4c] ss:$16 sps:$4 sm:$0xff]   ;;  %v7929_v62 = vld [vmem:[#allocation7 + $0x40] ss:$16 sps:$4 sm:$0xff]  }
 0xb08   :  { %v2842_v15 = vmul.f32 %v4873_v17, %v7426_v46  ;;  %v4875_v33 = vpop.eup %4874  ;;  %v7932_v17 = vld [vmem:[#allocation7 + $0x48] ss:$16 sps:$4 sm:$0xff]  }
 0xb0a   :  { %v2844_v28 = vadd.f32 %v2843_v39, %v2842_v15  ;;  %v7935_v39 = vld [vmem:[#allocation7 + $0x64] ss:$16 sps:$4 sm:$0xff]   ;;  %v7941_v15 = vld [vmem:[#allocation7 + $0x60] ss:$16 sps:$4 sm:$0xff]  }
 0xb0b   :  { %9892 = vst [vmem:[#allocation119_spill] sm:$0xff] %v7941_v15 }
 0xb0c   :  { %4876 = vtanh.f32 %v2844_v28  ;;  %v7890_v44 = vsel %vm2733_vm13, %v2844_v28, %v7426_v46  ;;  %v7906_v46 = vld [vmem:[#allocation7 + $0x8] ss:$16 sps:$4 sm:$0xff]  }
 0xb0d   :  { %v7944_v28 = vld [vmem:[#allocation7 + $0x68] ss:$16 sps:$4 sm:$0xff]  }
 0xb0e   :  { %9893 = vst [vmem:[#allocation120_spill] sm:$0xff] %v7944_v28 }
 0xb16   :  { %v4877_v37 = vpop.eup %4876 }
 0xb17   :  { %v2846_v59 = vmul.f32 %v4877_v37, %v4875_v33  ;;  %v7947_v33 = vld [vmem:[#allocation7 + $0x84] ss:$16 sps:$4 sm:$0xff]   ;;  %v7950_v37 = vld [vmem:[#allocation7 + $0x8c] ss:$16 sps:$4 sm:$0xff]  }
 0xb18   :  { %9894 = vst [vmem:[#allocation121_spill] sm:$0xff] %v7947_v33  ;;  %9895 = vst [vmem:[#allocation122_spill] sm:$0xff] %v7950_v37 }
 0xb19   :  { %v7895_v2 = vsel %vm2733_vm13, %v2846_v59, %v7431_v58  ;;  %v7912_v58 = vld [vmem:[#allocation7 + $0x2c] ss:$16 sps:$4 sm:$0xff]   ;;  %v7953_v59 = vld [vmem:[#allocation7 + $0x80] ss:$16 sps:$4 sm:$0xff]  }
 0xb1a   :  { %v7899_v36 = vpack.c.bf16 %v7895_v2, %v7895_v2  ;;  %9896 = vst [vmem:[#allocation123_spill] sm:$0xff] %v7953_v59 }
 0xb1c   :  { %2884 = vmatmul.mubr.bf16.vlgmr.msra.gmra.mrb[56].mxu0 %v7899_v36  ;;  %2925 = vmatmul.mubr.bf16.vlgmr.msra.gmra.mrb[56].mxu1 %v7899_v36 }
 0xb1d   :  { %2988 = vmatpush1.bf16.msra.mxu0 %v7903_v40  ;;  %3029 = vmatpush1.bf16.msra.mxu1 %v7906_v46 }
 0xb1e   :  { %2989 = vmatprep.subr.bf16.mxu0 %v7909_v51  ;;  %3030 = vmatprep.subr.bf16.mxu1 %v7912_v58 }
 0xb1f   :  { %3019 = vmatprep.mubr.bf16.mxu0 %v9420_v38  ;;  %3060 = vmatprep.mubr.bf16.mxu1 %v9420_v38 }
 0xb21   :  { %2990 = vmatpush1.bf16.msra.mxu0 %v7917_v35  ;;  %3031 = vmatpush1.bf16.msra.mxu1 %v7920_v53 }
 0xb22   :  { %2991 = vmatprep.subr.bf16.mxu0 %v7923_v56  ;;  %3032 = vmatprep.subr.bf16.mxu1 %v7926_v5 }
 0xb25   :  { %2992 = vmatpush1.bf16.msra.mxu0 %v7929_v62  ;;  %3033 = vmatpush1.bf16.msra.mxu1 %v7932_v17 }
 0xb26   :  { %2993 = vmatprep.subr.bf16.mxu0 %v7935_v39  ;;  %3034 = vmatprep.subr.bf16.mxu1 %v7938_v27  ;;  %v7956_v27 = vld [vmem:[#allocation7 + $0x88] ss:$16 sps:$4 sm:$0xff]  }
 0xb27   :  { %9897 = vst [vmem:[#allocation124_spill] sm:$0xff] %v7956_v27 }
 0xb29   :  { %2994 = vmatpush1.bf16.msra.mxu0 %v7941_v15  ;;  %3035 = vmatpush1.bf16.msra.mxu1 %v7944_v28  ;;  %v7959_v15 = vld [vmem:[#allocation7 + $0xa4] ss:$16 sps:$4 sm:$0xff]   ;;  %v7962_v28 = vld [vmem:[#allocation7 + $0xac] ss:$16 sps:$4 sm:$0xff]  }
 0xb2a   :  { %2995 = vmatprep.subr.bf16.mxu0 %v7947_v33  ;;  %3036 = vmatprep.subr.bf16.mxu1 %v7950_v37  ;;  %9898 = vst [vmem:[#allocation125_spill] sm:$0xff] %v7959_v15  ;;  %9899 = vst [vmem:[#allocation126_spill] sm:$0xff] %v7962_v28  ;;  %v7965_v33 = vld [vmem:[#allocation7 + $0xa0] ss:$16 sps:$4 sm:$0xff]   ;;  %v7968_v37 = vld [vmem:[#allocation7 + $0xa8] ss:$16 sps:$4 sm:$0xff]  }
 0xb2b   :  { %9900 = vst [vmem:[#allocation127_spill] sm:$0xff] %v7965_v33  ;;  %9901 = vst [vmem:[#allocation128_spill] sm:$0xff] %v7968_v37 }
 0xb2d   :  { %2996 = vmatpush1.bf16.msra.mxu0 %v7953_v59  ;;  %3037 = vmatpush1.bf16.msra.mxu1 %v7956_v27  ;;  %v7971_v59 = vld [vmem:[#allocation7 + $0xc4] ss:$16 sps:$4 sm:$0xff]   ;;  %v7974_v27 = vld [vmem:[#allocation7 + $0xcc] ss:$16 sps:$4 sm:$0xff]  }
 0xb2e   :  { %2997 = vmatprep.subr.bf16.mxu0 %v7959_v15  ;;  %3038 = vmatprep.subr.bf16.mxu1 %v7962_v28  ;;  %9902 = vst [vmem:[#allocation129_spill] sm:$0xff] %v7971_v59  ;;  %9903 = vst [vmem:[#allocation130_spill] sm:$0xff] %v7974_v27  ;;  %v7977_v15 = vld [vmem:[#allocation7 + $0xc0] ss:$16 sps:$4 sm:$0xff]   ;;  %v7980_v28 = vld [vmem:[#allocation7 + $0xc8] ss:$16 sps:$4 sm:$0xff]  }
 0xb2f   :  { %9904 = vst [vmem:[#allocation131_spill] sm:$0xff] %v7977_v15  ;;  %9905 = vst [vmem:[#allocation132_spill] sm:$0xff] %v7980_v28 }
 0xb31   :  { %2998 = vmatpush1.bf16.msra.mxu0 %v7965_v33  ;;  %3039 = vmatpush1.bf16.msra.mxu1 %v7968_v37  ;;  %v7983_v33 = vld [vmem:[#allocation7 + $0xe4] ss:$16 sps:$4 sm:$0xff]   ;;  %v7986_v37 = vld [vmem:[#allocation7 + $0xec] ss:$16 sps:$4 sm:$0xff]  }
 0xb32   :  { %2999 = vmatprep.subr.bf16.mxu0 %v7971_v59  ;;  %3040 = vmatprep.subr.bf16.mxu1 %v7974_v27  ;;  %v7989_v59 = vld [vmem:[#allocation7 + $0xe0] ss:$16 sps:$4 sm:$0xff]   ;;  %v7992_v27 = vld [vmem:[#allocation7 + $0xe8] ss:$16 sps:$4 sm:$0xff]  }
 0xb33   :  { %9906 = vst [vmem:[#allocation133_spill] sm:$0xff] %v7989_v59  ;;  %9907 = vst [vmem:[#allocation134_spill] sm:$0xff] %v7992_v27 }
 0xb35   :  { %3000 = vmatpush1.bf16.msra.mxu0 %v7977_v15  ;;  %3041 = vmatpush1.bf16.msra.mxu1 %v7980_v28  ;;  %v7995_v15 = vld [vmem:[#allocation9 + $0x4] ss:$16 sps:$4 sm:$0xff]   ;;  %v7998_v28 = vld [vmem:[#allocation9 + $0xc] ss:$16 sps:$4 sm:$0xff]  }
 0xb36   :  { %3001 = vmatprep.subr.bf16.mxu0 %v7983_v33  ;;  %3042 = vmatprep.subr.bf16.mxu1 %v7986_v37  ;;  %9908 = vst [vmem:[#allocation135_spill] sm:$0xff] %v7995_v15  ;;  %9909 = vst [vmem:[#allocation37_spill] sm:$0xff] %v7998_v28 }
 0xb39   :  { %3002 = vmatpush1.bf16.msra.mxu0 %v7989_v59  ;;  %3043 = vmatpush1.bf16.msra.mxu1 %v7992_v27  ;;  %v8005_v59 = vld [vmem:[#allocation9] ss:$16 sps:$4 sm:$0xff]   ;;  %v8008_v27 = vld [vmem:[#allocation9 + $0x8] ss:$16 sps:$4 sm:$0xff]  }
 0xb3a   :  { %3105 = vmatprep.subr.bf16.mxu0 %v7995_v15  ;;  %3146 = vmatprep.subr.bf16.mxu1 %v7998_v28  ;;  %9910 = vst [vmem:[#allocation22_spill] sm:$0xff] %v8008_v27  ;;  %v8011_v15 = vld [vmem:[#allocation9 + $0x24] ss:$16 sps:$4 sm:$0xff]   ;;  %v8014_v28 = vld [vmem:[#allocation9 + $0x2c] ss:$16 sps:$4 sm:$0xff]  }
 0xb3c   :  { %3020 = vmatmul.mubr.bf16.vlgmr.msra.gmra.mrb[60].mxu0 %v7684_v22  ;;  %3061 = vmatmul.mubr.bf16.vlgmr.msra.gmra.mrb[60].mxu1 %v7684_v22  ;;  %v8017_v22 = vld [vmem:[#allocation9 + $0x20] ss:$16 sps:$4 sm:$0xff]  }
 0xb3d   :  { %3137 = vmatprep.mubr.bf16.mxu0 %v7899_v36  ;;  %3178 = vmatprep.mubr.bf16.mxu1 %v7899_v36  ;;  %v8021_v36 = vld [vmem:[#allocation9 + $0x44] ss:$16 sps:$4 sm:$0xff]  }
 0xb3e   :  { %3106 = vmatpush1.bf16.msra.mxu0 %v8005_v59  ;;  %3147 = vmatpush1.bf16.msra.mxu1 %v8008_v27  ;;  %v8025_v27 = vld [vmem:[#allocation9 + $0x40] ss:$16 sps:$4 sm:$0xff]  }
 0xb3f   :  { %3107 = vmatprep.subr.bf16.mxu0 %v8011_v15  ;;  %3148 = vmatprep.subr.bf16.mxu1 %v8014_v28 }
 0xb42   :  { %3108 = vmatpush1.bf16.msra.mxu0 %v8017_v22  ;;  %3149 = vmatpush1.bf16.msra.mxu1 %v7476_v26  ;;  %v9911_v26 = vld [vmem:[#allocation26_spill] sm:$0xff] }
 0xb43   :  { %3109 = vmatprep.subr.bf16.mxu0 %v8021_v36  ;;  %3150 = vmatprep.subr.bf16.mxu1 %v7480_v54  ;;  %v9912_v54 = vld [vmem:[#allocation27_spill] sm:$0xff] }
 0xb46   :  { %3110 = vmatpush1.bf16.msra.mxu0 %v8025_v27  ;;  %3151 = vmatpush1.bf16.msra.mxu1 %v7484_v14  ;;  %v9913_v14 = vld [vmem:[#allocation28_spill] sm:$0xff] }
 0xb47   :  { %3111 = vmatprep.subr.bf16.mxu0 %v7487_v10  ;;  %3152 = vmatprep.subr.bf16.mxu1 %v7490_v7  ;;  %v9914_v10 = vld [vmem:[#allocation29_spill] sm:$0xff]  ;;  %v9915_v7 = vld [vmem:[#allocation30_spill] sm:$0xff] }
 0xb4a   :  { %3112 = vmatpush1.bf16.msra.mxu0 %v7493_v0  ;;  %3153 = vmatpush1.bf16.msra.mxu1 %v7496_v20  ;;  %v9916_v0 = vld [vmem:[#allocation31_spill] sm:$0xff]  ;;  %v9917_v20 = vld [vmem:[#allocation32_spill] sm:$0xff] }
 0xb4b   :  { %3113 = vmatprep.subr.bf16.mxu0 %v7499_v24  ;;  %3154 = vmatprep.subr.bf16.mxu1 %v7502_v4  ;;  %v9918_v24 = vld [vmem:[#allocation33_spill] sm:$0xff]  ;;  %v9919_v4 = vld [vmem:[#allocation34_spill] sm:$0xff] }
 0xb4e   :  { %3114 = vmatpush1.bf16.msra.mxu0 %v7505_v60  ;;  %3155 = vmatpush1.bf16.msra.mxu1 %v7508_v21  ;;  %v9920_v60 = vld [vmem:[#allocation35_spill] sm:$0xff]  ;;  %v9921_v21 = vld [vmem:[#allocation36_spill] sm:$0xff] }
 0xb4f   :  { %3115 = vmatprep.subr.bf16.mxu0 %v7511_v61  ;;  %3156 = vmatprep.subr.bf16.mxu1 %v7514_v31  ;;  %v9922_v61 = vld [vmem:[#allocation38_spill] sm:$0xff]  ;;  %v9923_v31 = vld [vmem:[#allocation40_spill] sm:$0xff] }
 0xb52   :  { %3116 = vmatpush1.bf16.msra.mxu0 %v7517_v18  ;;  %3157 = vmatpush1.bf16.msra.mxu1 %v7520_v11  ;;  %v9924_v18 = vld [vmem:[#allocation39_spill] sm:$0xff]  ;;  %v9925_v11 = vld [vmem:[#allocation41_spill] sm:$0xff] }
 0xb53   :  { %3117 = vmatprep.subr.bf16.mxu0 %v7523_v41  ;;  %3158 = vmatprep.subr.bf16.mxu1 %v7526_v49  ;;  %v9926_v41 = vld [vmem:[#allocation42_spill] sm:$0xff]  ;;  %v9927_v49 = vld [vmem:[#allocation43_spill] sm:$0xff] }
 0xb56   :  { %3118 = vmatpush1.bf16.msra.mxu0 %v7529_v3  ;;  %3159 = vmatpush1.bf16.msra.mxu1 %v7532_v32  ;;  %v9928_v3 = vld [vmem:[#allocation44_spill] sm:$0xff]  ;;  %v9929_v32 = vld [vmem:[#allocation45_spill] sm:$0xff] }
 0xb57   :  { %3119 = vmatprep.subr.bf16.mxu0 %v7535_v45  ;;  %3160 = vmatprep.subr.bf16.mxu1 %v7538_v12  ;;  %v9930_v45 = vld [vmem:[#allocation46_spill] sm:$0xff]  ;;  %v9931_v12 = vld [vmem:[#allocation47_spill] sm:$0xff] }
 0xb5a   :  { %3120 = vmatpush1.bf16.msra.mxu0 %v7541_v55  ;;  %3161 = vmatpush1.bf16.msra.mxu1 %v7544_v50  ;;  %v9932_v55 = vld [vmem:[#allocation48_spill] sm:$0xff]  ;;  %v9933_v50 = vld [vmem:[#allocation49_spill] sm:$0xff] }
 0xb5b   :  { %3121 = vmatprep.subr.bf16.mxu0 %v7547_v16  ;;  %3162 = vmatprep.subr.bf16.mxu1 %v7550_v29  ;;  %v9934_v16 = vld [vmem:[#allocation50_spill] sm:$0xff]  ;;  %v9935_v29 = vld [vmem:[#allocation51_spill] sm:$0xff] }
 0xb5e   :  { %3122 = vmatpush1.bf16.msra.mxu0 %v7553_v9  ;;  %3163 = vmatpush1.bf16.msra.mxu1 %v9911_v26  ;;  %v9936_v9 = vld [vmem:[#allocation52_spill] sm:$0xff]  ;;  %v9937_v26 = vld [vmem:[#allocation53_spill] sm:$0xff] }
 0xb5f   :  { %3123 = vmatprep.subr.bf16.mxu0 %v9912_v54  ;;  %3164 = vmatprep.subr.bf16.mxu1 %v9913_v14  ;;  %v9938_v54 = vld [vmem:[#allocation54_spill] sm:$0xff]  ;;  %v9939_v14 = vld [vmem:[#allocation55_spill] sm:$0xff] }
 0xb62   :  { %3124 = vmatpush1.bf16.msra.mxu0 %v9914_v10  ;;  %3165 = vmatpush1.bf16.msra.mxu1 %v9915_v7  ;;  %v9940_v10 = vld [vmem:[#allocation56_spill] sm:$0xff]  ;;  %v9941_v7 = vld [vmem:[#allocation57_spill] sm:$0xff] }
 0xb63   :  { %3125 = vmatprep.subr.bf16.mxu0 %v9916_v0  ;;  %3166 = vmatprep.subr.bf16.mxu1 %v9917_v20 }
 0xb66   :  { %3126 = vmatpush1.bf16.msra.mxu0 %v9918_v24  ;;  %3167 = vmatpush1.bf16.msra.mxu1 %v9919_v4  ;;  %v9942_v24 = vld [vmem:[#allocation18_spill] sm:$0xff] }
 0xb67   :  { %3127 = vmatprep.subr.bf16.mxu0 %v9920_v60  ;;  %3168 = vmatprep.subr.bf16.mxu1 %v9921_v21 }
 0xb6a   :  { %3128 = vmatpush1.bf16.msra.mxu0 %v9922_v61  ;;  %3169 = vmatpush1.bf16.msra.mxu1 %v9923_v31  ;;  %v9943_v61 = vld [vmem:[#allocation19_spill] sm:$0xff] }
 0xb6b   :  { %3129 = vmatprep.subr.bf16.mxu0 %v9924_v18  ;;  %3170 = vmatprep.subr.bf16.mxu1 %v9925_v11 }
 0xb6e   :  { %3130 = vmatpush1.bf16.msra.mxu0 %v9926_v41  ;;  %3171 = vmatpush1.bf16.msra.mxu1 %v9927_v49 }
 0xb6f   :  { %3131 = vmatprep.subr.bf16.mxu0 %v9928_v3  ;;  %3172 = vmatprep.subr.bf16.mxu1 %v9929_v32 }
 0xb72   :  { %3132 = vmatpush1.bf16.msra.mxu0 %v9930_v45  ;;  %3173 = vmatpush1.bf16.msra.mxu1 %v9931_v12  ;;  %v9944_v45 = vld [vmem:[#allocation20_spill] sm:$0xff] }
 0xb73   :  { %3133 = vmatprep.subr.bf16.mxu0 %v9932_v55  ;;  %3174 = vmatprep.subr.bf16.mxu1 %v9933_v50  ;;  %v9945_v50 = vld [vmem:[#allocation21_spill] sm:$0xff] }
 0xb76   :  { %3134 = vmatpush1.bf16.msra.mxu0 %v9934_v16  ;;  %3175 = vmatpush1.bf16.msra.mxu1 %v9935_v29 }
 0xb77   :  { %3135 = vmatprep.subr.bf16.mxu0 %v9936_v9  ;;  %3176 = vmatprep.subr.bf16.mxu1 %v9937_v26 }
 0xb7a   :  { %3136 = vmatpush1.bf16.msra.mxu0 %v9938_v54  ;;  %3177 = vmatpush1.bf16.msra.mxu1 %v9939_v14  ;;  %v2977_v14 = vld [vmem:[#allocation4 + $0x50] sm:$0xff] }
 0xb7b   :  { %3219 = vmatprep.subr.bf16.mxu0 %v9940_v10  ;;  %3260 = vmatprep.subr.bf16.mxu1 %v9941_v7  ;;  %v2979_v10 = vunpack.c.l.bf16 %v2977_v14 }
 0xbef   :  { %v2885_v0 = vpop.f32.mrb[56].mxu0  ;;  %v2926_v20 = vpop.f32.mrb[56].mxu1 }
 0xbf0   :  { %v2933_v4 = vadd.f32 %v2885_v0, %v9942_v24  ;;  %v2887_v60 = vpop.f32.mrb[57].mxu0  ;;  %v2928_v21 = vpop.f32.mrb[57].mxu1  ;;  %v2935_v16 = vadd.f32 %v2926_v20, %v9945_v50  ;;  %v2980_v0 = vunpack.c.h.bf16 %v2977_v14  ;;  %v2978_v20 = vld [vmem:[#allocation4 + $0x58] sm:$0xff] }
 0xbf1   :  { %v2934_v31 = vadd.f32 %v2887_v60, %v9943_v61  ;;  %v2889_v18 = vpop.f32.mrb[58].mxu0  ;;  %v2930_v11 = vpop.f32.mrb[58].mxu1  ;;  %v2936_v12 = vadd.f32 %v2928_v21, %v9944_v45 }
 0xbf2   :  { %v4313_v41 = vmul.f32 -1.442695, %v2933_v4  ;;  %v2890_v49 = vpop.f32.mrb[59].mxu0  ;;  %v2931_v3 = vpop.f32.mrb[59].mxu1  ;;  %v2983_v11 = vadd.f32 %v2979_v10, %v9468_v1 }
 0xbf3   :  { %v4314_v32 = vmul.f32 -1.442695, %v2934_v31  ;;  %v4315_v55 = vmul.f32 -1.442695, %v2936_v12  ;;  %v2984_v49 = vadd.f32 %v2980_v0, %v9829_v34 }
 0xbf4   :  { %4878 = vpow2.f32 %v4313_v41 }
 0xbf5   :  { %4880 = vpow2.f32 %v4314_v32 }
 0xbf6   :  { %4882 = vpow2.f32 %v4315_v55  ;;  %v2982_v55 = vunpack.c.h.bf16 %v2978_v20 }
 0xbf7   :  { %4884 = vtanh.f32 %v2935_v16 }
 0xbfe   :  { %v4879_v29 = vpop.eup %4878 }
 0xbff   :  { %v4881_v9 = vpop.eup %4880  ;;  %v2946_v26 = vadd.f32 1.0, %v4879_v29 }
 0xc00   :  { %v2947_v54 = vadd.f32 1.0, %v4881_v9  ;;  %v4883_v7 = vpop.eup %4882 }
 0xc01   :  { %4886 = vrcp.f32 %v2946_v26  ;;  %v4885_v4 = vpop.eup %4884  ;;  %v2948_v21 = vadd.f32 1.0, %v4883_v7 }
 0xc02   :  { %4888 = vrcp.f32 %v2947_v54 }
 0xc03   :  { %4890 = vrcp.f32 %v2948_v21 }
 0xc0b   :  { %v4887_v60 = vpop.eup %4886 }
 0xc0c   :  { %v4889_v31 = vpop.eup %4888  ;;  %v2957_v18 = vmul.f32 %v4887_v60, %v4885_v4 }
 0xc0d   :  { %v2956_v41 = vmul.f32 %v4889_v31, %v7659_v8  ;;  %v2986_v31 = vadd.f32 %v2982_v55, %v6040_v43 }
 0xc0f   :  { %v2958_v3 = vadd.f32 %v2957_v18, %v2956_v41  ;;  %v3021_v32 = vpop.f32.mrb[60].mxu0  ;;  %v3062_v12 = vpop.f32.mrb[60].mxu1  ;;  %v2981_v18 = vunpack.c.l.bf16 %v2978_v20 }
 0xc10   :  { %v3069_v16 = vadd.f32 %v3021_v32, %v2983_v11  ;;  %v3023_v29 = vpop.f32.mrb[61].mxu0  ;;  %v3064_v9 = vpop.f32.mrb[61].mxu1 }
 0xc11   :  { %4892 = vtanh.f32 %v2958_v3  ;;  %v3070_v26 = vadd.f32 %v3023_v29, %v2984_v49  ;;  %v3025_v54 = vpop.f32.mrb[62].mxu0  ;;  %v3066_v14 = vpop.f32.mrb[62].mxu1  ;;  %v8093_v10 = vsel %vm2733_vm13, %v2958_v3, %v7659_v8  ;;  %v3072_v21 = vadd.f32 %v3064_v9, %v2986_v31 }
 0xc12   :  { %v4318_v7 = vmul.f32 -1.442695, %v3069_v16  ;;  %v3026_v4 = vpop.f32.mrb[63].mxu0  ;;  %v3067_v0 = vpop.f32.mrb[63].mxu1  ;;  %v2985_v11 = vadd.f32 %v2981_v18, %v9472_v30 }
 0xc13   :  { %v4319_v60 = vmul.f32 -1.442695, %v3070_v26  ;;  %v4891_v41 = vpop.eup %4890  ;;  %v8097_v49 = vpop.permute.xlu0 %4405  ;;  %v4320_v29 = vmul.f32 -1.442695, %v3072_v21  ;;  %v9946_v21 = vld [vmem:[#allocation24_spill] sm:$0xff] }
 0xc14   :  { %4894 = vpow2.f32 %v4318_v7  ;;  %v3071_v54 = vadd.f32 %v3062_v12, %v2985_v11  ;;  %v4407_v3 = vunpack.i.l.bf16 %v8097_v49  ;;  %vm3101_vm14 = vcmp.eq.s32.totalorder %v9946_v21, 1 }
 0xc15   :  { %4896 = vpow2.f32 %v4319_v60 }
 0xc16   :  { %4898 = vpow2.f32 %v4320_v29 }
 0xc17   :  { %4900 = vtanh.f32 %v3071_v54 }
 0xc1b   :  { %v4893_v32 = vpop.eup %4892 }
 0xc1c   :  { %v2960_v8 = vmul.f32 %v4893_v32, %v4891_v41 }
 0xc1e   :  { %v4895_v16 = vpop.eup %4894  ;;  %v8103_v55 = vsel %vm2733_vm13, %v2960_v8, %v7667_v63 }
 0xc1f   :  { %v4897_v20 = vpop.eup %4896  ;;  %v3082_v26 = vadd.f32 1.0, %v4895_v16  ;;  %v2969_v9 = vmul.f32 %v4407_v3, %v8103_v55  ;;  %v3218_v3 = vpack.c.bf16 %v8103_v55, %v8103_v55  ;;  %v9949_v16 = vld [vmem:[#allocation60_spill] sm:$0xff] }
 0xc20   :  { %v3083_v14 = vadd.f32 1.0, %v4897_v20  ;;  %v4899_v12 = vpop.eup %4898  ;;  %v9950_v20 = vld [vmem:[#allocation61_spill] sm:$0xff] }
 0xc21   :  { %4902 = vrcp.f32 %v3082_v26  ;;  %v2970_v7 = vpack.c.bf16 %v2969_v9, %v2969_v9  ;;  %v4901_v4 = vpop.eup %4900  ;;  %v3084_v18 = vadd.f32 1.0, %v4899_v12  ;;  %v9951_v26 = vld [vmem:[#allocation62_spill] sm:$0xff]  ;;  %v9952_v9 = vld [vmem:[#allocation63_spill] sm:$0xff] }
 0xc22   :  { %4904 = vrcp.f32 %v3083_v14  ;;  %v9953_v14 = vld [vmem:[#allocation64_spill] sm:$0xff]  ;;  %v9959_v12 = vld [vmem:[#allocation70_spill] sm:$0xff] }
 0xc23   :  { %2972 = vst [vmem:[#allocation12 + $0x10] sm:$0xf] %v2970_v7  ;;  %4906 = vrcp.f32 %v3084_v18  ;;  %v9958_v7 = vld [vmem:[#allocation69_spill] sm:$0xff]  ;;  %v9964_v18 = vld [vmem:[#allocation75_spill] sm:$0xff] }
 0xc2b   :  { %v4903_v0 = vpop.eup %4902 }
 0xc2c   :  { %v4905_v60 = vpop.eup %4904  ;;  %v3093_v31 = vmul.f32 %v4903_v0, %v4901_v4  ;;  %v9960_v4 = vld [vmem:[#allocation71_spill] sm:$0xff]  ;;  %v9961_v0 = vld [vmem:[#allocation72_spill] sm:$0xff] }
 0xc2d   :  { %v3092_v63 = vmul.f32 %v4905_v60, %v7675_v57  ;;  %v4907_v41 = vpop.eup %4906  ;;  %v9962_v60 = vld [vmem:[#allocation73_spill] sm:$0xff] }
 0xc2f   :  { %v3094_v13 = vadd.f32 %v3093_v31, %v3092_v63  ;;  %v9963_v31 = vld [vmem:[#allocation74_spill] sm:$0xff]  ;;  %v9965_v63 = vld [vmem:[#allocation76_spill] sm:$0xff] }
 0xc31   :  { %4908 = vtanh.f32 %v3094_v13  ;;  %v8111_v11 = vsel %vm3101_vm14, %v3094_v13, %v7675_v57  ;;  %v9947_v57 = vld [vmem:[#allocation58_spill] sm:$0xff]  ;;  %v9966_v13 = vld [vmem:[#allocation77_spill] sm:$0xff] }
 0xc3b   :  { %v4909_v32 = vpop.eup %4908 }
 0xc3c   :  { %v3096_v29 = vmul.f32 %v4909_v32, %v4907_v41  ;;  %v9967_v41 = vld [vmem:[#allocation78_spill] sm:$0xff]  ;;  %v9968_v32 = vld [vmem:[#allocation79_spill] sm:$0xff] }
 0xc3e   :  { %v8116_v54 = vsel %vm3101_vm14, %v3096_v29, %v7680_v23  ;;  %v9948_v23 = vld [vmem:[#allocation59_spill] sm:$0xff]  ;;  %v9969_v29 = vld [vmem:[#allocation80_spill] sm:$0xff] }
 0xc3f   :  { %v8120_v8 = vpack.c.bf16 %v8116_v54, %v8116_v54 }
 0xc41   :  { %3138 = vmatmul.mubr.bf16.vlgmr.msra.gmra.mrb[64].mxu0 %v8120_v8  ;;  %3179 = vmatmul.mubr.bf16.vlgmr.msra.gmra.mrb[64].mxu1 %v8120_v8 }
 0xc42   :  { %3251 = vmatprep.mubr.bf16.mxu0 %v3218_v3  ;;  %3292 = vmatprep.mubr.bf16.mxu1 %v3218_v3  ;;  %v9970_v3 = vld [vmem:[#allocation81_spill] sm:$0xff] }
 0xc43   :  { %3220 = vmatpush1.bf16.msra.mxu0 %v7690_v48  ;;  %3261 = vmatpush1.bf16.msra.mxu1 %v7693_v42  ;;  %v9954_v48 = vld [vmem:[#allocation65_spill] sm:$0xff]  ;;  %v9955_v42 = vld [vmem:[#allocation66_spill] sm:$0xff] }
 0xc44   :  { %3221 = vmatprep.subr.bf16.mxu0 %v7696_v6  ;;  %3262 = vmatprep.subr.bf16.mxu1 %v7699_v19  ;;  %v9956_v6 = vld [vmem:[#allocation67_spill] sm:$0xff]  ;;  %v9957_v19 = vld [vmem:[#allocation68_spill] sm:$0xff] }
 0xc47   :  { %3222 = vmatpush1.bf16.msra.mxu0 %v9947_v57  ;;  %3263 = vmatpush1.bf16.msra.mxu1 %v9948_v23  ;;  %v9971_v57 = vld [vmem:[#allocation82_spill] sm:$0xff]  ;;  %v9972_v23 = vld [vmem:[#allocation83_spill] sm:$0xff] }
 0xc48   :  { %3223 = vmatprep.subr.bf16.mxu0 %v9949_v16  ;;  %3264 = vmatprep.subr.bf16.mxu1 %v9950_v20  ;;  %v9973_v16 = vld [vmem:[#allocation84_spill] sm:$0xff]  ;;  %v9974_v20 = vld [vmem:[#allocation85_spill] sm:$0xff] }
 0xc4b   :  { %3224 = vmatpush1.bf16.msra.mxu0 %v9951_v26  ;;  %3265 = vmatpush1.bf16.msra.mxu1 %v9952_v9  ;;  %v9975_v26 = vld [vmem:[#allocation86_spill] sm:$0xff]  ;;  %v9976_v9 = vld [vmem:[#allocation87_spill] sm:$0xff] }
 0xc4c   :  { %3225 = vmatprep.subr.bf16.mxu0 %v9953_v14  ;;  %3266 = vmatprep.subr.bf16.mxu1 %v9954_v48  ;;  %v9977_v14 = vld [vmem:[#allocation88_spill] sm:$0xff]  ;;  %v9978_v48 = vld [vmem:[#allocation89_spill] sm:$0xff] }
 0xc4f   :  { %3226 = vmatpush1.bf16.msra.mxu0 %v9955_v42  ;;  %3267 = vmatpush1.bf16.msra.mxu1 %v9956_v6  ;;  %v9979_v42 = vld [vmem:[#allocation90_spill] sm:$0xff]  ;;  %v9980_v6 = vld [vmem:[#allocation91_spill] sm:$0xff] }
 0xc50   :  { %3227 = vmatprep.subr.bf16.mxu0 %v9957_v19  ;;  %3268 = vmatprep.subr.bf16.mxu1 %v9958_v7  ;;  %v9981_v19 = vld [vmem:[#allocation92_spill] sm:$0xff]  ;;  %v9982_v7 = vld [vmem:[#allocation93_spill] sm:$0xff] }
 0xc53   :  { %3228 = vmatpush1.bf16.msra.mxu0 %v9959_v12  ;;  %3269 = vmatpush1.bf16.msra.mxu1 %v9960_v4  ;;  %v9983_v12 = vld [vmem:[#allocation94_spill] sm:$0xff]  ;;  %v9984_v4 = vld [vmem:[#allocation95_spill] sm:$0xff] }
 0xc54   :  { %3229 = vmatprep.subr.bf16.mxu0 %v9961_v0  ;;  %3270 = vmatprep.subr.bf16.mxu1 %v9962_v60  ;;  %v9985_v0 = vld [vmem:[#allocation96_spill] sm:$0xff]  ;;  %v9986_v60 = vld [vmem:[#allocation97_spill] sm:$0xff] }
 0xc57   :  { %3230 = vmatpush1.bf16.msra.mxu0 %v9963_v31  ;;  %3271 = vmatpush1.bf16.msra.mxu1 %v9964_v18  ;;  %v9987_v31 = vld [vmem:[#allocation98_spill] sm:$0xff]  ;;  %v9988_v18 = vld [vmem:[#allocation99_spill] sm:$0xff] }
 0xc58   :  { %3231 = vmatprep.subr.bf16.mxu0 %v9965_v63  ;;  %3272 = vmatprep.subr.bf16.mxu1 %v9966_v13  ;;  %v9989_v63 = vld [vmem:[#allocation100_spill] sm:$0xff]  ;;  %v9990_v13 = vld [vmem:[#allocation101_spill] sm:$0xff] }
 0xc5b   :  { %3232 = vmatpush1.bf16.msra.mxu0 %v9967_v41  ;;  %3273 = vmatpush1.bf16.msra.mxu1 %v9968_v32  ;;  %v9991_v41 = vld [vmem:[#allocation102_spill] sm:$0xff]  ;;  %v9992_v32 = vld [vmem:[#allocation103_spill] sm:$0xff] }
 0xc5c   :  { %3233 = vmatprep.subr.bf16.mxu0 %v9969_v29  ;;  %3274 = vmatprep.subr.bf16.mxu1 %v9970_v3  ;;  %v9993_v29 = vld [vmem:[#allocation104_spill] sm:$0xff]  ;;  %v9994_v3 = vld [vmem:[#allocation105_spill] sm:$0xff] }
 0xc5f   :  { %3234 = vmatpush1.bf16.msra.mxu0 %v9971_v57  ;;  %3275 = vmatpush1.bf16.msra.mxu1 %v9972_v23  ;;  %v9995_v57 = vld [vmem:[#allocation17_spill] sm:$0xff]  ;;  %v9996_v23 = vld [vmem:[#allocation107_spill] sm:$0xff] }
 0xc60   :  { %3235 = vmatprep.subr.bf16.mxu0 %v9973_v16  ;;  %3276 = vmatprep.subr.bf16.mxu1 %v9974_v20  ;;  %v9997_v16 = vld [vmem:[#allocation108_spill] sm:$0xff]  ;;  %v9998_v20 = vld [vmem:[#allocation109_spill] sm:$0xff] }
 0xc63   :  { %3236 = vmatpush1.bf16.msra.mxu0 %v9975_v26  ;;  %3277 = vmatpush1.bf16.msra.mxu1 %v9976_v9  ;;  %v9999_v26 = vld [vmem:[#allocation110_spill] sm:$0xff]  ;;  %v10000_v9 = vld [vmem:[#allocation111_spill] sm:$0xff] }
 0xc64   :  { %3237 = vmatprep.subr.bf16.mxu0 %v9977_v14  ;;  %3278 = vmatprep.subr.bf16.mxu1 %v9978_v48  ;;  %v10001_v14 = vld [vmem:[#allocation112_spill] sm:$0xff]  ;;  %v10002_v48 = vld [vmem:[#allocation113_spill] sm:$0xff] }
 0xc67   :  { %3238 = vmatpush1.bf16.msra.mxu0 %v9979_v42  ;;  %3279 = vmatpush1.bf16.msra.mxu1 %v9980_v6  ;;  %v10003_v42 = vld [vmem:[#allocation114_spill] sm:$0xff]  ;;  %v10004_v6 = vld [vmem:[#allocation115_spill] sm:$0xff] }
 0xc68   :  { %3239 = vmatprep.subr.bf16.mxu0 %v9981_v19  ;;  %3280 = vmatprep.subr.bf16.mxu1 %v9982_v7  ;;  %v10005_v19 = vld [vmem:[#allocation116_spill] sm:$0xff]  ;;  %v10006_v7 = vld [vmem:[#allocation117_spill] sm:$0xff] }
 0xc6b   :  { %3240 = vmatpush1.bf16.msra.mxu0 %v9983_v12  ;;  %3281 = vmatpush1.bf16.msra.mxu1 %v9984_v4 }
 0xc6c   :  { %3241 = vmatprep.subr.bf16.mxu0 %v9985_v0  ;;  %3282 = vmatprep.subr.bf16.mxu1 %v9986_v60  ;;  %v10007_v0 = vld [vmem:[#allocation106_spill] sm:$0xff] }
 0xc6f   :  { %3242 = vmatpush1.bf16.msra.mxu0 %v9987_v31  ;;  %3283 = vmatpush1.bf16.msra.mxu1 %v9988_v18 }
 0xc70   :  { %3243 = vmatprep.subr.bf16.mxu0 %v9989_v63  ;;  %3284 = vmatprep.subr.bf16.mxu1 %v9990_v13 }
 0xc73   :  { %3244 = vmatpush1.bf16.msra.mxu0 %v9991_v41  ;;  %3285 = vmatpush1.bf16.msra.mxu1 %v9992_v32 }
 0xc74   :  { %3245 = vmatprep.subr.bf16.mxu0 %v9993_v29  ;;  %3286 = vmatprep.subr.bf16.mxu1 %v9994_v3 }
 0xc77   :  { %3246 = vmatpush1.bf16.msra.mxu0 %v9995_v57  ;;  %3287 = vmatpush1.bf16.msra.mxu1 %v9996_v23 }
 0xc78   :  { %3247 = vmatprep.subr.bf16.mxu0 %v9997_v16  ;;  %3288 = vmatprep.subr.bf16.mxu1 %v9998_v20 }
 0xc7b   :  { %3248 = vmatpush1.bf16.msra.mxu0 %v9999_v26  ;;  %3289 = vmatpush1.bf16.msra.mxu1 %v10000_v9 }
 0xc7c   :  { %3249 = vmatprep.subr.bf16.mxu0 %v10001_v14  ;;  %3290 = vmatprep.subr.bf16.mxu1 %v10002_v48 }
 0xc7f   :  { %3250 = vmatpush1.bf16.msra.mxu0 %v10003_v42  ;;  %3291 = vmatpush1.bf16.msra.mxu1 %v10004_v6 }
 0xc80   :  { %3355 = vmatprep.subr.bf16.mxu0 %v10005_v19  ;;  %3396 = vmatprep.subr.bf16.mxu1 %v10006_v7 }
 0xd14   :  { %v3139_v12 = vpop.f32.mrb[64].mxu0  ;;  %v3180_v4 = vpop.f32.mrb[64].mxu1 }
 0xd15   :  { %v3187_v60 = vadd.f32 %v3139_v12, %v10007_v0  ;;  %v3141_v31 = vpop.f32.mrb[65].mxu0  ;;  %v3182_v18 = vpop.f32.mrb[65].mxu1  ;;  %v3189_v20 = vadd.f32 %v3180_v4, %v6284_v25 }
 0xd16   :  { %v3188_v63 = vadd.f32 %v3141_v31, %v6275_v52  ;;  %v3143_v13 = vpop.f32.mrb[66].mxu0  ;;  %v3184_v41 = vpop.f32.mrb[66].mxu1  ;;  %v3190_v23 = vadd.f32 %v3182_v18, %v9543_v47 }
 0xd17   :  { %v4321_v32 = vmul.f32 -1.442695, %v3187_v60  ;;  %v3144_v29 = vpop.f32.mrb[67].mxu0  ;;  %v3185_v3 = vpop.f32.mrb[67].mxu1 }
 0xd18   :  { %v4322_v57 = vmul.f32 -1.442695, %v3188_v63  ;;  %v4323_v16 = vmul.f32 -1.442695, %v3190_v23  ;;  %v10021_v3 = vld [vmem:[#allocation131_spill] sm:$0xff]  ;;  %v10023_v23 = vld [vmem:[#allocation133_spill] sm:$0xff] }
 0xd19   :  { %4910 = vpow2.f32 %v4321_v32 }
 0xd1a   :  { %4912 = vpow2.f32 %v4322_v57  ;;  %v10022_v57 = vld [vmem:[#allocation132_spill] sm:$0xff] }
 0xd1b   :  { %4914 = vpow2.f32 %v4323_v16  ;;  %v10024_v16 = vld [vmem:[#allocation134_spill] sm:$0xff] }
 0xd1c   :  { %4916 = vtanh.f32 %v3189_v20  ;;  %v10025_v20 = vld [vmem:[#allocation135_spill] sm:$0xff] }
 0xd23   :  { %v4911_v26 = vpop.eup %4910 }
 0xd24   :  { %v4913_v9 = vpop.eup %4912  ;;  %v3200_v14 = vadd.f32 1.0, %v4911_v26  ;;  %v10026_v26 = vld [vmem:[#allocation37_spill] sm:$0xff] }
 0xd25   :  { %v3201_v48 = vadd.f32 1.0, %v4913_v9  ;;  %v4915_v42 = vpop.eup %4914  ;;  %v10027_v9 = vld [vmem:[#allocation22_spill] sm:$0xff] }
 0xd26   :  { %4918 = vrcp.f32 %v3200_v14  ;;  %v4917_v6 = vpop.eup %4916  ;;  %v3202_v60 = vadd.f32 1.0, %v4915_v42  ;;  %v8277_v14 = vld [vmem:[#allocation9 + $0x80] ss:$16 sps:$4 sm:$0xff]   ;;  %v8283_v42 = vld [vmem:[#allocation9 + $0xa4] ss:$16 sps:$4 sm:$0xff]  }
 0xd27   :  { %4920 = vrcp.f32 %v3201_v48  ;;  %v8280_v48 = vld [vmem:[#allocation9 + $0x88] ss:$16 sps:$4 sm:$0xff]  }
 0xd28   :  { %4922 = vrcp.f32 %v3202_v60  ;;  %v8298_v60 = vld [vmem:[#allocation9 + $0xcc] ss:$16 sps:$4 sm:$0xff]  }
 0xd30   :  { %v4919_v19 = vpop.eup %4918 }
 0xd31   :  { %v4921_v7 = vpop.eup %4920  ;;  %v3211_v12 = vmul.f32 %v4919_v19, %v4917_v6  ;;  %v8286_v6 = vld [vmem:[#allocation9 + $0xac] ss:$16 sps:$4 sm:$0xff]   ;;  %v8289_v19 = vld [vmem:[#allocation9 + $0xa0] ss:$16 sps:$4 sm:$0xff]  }
 0xd32   :  { %v3210_v31 = vmul.f32 %v4921_v7, %v7890_v44  ;;  %v4923_v63 = vpop.eup %4922  ;;  %v8292_v7 = vld [vmem:[#allocation9 + $0xa8] ss:$16 sps:$4 sm:$0xff]  }
 0xd34   :  { %v3212_v18 = vadd.f32 %v3211_v12, %v3210_v31  ;;  %v8295_v12 = vld [vmem:[#allocation9 + $0xc4] ss:$16 sps:$4 sm:$0xff]   ;;  %v8301_v31 = vld [vmem:[#allocation9 + $0xc0] ss:$16 sps:$4 sm:$0xff]  }
 0xd36   :  { %4924 = vtanh.f32 %v3212_v18  ;;  %v8198_v4 = vsel %vm3101_vm14, %v3212_v18, %v7890_v44  ;;  %v10008_v44 = vld [vmem:[#allocation118_spill] sm:$0xff] }
 0xd37   :  { %v8304_v18 = vld [vmem:[#allocation9 + $0xc8] ss:$16 sps:$4 sm:$0xff]  }
 0xd40   :  { %v4925_v13 = vpop.eup %4924 }
 0xd41   :  { %v3214_v41 = vmul.f32 %v4925_v13, %v4923_v63  ;;  %v8307_v63 = vld [vmem:[#allocation9 + $0xe4] ss:$16 sps:$4 sm:$0xff]   ;;  %v8310_v13 = vld [vmem:[#allocation9 + $0xec] ss:$16 sps:$4 sm:$0xff]  }
 0xd43   :  { %v8203_v32 = vsel %vm3101_vm14, %v3214_v41, %v7895_v2  ;;  %v10009_v2 = vld [vmem:[#allocation119_spill] sm:$0xff] }
 0xd44   :  { %v3217_v29 = vpack.c.bf16 %v8203_v32, %v8203_v32  ;;  %v8313_v41 = vld [vmem:[#allocation9 + $0xe0] ss:$16 sps:$4 sm:$0xff]  }
 0xd46   :  { %3252 = vmatmul.mubr.bf16.vlgmr.msra.gmra.mrb[68].mxu0 %v3217_v29  ;;  %3293 = vmatmul.mubr.bf16.vlgmr.msra.gmra.mrb[68].mxu1 %v3217_v29 }
 0xd47   :  { %3356 = vmatpush1.bf16.msra.mxu0 %v7903_v40  ;;  %3397 = vmatpush1.bf16.msra.mxu1 %v7906_v46  ;;  %v10010_v40 = vld [vmem:[#allocation120_spill] sm:$0xff]  ;;  %v10011_v46 = vld [vmem:[#allocation121_spill] sm:$0xff] }
 0xd48   :  { %3357 = vmatprep.subr.bf16.mxu0 %v7909_v51  ;;  %3398 = vmatprep.subr.bf16.mxu1 %v7912_v58  ;;  %v10012_v51 = vld [vmem:[#allocation122_spill] sm:$0xff]  ;;  %v10013_v58 = vld [vmem:[#allocation123_spill] sm:$0xff] }
 0xd49   :  { %3387 = vmatprep.mubr.bf16.mxu0 %v9420_v38  ;;  %3428 = vmatprep.mubr.bf16.mxu1 %v9420_v38 }
 0xd4b   :  { %3358 = vmatpush1.bf16.msra.mxu0 %v7917_v35  ;;  %3399 = vmatpush1.bf16.msra.mxu1 %v7920_v53  ;;  %v10014_v35 = vld [vmem:[#allocation124_spill] sm:$0xff]  ;;  %v10015_v53 = vld [vmem:[#allocation125_spill] sm:$0xff] }
 0xd4c   :  { %3359 = vmatprep.subr.bf16.mxu0 %v7923_v56  ;;  %3400 = vmatprep.subr.bf16.mxu1 %v7926_v5  ;;  %v10016_v56 = vld [vmem:[#allocation126_spill] sm:$0xff]  ;;  %v10017_v5 = vld [vmem:[#allocation127_spill] sm:$0xff] }
 0xd4f   :  { %3360 = vmatpush1.bf16.msra.mxu0 %v7929_v62  ;;  %3401 = vmatpush1.bf16.msra.mxu1 %v7932_v17  ;;  %v10018_v62 = vld [vmem:[#allocation128_spill] sm:$0xff]  ;;  %v10019_v17 = vld [vmem:[#allocation129_spill] sm:$0xff] }
 0xd50   :  { %3361 = vmatprep.subr.bf16.mxu0 %v7935_v39  ;;  %3402 = vmatprep.subr.bf16.mxu1 %v10008_v44  ;;  %v10020_v39 = vld [vmem:[#allocation130_spill] sm:$0xff]  ;;  %v8319_v44 = vld [vmem:[#allocation9 + $0x104] ss:$16 sps:$4 sm:$0xff]  }
 0xd53   :  { %3362 = vmatpush1.bf16.msra.mxu0 %v10009_v2  ;;  %3403 = vmatpush1.bf16.msra.mxu1 %v10010_v40  ;;  %v8322_v2 = vld [vmem:[#allocation9 + $0x10c] ss:$16 sps:$4 sm:$0xff]   ;;  %v8325_v40 = vld [vmem:[#allocation9 + $0x100] ss:$16 sps:$4 sm:$0xff]  }
 0xd54   :  { %3363 = vmatprep.subr.bf16.mxu0 %v10011_v46  ;;  %3404 = vmatprep.subr.bf16.mxu1 %v10012_v51  ;;  %v8328_v46 = vld [vmem:[#allocation9 + $0x108] ss:$16 sps:$4 sm:$0xff]   ;;  %v8331_v51 = vld [vmem:[#allocation9 + $0x124] ss:$16 sps:$4 sm:$0xff]  }
 0xd55   :  { %10028 = vst [vmem:[#allocation26_spill] sm:$0xff] %v8328_v46  ;;  %10029 = vst [vmem:[#allocation27_spill] sm:$0xff] %v8331_v51 }
 0xd57   :  { %3364 = vmatpush1.bf16.msra.mxu0 %v10013_v58  ;;  %3405 = vmatpush1.bf16.msra.mxu1 %v10014_v35  ;;  %v8334_v58 = vld [vmem:[#allocation9 + $0x12c] ss:$16 sps:$4 sm:$0xff]   ;;  %v8337_v35 = vld [vmem:[#allocation9 + $0x120] ss:$16 sps:$4 sm:$0xff]  }
 0xd58   :  { %3365 = vmatprep.subr.bf16.mxu0 %v10015_v53  ;;  %3406 = vmatprep.subr.bf16.mxu1 %v10016_v56  ;;  %10030 = vst [vmem:[#allocation28_spill] sm:$0xff] %v8334_v58  ;;  %10031 = vst [vmem:[#allocation29_spill] sm:$0xff] %v8337_v35  ;;  %v8340_v53 = vld [vmem:[#allocation9 + $0x128] ss:$16 sps:$4 sm:$0xff]   ;;  %v8343_v56 = vld [vmem:[#allocation9 + $0x144] ss:$16 sps:$4 sm:$0xff]  }
 0xd59   :  { %10032 = vst [vmem:[#allocation30_spill] sm:$0xff] %v8340_v53  ;;  %10033 = vst [vmem:[#allocation31_spill] sm:$0xff] %v8343_v56 }
 0xd5b   :  { %3366 = vmatpush1.bf16.msra.mxu0 %v10017_v5  ;;  %3407 = vmatpush1.bf16.msra.mxu1 %v10018_v62  ;;  %v8346_v5 = vld [vmem:[#allocation9 + $0x14c] ss:$16 sps:$4 sm:$0xff]   ;;  %v8349_v62 = vld [vmem:[#allocation9 + $0x140] ss:$16 sps:$4 sm:$0xff]  }
 0xd5c   :  { %3367 = vmatprep.subr.bf16.mxu0 %v10019_v17  ;;  %3408 = vmatprep.subr.bf16.mxu1 %v10020_v39  ;;  %10034 = vst [vmem:[#allocation32_spill] sm:$0xff] %v8346_v5  ;;  %10035 = vst [vmem:[#allocation33_spill] sm:$0xff] %v8349_v62  ;;  %v8352_v17 = vld [vmem:[#allocation9 + $0x148] ss:$16 sps:$4 sm:$0xff]   ;;  %v8355_v39 = vld [vmem:[#allocation9 + $0x164] ss:$16 sps:$4 sm:$0xff]  }
 0xd5d   :  { %10036 = vst [vmem:[#allocation34_spill] sm:$0xff] %v8352_v17  ;;  %10037 = vst [vmem:[#allocation35_spill] sm:$0xff] %v8355_v39 }
 0xd5f   :  { %3368 = vmatpush1.bf16.msra.mxu0 %v10021_v3  ;;  %3409 = vmatpush1.bf16.msra.mxu1 %v10022_v57  ;;  %v8358_v3 = vld [vmem:[#allocation9 + $0x16c] ss:$16 sps:$4 sm:$0xff]   ;;  %v8361_v57 = vld [vmem:[#allocation9 + $0x160] ss:$16 sps:$4 sm:$0xff]  }
 0xd60   :  { %3369 = vmatprep.subr.bf16.mxu0 %v7983_v33  ;;  %3410 = vmatprep.subr.bf16.mxu1 %v7986_v37  ;;  %v8248_v33 = vld [vmem:[#allocation9 + $0x28] ss:$16 sps:$4 sm:$0xff]   ;;  %v8252_v37 = vld [vmem:[#allocation9 + $0x4c] ss:$16 sps:$4 sm:$0xff]   ;;  %10038 = vst [vmem:[#allocation36_spill] sm:$0xff] %v8358_v3  ;;  %10039 = vst [vmem:[#allocation38_spill] sm:$0xff] %v8361_v57 }
 0xd63   :  { %3370 = vmatpush1.bf16.msra.mxu0 %v10023_v23  ;;  %3411 = vmatpush1.bf16.msra.mxu1 %v10024_v16  ;;  %v8364_v23 = vld [vmem:[#allocation9 + $0x168] ss:$16 sps:$4 sm:$0xff]   ;;  %v8367_v16 = vld [vmem:[#allocation9 + $0x184] ss:$16 sps:$4 sm:$0xff]  }
 0xd64   :  { %3473 = vmatprep.subr.bf16.mxu0 %v10025_v20  ;;  %3514 = vmatprep.subr.bf16.mxu1 %v10026_v26  ;;  %10040 = vst [vmem:[#allocation40_spill] sm:$0xff] %v8364_v23  ;;  %10041 = vst [vmem:[#allocation39_spill] sm:$0xff] %v8367_v16  ;;  %v8370_v20 = vld [vmem:[#allocation9 + $0x18c] ss:$16 sps:$4 sm:$0xff]   ;;  %v8373_v26 = vld [vmem:[#allocation9 + $0x180] ss:$16 sps:$4 sm:$0xff]  }
 0xd65   :  { %10042 = vst [vmem:[#allocation41_spill] sm:$0xff] %v8370_v20  ;;  %10043 = vst [vmem:[#allocation42_spill] sm:$0xff] %v8373_v26 }
 0xd66   :  { %3388 = vmatmul.mubr.bf16.vlgmr.msra.gmra.mrb[72].mxu0 %v8120_v8  ;;  %3429 = vmatmul.mubr.bf16.vlgmr.msra.gmra.mrb[72].mxu1 %v8120_v8  ;;  %v8274_v8 = vld [vmem:[#allocation9 + $0x8c] ss:$16 sps:$4 sm:$0xff]  }
 0xd67   :  { %3505 = vmatprep.mubr.bf16.mxu0 %v3217_v29  ;;  %3546 = vmatprep.mubr.bf16.mxu1 %v3217_v29  ;;  %v8316_v29 = vld [vmem:[#allocation9 + $0xe8] ss:$16 sps:$4 sm:$0xff]  }
 0xd68   :  { %3474 = vmatpush1.bf16.msra.mxu0 %v8005_v59  ;;  %3515 = vmatpush1.bf16.msra.mxu1 %v10027_v9  ;;  %v8256_v59 = vld [vmem:[#allocation9 + $0x48] ss:$16 sps:$4 sm:$0xff]  }
 0xd69   :  { %3475 = vmatprep.subr.bf16.mxu0 %v8011_v15  ;;  %3516 = vmatprep.subr.bf16.mxu1 %v8014_v28  ;;  %v8259_v15 = vld [vmem:[#allocation9 + $0x64] ss:$16 sps:$4 sm:$0xff]   ;;  %v8262_v28 = vld [vmem:[#allocation9 + $0x6c] ss:$16 sps:$4 sm:$0xff]   ;;  %v8376_v9 = vld [vmem:[#allocation9 + $0x188] ss:$16 sps:$4 sm:$0xff]  }
 0xd6a   :  { %10044 = vst [vmem:[#allocation43_spill] sm:$0xff] %v8376_v9 }
 0xd6c   :  { %3476 = vmatpush1.bf16.msra.mxu0 %v8017_v22  ;;  %3517 = vmatpush1.bf16.msra.mxu1 %v8248_v33  ;;  %v8265_v22 = vld [vmem:[#allocation9 + $0x60] ss:$16 sps:$4 sm:$0xff]  }
 0xd6d   :  { %3477 = vmatprep.subr.bf16.mxu0 %v8021_v36  ;;  %3518 = vmatprep.subr.bf16.mxu1 %v8252_v37  ;;  %v8268_v36 = vld [vmem:[#allocation9 + $0x68] ss:$16 sps:$4 sm:$0xff]  }
 0xd70   :  { %3478 = vmatpush1.bf16.msra.mxu0 %v8025_v27  ;;  %3519 = vmatpush1.bf16.msra.mxu1 %v8256_v59  ;;  %v8271_v27 = vld [vmem:[#allocation9 + $0x84] ss:$16 sps:$4 sm:$0xff]  }
 0xd71   :  { %3479 = vmatprep.subr.bf16.mxu0 %v8259_v15  ;;  %3520 = vmatprep.subr.bf16.mxu1 %v8262_v28 }
 0xd74   :  { %3480 = vmatpush1.bf16.msra.mxu0 %v8265_v22  ;;  %3521 = vmatpush1.bf16.msra.mxu1 %v8268_v36 }
 0xd75   :  { %3481 = vmatprep.subr.bf16.mxu0 %v8271_v27  ;;  %3522 = vmatprep.subr.bf16.mxu1 %v8274_v8 }
 0xd78   :  { %3482 = vmatpush1.bf16.msra.mxu0 %v8277_v14  ;;  %3523 = vmatpush1.bf16.msra.mxu1 %v8280_v48 }
 0xd79   :  { %3483 = vmatprep.subr.bf16.mxu0 %v8283_v42  ;;  %3524 = vmatprep.subr.bf16.mxu1 %v8286_v6 }
 0xd7c   :  { %3484 = vmatpush1.bf16.msra.mxu0 %v8289_v19  ;;  %3525 = vmatpush1.bf16.msra.mxu1 %v8292_v7 }
 0xd7d   :  { %3485 = vmatprep.subr.bf16.mxu0 %v8295_v12  ;;  %3526 = vmatprep.subr.bf16.mxu1 %v8298_v60 }
 0xd80   :  { %3486 = vmatpush1.bf16.msra.mxu0 %v8301_v31  ;;  %3527 = vmatpush1.bf16.msra.mxu1 %v8304_v18 }
 0xd81   :  { %3487 = vmatprep.subr.bf16.mxu0 %v8307_v63  ;;  %3528 = vmatprep.subr.bf16.mxu1 %v8310_v13 }
 0xd84   :  { %3488 = vmatpush1.bf16.msra.mxu0 %v8313_v41  ;;  %3529 = vmatpush1.bf16.msra.mxu1 %v8316_v29 }
 0xd85   :  { %3489 = vmatprep.subr.bf16.mxu0 %v8319_v44  ;;  %3530 = vmatprep.subr.bf16.mxu1 %v8322_v2 }
 0xd88   :  { %3490 = vmatpush1.bf16.msra.mxu0 %v8325_v40  ;;  %3531 = vmatpush1.bf16.msra.mxu1 %v8328_v46 }
 0xd89   :  { %3491 = vmatprep.subr.bf16.mxu0 %v8331_v51  ;;  %3532 = vmatprep.subr.bf16.mxu1 %v8334_v58 }
 0xd8c   :  { %3492 = vmatpush1.bf16.msra.mxu0 %v8337_v35  ;;  %3533 = vmatpush1.bf16.msra.mxu1 %v8340_v53 }
 0xd8d   :  { %3493 = vmatprep.subr.bf16.mxu0 %v8343_v56  ;;  %3534 = vmatprep.subr.bf16.mxu1 %v8346_v5 }
 0xd90   :  { %3494 = vmatpush1.bf16.msra.mxu0 %v8349_v62  ;;  %3535 = vmatpush1.bf16.msra.mxu1 %v8352_v17 }
 0xd91   :  { %3495 = vmatprep.subr.bf16.mxu0 %v8355_v39  ;;  %3536 = vmatprep.subr.bf16.mxu1 %v8358_v3 }
 0xd94   :  { %3496 = vmatpush1.bf16.msra.mxu0 %v8361_v57  ;;  %3537 = vmatpush1.bf16.msra.mxu1 %v8364_v23  ;;  %v8379_v57 = vld [vmem:[#allocation9 + $0x1a4] ss:$16 sps:$4 sm:$0xff]   ;;  %v8382_v23 = vld [vmem:[#allocation9 + $0x1ac] ss:$16 sps:$4 sm:$0xff]  }
 0xd95   :  { %3497 = vmatprep.subr.bf16.mxu0 %v8367_v16  ;;  %3538 = vmatprep.subr.bf16.mxu1 %v8370_v20  ;;  %10045 = vst [vmem:[#allocation44_spill] sm:$0xff] %v8379_v57  ;;  %10046 = vst [vmem:[#allocation45_spill] sm:$0xff] %v8382_v23  ;;  %v8385_v16 = vld [vmem:[#allocation9 + $0x1a0] ss:$16 sps:$4 sm:$0xff]   ;;  %v8388_v20 = vld [vmem:[#allocation9 + $0x1a8] ss:$16 sps:$4 sm:$0xff]  }
 0xd96   :  { %10047 = vst [vmem:[#allocation46_spill] sm:$0xff] %v8385_v16  ;;  %10048 = vst [vmem:[#allocation47_spill] sm:$0xff] %v8388_v20 }
 0xd98   :  { %3498 = vmatpush1.bf16.msra.mxu0 %v8373_v26  ;;  %3539 = vmatpush1.bf16.msra.mxu1 %v8376_v9  ;;  %v8391_v26 = vld [vmem:[#allocation9 + $0x1c4] ss:$16 sps:$4 sm:$0xff]   ;;  %v8394_v9 = vld [vmem:[#allocation9 + $0x1cc] ss:$16 sps:$4 sm:$0xff]  }
 0xd99   :  { %3499 = vmatprep.subr.bf16.mxu0 %v8379_v57  ;;  %3540 = vmatprep.subr.bf16.mxu1 %v8382_v23  ;;  %10049 = vst [vmem:[#allocation48_spill] sm:$0xff] %v8391_v26  ;;  %10050 = vst [vmem:[#allocation49_spill] sm:$0xff] %v8394_v9  ;;  %v8397_v57 = vld [vmem:[#allocation9 + $0x1c0] ss:$16 sps:$4 sm:$0xff]   ;;  %v8400_v23 = vld [vmem:[#allocation9 + $0x1c8] ss:$16 sps:$4 sm:$0xff]  }
 0xd9a   :  { %10051 = vst [vmem:[#allocation50_spill] sm:$0xff] %v8397_v57  ;;  %10052 = vst [vmem:[#allocation51_spill] sm:$0xff] %v8400_v23 }
 0xd9c   :  { %3500 = vmatpush1.bf16.msra.mxu0 %v8385_v16  ;;  %3541 = vmatpush1.bf16.msra.mxu1 %v8388_v20  ;;  %v8403_v16 = vld [vmem:[#allocation9 + $0x1e4] ss:$16 sps:$4 sm:$0xff]   ;;  %v8406_v20 = vld [vmem:[#allocation9 + $0x1ec] ss:$16 sps:$4 sm:$0xff]  }
 0xd9d   :  { %3501 = vmatprep.subr.bf16.mxu0 %v8391_v26  ;;  %3542 = vmatprep.subr.bf16.mxu1 %v8394_v9  ;;  %10053 = vst [vmem:[#allocation52_spill] sm:$0xff] %v8403_v16  ;;  %10054 = vst [vmem:[#allocation53_spill] sm:$0xff] %v8406_v20  ;;  %v8409_v26 = vld [vmem:[#allocation9 + $0x1e0] ss:$16 sps:$4 sm:$0xff]   ;;  %v8412_v9 = vld [vmem:[#allocation9 + $0x1e8] ss:$16 sps:$4 sm:$0xff]  }
 0xd9e   :  { %10055 = vst [vmem:[#allocation54_spill] sm:$0xff] %v8409_v26  ;;  %10056 = vst [vmem:[#allocation55_spill] sm:$0xff] %v8412_v9 }
 0xda0   :  { %3502 = vmatpush1.bf16.msra.mxu0 %v8397_v57  ;;  %3543 = vmatpush1.bf16.msra.mxu1 %v8400_v23  ;;  %v8415_v57 = vld [vmem:[#allocation10 + $0x4] ss:$16 sps:$4 sm:$0xff]   ;;  %v8418_v23 = vld [vmem:[#allocation10 + $0xc] ss:$16 sps:$4 sm:$0xff]  }
 0xda1   :  { %3503 = vmatprep.subr.bf16.mxu0 %v8403_v16  ;;  %3544 = vmatprep.subr.bf16.mxu1 %v8406_v20  ;;  %10057 = vst [vmem:[#allocation56_spill] sm:$0xff] %v8415_v57  ;;  %10058 = vst [vmem:[#allocation57_spill] sm:$0xff] %v8418_v23 }
 0xda4   :  { %3504 = vmatpush1.bf16.msra.mxu0 %v8409_v26  ;;  %3545 = vmatpush1.bf16.msra.mxu1 %v8412_v9 }
 0xda5   :  { %3587 = vmatprep.subr.bf16.mxu0 %v8415_v57  ;;  %3628 = vmatprep.subr.bf16.mxu1 %v8418_v23 }
 0xe19   :  { %v3253_v16 = vpop.f32.mrb[68].mxu0  ;;  %v3294_v3 = vpop.f32.mrb[68].mxu1 }
 0xe1a   :  { %v3301_v20 = vadd.f32 %v3253_v16, %v9942_v24  ;;  %v3255_v39 = vpop.f32.mrb[69].mxu0  ;;  %v3296_v17 = vpop.f32.mrb[69].mxu1  ;;  %v3303_v23 = vadd.f32 %v3294_v3, %v9945_v50  ;;  %v3346_v3 = vld [vmem:[#allocation4 + $0x68] sm:$0xff] }
 0xe1b   :  { %v3302_v26 = vadd.f32 %v3255_v39, %v9943_v61  ;;  %v3257_v62 = vpop.f32.mrb[70].mxu0  ;;  %v3298_v5 = vpop.f32.mrb[70].mxu1  ;;  %v3304_v57 = vadd.f32 %v3296_v17, %v9944_v45 }
 0xe1c   :  { %v4324_v56 = vmul.f32 -1.442695, %v3301_v20  ;;  %v3258_v9 = vpop.f32.mrb[71].mxu0  ;;  %v3299_v53 = vpop.f32.mrb[71].mxu1  ;;  %v3345_v5 = vld [vmem:[#allocation4 + $0x60] sm:$0xff] }
 0xe1d   :  { %v4325_v35 = vmul.f32 -1.442695, %v3302_v26  ;;  %v4326_v58 = vmul.f32 -1.442695, %v3304_v57  ;;  %v3347_v62 = vunpack.c.l.bf16 %v3345_v5  ;;  %v3348_v53 = vunpack.c.h.bf16 %v3345_v5 }
 0xe1e   :  { %4926 = vpow2.f32 %v4324_v56 }
 0xe1f   :  { %4928 = vpow2.f32 %v4325_v35  ;;  %v3351_v57 = vadd.f32 %v3347_v62, %v9468_v1 }
 0xe20   :  { %4930 = vpow2.f32 %v4326_v58 }
 0xe21   :  { %4932 = vtanh.f32 %v3303_v23 }
 0xe28   :  { %v4927_v51 = vpop.eup %4926 }
 0xe29   :  { %v4929_v46 = vpop.eup %4928  ;;  %v3314_v16 = vadd.f32 1.0, %v4927_v51  ;;  %v3352_v51 = vadd.f32 %v3348_v53, %v9829_v34 }
 0xe2a   :  { %v3315_v24 = vadd.f32 1.0, %v4929_v46  ;;  %v4931_v39 = vpop.eup %4930 }
 0xe2b   :  { %4934 = vrcp.f32 %v3314_v16  ;;  %v4933_v20 = vpop.eup %4932  ;;  %v3316_v17 = vadd.f32 1.0, %v4931_v39 }
 0xe2c   :  { %4936 = vrcp.f32 %v3315_v24  ;;  %v3350_v24 = vunpack.c.h.bf16 %v3346_v3 }
 0xe2d   :  { %4938 = vrcp.f32 %v3316_v17  ;;  %v3349_v17 = vunpack.c.l.bf16 %v3346_v3 }
 0xe35   :  { %v4935_v56 = vpop.eup %4934 }
 0xe36   :  { %v4937_v35 = vpop.eup %4936  ;;  %v3325_v26 = vmul.f32 %v4935_v56, %v4933_v20 }
 0xe37   :  { %v3324_v9 = vmul.f32 %v4937_v35, %v8093_v10 }
 0xe39   :  { %v3326_v58 = vadd.f32 %v3325_v26, %v3324_v9  ;;  %v3389_v46 = vpop.f32.mrb[72].mxu0  ;;  %v3430_v23 = vpop.f32.mrb[72].mxu1  ;;  %v3354_v26 = vadd.f32 %v3350_v24, %v6040_v43  ;;  %v3353_v9 = vadd.f32 %v3349_v17, %v9472_v30  ;;  %v10059_v17 = vld [vmem:[#allocation23_spill] sm:$0xff] }
 0xe3a   :  { %v3437_v16 = vadd.f32 %v3389_v46, %v3351_v57  ;;  %v3391_v50 = vpop.f32.mrb[73].mxu0  ;;  %v3432_v5 = vpop.f32.mrb[73].mxu1  ;;  %vm3469_vm15 = vcmp.eq.s32.totalorder %v10059_v17, 1 }
 0xe3b   :  { %4940 = vtanh.f32 %v3326_v58  ;;  %v3438_v45 = vadd.f32 %v3391_v50, %v3352_v51  ;;  %v3393_v61 = vpop.f32.mrb[74].mxu0  ;;  %v3434_v20 = vpop.f32.mrb[74].mxu1  ;;  %v8431_v62 = vsel %vm3101_vm14, %v3326_v58, %v8093_v10  ;;  %v3440_v57 = vadd.f32 %v3432_v5, %v3354_v26 }
 0xe3c   :  { %v4329_v39 = vmul.f32 -1.442695, %v3437_v16  ;;  %v3394_v56 = vpop.f32.mrb[75].mxu0  ;;  %v3435_v53 = vpop.f32.mrb[75].mxu1  ;;  %v3439_v46 = vadd.f32 %v3430_v23, %v3353_v9  ;;  %v4408_v10 = vunpack.i.h.bf16 %v8097_v49 }
 0xe3d   :  { %v4330_v35 = vmul.f32 -1.442695, %v3438_v45  ;;  %v4939_v50 = vpop.eup %4938  ;;  %v4331_v51 = vmul.f32 -1.442695, %v3440_v57 }
 0xe3e   :  { %4942 = vpow2.f32 %v4329_v39 }
 0xe3f   :  { %4944 = vpow2.f32 %v4330_v35 }
 0xe40   :  { %4946 = vpow2.f32 %v4331_v51 }
 0xe41   :  { %4948 = vtanh.f32 %v3439_v46 }
 0xe45   :  { %v4941_v61 = vpop.eup %4940 }
 0xe46   :  { %v3328_v20 = vmul.f32 %v4941_v61, %v4939_v50 }
 0xe48   :  { %v4943_v58 = vpop.eup %4942  ;;  %v8439_v45 = vsel %vm3101_vm14, %v3328_v20, %v8103_v55 }
 0xe49   :  { %v4945_v24 = vpop.eup %4944  ;;  %v3450_v16 = vadd.f32 1.0, %v4943_v58  ;;  %v3337_v3 = vmul.f32 %v4408_v10, %v8439_v45  ;;  %v3586_v20 = vpack.c.bf16 %v8439_v45, %v8439_v45  ;;  %v8465_v10 = vld [vmem:[#allocation10 + $0x8] ss:$16 sps:$4 sm:$0xff]   ;;  %v8471_v58 = vld [vmem:[#allocation10 + $0x2c] ss:$16 sps:$4 sm:$0xff]  }
 0xe4a   :  { %v3451_v5 = vadd.f32 1.0, %v4945_v24  ;;  %v4947_v23 = vpop.eup %4946  ;;  %v8474_v24 = vld [vmem:[#allocation10 + $0x20] ss:$16 sps:$4 sm:$0xff]  }
 0xe4b   :  { %4950 = vrcp.f32 %v3450_v16  ;;  %v3338_v39 = vpack.c.bf16 %v3337_v3, %v3337_v3  ;;  %v4949_v56 = vpop.eup %4948  ;;  %v3452_v26 = vadd.f32 1.0, %v4947_v23  ;;  %10060 = vst [vmem:[#allocation24_spill] sm:$0xff] %v8474_v24  ;;  %v8477_v16 = vld [vmem:[#allocation10 + $0x28] ss:$16 sps:$4 sm:$0xff]   ;;  %v8480_v3 = vld [vmem:[#allocation10 + $0x44] ss:$16 sps:$4 sm:$0xff]  }
 0xe4c   :  { %4952 = vrcp.f32 %v3451_v5  ;;  %10061 = vst [vmem:[#allocation58_spill] sm:$0xff] %v8477_v16  ;;  %10062 = vst [vmem:[#allocation59_spill] sm:$0xff] %v8480_v3  ;;  %v8483_v5 = vld [vmem:[#allocation10 + $0x4c] ss:$16 sps:$4 sm:$0xff]   ;;  %v8489_v23 = vld [vmem:[#allocation10 + $0x48] ss:$16 sps:$4 sm:$0xff]  }
 0xe4d   :  { %3340 = vst [vmem:[#allocation12 + $0x14] sm:$0xf] %v3338_v39  ;;  %4954 = vrcp.f32 %v3452_v26  ;;  %10063 = vst [vmem:[#allocation60_spill] sm:$0xff] %v8483_v5  ;;  %v8486_v39 = vld [vmem:[#allocation10 + $0x40] ss:$16 sps:$4 sm:$0xff]  }
 0xe4e   :  { %10064 = vst [vmem:[#allocation61_spill] sm:$0xff] %v8486_v39  ;;  %10065 = vst [vmem:[#allocation62_spill] sm:$0xff] %v8489_v23  ;;  %v8504_v26 = vld [vmem:[#allocation10 + $0x84] ss:$16 sps:$4 sm:$0xff]  }
 0xe4f   :  { %10070 = vst [vmem:[#allocation67_spill] sm:$0xff] %v8504_v26 }
 0xe55   :  { %v4951_v49 = vpop.eup %4950 }
 0xe56   :  { %v4953_v53 = vpop.eup %4952  ;;  %v3461_v35 = vmul.f32 %v4951_v49, %v4949_v56  ;;  %v8492_v56 = vld [vmem:[#allocation10 + $0x64] ss:$16 sps:$4 sm:$0xff]   ;;  %v8495_v49 = vld [vmem:[#allocation10 + $0x6c] ss:$16 sps:$4 sm:$0xff]  }
 0xe57   :  { %v3460_v55 = vmul.f32 %v4953_v53, %v8111_v11  ;;  %v4955_v9 = vpop.eup %4954  ;;  %10066 = vst [vmem:[#allocation63_spill] sm:$0xff] %v8492_v56  ;;  %10067 = vst [vmem:[#allocation64_spill] sm:$0xff] %v8495_v49  ;;  %v8498_v53 = vld [vmem:[#allocation10 + $0x60] ss:$16 sps:$4 sm:$0xff]  }
 0xe58   :  { %10068 = vst [vmem:[#allocation65_spill] sm:$0xff] %v8498_v53 }
 0xe59   :  { %v3462_v21 = vadd.f32 %v3461_v35, %v3460_v55  ;;  %v8501_v35 = vld [vmem:[#allocation10 + $0x68] ss:$16 sps:$4 sm:$0xff]   ;;  %v8507_v55 = vld [vmem:[#allocation10 + $0x8c] ss:$16 sps:$4 sm:$0xff]  }
 0xe5a   :  { %10069 = vst [vmem:[#allocation66_spill] sm:$0xff] %v8501_v35  ;;  %10071 = vst [vmem:[#allocation68_spill] sm:$0xff] %v8507_v55 }
 0xe5b   :  { %4956 = vtanh.f32 %v3462_v21  ;;  %v8447_v57 = vsel %vm3469_vm15, %v3462_v21, %v8111_v11  ;;  %v8462_v11 = vld [vmem:[#allocation10] ss:$16 sps:$4 sm:$0xff]  }
 0xe5c   :  { %v8510_v21 = vld [vmem:[#allocation10 + $0x80] ss:$16 sps:$4 sm:$0xff]  }
 0xe5d   :  { %10072 = vst [vmem:[#allocation69_spill] sm:$0xff] %v8510_v21 }
 0xe65   :  { %v4957_v50 = vpop.eup %4956 }
 0xe66   :  { %v3464_v61 = vmul.f32 %v4957_v50, %v4955_v9  ;;  %v8513_v9 = vld [vmem:[#allocation10 + $0x88] ss:$16 sps:$4 sm:$0xff]   ;;  %v8516_v50 = vld [vmem:[#allocation10 + $0xa4] ss:$16 sps:$4 sm:$0xff]  }
 0xe67   :  { %10073 = vst [vmem:[#allocation70_spill] sm:$0xff] %v8513_v9  ;;  %10074 = vst [vmem:[#allocation71_spill] sm:$0xff] %v8516_v50 }
 0xe68   :  { %v8452_v51 = vsel %vm3469_vm15, %v3464_v61, %v8116_v54  ;;  %v8468_v54 = vld [vmem:[#allocation10 + $0x24] ss:$16 sps:$4 sm:$0xff]   ;;  %v8519_v61 = vld [vmem:[#allocation10 + $0xac] ss:$16 sps:$4 sm:$0xff]  }
 0xe69   :  { %v8456_v46 = vpack.c.bf16 %v8452_v51, %v8452_v51  ;;  %10075 = vst [vmem:[#allocation72_spill] sm:$0xff] %v8519_v61 }
 0xe6b   :  { %3506 = vmatmul.mubr.bf16.vlgmr.msra.gmra.mrb[76].mxu0 %v8456_v46  ;;  %3547 = vmatmul.mubr.bf16.vlgmr.msra.gmra.mrb[76].mxu1 %v8456_v46 }
 0xe6c   :  { %3619 = vmatprep.mubr.bf16.mxu0 %v3586_v20  ;;  %3660 = vmatprep.mubr.bf16.mxu1 %v3586_v20  ;;  %v8522_v20 = vld [vmem:[#allocation10 + $0xa0] ss:$16 sps:$4 sm:$0xff]  }
 0xe6d   :  { %3588 = vmatpush1.bf16.msra.mxu0 %v8462_v11  ;;  %3629 = vmatpush1.bf16.msra.mxu1 %v8465_v10  ;;  %10076 = vst [vmem:[#allocation73_spill] sm:$0xff] %v8522_v20 }
 0xe6e   :  { %3589 = vmatprep.subr.bf16.mxu0 %v8468_v54  ;;  %3630 = vmatprep.subr.bf16.mxu1 %v8471_v58 }
 0xe71   :  { %3590 = vmatpush1.bf16.msra.mxu0 %v8474_v24  ;;  %3631 = vmatpush1.bf16.msra.mxu1 %v8477_v16 }
 0xe72   :  { %3591 = vmatprep.subr.bf16.mxu0 %v8480_v3  ;;  %3632 = vmatprep.subr.bf16.mxu1 %v8483_v5 }
 0xe75   :  { %3592 = vmatpush1.bf16.msra.mxu0 %v8486_v39  ;;  %3633 = vmatpush1.bf16.msra.mxu1 %v8489_v23 }
 0xe76   :  { %3593 = vmatprep.subr.bf16.mxu0 %v8492_v56  ;;  %3634 = vmatprep.subr.bf16.mxu1 %v8495_v49 }
 0xe79   :  { %3594 = vmatpush1.bf16.msra.mxu0 %v8498_v53  ;;  %3635 = vmatpush1.bf16.msra.mxu1 %v8501_v35 }
 0xe7a   :  { %3595 = vmatprep.subr.bf16.mxu0 %v8504_v26  ;;  %3636 = vmatprep.subr.bf16.mxu1 %v8507_v55  ;;  %v8525_v55 = vld [vmem:[#allocation10 + $0xa8] ss:$16 sps:$4 sm:$0xff]   ;;  %v5520_v26 = vld [vmem:[#allocation7 + $0xc] ss:$16 sps:$4 sm:$0xff]  }
 0xe7b   :  { %10077 = vst [vmem:[#allocation74_spill] sm:$0xff] %v8525_v55 }
 0xe7d   :  { %3596 = vmatpush1.bf16.msra.mxu0 %v8510_v21  ;;  %3637 = vmatpush1.bf16.msra.mxu1 %v8513_v9  ;;  %v8528_v21 = vld [vmem:[#allocation10 + $0xc4] ss:$16 sps:$4 sm:$0xff]   ;;  %v8531_v9 = vld [vmem:[#allocation10 + $0xcc] ss:$16 sps:$4 sm:$0xff]  }
 0xe7e   :  { %3597 = vmatprep.subr.bf16.mxu0 %v8516_v50  ;;  %3638 = vmatprep.subr.bf16.mxu1 %v8519_v61  ;;  %10078 = vst [vmem:[#allocation75_spill] sm:$0xff] %v8528_v21  ;;  %10079 = vst [vmem:[#allocation76_spill] sm:$0xff] %v8531_v9  ;;  %v8534_v50 = vld [vmem:[#allocation10 + $0xc0] ss:$16 sps:$4 sm:$0xff]   ;;  %v8537_v61 = vld [vmem:[#allocation10 + $0xc8] ss:$16 sps:$4 sm:$0xff]  }
 0xe7f   :  { %10080 = vst [vmem:[#allocation77_spill] sm:$0xff] %v8534_v50  ;;  %10081 = vst [vmem:[#allocation78_spill] sm:$0xff] %v8537_v61 }
 0xe81   :  { %3598 = vmatpush1.bf16.msra.mxu0 %v8522_v20  ;;  %3639 = vmatpush1.bf16.msra.mxu1 %v8525_v55  ;;  %v8540_v20 = vld [vmem:[#allocation10 + $0xe4] ss:$16 sps:$4 sm:$0xff]   ;;  %v8543_v55 = vld [vmem:[#allocation10 + $0xec] ss:$16 sps:$4 sm:$0xff]  }
 0xe82   :  { %3599 = vmatprep.subr.bf16.mxu0 %v8528_v21  ;;  %3640 = vmatprep.subr.bf16.mxu1 %v8531_v9  ;;  %10082 = vst [vmem:[#allocation79_spill] sm:$0xff] %v8540_v20  ;;  %10083 = vst [vmem:[#allocation80_spill] sm:$0xff] %v8543_v55  ;;  %v8546_v21 = vld [vmem:[#allocation10 + $0xe0] ss:$16 sps:$4 sm:$0xff]   ;;  %v8549_v9 = vld [vmem:[#allocation10 + $0xe8] ss:$16 sps:$4 sm:$0xff]  }
 0xe83   :  { %10084 = vst [vmem:[#allocation81_spill] sm:$0xff] %v8546_v21  ;;  %10085 = vst [vmem:[#allocation82_spill] sm:$0xff] %v8549_v9 }
 0xe85   :  { %3600 = vmatpush1.bf16.msra.mxu0 %v8534_v50  ;;  %3641 = vmatpush1.bf16.msra.mxu1 %v8537_v61  ;;  %v8552_v50 = vld [vmem:[#allocation10 + $0x104] ss:$16 sps:$4 sm:$0xff]   ;;  %v8555_v61 = vld [vmem:[#allocation10 + $0x10c] ss:$16 sps:$4 sm:$0xff]  }
 0xe86   :  { %3601 = vmatprep.subr.bf16.mxu0 %v8540_v20  ;;  %3642 = vmatprep.subr.bf16.mxu1 %v8543_v55  ;;  %10086 = vst [vmem:[#allocation83_spill] sm:$0xff] %v8552_v50  ;;  %10087 = vst [vmem:[#allocation84_spill] sm:$0xff] %v8555_v61  ;;  %v8558_v20 = vld [vmem:[#allocation10 + $0x100] ss:$16 sps:$4 sm:$0xff]   ;;  %v8561_v55 = vld [vmem:[#allocation10 + $0x108] ss:$16 sps:$4 sm:$0xff]  }
 0xe87   :  { %10088 = vst [vmem:[#allocation85_spill] sm:$0xff] %v8558_v20  ;;  %10089 = vst [vmem:[#allocation86_spill] sm:$0xff] %v8561_v55 }
 0xe89   :  { %3602 = vmatpush1.bf16.msra.mxu0 %v8546_v21  ;;  %3643 = vmatpush1.bf16.msra.mxu1 %v8549_v9  ;;  %v8564_v21 = vld [vmem:[#allocation10 + $0x124] ss:$16 sps:$4 sm:$0xff]   ;;  %v8567_v9 = vld [vmem:[#allocation10 + $0x12c] ss:$16 sps:$4 sm:$0xff]  }
 0xe8a   :  { %3603 = vmatprep.subr.bf16.mxu0 %v8552_v50  ;;  %3644 = vmatprep.subr.bf16.mxu1 %v8555_v61  ;;  %10090 = vst [vmem:[#allocation87_spill] sm:$0xff] %v8564_v21  ;;  %10091 = vst [vmem:[#allocation88_spill] sm:$0xff] %v8567_v9  ;;  %v8570_v50 = vld [vmem:[#allocation10 + $0x120] ss:$16 sps:$4 sm:$0xff]   ;;  %v8573_v61 = vld [vmem:[#allocation10 + $0x128] ss:$16 sps:$4 sm:$0xff]  }
 0xe8b   :  { %10092 = vst [vmem:[#allocation89_spill] sm:$0xff] %v8570_v50  ;;  %10093 = vst [vmem:[#allocation90_spill] sm:$0xff] %v8573_v61 }
 0xe8d   :  { %3604 = vmatpush1.bf16.msra.mxu0 %v8558_v20  ;;  %3645 = vmatpush1.bf16.msra.mxu1 %v8561_v55  ;;  %v8576_v20 = vld [vmem:[#allocation10 + $0x144] ss:$16 sps:$4 sm:$0xff]   ;;  %v8579_v55 = vld [vmem:[#allocation10 + $0x14c] ss:$16 sps:$4 sm:$0xff]  }
 0xe8e   :  { %3605 = vmatprep.subr.bf16.mxu0 %v8564_v21  ;;  %3646 = vmatprep.subr.bf16.mxu1 %v8567_v9  ;;  %10094 = vst [vmem:[#allocation91_spill] sm:$0xff] %v8576_v20  ;;  %10095 = vst [vmem:[#allocation92_spill] sm:$0xff] %v8579_v55  ;;  %v8582_v21 = vld [vmem:[#allocation10 + $0x140] ss:$16 sps:$4 sm:$0xff]   ;;  %v8585_v9 = vld [vmem:[#allocation10 + $0x148] ss:$16 sps:$4 sm:$0xff]  }
 0xe8f   :  { %10096 = vst [vmem:[#allocation93_spill] sm:$0xff] %v8582_v21  ;;  %10097 = vst [vmem:[#allocation94_spill] sm:$0xff] %v8585_v9 }
 0xe91   :  { %3606 = vmatpush1.bf16.msra.mxu0 %v8570_v50  ;;  %3647 = vmatpush1.bf16.msra.mxu1 %v8573_v61  ;;  %v8588_v50 = vld [vmem:[#allocation10 + $0x164] ss:$16 sps:$4 sm:$0xff]   ;;  %v8591_v61 = vld [vmem:[#allocation10 + $0x16c] ss:$16 sps:$4 sm:$0xff]  }
 0xe92   :  { %3607 = vmatprep.subr.bf16.mxu0 %v8576_v20  ;;  %3648 = vmatprep.subr.bf16.mxu1 %v8579_v55  ;;  %10098 = vst [vmem:[#allocation95_spill] sm:$0xff] %v8588_v50  ;;  %10099 = vst [vmem:[#allocation96_spill] sm:$0xff] %v8591_v61  ;;  %v8594_v20 = vld [vmem:[#allocation10 + $0x160] ss:$16 sps:$4 sm:$0xff]   ;;  %v8597_v55 = vld [vmem:[#allocation10 + $0x168] ss:$16 sps:$4 sm:$0xff]  }
 0xe93   :  { %10100 = vst [vmem:[#allocation97_spill] sm:$0xff] %v8594_v20  ;;  %10101 = vst [vmem:[#allocation98_spill] sm:$0xff] %v8597_v55 }
 0xe95   :  { %3608 = vmatpush1.bf16.msra.mxu0 %v8582_v21  ;;  %3649 = vmatpush1.bf16.msra.mxu1 %v8585_v9  ;;  %v8600_v21 = vld [vmem:[#allocation10 + $0x184] ss:$16 sps:$4 sm:$0xff]   ;;  %v8603_v9 = vld [vmem:[#allocation10 + $0x18c] ss:$16 sps:$4 sm:$0xff]  }
 0xe96   :  { %3609 = vmatprep.subr.bf16.mxu0 %v8588_v50  ;;  %3650 = vmatprep.subr.bf16.mxu1 %v8591_v61  ;;  %10102 = vst [vmem:[#allocation99_spill] sm:$0xff] %v8600_v21  ;;  %10103 = vst [vmem:[#allocation100_spill] sm:$0xff] %v8603_v9  ;;  %v8606_v50 = vld [vmem:[#allocation10 + $0x180] ss:$16 sps:$4 sm:$0xff]   ;;  %v8609_v61 = vld [vmem:[#allocation10 + $0x188] ss:$16 sps:$4 sm:$0xff]  }
 0xe97   :  { %10104 = vst [vmem:[#allocation101_spill] sm:$0xff] %v8606_v50  ;;  %10105 = vst [vmem:[#allocation102_spill] sm:$0xff] %v8609_v61 }
 0xe99   :  { %3610 = vmatpush1.bf16.msra.mxu0 %v8594_v20  ;;  %3651 = vmatpush1.bf16.msra.mxu1 %v8597_v55  ;;  %v8612_v20 = vld [vmem:[#allocation10 + $0x1a4] ss:$16 sps:$4 sm:$0xff]   ;;  %v8615_v55 = vld [vmem:[#allocation10 + $0x1ac] ss:$16 sps:$4 sm:$0xff]  }
 0xe9a   :  { %3611 = vmatprep.subr.bf16.mxu0 %v8600_v21  ;;  %3652 = vmatprep.subr.bf16.mxu1 %v8603_v9  ;;  %10106 = vst [vmem:[#allocation103_spill] sm:$0xff] %v8612_v20  ;;  %10107 = vst [vmem:[#allocation104_spill] sm:$0xff] %v8615_v55  ;;  %v8618_v21 = vld [vmem:[#allocation10 + $0x1a0] ss:$16 sps:$4 sm:$0xff]   ;;  %v8621_v9 = vld [vmem:[#allocation10 + $0x1a8] ss:$16 sps:$4 sm:$0xff]  }
 0xe9b   :  { %10108 = vst [vmem:[#allocation105_spill] sm:$0xff] %v8618_v21  ;;  %10109 = vst [vmem:[#allocation17_spill] sm:$0xff] %v8621_v9 }
 0xe9d   :  { %3612 = vmatpush1.bf16.msra.mxu0 %v8606_v50  ;;  %3653 = vmatpush1.bf16.msra.mxu1 %v8609_v61  ;;  %v8624_v50 = vld [vmem:[#allocation10 + $0x1c4] ss:$16 sps:$4 sm:$0xff]   ;;  %v8627_v61 = vld [vmem:[#allocation10 + $0x1cc] ss:$16 sps:$4 sm:$0xff]  }
 0xe9e   :  { %3613 = vmatprep.subr.bf16.mxu0 %v8612_v20  ;;  %3654 = vmatprep.subr.bf16.mxu1 %v8615_v55  ;;  %10110 = vst [vmem:[#allocation107_spill] sm:$0xff] %v8624_v50  ;;  %10111 = vst [vmem:[#allocation108_spill] sm:$0xff] %v8627_v61  ;;  %v8630_v20 = vld [vmem:[#allocation10 + $0x1c0] ss:$16 sps:$4 sm:$0xff]   ;;  %v8633_v55 = vld [vmem:[#allocation10 + $0x1c8] ss:$16 sps:$4 sm:$0xff]  }
 0xe9f   :  { %10112 = vst [vmem:[#allocation109_spill] sm:$0xff] %v8630_v20  ;;  %10113 = vst [vmem:[#allocation110_spill] sm:$0xff] %v8633_v55 }
 0xea1   :  { %3614 = vmatpush1.bf16.msra.mxu0 %v8618_v21  ;;  %3655 = vmatpush1.bf16.msra.mxu1 %v8621_v9  ;;  %v8636_v21 = vld [vmem:[#allocation10 + $0x1e4] ss:$16 sps:$4 sm:$0xff]   ;;  %v8639_v9 = vld [vmem:[#allocation10 + $0x1ec] ss:$16 sps:$4 sm:$0xff]  }
 0xea2   :  { %3615 = vmatprep.subr.bf16.mxu0 %v8624_v50  ;;  %3656 = vmatprep.subr.bf16.mxu1 %v8627_v61  ;;  %10114 = vst [vmem:[#allocation111_spill] sm:$0xff] %v8636_v21  ;;  %10115 = vst [vmem:[#allocation112_spill] sm:$0xff] %v8639_v9  ;;  %v8642_v50 = vld [vmem:[#allocation10 + $0x1e0] ss:$16 sps:$4 sm:$0xff]   ;;  %v8645_v61 = vld [vmem:[#allocation10 + $0x1e8] ss:$16 sps:$4 sm:$0xff]  }
 0xea3   :  { %10116 = vst [vmem:[#allocation113_spill] sm:$0xff] %v8642_v50  ;;  %10117 = vst [vmem:[#allocation114_spill] sm:$0xff] %v8645_v61 }
 0xea5   :  { %3616 = vmatpush1.bf16.msra.mxu0 %v8630_v20  ;;  %3657 = vmatpush1.bf16.msra.mxu1 %v8633_v55  ;;  %v5519_v20 = vld [vmem:[#allocation7 + $0x4] ss:$16 sps:$4 sm:$0xff]  }
 0xea6   :  { %3617 = vmatprep.subr.bf16.mxu0 %v8636_v21  ;;  %3658 = vmatprep.subr.bf16.mxu1 %v8639_v9 }
 0xea9   :  { %3618 = vmatpush1.bf16.msra.mxu0 %v8642_v50  ;;  %3659 = vmatpush1.bf16.msra.mxu1 %v8645_v61 }
 0xeaa   :  { %3723 = vmatprep.subr.bf16.mxu0 %v5519_v20  ;;  %3764 = vmatprep.subr.bf16.mxu1 %v5520_v26 }
 0xf3e   :  { %v3507_v55 = vpop.f32.mrb[76].mxu0  ;;  %v3548_v35 = vpop.f32.mrb[76].mxu1 }
 0xf3f   :  { %v3555_v21 = vadd.f32 %v3507_v55, %v10007_v0  ;;  %v3509_v53 = vpop.f32.mrb[77].mxu0  ;;  %v3550_v49 = vpop.f32.mrb[77].mxu1  ;;  %v3557_v26 = vadd.f32 %v3548_v35, %v6284_v25 }
 0xf40   :  { %v3556_v9 = vadd.f32 %v3509_v53, %v6275_v52  ;;  %v3511_v56 = vpop.f32.mrb[78].mxu0  ;;  %v3552_v23 = vpop.f32.mrb[78].mxu1  ;;  %v3558_v20 = vadd.f32 %v3550_v49, %v9543_v47 }
 0xf41   :  { %v4332_v39 = vmul.f32 -1.442695, %v3555_v21  ;;  %v3512_v50 = vpop.f32.mrb[79].mxu0  ;;  %v3553_v5 = vpop.f32.mrb[79].mxu1 }
 0xf42   :  { %v4333_v3 = vmul.f32 -1.442695, %v3556_v9  ;;  %v4334_v61 = vmul.f32 -1.442695, %v3558_v20  ;;  %v5523_v20 = vld [vmem:[#allocation7 + $0x24] ss:$16 sps:$4 sm:$0xff]  }
 0xf43   :  { %4958 = vpow2.f32 %v4332_v39 }
 0xf44   :  { %4960 = vpow2.f32 %v4333_v3 }
 0xf45   :  { %4962 = vpow2.f32 %v4334_v61  ;;  %v5521_v61 = vld [vmem:[#allocation7] ss:$16 sps:$4 sm:$0xff]  }
 0xf46   :  { %4964 = vtanh.f32 %v3557_v26  ;;  %v5524_v26 = vld [vmem:[#allocation7 + $0x2c] ss:$16 sps:$4 sm:$0xff]  }
 0xf4d   :  { %v4959_v16 = vpop.eup %4958 }
 0xf4e   :  { %v4961_v24 = vpop.eup %4960  ;;  %v3568_v55 = vadd.f32 1.0, %v4959_v16 }
 0xf4f   :  { %v3569_v0 = vadd.f32 1.0, %v4961_v24  ;;  %v4963_v23 = vpop.eup %4962 }
 0xf50   :  { %4966 = vrcp.f32 %v3568_v55  ;;  %v4965_v56 = vpop.eup %4964  ;;  %v3570_v39 = vadd.f32 1.0, %v4963_v23  ;;  %v5526_v55 = vld [vmem:[#allocation7 + $0x28] ss:$16 sps:$4 sm:$0xff]   ;;  %v5527_v23 = vld [vmem:[#allocation7 + $0x44] ss:$16 sps:$4 sm:$0xff]  }
 0xf51   :  { %4968 = vrcp.f32 %v3569_v0 }
 0xf52   :  { %4970 = vrcp.f32 %v3570_v39  ;;  %v5532_v39 = vld [vmem:[#allocation7 + $0x6c] ss:$16 sps:$4 sm:$0xff]  }
 0xf5a   :  { %v4967_v53 = vpop.eup %4966 }
 0xf5b   :  { %v4969_v5 = vpop.eup %4968  ;;  %v3579_v21 = vmul.f32 %v4967_v53, %v4965_v56  ;;  %v5528_v56 = vld [vmem:[#allocation7 + $0x4c] ss:$16 sps:$4 sm:$0xff]   ;;  %v5529_v53 = vld [vmem:[#allocation7 + $0x40] ss:$16 sps:$4 sm:$0xff]  }
 0xf5c   :  { %v3578_v3 = vmul.f32 %v4969_v5, %v8198_v4  ;;  %v4971_v35 = vpop.eup %4970  ;;  %v5530_v5 = vld [vmem:[#allocation7 + $0x48] ss:$16 sps:$4 sm:$0xff]  }
 0xf5e   :  { %v3580_v49 = vadd.f32 %v3579_v21, %v3578_v3  ;;  %v5531_v21 = vld [vmem:[#allocation7 + $0x64] ss:$16 sps:$4 sm:$0xff]   ;;  %v5533_v3 = vld [vmem:[#allocation7 + $0x60] ss:$16 sps:$4 sm:$0xff]  }
 0xf60   :  { %4972 = vtanh.f32 %v3580_v49  ;;  %v8656_v16 = vsel %vm3469_vm15, %v3580_v49, %v8198_v4  ;;  %v5522_v4 = vld [vmem:[#allocation7 + $0x8] ss:$16 sps:$4 sm:$0xff]  }
 0xf61   :  { %v5534_v49 = vld [vmem:[#allocation7 + $0x68] ss:$16 sps:$4 sm:$0xff]  }
 0xf6a   :  { %v4973_v24 = vpop.eup %4972 }
 0xf6b   :  { %v3582_v9 = vmul.f32 %v4973_v24, %v4971_v35  ;;  %v5536_v35 = vld [vmem:[#allocation7 + $0x8c] ss:$16 sps:$4 sm:$0xff]   ;;  %v5537_v24 = vld [vmem:[#allocation7 + $0x80] ss:$16 sps:$4 sm:$0xff]  }
 0xf6d   :  { %v8661_v0 = vsel %vm3469_vm15, %v3582_v9, %v8203_v32  ;;  %v5525_v32 = vld [vmem:[#allocation7 + $0x20] ss:$16 sps:$4 sm:$0xff]   ;;  %v5538_v9 = vld [vmem:[#allocation7 + $0x88] ss:$16 sps:$4 sm:$0xff]  }
 0xf6e   :  { %v8665_v50 = vpack.c.bf16 %v8661_v0, %v8661_v0 }
 0xf70   :  { %3620 = vmatmul.mubr.bf16.vlgmr.msra.gmra.mrb[80].mxu0 %v8665_v50  ;;  %3661 = vmatmul.mubr.bf16.vlgmr.msra.gmra.mrb[80].mxu1 %v8665_v50 }
 0xf71   :  { %3724 = vmatpush1.bf16.msra.mxu0 %v5521_v61  ;;  %3765 = vmatpush1.bf16.msra.mxu1 %v5522_v4  ;;  %v5539_v61 = vld [vmem:[#allocation7 + $0xa4] ss:$16 sps:$4 sm:$0xff]   ;;  %v5540_v4 = vld [vmem:[#allocation7 + $0xac] ss:$16 sps:$4 sm:$0xff]  }
 0xf72   :  { %3725 = vmatprep.subr.bf16.mxu0 %v5523_v20  ;;  %3766 = vmatprep.subr.bf16.mxu1 %v5524_v26  ;;  %v5541_v20 = vld [vmem:[#allocation7 + $0xa0] ss:$16 sps:$4 sm:$0xff]   ;;  %v5542_v26 = vld [vmem:[#allocation7 + $0xa8] ss:$16 sps:$4 sm:$0xff]  }
 0xf73   :  { %3755 = vmatprep.mubr.bf16.mxu0 %v9420_v38  ;;  %3796 = vmatprep.mubr.bf16.mxu1 %v9420_v38  ;;  %v5535_v38 = vld [vmem:[#allocation7 + $0x84] ss:$16 sps:$4 sm:$0xff]  }
 0xf75   :  { %3726 = vmatpush1.bf16.msra.mxu0 %v5525_v32  ;;  %3767 = vmatpush1.bf16.msra.mxu1 %v5526_v55  ;;  %v5543_v32 = vld [vmem:[#allocation7 + $0xc4] ss:$16 sps:$4 sm:$0xff]   ;;  %v5544_v55 = vld [vmem:[#allocation7 + $0xcc] ss:$16 sps:$4 sm:$0xff]  }
 0xf76   :  { %3727 = vmatprep.subr.bf16.mxu0 %v5527_v23  ;;  %3768 = vmatprep.subr.bf16.mxu1 %v5528_v56  ;;  %v5545_v23 = vld [vmem:[#allocation7 + $0xc0] ss:$16 sps:$4 sm:$0xff]   ;;  %v5546_v56 = vld [vmem:[#allocation7 + $0xc8] ss:$16 sps:$4 sm:$0xff]  }
 0xf79   :  { %3728 = vmatpush1.bf16.msra.mxu0 %v5529_v53  ;;  %3769 = vmatpush1.bf16.msra.mxu1 %v5530_v5  ;;  %v5547_v53 = vld [vmem:[#allocation7 + $0xe4] ss:$16 sps:$4 sm:$0xff]   ;;  %v5548_v5 = vld [vmem:[#allocation7 + $0xec] ss:$16 sps:$4 sm:$0xff]  }
 0xf7a   :  { %3729 = vmatprep.subr.bf16.mxu0 %v5531_v21  ;;  %3770 = vmatprep.subr.bf16.mxu1 %v5532_v39  ;;  %v5549_v21 = vld [vmem:[#allocation7 + $0xe0] ss:$16 sps:$4 sm:$0xff]   ;;  %v5550_v39 = vld [vmem:[#allocation7 + $0xe8] ss:$16 sps:$4 sm:$0xff]  }
 0xf7d   :  { %3730 = vmatpush1.bf16.msra.mxu0 %v5533_v3  ;;  %3771 = vmatpush1.bf16.msra.mxu1 %v5534_v49  ;;  %v5551_v3 = vld [vmem:[#allocation9 + $0x4] ss:$16 sps:$4 sm:$0xff]   ;;  %v5552_v49 = vld [vmem:[#allocation9 + $0xc] ss:$16 sps:$4 sm:$0xff]  }
 0xf7e   :  { %3731 = vmatprep.subr.bf16.mxu0 %v5535_v38  ;;  %3772 = vmatprep.subr.bf16.mxu1 %v5536_v35  ;;  %v5553_v38 = vld [vmem:[#allocation9] ss:$16 sps:$4 sm:$0xff]   ;;  %v5554_v35 = vld [vmem:[#allocation9 + $0x8] ss:$16 sps:$4 sm:$0xff]  }
 0xf81   :  { %3732 = vmatpush1.bf16.msra.mxu0 %v5537_v24  ;;  %3773 = vmatpush1.bf16.msra.mxu1 %v5538_v9  ;;  %v5555_v24 = vld [vmem:[#allocation9 + $0x24] ss:$16 sps:$4 sm:$0xff]   ;;  %v5556_v9 = vld [vmem:[#allocation9 + $0x2c] ss:$16 sps:$4 sm:$0xff]  }
 0xf82   :  { %3733 = vmatprep.subr.bf16.mxu0 %v5539_v61  ;;  %3774 = vmatprep.subr.bf16.mxu1 %v5540_v4  ;;  %v5557_v61 = vld [vmem:[#allocation9 + $0x20] ss:$16 sps:$4 sm:$0xff]   ;;  %v5558_v4 = vld [vmem:[#allocation9 + $0x44] ss:$16 sps:$4 sm:$0xff]  }
 0xf85   :  { %3734 = vmatpush1.bf16.msra.mxu0 %v5541_v20  ;;  %3775 = vmatpush1.bf16.msra.mxu1 %v5542_v26  ;;  %v10145_v20 = vld [vmem:[#allocation54_spill] sm:$0xff]  ;;  %v10146_v26 = vld [vmem:[#allocation55_spill] sm:$0xff] }
 0xf86   :  { %3735 = vmatprep.subr.bf16.mxu0 %v5543_v32  ;;  %3776 = vmatprep.subr.bf16.mxu1 %v5544_v55  ;;  %v10147_v32 = vld [vmem:[#allocation56_spill] sm:$0xff]  ;;  %v10148_v55 = vld [vmem:[#allocation57_spill] sm:$0xff] }
 0xf89   :  { %3736 = vmatpush1.bf16.msra.mxu0 %v5545_v23  ;;  %3777 = vmatpush1.bf16.msra.mxu1 %v5546_v56 }
 0xf8a   :  { %3737 = vmatprep.subr.bf16.mxu0 %v5547_v53  ;;  %3778 = vmatprep.subr.bf16.mxu1 %v5548_v5  ;;  %v10149_v53 = vld [vmem:[#allocation18_spill] sm:$0xff] }
 0xf8d   :  { %3738 = vmatpush1.bf16.msra.mxu0 %v5549_v21  ;;  %3779 = vmatpush1.bf16.msra.mxu1 %v5550_v39 }
 0xf8e   :  { %3841 = vmatprep.subr.bf16.mxu0 %v5551_v3  ;;  %3882 = vmatprep.subr.bf16.mxu1 %v5552_v49  ;;  %v10150_v3 = vld [vmem:[#allocation19_spill] sm:$0xff] }
 0xf90   :  { %3756 = vmatmul.mubr.bf16.vlgmr.msra.gmra.mrb[84].mxu0 %v8456_v46  ;;  %3797 = vmatmul.mubr.bf16.vlgmr.msra.gmra.mrb[84].mxu1 %v8456_v46  ;;  %v5559_v46 = vld [vmem:[#allocation9 + $0x40] ss:$16 sps:$4 sm:$0xff]  }
 0xf91   :  { %3873 = vmatprep.mubr.bf16.mxu0 %v8665_v50  ;;  %3914 = vmatprep.mubr.bf16.mxu1 %v8665_v50  ;;  %v10144_v50 = vld [vmem:[#allocation53_spill] sm:$0xff] }
 0xf92   :  { %3842 = vmatpush1.bf16.msra.mxu0 %v5553_v38  ;;  %3883 = vmatpush1.bf16.msra.mxu1 %v5554_v35 }
 0xf93   :  { %3843 = vmatprep.subr.bf16.mxu0 %v5555_v24  ;;  %3884 = vmatprep.subr.bf16.mxu1 %v5556_v9 }
 0xf96   :  { %3844 = vmatpush1.bf16.msra.mxu0 %v5557_v61  ;;  %3885 = vmatpush1.bf16.msra.mxu1 %v8248_v33  ;;  %v10118_v33 = vld [vmem:[#allocation26_spill] sm:$0xff] }
 0xf97   :  { %3845 = vmatprep.subr.bf16.mxu0 %v5558_v4  ;;  %3886 = vmatprep.subr.bf16.mxu1 %v8252_v37  ;;  %v10119_v37 = vld [vmem:[#allocation27_spill] sm:$0xff] }
 0xf9a   :  { %3846 = vmatpush1.bf16.msra.mxu0 %v5559_v46  ;;  %3887 = vmatpush1.bf16.msra.mxu1 %v8256_v59  ;;  %v10120_v59 = vld [vmem:[#allocation28_spill] sm:$0xff] }
 0xf9b   :  { %3847 = vmatprep.subr.bf16.mxu0 %v8259_v15  ;;  %3888 = vmatprep.subr.bf16.mxu1 %v8262_v28  ;;  %v10121_v15 = vld [vmem:[#allocation29_spill] sm:$0xff]  ;;  %v10122_v28 = vld [vmem:[#allocation30_spill] sm:$0xff]  ;;  %v10151_v46 = vld [vmem:[#allocation20_spill] sm:$0xff] }
 0xf9e   :  { %3848 = vmatpush1.bf16.msra.mxu0 %v8265_v22  ;;  %3889 = vmatpush1.bf16.msra.mxu1 %v8268_v36  ;;  %v10123_v22 = vld [vmem:[#allocation31_spill] sm:$0xff]  ;;  %v10124_v36 = vld [vmem:[#allocation32_spill] sm:$0xff] }
 0xf9f   :  { %3849 = vmatprep.subr.bf16.mxu0 %v8271_v27  ;;  %3890 = vmatprep.subr.bf16.mxu1 %v8274_v8  ;;  %v10125_v27 = vld [vmem:[#allocation33_spill] sm:$0xff]  ;;  %v10126_v8 = vld [vmem:[#allocation34_spill] sm:$0xff] }
 0xfa2   :  { %3850 = vmatpush1.bf16.msra.mxu0 %v8277_v14  ;;  %3891 = vmatpush1.bf16.msra.mxu1 %v8280_v48  ;;  %v10127_v14 = vld [vmem:[#allocation35_spill] sm:$0xff]  ;;  %v10128_v48 = vld [vmem:[#allocation36_spill] sm:$0xff] }
 0xfa3   :  { %3851 = vmatprep.subr.bf16.mxu0 %v8283_v42  ;;  %3892 = vmatprep.subr.bf16.mxu1 %v8286_v6  ;;  %v10129_v42 = vld [vmem:[#allocation38_spill] sm:$0xff]  ;;  %v10130_v6 = vld [vmem:[#allocation40_spill] sm:$0xff] }
 0xfa6   :  { %3852 = vmatpush1.bf16.msra.mxu0 %v8289_v19  ;;  %3893 = vmatpush1.bf16.msra.mxu1 %v8292_v7  ;;  %v10131_v19 = vld [vmem:[#allocation39_spill] sm:$0xff]  ;;  %v10132_v7 = vld [vmem:[#allocation41_spill] sm:$0xff] }
 0xfa7   :  { %3853 = vmatprep.subr.bf16.mxu0 %v8295_v12  ;;  %3894 = vmatprep.subr.bf16.mxu1 %v8298_v60  ;;  %v10133_v12 = vld [vmem:[#allocation42_spill] sm:$0xff]  ;;  %v10134_v60 = vld [vmem:[#allocation43_spill] sm:$0xff] }
 0xfaa   :  { %3854 = vmatpush1.bf16.msra.mxu0 %v8301_v31  ;;  %3895 = vmatpush1.bf16.msra.mxu1 %v8304_v18  ;;  %v10135_v31 = vld [vmem:[#allocation44_spill] sm:$0xff]  ;;  %v10136_v18 = vld [vmem:[#allocation45_spill] sm:$0xff] }
 0xfab   :  { %3855 = vmatprep.subr.bf16.mxu0 %v8307_v63  ;;  %3896 = vmatprep.subr.bf16.mxu1 %v8310_v13  ;;  %v10137_v63 = vld [vmem:[#allocation46_spill] sm:$0xff]  ;;  %v10138_v13 = vld [vmem:[#allocation47_spill] sm:$0xff] }
 0xfae   :  { %3856 = vmatpush1.bf16.msra.mxu0 %v8313_v41  ;;  %3897 = vmatpush1.bf16.msra.mxu1 %v8316_v29  ;;  %v10139_v41 = vld [vmem:[#allocation48_spill] sm:$0xff]  ;;  %v10140_v29 = vld [vmem:[#allocation49_spill] sm:$0xff] }
 0xfaf   :  { %3857 = vmatprep.subr.bf16.mxu0 %v8319_v44  ;;  %3898 = vmatprep.subr.bf16.mxu1 %v8322_v2  ;;  %v10141_v44 = vld [vmem:[#allocation50_spill] sm:$0xff]  ;;  %v10142_v2 = vld [vmem:[#allocation51_spill] sm:$0xff] }
 0xfb2   :  { %3858 = vmatpush1.bf16.msra.mxu0 %v8325_v40  ;;  %3899 = vmatpush1.bf16.msra.mxu1 %v10118_v33  ;;  %v10143_v40 = vld [vmem:[#allocation52_spill] sm:$0xff] }
 0xfb3   :  { %3859 = vmatprep.subr.bf16.mxu0 %v10119_v37  ;;  %3900 = vmatprep.subr.bf16.mxu1 %v10120_v59  ;;  %v10152_v59 = vld [vmem:[#allocation21_spill] sm:$0xff] }
 0xfb6   :  { %3860 = vmatpush1.bf16.msra.mxu0 %v10121_v15  ;;  %3901 = vmatpush1.bf16.msra.mxu1 %v10122_v28 }
 0xfb7   :  { %3861 = vmatprep.subr.bf16.mxu0 %v10123_v22  ;;  %3902 = vmatprep.subr.bf16.mxu1 %v10124_v36 }
 0xfba   :  { %3862 = vmatpush1.bf16.msra.mxu0 %v10125_v27  ;;  %3903 = vmatpush1.bf16.msra.mxu1 %v10126_v8  ;;  %v3713_v8 = vld [vmem:[#allocation4 + $0x70] sm:$0xff] }
 0xfbb   :  { %3863 = vmatprep.subr.bf16.mxu0 %v10127_v14  ;;  %3904 = vmatprep.subr.bf16.mxu1 %v10128_v48  ;;  %v3715_v14 = vunpack.c.l.bf16 %v3713_v8 }
 0xfbe   :  { %3864 = vmatpush1.bf16.msra.mxu0 %v10129_v42  ;;  %3905 = vmatpush1.bf16.msra.mxu1 %v10130_v6  ;;  %v3716_v42 = vunpack.c.h.bf16 %v3713_v8 }
 0xfbf   :  { %3865 = vmatprep.subr.bf16.mxu0 %v10131_v19  ;;  %3906 = vmatprep.subr.bf16.mxu1 %v10132_v7 }
 0xfc2   :  { %3866 = vmatpush1.bf16.msra.mxu0 %v10133_v12  ;;  %3907 = vmatpush1.bf16.msra.mxu1 %v10134_v60 }
 0xfc3   :  { %3867 = vmatprep.subr.bf16.mxu0 %v10135_v31  ;;  %3908 = vmatprep.subr.bf16.mxu1 %v10136_v18  ;;  %v3719_v31 = vadd.f32 %v3715_v14, %v9468_v1  ;;  %v3714_v18 = vld [vmem:[#allocation4 + $0x78] sm:$0xff] }
 0xfc6   :  { %3868 = vmatpush1.bf16.msra.mxu0 %v10137_v63  ;;  %3909 = vmatpush1.bf16.msra.mxu1 %v10138_v13  ;;  %v3720_v13 = vadd.f32 %v3716_v42, %v9829_v34 }
 0xfc7   :  { %3869 = vmatprep.subr.bf16.mxu0 %v10139_v41  ;;  %3910 = vmatprep.subr.bf16.mxu1 %v10140_v29 }
 0xfca   :  { %3870 = vmatpush1.bf16.msra.mxu0 %v10141_v44  ;;  %3911 = vmatpush1.bf16.msra.mxu1 %v10142_v2  ;;  %v3718_v2 = vunpack.c.h.bf16 %v3714_v18 }
 0xfcb   :  { %3871 = vmatprep.subr.bf16.mxu0 %v10143_v40  ;;  %3912 = vmatprep.subr.bf16.mxu1 %v10144_v50 }
 0xfce   :  { %3872 = vmatpush1.bf16.msra.mxu0 %v10145_v20  ;;  %3913 = vmatpush1.bf16.msra.mxu1 %v10146_v26 }
 0xfcf   :  { %3955 = vmatprep.subr.bf16.mxu0 %v10147_v32  ;;  %3996 = vmatprep.subr.bf16.mxu1 %v10148_v55 }
0x1043   :  { %v3621_v23 = vpop.f32.mrb[80].mxu0  ;;  %v3662_v56 = vpop.f32.mrb[80].mxu1 }
0x1044   :  { %v3669_v5 = vadd.f32 %v3621_v23, %v10149_v53  ;;  %v3623_v21 = vpop.f32.mrb[81].mxu0  ;;  %v3664_v39 = vpop.f32.mrb[81].mxu1  ;;  %v3671_v15 = vadd.f32 %v3662_v56, %v10152_v59 }
0x1045   :  { %v3670_v49 = vadd.f32 %v3623_v21, %v10150_v3  ;;  %v3625_v38 = vpop.f32.mrb[82].mxu0  ;;  %v3666_v35 = vpop.f32.mrb[82].mxu1  ;;  %v3672_v33 = vadd.f32 %v3664_v39, %v10151_v46  ;;  %v3722_v21 = vadd.f32 %v3718_v2, %v6040_v43  ;;  %v3717_v39 = vunpack.c.l.bf16 %v3714_v18  ;;  %v10160_v2 = vld [vmem:[#allocation63_spill] sm:$0xff] }
0x1046   :  { %v4335_v24 = vmul.f32 -1.442695, %v3669_v5  ;;  %v3626_v9 = vpop.f32.mrb[83].mxu0  ;;  %v3667_v61 = vpop.f32.mrb[83].mxu1 }
0x1047   :  { %v4336_v4 = vmul.f32 -1.442695, %v3670_v49  ;;  %v4337_v37 = vmul.f32 -1.442695, %v3672_v33  ;;  %v3721_v38 = vadd.f32 %v3717_v39, %v9472_v30  ;;  %v10176_v39 = vld [vmem:[#allocation79_spill] sm:$0xff] }
0x1048   :  { %4974 = vpow2.f32 %v4335_v24  ;;  %v8746_v24 = vpop.permute.xlu1 %4410 }
0x1049   :  { %4976 = vpow2.f32 %v4336_v4  ;;  %v4412_v33 = vunpack.i.l.bf16 %v8746_v24 }
0x104a   :  { %4978 = vpow2.f32 %v4337_v37 }
0x104b   :  { %4980 = vtanh.f32 %v3671_v15 }
0x1052   :  { %v4975_v28 = vpop.eup %4974 }
0x1053   :  { %v4977_v22 = vpop.eup %4976  ;;  %v3682_v36 = vadd.f32 1.0, %v4975_v28 }
0x1054   :  { %v3683_v27 = vadd.f32 1.0, %v4977_v22  ;;  %v4979_v48 = vpop.eup %4978 }
0x1055   :  { %4982 = vrcp.f32 %v3682_v36  ;;  %v4981_v6 = vpop.eup %4980  ;;  %v3684_v60 = vadd.f32 1.0, %v4979_v48 }
0x1056   :  { %4984 = vrcp.f32 %v3683_v27 }
0x1057   :  { %4986 = vrcp.f32 %v3684_v60  ;;  %v10153_v60 = vld [vmem:[#allocation25_spill] sm:$0xff] }
0x1058   :  { %vm3837_vm0 = vcmp.eq.s32.totalorder %v10153_v60, 1 }
0x105f   :  { %v4983_v19 = vpop.eup %4982 }
0x1060   :  { %v4985_v7 = vpop.eup %4984  ;;  %v3693_v12 = vmul.f32 %v4983_v19, %v4981_v6 }
0x1061   :  { %v3692_v63 = vmul.f32 %v4985_v7, %v8431_v62  ;;  %v4987_v35 = vpop.eup %4986 }
0x1063   :  { %v3694_v41 = vadd.f32 %v3693_v12, %v3692_v63  ;;  %v3757_v29 = vpop.f32.mrb[84].mxu0  ;;  %v3798_v44 = vpop.f32.mrb[84].mxu1 }
0x1064   :  { %v3805_v40 = vadd.f32 %v3757_v29, %v3719_v31  ;;  %v3759_v50 = vpop.f32.mrb[85].mxu0  ;;  %v3800_v20 = vpop.f32.mrb[85].mxu1  ;;  %v3807_v4 = vadd.f32 %v3798_v44, %v3721_v38  ;;  %v10158_v29 = vld [vmem:[#allocation61_spill] sm:$0xff]  ;;  %v10159_v44 = vld [vmem:[#allocation62_spill] sm:$0xff] }
0x1065   :  { %4988 = vtanh.f32 %v3694_v41  ;;  %v3806_v26 = vadd.f32 %v3759_v50, %v3720_v13  ;;  %v3761_v32 = vpop.f32.mrb[86].mxu0  ;;  %v3802_v55 = vpop.f32.mrb[86].mxu1  ;;  %v8742_v1 = vsel %vm3469_vm15, %v3694_v41, %v8431_v62  ;;  %v3808_v49 = vadd.f32 %v3800_v20, %v3722_v21  ;;  %v10155_v13 = vld [vmem:[#allocation58_spill] sm:$0xff]  ;;  %v10157_v41 = vld [vmem:[#allocation60_spill] sm:$0xff]  ;;  %v10166_v50 = vld [vmem:[#allocation69_spill] sm:$0xff] }
0x1066   :  { %v4340_v23 = vmul.f32 -1.442695, %v3805_v40  ;;  %v3762_v56 = vpop.f32.mrb[87].mxu0  ;;  %v3803_v34 = vpop.f32.mrb[87].mxu1  ;;  %v10165_v40 = vld [vmem:[#allocation68_spill] sm:$0xff]  ;;  %v10167_v20 = vld [vmem:[#allocation70_spill] sm:$0xff] }
0x1067   :  { %v4341_v5 = vmul.f32 -1.442695, %v3806_v26  ;;  %v4342_v61 = vmul.f32 -1.442695, %v3808_v49  ;;  %v10168_v26 = vld [vmem:[#allocation71_spill] sm:$0xff]  ;;  %v10169_v32 = vld [vmem:[#allocation72_spill] sm:$0xff] }
0x1068   :  { %4990 = vpow2.f32 %v4340_v23  ;;  %v10170_v55 = vld [vmem:[#allocation73_spill] sm:$0xff]  ;;  %v10171_v23 = vld [vmem:[#allocation74_spill] sm:$0xff]  ;;  %v10172_v56 = vld [vmem:[#allocation75_spill] sm:$0xff] }
0x1069   :  { %4992 = vpow2.f32 %v4341_v5  ;;  %v10173_v34 = vld [vmem:[#allocation76_spill] sm:$0xff]  ;;  %v10174_v5 = vld [vmem:[#allocation77_spill] sm:$0xff]  ;;  %v10175_v21 = vld [vmem:[#allocation78_spill] sm:$0xff] }
0x106a   :  { %4994 = vpow2.f32 %v4342_v61  ;;  %v10177_v49 = vld [vmem:[#allocation80_spill] sm:$0xff]  ;;  %v10178_v38 = vld [vmem:[#allocation81_spill] sm:$0xff] }
0x106b   :  { %4996 = vtanh.f32 %v3807_v4  ;;  %v10181_v61 = vld [vmem:[#allocation84_spill] sm:$0xff]  ;;  %v10182_v4 = vld [vmem:[#allocation85_spill] sm:$0xff] }
0x106f   :  { %v4989_v9 = vpop.eup %4988 }
0x1070   :  { %v3696_v62 = vmul.f32 %v4989_v9, %v4987_v35  ;;  %v10179_v35 = vld [vmem:[#allocation82_spill] sm:$0xff]  ;;  %v10180_v9 = vld [vmem:[#allocation83_spill] sm:$0xff] }
0x1072   :  { %v4991_v37 = vpop.eup %4990  ;;  %v8752_v43 = vsel %vm3469_vm15, %v3696_v62, %v8439_v45  ;;  %v10183_v62 = vld [vmem:[#allocation86_spill] sm:$0xff] }
0x1073   :  { %v4993_v15 = vpop.eup %4992  ;;  %v3818_v28 = vadd.f32 1.0, %v4991_v37  ;;  %v3705_v30 = vmul.f32 %v4412_v33, %v8752_v43  ;;  %v3954_v63 = vpack.c.bf16 %v8752_v43, %v8752_v43  ;;  %v10184_v33 = vld [vmem:[#allocation87_spill] sm:$0xff]  ;;  %v10185_v37 = vld [vmem:[#allocation88_spill] sm:$0xff] }
0x1074   :  { %v3819_v22 = vadd.f32 1.0, %v4993_v15  ;;  %v4995_v27 = vpop.eup %4994  ;;  %v10186_v15 = vld [vmem:[#allocation89_spill] sm:$0xff] }
0x1075   :  { %4998 = vrcp.f32 %v3818_v28  ;;  %v3706_v36 = vpack.c.bf16 %v3705_v30, %v3705_v30  ;;  %v4997_v8 = vpop.eup %4996  ;;  %v3820_v6 = vadd.f32 1.0, %v4995_v27  ;;  %v10187_v28 = vld [vmem:[#allocation90_spill] sm:$0xff]  ;;  %v10188_v30 = vld [vmem:[#allocation91_spill] sm:$0xff] }
0x1076   :  { %5000 = vrcp.f32 %v3819_v22  ;;  %v10189_v22 = vld [vmem:[#allocation92_spill] sm:$0xff]  ;;  %v10191_v27 = vld [vmem:[#allocation94_spill] sm:$0xff] }
0x1077   :  { %3708 = vst [vmem:[#allocation12 + $0x18] sm:$0xf] %v3706_v36  ;;  %5002 = vrcp.f32 %v3820_v6  ;;  %v10190_v36 = vld [vmem:[#allocation93_spill] sm:$0xff]  ;;  %v10196_v6 = vld [vmem:[#allocation99_spill] sm:$0xff] }
0x107f   :  { %v4999_v14 = vpop.eup %4998 }
0x1080   :  { %v5001_v48 = vpop.eup %5000  ;;  %v3829_v42 = vmul.f32 %v4999_v14, %v4997_v8  ;;  %v10192_v8 = vld [vmem:[#allocation95_spill] sm:$0xff]  ;;  %v10193_v14 = vld [vmem:[#allocation96_spill] sm:$0xff] }
0x1081   :  { %v3828_v45 = vmul.f32 %v5001_v48, %v8447_v57  ;;  %v5003_v19 = vpop.eup %5002  ;;  %v10154_v57 = vld [vmem:[#allocation24_spill] sm:$0xff]  ;;  %v10194_v48 = vld [vmem:[#allocation97_spill] sm:$0xff] }
0x1083   :  { %v3830_v17 = vadd.f32 %v3829_v42, %v3828_v45  ;;  %v10195_v42 = vld [vmem:[#allocation98_spill] sm:$0xff]  ;;  %v10197_v45 = vld [vmem:[#allocation100_spill] sm:$0xff] }
0x1085   :  { %5004 = vtanh.f32 %v3830_v17  ;;  %v10198_v17 = vld [vmem:[#allocation101_spill] sm:$0xff] }
0x108f   :  { %v5005_v7 = vpop.eup %5004 }
0x1090   :  { %v3832_v12 = vmul.f32 %v5005_v7, %v5003_v19  ;;  %v10199_v19 = vld [vmem:[#allocation102_spill] sm:$0xff]  ;;  %v10200_v7 = vld [vmem:[#allocation103_spill] sm:$0xff] }
0x1092   :  { %v3838_v31 = vsel %vm3837_vm0, %v3832_v12, %v8452_v51  ;;  %v10156_v51 = vld [vmem:[#allocation59_spill] sm:$0xff]  ;;  %v10201_v12 = vld [vmem:[#allocation104_spill] sm:$0xff] }
0x1093   :  { %v3840_v18 = vpack.c.bf16 %v3838_v31, %v3838_v31  ;;  %v10202_v31 = vld [vmem:[#allocation105_spill] sm:$0xff] }
0x1095   :  { %3874 = vmatmul.mubr.bf16.vlgmr.msra.gmra.mrb[88].mxu0 %v3840_v18  ;;  %3915 = vmatmul.mubr.bf16.vlgmr.msra.gmra.mrb[88].mxu1 %v3840_v18  ;;  %v10203_v18 = vld [vmem:[#allocation17_spill] sm:$0xff] }
0x1096   :  { %3987 = vmatprep.mubr.bf16.mxu0 %v3954_v63  ;;  %4028 = vmatprep.mubr.bf16.mxu1 %v3954_v63  ;;  %v10204_v63 = vld [vmem:[#allocation107_spill] sm:$0xff] }
0x1097   :  { %3956 = vmatpush1.bf16.msra.mxu0 %v8462_v11  ;;  %3997 = vmatpush1.bf16.msra.mxu1 %v8465_v10  ;;  %v10161_v11 = vld [vmem:[#allocation64_spill] sm:$0xff]  ;;  %v10162_v10 = vld [vmem:[#allocation65_spill] sm:$0xff] }
0x1098   :  { %3957 = vmatprep.subr.bf16.mxu0 %v8468_v54  ;;  %3998 = vmatprep.subr.bf16.mxu1 %v8471_v58  ;;  %v10163_v54 = vld [vmem:[#allocation66_spill] sm:$0xff]  ;;  %v10164_v58 = vld [vmem:[#allocation67_spill] sm:$0xff] }
0x109b   :  { %3958 = vmatpush1.bf16.msra.mxu0 %v10154_v57  ;;  %3999 = vmatpush1.bf16.msra.mxu1 %v10155_v13  ;;  %v10205_v57 = vld [vmem:[#allocation108_spill] sm:$0xff]  ;;  %v10206_v13 = vld [vmem:[#allocation109_spill] sm:$0xff] }
0x109c   :  { %3959 = vmatprep.subr.bf16.mxu0 %v10156_v51  ;;  %4000 = vmatprep.subr.bf16.mxu1 %v10157_v41  ;;  %v10207_v51 = vld [vmem:[#allocation110_spill] sm:$0xff]  ;;  %v10208_v41 = vld [vmem:[#allocation111_spill] sm:$0xff] }
0x109f   :  { %3960 = vmatpush1.bf16.msra.mxu0 %v10158_v29  ;;  %4001 = vmatpush1.bf16.msra.mxu1 %v10159_v44  ;;  %v10209_v29 = vld [vmem:[#allocation112_spill] sm:$0xff]  ;;  %v10210_v44 = vld [vmem:[#allocation113_spill] sm:$0xff] }
0x10a0   :  { %3961 = vmatprep.subr.bf16.mxu0 %v10160_v2  ;;  %4002 = vmatprep.subr.bf16.mxu1 %v10161_v11  ;;  %v10211_v2 = vld [vmem:[#allocation114_spill] sm:$0xff] }
0x10a3   :  { %3962 = vmatpush1.bf16.msra.mxu0 %v10162_v10  ;;  %4003 = vmatpush1.bf16.msra.mxu1 %v10163_v54  ;;  %v10212_v54 = vld [vmem:[#allocation106_spill] sm:$0xff] }
0x10a4   :  { %3963 = vmatprep.subr.bf16.mxu0 %v10164_v58  ;;  %4004 = vmatprep.subr.bf16.mxu1 %v10165_v40 }
0x10a7   :  { %3964 = vmatpush1.bf16.msra.mxu0 %v10166_v50  ;;  %4005 = vmatpush1.bf16.msra.mxu1 %v10167_v20 }
0x10a8   :  { %3965 = vmatprep.subr.bf16.mxu0 %v10168_v26  ;;  %4006 = vmatprep.subr.bf16.mxu1 %v10169_v32 }
0x10ab   :  { %3966 = vmatpush1.bf16.msra.mxu0 %v10170_v55  ;;  %4007 = vmatpush1.bf16.msra.mxu1 %v10171_v23 }
0x10ac   :  { %3967 = vmatprep.subr.bf16.mxu0 %v10172_v56  ;;  %4008 = vmatprep.subr.bf16.mxu1 %v10173_v34 }
0x10af   :  { %3968 = vmatpush1.bf16.msra.mxu0 %v10174_v5  ;;  %4009 = vmatpush1.bf16.msra.mxu1 %v10175_v21 }
0x10b0   :  { %3969 = vmatprep.subr.bf16.mxu0 %v10176_v39  ;;  %4010 = vmatprep.subr.bf16.mxu1 %v10177_v49 }
0x10b3   :  { %3970 = vmatpush1.bf16.msra.mxu0 %v10178_v38  ;;  %4011 = vmatpush1.bf16.msra.mxu1 %v10179_v35 }
0x10b4   :  { %3971 = vmatprep.subr.bf16.mxu0 %v10180_v9  ;;  %4012 = vmatprep.subr.bf16.mxu1 %v10181_v61 }
0x10b7   :  { %3972 = vmatpush1.bf16.msra.mxu0 %v10182_v4  ;;  %4013 = vmatpush1.bf16.msra.mxu1 %v10183_v62 }
0x10b8   :  { %3973 = vmatprep.subr.bf16.mxu0 %v10184_v33  ;;  %4014 = vmatprep.subr.bf16.mxu1 %v10185_v37 }
0x10bb   :  { %3974 = vmatpush1.bf16.msra.mxu0 %v10186_v15  ;;  %4015 = vmatpush1.bf16.msra.mxu1 %v10187_v28 }
0x10bc   :  { %3975 = vmatprep.subr.bf16.mxu0 %v10188_v30  ;;  %4016 = vmatprep.subr.bf16.mxu1 %v10189_v22 }
0x10bf   :  { %3976 = vmatpush1.bf16.msra.mxu0 %v10190_v36  ;;  %4017 = vmatpush1.bf16.msra.mxu1 %v10191_v27 }
0x10c0   :  { %3977 = vmatprep.subr.bf16.mxu0 %v10192_v8  ;;  %4018 = vmatprep.subr.bf16.mxu1 %v10193_v14 }
0x10c3   :  { %3978 = vmatpush1.bf16.msra.mxu0 %v10194_v48  ;;  %4019 = vmatpush1.bf16.msra.mxu1 %v10195_v42 }
0x10c4   :  { %3979 = vmatprep.subr.bf16.mxu0 %v10196_v6  ;;  %4020 = vmatprep.subr.bf16.mxu1 %v10197_v45 }
0x10c7   :  { %3980 = vmatpush1.bf16.msra.mxu0 %v10198_v17  ;;  %4021 = vmatpush1.bf16.msra.mxu1 %v10199_v19 }
0x10c8   :  { %3981 = vmatprep.subr.bf16.mxu0 %v10200_v7  ;;  %4022 = vmatprep.subr.bf16.mxu1 %v10201_v12 }
0x10cb   :  { %3982 = vmatpush1.bf16.msra.mxu0 %v10202_v31  ;;  %4023 = vmatpush1.bf16.msra.mxu1 %v10203_v18 }
0x10cc   :  { %3983 = vmatprep.subr.bf16.mxu0 %v10204_v63  ;;  %4024 = vmatprep.subr.bf16.mxu1 %v10205_v57 }
0x10cf   :  { %3984 = vmatpush1.bf16.msra.mxu0 %v10206_v13  ;;  %4025 = vmatpush1.bf16.msra.mxu1 %v10207_v51 }
0x10d0   :  { %3985 = vmatprep.subr.bf16.mxu0 %v10208_v41  ;;  %4026 = vmatprep.subr.bf16.mxu1 %v10209_v29 }
0x10d3   :  { %3986 = vmatpush1.bf16.msra.mxu0 %v10210_v44  ;;  %4027 = vmatpush1.bf16.msra.mxu1 %v10211_v2 }
0x1168   :  { %v3875_v11 = vpop.f32.mrb[88].mxu0  ;;  %v3916_v10 = vpop.f32.mrb[88].mxu1 }
0x1169   :  { %v3923_v58 = vadd.f32 %v3875_v11, %v10212_v54  ;;  %v3877_v40 = vpop.f32.mrb[89].mxu0  ;;  %v3918_v50 = vpop.f32.mrb[89].mxu1  ;;  %v3925_v39 = vadd.f32 %v3916_v10, %v6284_v25 }
0x116a   :  { %v3924_v20 = vadd.f32 %v3877_v40, %v6275_v52  ;;  %v3879_v26 = vpop.f32.mrb[90].mxu0  ;;  %v3920_v32 = vpop.f32.mrb[90].mxu1  ;;  %v3926_v5 = vadd.f32 %v3918_v50, %v9543_v47 }
0x116b   :  { %v4343_v55 = vmul.f32 -1.442695, %v3923_v58  ;;  %v3880_v23 = vpop.f32.mrb[91].mxu0  ;;  %v3921_v56 = vpop.f32.mrb[91].mxu1  ;;  %v4413_v58 = vunpack.i.h.bf16 %v8746_v24 }
0x116c   :  { %v4344_v34 = vmul.f32 -1.442695, %v3924_v20  ;;  %v4345_v21 = vmul.f32 -1.442695, %v3926_v5 }
0x116d   :  { %5006 = vpow2.f32 %v4343_v55 }
0x116e   :  { %5008 = vpow2.f32 %v4344_v34 }
0x116f   :  { %5010 = vpow2.f32 %v4345_v21 }
0x1170   :  { %5012 = vtanh.f32 %v3925_v39 }
0x1177   :  { %v5007_v49 = vpop.eup %5006 }
0x1178   :  { %v5009_v38 = vpop.eup %5008  ;;  %v3936_v35 = vadd.f32 1.0, %v5007_v49 }
0x1179   :  { %v3937_v9 = vadd.f32 1.0, %v5009_v38  ;;  %v5011_v52 = vpop.eup %5010 }
0x117a   :  { %5014 = vrcp.f32 %v3936_v35  ;;  %v5013_v61 = vpop.eup %5012  ;;  %v3938_v37 = vadd.f32 1.0, %v5011_v52 }
0x117b   :  { %5016 = vrcp.f32 %v3937_v9 }
0x117c   :  { %5018 = vrcp.f32 %v3938_v37 }
0x1184   :  { %v5015_v4 = vpop.eup %5014 }
0x1185   :  { %v5017_v62 = vpop.eup %5016  ;;  %v3947_v33 = vmul.f32 %v5015_v4, %v5013_v61 }
0x1186   :  { %v3946_v15 = vmul.f32 %v5017_v62, %v8656_v16  ;;  %v5019_v25 = vpop.eup %5018 }
0x1188   :  { %v3948_v47 = vadd.f32 %v3947_v33, %v3946_v15 }
0x118a   :  { %5020 = vtanh.f32 %v3948_v47 }
0x1194   :  { %v5021_v28 = vpop.eup %5020 }
0x1195   :  { %v3950_v30 = vmul.f32 %v5021_v28, %v5019_v25 }
0x1197   :  { %v3951_v22 = vsel %vm3837_vm0, %v3950_v30, %v8661_v0 }
0x1198   :  { %v3953_v36 = vpack.c.bf16 %v3951_v22, %v3951_v22 }
0x119a   :  { %3988 = vmatmul.mubr.bf16.vlgmr.msra.gmra.mrb[92].mxu0 %v3953_v36  ;;  %4029 = vmatmul.mubr.bf16.vlgmr.msra.gmra.mrb[92].mxu1 %v3953_v36 }
0x126d   :  { %v3989_v27 = vpop.f32.mrb[92].mxu0  ;;  %v4030_v8 = vpop.f32.mrb[92].mxu1 }
0x126e   :  { %v4037_v14 = vadd.f32 %v3989_v27, %v10149_v53  ;;  %v3991_v48 = vpop.f32.mrb[93].mxu0  ;;  %v4032_v42 = vpop.f32.mrb[93].mxu1  ;;  %v4039_v18 = vadd.f32 %v4030_v8, %v10152_v59 }
0x126f   :  { %v4038_v16 = vadd.f32 %v3991_v48, %v10150_v3  ;;  %v3993_v6 = vpop.f32.mrb[94].mxu0  ;;  %v4034_v45 = vpop.f32.mrb[94].mxu1  ;;  %v4040_v0 = vadd.f32 %v4032_v42, %v10151_v46 }
0x1270   :  { %v4346_v17 = vmul.f32 -1.442695, %v4037_v14  ;;  %v3994_v19 = vpop.f32.mrb[95].mxu0  ;;  %v4035_v7 = vpop.f32.mrb[95].mxu1 }
0x1271   :  { %v4347_v12 = vmul.f32 -1.442695, %v4038_v16  ;;  %v4348_v31 = vmul.f32 -1.442695, %v4040_v0 }
0x1272   :  { %5022 = vpow2.f32 %v4346_v17 }
0x1273   :  { %5024 = vpow2.f32 %v4347_v12 }
0x1274   :  { %5026 = vpow2.f32 %v4348_v31 }
0x1275   :  { %5028 = vtanh.f32 %v4039_v18 }
0x127c   :  { %v5023_v63 = vpop.eup %5022 }
0x127d   :  { %v5025_v57 = vpop.eup %5024  ;;  %v4050_v53 = vadd.f32 1.0, %v5023_v63 }
0x127e   :  { %v4051_v13 = vadd.f32 1.0, %v5025_v57  ;;  %v5027_v3 = vpop.eup %5026 }
0x127f   :  { %5030 = vrcp.f32 %v4050_v53  ;;  %v5029_v51 = vpop.eup %5028  ;;  %v4052_v2 = vadd.f32 1.0, %v5027_v3 }
0x1280   :  { %5032 = vrcp.f32 %v4051_v13 }
0x1281   :  { %5034 = vrcp.f32 %v4052_v2 }
0x1289   :  { %v5031_v41 = vpop.eup %5030 }
0x128a   :  { %v5033_v29 = vpop.eup %5032  ;;  %v4061_v44 = vmul.f32 %v5031_v41, %v5029_v51 }
0x128b   :  { %v4060_v11 = vmul.f32 %v5033_v29, %v8742_v1  ;;  %v5035_v59 = vpop.eup %5034 }
0x128d   :  { %v4062_v46 = vadd.f32 %v4061_v44, %v4060_v11 }
0x128f   :  { %5036 = vtanh.f32 %v4062_v46 }
0x1299   :  { %v5037_v10 = vpop.eup %5036 }
0x129a   :  { %v4064_v54 = vmul.f32 %v5037_v10, %v5035_v59 }
0x129c   :  { %v4065_v40 = vsel %vm3837_vm0, %v4064_v54, %v8752_v43 }
0x129d   :  { %v4073_v50 = vmul.f32 %v4413_v58, %v4065_v40 }
0x129f   :  { %v4074_v20 = vpack.c.bf16 %v4073_v50, %v4073_v50 }
0x12a1   :  { %4076 = vst [vmem:[#allocation12 + $0x1c] sm:$0xf] %v4074_v20 }
0x12a2   :  { %5659 = shalt.err (!%p5656_p8)
}
0x12a3   :  { %s5660_s20 = scalar_lea.hbm %s8861_s8, 512 }
0x12a4   :  { %p5661_p9 = scmp.ne.s32.totalorder %s8861_s8, %s5660_s20  ;;  %p5664_p10 = scmp.lt.u32.totalorder %s5660_s20, %s8861_s8 }
0x12a6   :  { %p5666_p11 = pnand %p5664_p10, %p5661_p9 }
0x12a8   :  { %5669 = shalt.err (!%p5666_p11)
}
0x12a9   :  { %s5688_s23 = smov 64   ;;  %s5689_s24 = smov 4  }
0x12aa   :  { %4094 = dma.vmem_to_hbm [thread:$0]  %s4089_s14, 512, %s8861_s8, [#allocation6], %s5688_s23, %s5688_s23, %s5689_s24  }
0x12ab   :  { %5676 = dma.done.wait [#allocation6], 512  }
0x12ac   :  { %5677 = vsyncadd [#allocation6], 4294966784 }
0x12ad   :  { %4098 = vsyncpa [#allocation5], 1 }
0x12ae   :  { %4099 = vsyncpa [#allocation8], 1 }
0x12af   :  { %4100 = vsyncpa [#allocation11], 1 }
0x12b0   :  { %4101 = vsyncpa [#allocation6], 1 }

</bundles_post_ra>
